<compile_context>
chip_gen: v7x
topology: tpu7x:2x2x1
jax: 0.10.0
libtpu: 0.0.40
codegen_flags: <defaults>
</compile_context>

<pallas_src>
import math
import functools

import jax
import jax.numpy as jnp
from jax.experimental import pallas as pl
from jax.experimental.pallas import tpu as pltpu


_PARAM_ORDER = [
    "w_q1_t", "w_k1_t", "w_v1_t", "b_q1", "b_k1", "b_v1", "w_o1_t", "b_o1",
    "ln1_g", "ln1_b",
    "w_q2_t", "w_k2_t", "w_v2_t", "b_q2", "b_k2", "b_v2", "w_o2_t", "b_o2",
    "ln2_g", "ln2_b",
    "w_fc1_t", "b_fc1", "w_fc2_t", "b_fc2", "ln3_g", "ln3_b",
]


# ----------------------------- math helpers ---------------------------------
def _gelu_tanh(x):
    # tanh-form GELU: tanh runs on the EUP slot (VALU relief); max abs error vs
    # exact-erf GELU ~3e-4, far below bf16 resolution.
    c = math.sqrt(2.0 / math.pi)
    return 0.5 * x * (1.0 + jnp.tanh(c * (x + 0.044715 * x * x * x)))


def _layernorm(x, g, b, eps=1e-5):
    mu = jnp.mean(x, axis=-1, keepdims=True)
    var = jnp.mean(jnp.square(x - mu), axis=-1, keepdims=True)
    return (x - mu) * jax.lax.rsqrt(var + eps) * g + b


# ------------------------------ Pallas kernel --------------------------------
def _decoder_kernel(num_heads,
                    x_ref, e_ref,
                    wq1, wk1, wv1, bq1, bk1, bv1, wo1, bo1, g1, be1,
                    wq2, wk2, wv2, bq2, bk2, bv2, wo2, bo2, g2, be2,
                    wf1, bf1, wf2, bf2, g3, be3,
                    out_ref):
    B, S, E = x_ref.shape
    H = num_heads
    hd = E // H
    scale = 1.0 / math.sqrt(hd)
    N = B * S

    up = lambda r: r[...].astype(jnp.float32)      # biases / LN params only

    # Activations: bf16 operands for every MXU op; residual / LN math in f32.
    x_bf = x_ref[...].reshape(N, E)                # bf16 (N, E)
    e_bf = e_ref[...].reshape(N, E)                # bf16 (N, E)
    x_f = x_bf.astype(jnp.float32)

    # Causal additive mask, built once.
    row = jax.lax.broadcasted_iota(jnp.int32, (S, S), 0)
    col = jax.lax.broadcasted_iota(jnp.int32, (S, S), 1)
    causal = jnp.where(col > row, jnp.float32(-1e30), jnp.float32(0.0))

    def mha(q_src, k_src, v_src, wq, bq, wk, bk, wv, bv, wo, bo, mask):
        # q_src/k_src/v_src: (N, E) bf16.  Projections run on the full
        # flattened batch; weights stay bf16, accumulation is f32.
        q = jnp.dot(q_src, wq[...], preferred_element_type=jnp.float32) + bq
        k = jnp.dot(k_src, wk[...], preferred_element_type=jnp.float32) + bk
        v = jnp.dot(v_src, wv[...], preferred_element_type=jnp.float32) + bv
        q = (q * scale).astype(jnp.bfloat16)
        k = k.astype(jnp.bfloat16)
        v = v.astype(jnp.bfloat16)

        ctx_rows = []
        for b in range(B):                         # B is a small static int
            rows = slice(b * S, (b + 1) * S)
            qb, kb, vb = q[rows, :], k[rows, :], v[rows, :]
            # Batch all heads into one 3-D einsum (no per-head matmul loop).
            qh = jnp.stack([qb[:, h * hd:(h + 1) * hd] for h in range(H)], axis=0)
            kh = jnp.stack([kb[:, h * hd:(h + 1) * hd] for h in range(H)], axis=0)
            vh = jnp.stack([vb[:, h * hd:(h + 1) * hd] for h in range(H)], axis=0)
            s = jnp.einsum('hqd,hkd->hqk', qh, kh,
                           preferred_element_type=jnp.float32)      # (H,S,S)
            if mask is not None:
                s = s + mask                        # broadcast over heads
            s = s - jnp.max(s, axis=-1, keepdims=True)
            p = jnp.exp(s)
            p = p * pl.reciprocal(jnp.sum(p, axis=-1, keepdims=True), approx=True)
            cb = jnp.einsum('hqk,hkd->hqd', p.astype(jnp.bfloat16), vh,
                            preferred_element_type=jnp.float32)     # (H,S,hd)
            ctx_rows.append(jnp.concatenate([cb[h] for h in range(H)], axis=-1))
        ctx = jnp.concatenate(ctx_rows, axis=0)                      # (N, E) f32
        return jnp.dot(ctx.astype(jnp.bfloat16), wo[...],
                       preferred_element_type=jnp.float32) + bo

    # 1) masked self-attention + residual + LayerNorm
    m_atn = mha(x_bf, x_bf, x_bf,
                wq1, up(bq1), wk1, up(bk1), wv1, up(bv1), wo1, up(bo1), causal)
    out = _layernorm(m_atn + x_f, up(g1), up(be1))
    out_bf = out.astype(jnp.bfloat16)

    # 2) "cross" attention exactly as in the torch code: query=key=e_in, value=out
    atn = mha(e_bf, e_bf, out_bf,
              wq2, up(bq2), wk2, up(bk2), wv2, up(bv2), wo2, up(bo2), None)
    out1 = _layernorm(out + atn, up(g2), up(be2))
    out1_bf = out1.astype(jnp.bfloat16)

    # 3) FFN: Linear -> GELU -> Linear, residual + LayerNorm
    h = jnp.dot(out1_bf, wf1[...], preferred_element_type=jnp.float32) + up(bf1)
    h = _gelu_tanh(h)
    ffn = jnp.dot(h.astype(jnp.bfloat16), wf2[...],
                  preferred_element_type=jnp.float32) + up(bf2)
    out2 = _layernorm(out1 + ffn, up(g3), up(be3))

    out_ref[...] = out2.reshape(B, S, E).astype(out_ref.dtype)


def decoder_forward(x, e_in, params, num_heads, batch_block=None):
    B, S, E = x.shape
    assert E % num_heads == 0
    if batch_block is None:
        batch_block = B        # single grid step: weights DMA'd exactly once
    assert B % batch_block == 0
    ordered = [params[k] for k in _PARAM_ORDER]

    act_spec = pl.BlockSpec((batch_block, S, E), lambda i: (i, 0, 0))

    def full_spec(a):
        nd = a.ndim
        return pl.BlockSpec(a.shape, lambda i, _nd=nd: (0,) * _nd)

    # TODO(synk): for large S/E on v7x, tile the sequence dim and set
    # vmem_limit_bytes via pltpu.CompilerParams; unnecessary at these shapes.
    return pl.pallas_call(
        functools.partial(_decoder_kernel, num_heads),
        out_shape=jax.ShapeDtypeStruct((B, S, E), x.dtype),
        grid=(B // batch_block,),
        in_specs=[act_spec, act_spec] + [full_spec(a) for a in ordered],
        out_specs=pl.BlockSpec((batch_block, S, E), lambda i: (i, 0, 0)),
        compiler_params=pltpu.CompilerParams(dimension_semantics=("parallel",)),
    )(x, e_in, *ordered)


# ---------------------------- params / reference -----------------------------
def init_params(key, E, inner_scale=4, dtype=jnp.bfloat16):
    I = E * inner_scale
    ks = jax.random.split(key, 20)

    def w(k, shape, scale=0.05):
        return (jax.random.normal(k, shape, jnp.float32) * scale).astype(dtype)

    z = lambda shape: jnp.zeros(shape, dtype)
    o = lambda shape: jnp.ones(shape, dtype)
    return {
        "w_q1_t": w(ks[0], (E, E)), "w_k1_t": w(ks[1], (E, E)), "w_v1_t": w(ks[2], (E, E)),
        "b_q1": w(ks[3], (1, E)), "b_k1": w(ks[4], (1, E)), "b_v1": w(ks[5], (1, E)),
        "w_o1_t": w(ks[6], (E, E)), "b_o1": w(ks[7], (1, E)),
        "ln1_g": o((1, E)), "ln1_b": z((1, E)),
        "w_q2_t": w(ks[8], (E, E)), "w_k2_t": w(ks[9], (E, E)), "w_v2_t": w(ks[10], (E, E)),
        "b_q2": w(ks[11], (1, E)), "b_k2": w(ks[12], (1, E)), "b_v2": w(ks[13], (1, E)),
        "w_o2_t": w(ks[14], (E, E)), "b_o2": w(ks[15], (1, E)),
        "ln2_g": o((1, E)), "ln2_b": z((1, E)),
        "w_fc1_t": w(ks[16], (E, I)), "b_fc1": w(ks[17], (1, I)),
        "w_fc2_t": w(ks[18], (I, E)), "b_fc2": w(ks[19], (1, E)),
        "ln3_g": o((1, E)), "ln3_b": z((1, E)),
    }


def _mha_ref(q_in, k_in, v_in, wq, bq, wk, bk, wv, bv, wo, bo, mask, num_heads):
    E = q_in.shape[-1]
    hd = E // num_heads
    scale = 1.0 / math.sqrt(hd)
    q = q_in @ wq + bq
    k = k_in @ wk + bk
    v = v_in @ wv + bv
    heads = []
    for h in range(num_heads):
        sl = slice(h * hd, (h + 1) * hd)
        s = (q[:, sl] @ k[:, sl].T) * scale
        if mask is not None:
            s = s + mask
        p = jax.nn.softmax(s, axis=-1)
        heads.append(p @ v[:, sl])
    ctx = jnp.concatenate(heads, axis=-1)
    return ctx @ wo + bo


def decoder_reference(x, e_in, params, num_heads):
    p = {k: v.astype(jnp.float32) for k, v in params.items()}

    def single(xb, eb):
        S = xb.shape[0]
        mask = jnp.where(jnp.arange(S)[None, :] > jnp.arange(S)[:, None],
                         jnp.float32(-1e30), jnp.float32(0.0))
        m_atn = _mha_ref(xb, xb, xb, p["w_q1_t"], p["b_q1"], p["w_k1_t"], p["b_k1"],
                         p["w_v1_t"], p["b_v1"], p["w_o1_t"], p["b_o1"], mask, num_heads)
        out = _layernorm(m_atn + xb, p["ln1_g"], p["ln1_b"])
        atn = _mha_ref(eb, eb, out, p["w_q2_t"], p["b_q2"], p["w_k2_t"], p["b_k2"],
                       p["w_v2_t"], p["b_v2"], p["w_o2_t"], p["b_o2"], None, num_heads)
        out1 = _layernorm(out + atn, p["ln2_g"], p["ln2_b"])
        h = out1 @ p["w_fc1_t"] + p["b_fc1"]
        h = jax.nn.gelu(h, approximate=False)
        ffn = h @ p["w_fc2_t"] + p["b_fc2"]
        return _layernorm(out1 + ffn, p["ln3_g"], p["ln3_b"])

    return jax.vmap(single)(x.astype(jnp.float32), e_in.astype(jnp.float32))


# ---------------------------------- main -------------------------------------
if __name__ == "__main__":
    B, S, E, H = 2, 16, 128, 8   # E multiple of 128 -> lane-dense activations
    key = jax.random.PRNGKey(0)
    kx, ke, kp = jax.random.split(key, 3)

    x = jax.random.normal(kx, (B, S, E), jnp.float32).astype(jnp.bfloat16)
    e_in = jax.random.normal(ke, (B, S, E), jnp.float32).astype(jnp.bfloat16)
    params = init_params(kp, E)

    out = decoder_forward(x, e_in, params, H)
    out = jax.block_until_ready(out)

    ref = decoder_reference(x, e_in, params, H)
    assert out.shape == (B, S, E) and out.dtype == jnp.bfloat16
    max_err = jnp.max(jnp.abs(out.astype(jnp.float32) - ref))
    assert jnp.allclose(out.astype(jnp.float32), ref, atol=5e-2, rtol=5e-2), \
        f"Pallas kernel diverges from reference (max abs err {max_err})"
    print("KERNEL_OK")
</pallas_src>

<mosaic_0001>
module attributes {stable_mosaic.version = 11 : i64} {
  func.func @_decoder_kernel(%arg0: i32, %arg1: memref<2x16x128xbf16, #tpu.memory_space<vmem>>, %arg2: memref<2x16x128xbf16, #tpu.memory_space<vmem>>, %arg3: memref<128x128xbf16, #tpu.memory_space<vmem>>, %arg4: memref<128x128xbf16, #tpu.memory_space<vmem>>, %arg5: memref<128x128xbf16, #tpu.memory_space<vmem>>, %arg6: memref<1x128xbf16, #tpu.memory_space<vmem>>, %arg7: memref<1x128xbf16, #tpu.memory_space<vmem>>, %arg8: memref<1x128xbf16, #tpu.memory_space<vmem>>, %arg9: memref<128x128xbf16, #tpu.memory_space<vmem>>, %arg10: memref<1x128xbf16, #tpu.memory_space<vmem>>, %arg11: memref<1x128xbf16, #tpu.memory_space<vmem>>, %arg12: memref<1x128xbf16, #tpu.memory_space<vmem>>, %arg13: memref<128x128xbf16, #tpu.memory_space<vmem>>, %arg14: memref<128x128xbf16, #tpu.memory_space<vmem>>, %arg15: memref<128x128xbf16, #tpu.memory_space<vmem>>, %arg16: memref<1x128xbf16, #tpu.memory_space<vmem>>, %arg17: memref<1x128xbf16, #tpu.memory_space<vmem>>, %arg18: memref<1x128xbf16, #tpu.memory_space<vmem>>, %arg19: memref<128x128xbf16, #tpu.memory_space<vmem>>, %arg20: memref<1x128xbf16, #tpu.memory_space<vmem>>, %arg21: memref<1x128xbf16, #tpu.memory_space<vmem>>, %arg22: memref<1x128xbf16, #tpu.memory_space<vmem>>, %arg23: memref<128x512xbf16, #tpu.memory_space<vmem>>, %arg24: memref<1x512xbf16, #tpu.memory_space<vmem>>, %arg25: memref<512x128xbf16, #tpu.memory_space<vmem>>, %arg26: memref<1x128xbf16, #tpu.memory_space<vmem>>, %arg27: memref<1x128xbf16, #tpu.memory_space<vmem>>, %arg28: memref<1x128xbf16, #tpu.memory_space<vmem>>, %arg29: memref<2x16x128xbf16, #tpu.memory_space<vmem>>) attributes {dimension_semantics = [#tpu.dimension_semantics<parallel>], iteration_bounds = array<i64: 1>, scalar_prefetch = 0 : i64, scratch_operands = 0 : i64, tpu.core_type = #tpu.core_type<tc>, window_params = [{transform_indices = @transform_0, window_bounds = array<i64: 2, 16, 128>}, {transform_indices = @transform_1, window_bounds = array<i64: 2, 16, 128>}, {pipeline_mode = #tpu.pipeline_mode<synchronous>, transform_indices = @transform_2, window_bounds = array<i64: 128, 128>}, {pipeline_mode = #tpu.pipeline_mode<synchronous>, transform_indices = @transform_3, window_bounds = array<i64: 128, 128>}, {pipeline_mode = #tpu.pipeline_mode<synchronous>, transform_indices = @transform_4, window_bounds = array<i64: 128, 128>}, {pipeline_mode = #tpu.pipeline_mode<synchronous>, transform_indices = @transform_5, window_bounds = array<i64: 1, 128>}, {pipeline_mode = #tpu.pipeline_mode<synchronous>, transform_indices = @transform_6, window_bounds = array<i64: 1, 128>}, {pipeline_mode = #tpu.pipeline_mode<synchronous>, transform_indices = @transform_7, window_bounds = array<i64: 1, 128>}, {pipeline_mode = #tpu.pipeline_mode<synchronous>, transform_indices = @transform_8, window_bounds = array<i64: 128, 128>}, {pipeline_mode = #tpu.pipeline_mode<synchronous>, transform_indices = @transform_9, window_bounds = array<i64: 1, 128>}, {pipeline_mode = #tpu.pipeline_mode<synchronous>, transform_indices = @transform_10, window_bounds = array<i64: 1, 128>}, {pipeline_mode = #tpu.pipeline_mode<synchronous>, transform_indices = @transform_11, window_bounds = array<i64: 1, 128>}, {pipeline_mode = #tpu.pipeline_mode<synchronous>, transform_indices = @transform_12, window_bounds = array<i64: 128, 128>}, {pipeline_mode = #tpu.pipeline_mode<synchronous>, transform_indices = @transform_13, window_bounds = array<i64: 128, 128>}, {pipeline_mode = #tpu.pipeline_mode<synchronous>, transform_indices = @transform_14, window_bounds = array<i64: 128, 128>}, {pipeline_mode = #tpu.pipeline_mode<synchronous>, transform_indices = @transform_15, window_bounds = array<i64: 1, 128>}, {pipeline_mode = #tpu.pipeline_mode<synchronous>, transform_indices = @transform_16, window_bounds = array<i64: 1, 128>}, {pipeline_mode = #tpu.pipeline_mode<synchronous>, transform_indices = @transform_17, window_bounds = array<i64: 1, 128>}, {pipeline_mode = #tpu.pipeline_mode<synchronous>, transform_indices = @transform_18, window_bounds = array<i64: 128, 128>}, {pipeline_mode = #tpu.pipeline_mode<synchronous>, transform_indices = @transform_19, window_bounds = array<i64: 1, 128>}, {pipeline_mode = #tpu.pipeline_mode<synchronous>, transform_indices = @transform_20, window_bounds = array<i64: 1, 128>}, {pipeline_mode = #tpu.pipeline_mode<synchronous>, transform_indices = @transform_21, window_bounds = array<i64: 1, 128>}, {pipeline_mode = #tpu.pipeline_mode<synchronous>, transform_indices = @transform_22, window_bounds = array<i64: 128, 512>}, {pipeline_mode = #tpu.pipeline_mode<synchronous>, transform_indices = @transform_23, window_bounds = array<i64: 1, 512>}, {pipeline_mode = #tpu.pipeline_mode<synchronous>, transform_indices = @transform_24, window_bounds = array<i64: 512, 128>}, {pipeline_mode = #tpu.pipeline_mode<synchronous>, transform_indices = @transform_25, window_bounds = array<i64: 1, 128>}, {pipeline_mode = #tpu.pipeline_mode<synchronous>, transform_indices = @transform_26, window_bounds = array<i64: 1, 128>}, {pipeline_mode = #tpu.pipeline_mode<synchronous>, transform_indices = @transform_27, window_bounds = array<i64: 1, 128>}, {transform_indices = @transform_28, window_bounds = array<i64: 2, 16, 128>}]} {
    %c0 = arith.constant 0 : index
    %c0_0 = arith.constant 0 : index
    %c0_1 = arith.constant 0 : index
    %0 = vector.load %arg1[%c0, %c0_0, %c0_1] : memref<2x16x128xbf16, #tpu.memory_space<vmem>>, vector<2x16x128xbf16>
    %1 = vector.shape_cast %0 : vector<2x16x128xbf16> to vector<32x128xbf16>
    %c0_2 = arith.constant 0 : index
    %c0_3 = arith.constant 0 : index
    %c0_4 = arith.constant 0 : index
    %2 = vector.load %arg2[%c0_2, %c0_3, %c0_4] : memref<2x16x128xbf16, #tpu.memory_space<vmem>>, vector<2x16x128xbf16>
    %3 = vector.shape_cast %2 : vector<2x16x128xbf16> to vector<32x128xbf16>
    %4 = arith.extf %1 : vector<32x128xbf16> to vector<32x128xf32>
    %5 = tpu.iota {dimensions = array<i32: 0>} : vector<16x16xi32>
    %6 = tpu.iota {dimensions = array<i32: 1>} : vector<16x16xi32>
    %7 = arith.cmpi sgt, %6, %5 : vector<16x16xi32>
    %cst = arith.constant -1.000000e+30 : f32
    %cst_5 = arith.constant 0.000000e+00 : f32
    %8 = vector.broadcast %cst : f32 to vector<16x16xf32>
    %9 = vector.broadcast %cst_5 : f32 to vector<16x16xf32>
    %10 = arith.select %7, %8, %9 : vector<16x16xi1>, vector<16x16xf32>
    %c0_6 = arith.constant 0 : index
    %c0_7 = arith.constant 0 : index
    %11 = vector.load %arg6[%c0_6, %c0_7] : memref<1x128xbf16, #tpu.memory_space<vmem>>, vector<1x128xbf16>
    %12 = arith.extf %11 : vector<1x128xbf16> to vector<1x128xf32>
    %c0_8 = arith.constant 0 : index
    %c0_9 = arith.constant 0 : index
    %13 = vector.load %arg7[%c0_8, %c0_9] : memref<1x128xbf16, #tpu.memory_space<vmem>>, vector<1x128xbf16>
    %14 = arith.extf %13 : vector<1x128xbf16> to vector<1x128xf32>
    %c0_10 = arith.constant 0 : index
    %c0_11 = arith.constant 0 : index
    %15 = vector.load %arg8[%c0_10, %c0_11] : memref<1x128xbf16, #tpu.memory_space<vmem>>, vector<1x128xbf16>
    %16 = arith.extf %15 : vector<1x128xbf16> to vector<1x128xf32>
    %c0_12 = arith.constant 0 : index
    %c0_13 = arith.constant 0 : index
    %17 = vector.load %arg10[%c0_12, %c0_13] : memref<1x128xbf16, #tpu.memory_space<vmem>>, vector<1x128xbf16>
    %18 = arith.extf %17 : vector<1x128xbf16> to vector<1x128xf32>
    %c0_14 = arith.constant 0 : index
    %c0_15 = arith.constant 0 : index
    %19 = vector.load %arg3[%c0_14, %c0_15] : memref<128x128xbf16, #tpu.memory_space<vmem>>, vector<128x128xbf16>
    %cst_16 = arith.constant dense<0.000000e+00> : vector<32x128xf32>
    %20 = tpu.matmul %1, %19, %cst_16 {dimension_numbers = #tpu.dot_dimension_numbers<[1], [0], [0], [1], [0, 0, 1, 1], [], []>} : vector<32x128xbf16>, vector<128x128xbf16>, vector<32x128xf32> -> vector<32x128xf32>
    %21 = vector.broadcast %12 : vector<1x128xf32> to vector<32x128xf32>
    %22 = arith.addf %20, %21 : vector<32x128xf32>
    %c0_17 = arith.constant 0 : index
    %c0_18 = arith.constant 0 : index
    %23 = vector.load %arg4[%c0_17, %c0_18] : memref<128x128xbf16, #tpu.memory_space<vmem>>, vector<128x128xbf16>
    %cst_19 = arith.constant dense<0.000000e+00> : vector<32x128xf32>
    %24 = tpu.matmul %1, %23, %cst_19 {dimension_numbers = #tpu.dot_dimension_numbers<[1], [0], [0], [1], [0, 0, 1, 1], [], []>} : vector<32x128xbf16>, vector<128x128xbf16>, vector<32x128xf32> -> vector<32x128xf32>
    %25 = vector.broadcast %14 : vector<1x128xf32> to vector<32x128xf32>
    %26 = arith.addf %24, %25 : vector<32x128xf32>
    %c0_20 = arith.constant 0 : index
    %c0_21 = arith.constant 0 : index
    %27 = vector.load %arg5[%c0_20, %c0_21] : memref<128x128xbf16, #tpu.memory_space<vmem>>, vector<128x128xbf16>
    %cst_22 = arith.constant dense<0.000000e+00> : vector<32x128xf32>
    %28 = tpu.matmul %1, %27, %cst_22 {dimension_numbers = #tpu.dot_dimension_numbers<[1], [0], [0], [1], [0, 0, 1, 1], [], []>} : vector<32x128xbf16>, vector<128x128xbf16>, vector<32x128xf32> -> vector<32x128xf32>
    %29 = vector.broadcast %16 : vector<1x128xf32> to vector<32x128xf32>
    %30 = arith.addf %28, %29 : vector<32x128xf32>
    %cst_23 = arith.constant 2.500000e-01 : f32
    %31 = vector.broadcast %cst_23 : f32 to vector<32x128xf32>
    %32 = arith.mulf %22, %31 : vector<32x128xf32>
    %33 = arith.truncf %32 : vector<32x128xf32> to vector<32x128xbf16>
    %34 = arith.truncf %26 : vector<32x128xf32> to vector<32x128xbf16>
    %35 = arith.truncf %30 : vector<32x128xf32> to vector<32x128xbf16>
    %36 = vector.extract_strided_slice %33 {offsets = [0, 0], sizes = [16, 128], strides = [1, 1]} : vector<32x128xbf16> to vector<16x128xbf16>
    %37 = vector.extract_strided_slice %34 {offsets = [0, 0], sizes = [16, 128], strides = [1, 1]} : vector<32x128xbf16> to vector<16x128xbf16>
    %38 = vector.extract_strided_slice %35 {offsets = [0, 0], sizes = [16, 128], strides = [1, 1]} : vector<32x128xbf16> to vector<16x128xbf16>
    %39 = vector.extract_strided_slice %36 {offsets = [0, 0], sizes = [16, 16], strides = [1, 1]} : vector<16x128xbf16> to vector<16x16xbf16>
    %40 = vector.extract_strided_slice %36 {offsets = [0, 16], sizes = [16, 16], strides = [1, 1]} : vector<16x128xbf16> to vector<16x16xbf16>
    %41 = vector.extract_strided_slice %36 {offsets = [0, 32], sizes = [16, 16], strides = [1, 1]} : vector<16x128xbf16> to vector<16x16xbf16>
    %42 = vector.extract_strided_slice %36 {offsets = [0, 48], sizes = [16, 16], strides = [1, 1]} : vector<16x128xbf16> to vector<16x16xbf16>
    %43 = vector.extract_strided_slice %36 {offsets = [0, 64], sizes = [16, 16], strides = [1, 1]} : vector<16x128xbf16> to vector<16x16xbf16>
    %44 = vector.extract_strided_slice %36 {offsets = [0, 80], sizes = [16, 16], strides = [1, 1]} : vector<16x128xbf16> to vector<16x16xbf16>
    %45 = vector.extract_strided_slice %36 {offsets = [0, 96], sizes = [16, 16], strides = [1, 1]} : vector<16x128xbf16> to vector<16x16xbf16>
    %46 = vector.extract_strided_slice %36 {offsets = [0, 112], sizes = [16, 16], strides = [1, 1]} : vector<16x128xbf16> to vector<16x16xbf16>
    %47 = vector.shape_cast %39 : vector<16x16xbf16> to vector<1x16x16xbf16>
    %48 = vector.shape_cast %40 : vector<16x16xbf16> to vector<1x16x16xbf16>
    %49 = vector.shape_cast %41 : vector<16x16xbf16> to vector<1x16x16xbf16>
    %50 = vector.shape_cast %42 : vector<16x16xbf16> to vector<1x16x16xbf16>
    %51 = vector.shape_cast %43 : vector<16x16xbf16> to vector<1x16x16xbf16>
    %52 = vector.shape_cast %44 : vector<16x16xbf16> to vector<1x16x16xbf16>
    %53 = vector.shape_cast %45 : vector<16x16xbf16> to vector<1x16x16xbf16>
    %54 = vector.shape_cast %46 : vector<16x16xbf16> to vector<1x16x16xbf16>
    %55 = tpu.concatenate %47, %48, %49, %50, %51, %52, %53, %54 in 0 : vector<1x16x16xbf16>, vector<1x16x16xbf16>, vector<1x16x16xbf16>, vector<1x16x16xbf16>, vector<1x16x16xbf16>, vector<1x16x16xbf16>, vector<1x16x16xbf16>, vector<1x16x16xbf16> -> vector<8x16x16xbf16>
    %56 = vector.extract_strided_slice %37 {offsets = [0, 0], sizes = [16, 16], strides = [1, 1]} : vector<16x128xbf16> to vector<16x16xbf16>
    %57 = vector.extract_strided_slice %37 {offsets = [0, 16], sizes = [16, 16], strides = [1, 1]} : vector<16x128xbf16> to vector<16x16xbf16>
    %58 = vector.extract_strided_slice %37 {offsets = [0, 32], sizes = [16, 16], strides = [1, 1]} : vector<16x128xbf16> to vector<16x16xbf16>
    %59 = vector.extract_strided_slice %37 {offsets = [0, 48], sizes = [16, 16], strides = [1, 1]} : vector<16x128xbf16> to vector<16x16xbf16>
    %60 = vector.extract_strided_slice %37 {offsets = [0, 64], sizes = [16, 16], strides = [1, 1]} : vector<16x128xbf16> to vector<16x16xbf16>
    %61 = vector.extract_strided_slice %37 {offsets = [0, 80], sizes = [16, 16], strides = [1, 1]} : vector<16x128xbf16> to vector<16x16xbf16>
    %62 = vector.extract_strided_slice %37 {offsets = [0, 96], sizes = [16, 16], strides = [1, 1]} : vector<16x128xbf16> to vector<16x16xbf16>
    %63 = vector.extract_strided_slice %37 {offsets = [0, 112], sizes = [16, 16], strides = [1, 1]} : vector<16x128xbf16> to vector<16x16xbf16>
    %64 = vector.shape_cast %56 : vector<16x16xbf16> to vector<1x16x16xbf16>
    %65 = vector.shape_cast %57 : vector<16x16xbf16> to vector<1x16x16xbf16>
    %66 = vector.shape_cast %58 : vector<16x16xbf16> to vector<1x16x16xbf16>
    %67 = vector.shape_cast %59 : vector<16x16xbf16> to vector<1x16x16xbf16>
    %68 = vector.shape_cast %60 : vector<16x16xbf16> to vector<1x16x16xbf16>
    %69 = vector.shape_cast %61 : vector<16x16xbf16> to vector<1x16x16xbf16>
    %70 = vector.shape_cast %62 : vector<16x16xbf16> to vector<1x16x16xbf16>
    %71 = vector.shape_cast %63 : vector<16x16xbf16> to vector<1x16x16xbf16>
    %72 = tpu.concatenate %64, %65, %66, %67, %68, %69, %70, %71 in 0 : vector<1x16x16xbf16>, vector<1x16x16xbf16>, vector<1x16x16xbf16>, vector<1x16x16xbf16>, vector<1x16x16xbf16>, vector<1x16x16xbf16>, vector<1x16x16xbf16>, vector<1x16x16xbf16> -> vector<8x16x16xbf16>
    %73 = vector.extract_strided_slice %38 {offsets = [0, 0], sizes = [16, 16], strides = [1, 1]} : vector<16x128xbf16> to vector<16x16xbf16>
    %74 = vector.extract_strided_slice %38 {offsets = [0, 16], sizes = [16, 16], strides = [1, 1]} : vector<16x128xbf16> to vector<16x16xbf16>
    %75 = vector.extract_strided_slice %38 {offsets = [0, 32], sizes = [16, 16], strides = [1, 1]} : vector<16x128xbf16> to vector<16x16xbf16>
    %76 = vector.extract_strided_slice %38 {offsets = [0, 48], sizes = [16, 16], strides = [1, 1]} : vector<16x128xbf16> to vector<16x16xbf16>
    %77 = vector.extract_strided_slice %38 {offsets = [0, 64], sizes = [16, 16], strides = [1, 1]} : vector<16x128xbf16> to vector<16x16xbf16>
    %78 = vector.extract_strided_slice %38 {offsets = [0, 80], sizes = [16, 16], strides = [1, 1]} : vector<16x128xbf16> to vector<16x16xbf16>
    %79 = vector.extract_strided_slice %38 {offsets = [0, 96], sizes = [16, 16], strides = [1, 1]} : vector<16x128xbf16> to vector<16x16xbf16>
    %80 = vector.extract_strided_slice %38 {offsets = [0, 112], sizes = [16, 16], strides = [1, 1]} : vector<16x128xbf16> to vector<16x16xbf16>
    %81 = vector.shape_cast %73 : vector<16x16xbf16> to vector<1x16x16xbf16>
    %82 = vector.shape_cast %74 : vector<16x16xbf16> to vector<1x16x16xbf16>
    %83 = vector.shape_cast %75 : vector<16x16xbf16> to vector<1x16x16xbf16>
    %84 = vector.shape_cast %76 : vector<16x16xbf16> to vector<1x16x16xbf16>
    %85 = vector.shape_cast %77 : vector<16x16xbf16> to vector<1x16x16xbf16>
    %86 = vector.shape_cast %78 : vector<16x16xbf16> to vector<1x16x16xbf16>
    %87 = vector.shape_cast %79 : vector<16x16xbf16> to vector<1x16x16xbf16>
    %88 = vector.shape_cast %80 : vector<16x16xbf16> to vector<1x16x16xbf16>
    %89 = tpu.concatenate %81, %82, %83, %84, %85, %86, %87, %88 in 0 : vector<1x16x16xbf16>, vector<1x16x16xbf16>, vector<1x16x16xbf16>, vector<1x16x16xbf16>, vector<1x16x16xbf16>, vector<1x16x16xbf16>, vector<1x16x16xbf16>, vector<1x16x16xbf16> -> vector<8x16x16xbf16>
    "tpu.trace_start"() <{level = 10 : i32, message = "hqd,hkd->hqk"}> : () -> ()
    %cst_24 = arith.constant dense<0.000000e+00> : vector<8x16x16xf32>
    %90 = tpu.matmul %55, %72, %cst_24 {dimension_numbers = #tpu.dot_dimension_numbers<[2], [2], [1], [1], [0, 0, 0, 1, 1, 1], [0], [0]>} : vector<8x16x16xbf16>, vector<8x16x16xbf16>, vector<8x16x16xf32> -> vector<8x16x16xf32>
    "tpu.trace_stop"() : () -> ()
    %91 = vector.shape_cast %10 : vector<16x16xf32> to vector<1x16x16xf32>
    %92 = vector.broadcast %91 : vector<1x16x16xf32> to vector<8x16x16xf32>
    %93 = arith.addf %90, %92 : vector<8x16x16xf32>
    %cst_25 = arith.constant dense<0xFF800000> : vector<8x16xf32>
    %94 = vector.multi_reduction <maximumf>, %93, %cst_25 [2] : vector<8x16x16xf32> to vector<8x16xf32>
    %95 = vector.shape_cast %94 : vector<8x16xf32> to vector<8x16x1xf32>
    %96 = vector.broadcast %95 : vector<8x16x1xf32> to vector<8x16x16xf32>
    %97 = arith.subf %93, %96 : vector<8x16x16xf32>
    %98 = math.exp %97 : vector<8x16x16xf32>
    %cst_26 = arith.constant dense<0.000000e+00> : vector<8x16xf32>
    %99 = vector.multi_reduction <add>, %98, %cst_26 [2] : vector<8x16x16xf32> to vector<8x16xf32>
    %100 = vector.shape_cast %99 : vector<8x16xf32> to vector<8x16x1xf32>
    %101 = tpu.reciprocal %100 {approx = true} : vector<8x16x1xf32> -> vector<8x16x1xf32>
    %102 = vector.broadcast %101 : vector<8x16x1xf32> to vector<8x16x16xf32>
    %103 = arith.mulf %98, %102 : vector<8x16x16xf32>
    %104 = arith.truncf %103 : vector<8x16x16xf32> to vector<8x16x16xbf16>
    "tpu.trace_start"() <{level = 10 : i32, message = "hqk,hkd->hqd"}> : () -> ()
    %cst_27 = arith.constant dense<0.000000e+00> : vector<8x16x16xf32>
    %105 = tpu.matmul %104, %89, %cst_27 {dimension_numbers = #tpu.dot_dimension_numbers<[2], [1], [1], [2], [0, 0, 0, 1, 1, 2], [0], [0]>} : vector<8x16x16xbf16>, vector<8x16x16xbf16>, vector<8x16x16xf32> -> vector<8x16x16xf32>
    "tpu.trace_stop"() : () -> ()
    %106 = vector.extract_strided_slice %105 {offsets = [0, 0, 0], sizes = [1, 16, 16], strides = [1, 1, 1]} : vector<8x16x16xf32> to vector<1x16x16xf32>
    %107 = vector.shape_cast %106 : vector<1x16x16xf32> to vector<16x16xf32>
    %108 = vector.extract_strided_slice %105 {offsets = [1, 0, 0], sizes = [1, 16, 16], strides = [1, 1, 1]} : vector<8x16x16xf32> to vector<1x16x16xf32>
    %109 = vector.shape_cast %108 : vector<1x16x16xf32> to vector<16x16xf32>
    %110 = vector.extract_strided_slice %105 {offsets = [2, 0, 0], sizes = [1, 16, 16], strides = [1, 1, 1]} : vector<8x16x16xf32> to vector<1x16x16xf32>
    %111 = vector.shape_cast %110 : vector<1x16x16xf32> to vector<16x16xf32>
    %112 = vector.extract_strided_slice %105 {offsets = [3, 0, 0], sizes = [1, 16, 16], strides = [1, 1, 1]} : vector<8x16x16xf32> to vector<1x16x16xf32>
    %113 = vector.shape_cast %112 : vector<1x16x16xf32> to vector<16x16xf32>
    %114 = vector.extract_strided_slice %105 {offsets = [4, 0, 0], sizes = [1, 16, 16], strides = [1, 1, 1]} : vector<8x16x16xf32> to vector<1x16x16xf32>
    %115 = vector.shape_cast %114 : vector<1x16x16xf32> to vector<16x16xf32>
    %116 = vector.extract_strided_slice %105 {offsets = [5, 0, 0], sizes = [1, 16, 16], strides = [1, 1, 1]} : vector<8x16x16xf32> to vector<1x16x16xf32>
    %117 = vector.shape_cast %116 : vector<1x16x16xf32> to vector<16x16xf32>
    %118 = vector.extract_strided_slice %105 {offsets = [6, 0, 0], sizes = [1, 16, 16], strides = [1, 1, 1]} : vector<8x16x16xf32> to vector<1x16x16xf32>
    %119 = vector.shape_cast %118 : vector<1x16x16xf32> to vector<16x16xf32>
    %120 = vector.extract_strided_slice %105 {offsets = [7, 0, 0], sizes = [1, 16, 16], strides = [1, 1, 1]} : vector<8x16x16xf32> to vector<1x16x16xf32>
    %121 = vector.shape_cast %120 : vector<1x16x16xf32> to vector<16x16xf32>
    %122 = tpu.concatenate %107, %109, %111, %113, %115, %117, %119, %121 in 1 : vector<16x16xf32>, vector<16x16xf32>, vector<16x16xf32>, vector<16x16xf32>, vector<16x16xf32>, vector<16x16xf32>, vector<16x16xf32>, vector<16x16xf32> -> vector<16x128xf32>
    %123 = vector.extract_strided_slice %33 {offsets = [16, 0], sizes = [16, 128], strides = [1, 1]} : vector<32x128xbf16> to vector<16x128xbf16>
    %124 = vector.extract_strided_slice %34 {offsets = [16, 0], sizes = [16, 128], strides = [1, 1]} : vector<32x128xbf16> to vector<16x128xbf16>
    %125 = vector.extract_strided_slice %35 {offsets = [16, 0], sizes = [16, 128], strides = [1, 1]} : vector<32x128xbf16> to vector<16x128xbf16>
    %126 = vector.extract_strided_slice %123 {offsets = [0, 0], sizes = [16, 16], strides = [1, 1]} : vector<16x128xbf16> to vector<16x16xbf16>
    %127 = vector.extract_strided_slice %123 {offsets = [0, 16], sizes = [16, 16], strides = [1, 1]} : vector<16x128xbf16> to vector<16x16xbf16>
    %128 = vector.extract_strided_slice %123 {offsets = [0, 32], sizes = [16, 16], strides = [1, 1]} : vector<16x128xbf16> to vector<16x16xbf16>
    %129 = vector.extract_strided_slice %123 {offsets = [0, 48], sizes = [16, 16], strides = [1, 1]} : vector<16x128xbf16> to vector<16x16xbf16>
    %130 = vector.extract_strided_slice %123 {offsets = [0, 64], sizes = [16, 16], strides = [1, 1]} : vector<16x128xbf16> to vector<16x16xbf16>
    %131 = vector.extract_strided_slice %123 {offsets = [0, 80], sizes = [16, 16], strides = [1, 1]} : vector<16x128xbf16> to vector<16x16xbf16>
    %132 = vector.extract_strided_slice %123 {offsets = [0, 96], sizes = [16, 16], strides = [1, 1]} : vector<16x128xbf16> to vector<16x16xbf16>
    %133 = vector.extract_strided_slice %123 {offsets = [0, 112], sizes = [16, 16], strides = [1, 1]} : vector<16x128xbf16> to vector<16x16xbf16>
    %134 = vector.shape_cast %126 : vector<16x16xbf16> to vector<1x16x16xbf16>
    %135 = vector.shape_cast %127 : vector<16x16xbf16> to vector<1x16x16xbf16>
    %136 = vector.shape_cast %128 : vector<16x16xbf16> to vector<1x16x16xbf16>
    %137 = vector.shape_cast %129 : vector<16x16xbf16> to vector<1x16x16xbf16>
    %138 = vector.shape_cast %130 : vector<16x16xbf16> to vector<1x16x16xbf16>
    %139 = vector.shape_cast %131 : vector<16x16xbf16> to vector<1x16x16xbf16>
    %140 = vector.shape_cast %132 : vector<16x16xbf16> to vector<1x16x16xbf16>
    %141 = vector.shape_cast %133 : vector<16x16xbf16> to vector<1x16x16xbf16>
    %142 = tpu.concatenate %134, %135, %136, %137, %138, %139, %140, %141 in 0 : vector<1x16x16xbf16>, vector<1x16x16xbf16>, vector<1x16x16xbf16>, vector<1x16x16xbf16>, vector<1x16x16xbf16>, vector<1x16x16xbf16>, vector<1x16x16xbf16>, vector<1x16x16xbf16> -> vector<8x16x16xbf16>
    %143 = vector.extract_strided_slice %124 {offsets = [0, 0], sizes = [16, 16], strides = [1, 1]} : vector<16x128xbf16> to vector<16x16xbf16>
    %144 = vector.extract_strided_slice %124 {offsets = [0, 16], sizes = [16, 16], strides = [1, 1]} : vector<16x128xbf16> to vector<16x16xbf16>
    %145 = vector.extract_strided_slice %124 {offsets = [0, 32], sizes = [16, 16], strides = [1, 1]} : vector<16x128xbf16> to vector<16x16xbf16>
    %146 = vector.extract_strided_slice %124 {offsets = [0, 48], sizes = [16, 16], strides = [1, 1]} : vector<16x128xbf16> to vector<16x16xbf16>
    %147 = vector.extract_strided_slice %124 {offsets = [0, 64], sizes = [16, 16], strides = [1, 1]} : vector<16x128xbf16> to vector<16x16xbf16>
    %148 = vector.extract_strided_slice %124 {offsets = [0, 80], sizes = [16, 16], strides = [1, 1]} : vector<16x128xbf16> to vector<16x16xbf16>
    %149 = vector.extract_strided_slice %124 {offsets = [0, 96], sizes = [16, 16], strides = [1, 1]} : vector<16x128xbf16> to vector<16x16xbf16>
    %150 = vector.extract_strided_slice %124 {offsets = [0, 112], sizes = [16, 16], strides = [1, 1]} : vector<16x128xbf16> to vector<16x16xbf16>
    %151 = vector.shape_cast %143 : vector<16x16xbf16> to vector<1x16x16xbf16>
    %152 = vector.shape_cast %144 : vector<16x16xbf16> to vector<1x16x16xbf16>
    %153 = vector.shape_cast %145 : vector<16x16xbf16> to vector<1x16x16xbf16>
    %154 = vector.shape_cast %146 : vector<16x16xbf16> to vector<1x16x16xbf16>
    %155 = vector.shape_cast %147 : vector<16x16xbf16> to vector<1x16x16xbf16>
    %156 = vector.shape_cast %148 : vector<16x16xbf16> to vector<1x16x16xbf16>
    %157 = vector.shape_cast %149 : vector<16x16xbf16> to vector<1x16x16xbf16>
    %158 = vector.shape_cast %150 : vector<16x16xbf16> to vector<1x16x16xbf16>
    %159 = tpu.concatenate %151, %152, %153, %154, %155, %156, %157, %158 in 0 : vector<1x16x16xbf16>, vector<1x16x16xbf16>, vector<1x16x16xbf16>, vector<1x16x16xbf16>, vector<1x16x16xbf16>, vector<1x16x16xbf16>, vector<1x16x16xbf16>, vector<1x16x16xbf16> -> vector<8x16x16xbf16>
    %160 = vector.extract_strided_slice %125 {offsets = [0, 0], sizes = [16, 16], strides = [1, 1]} : vector<16x128xbf16> to vector<16x16xbf16>
    %161 = vector.extract_strided_slice %125 {offsets = [0, 16], sizes = [16, 16], strides = [1, 1]} : vector<16x128xbf16> to vector<16x16xbf16>
    %162 = vector.extract_strided_slice %125 {offsets = [0, 32], sizes = [16, 16], strides = [1, 1]} : vector<16x128xbf16> to vector<16x16xbf16>
    %163 = vector.extract_strided_slice %125 {offsets = [0, 48], sizes = [16, 16], strides = [1, 1]} : vector<16x128xbf16> to vector<16x16xbf16>
    %164 = vector.extract_strided_slice %125 {offsets = [0, 64], sizes = [16, 16], strides = [1, 1]} : vector<16x128xbf16> to vector<16x16xbf16>
    %165 = vector.extract_strided_slice %125 {offsets = [0, 80], sizes = [16, 16], strides = [1, 1]} : vector<16x128xbf16> to vector<16x16xbf16>
    %166 = vector.extract_strided_slice %125 {offsets = [0, 96], sizes = [16, 16], strides = [1, 1]} : vector<16x128xbf16> to vector<16x16xbf16>
    %167 = vector.extract_strided_slice %125 {offsets = [0, 112], sizes = [16, 16], strides = [1, 1]} : vector<16x128xbf16> to vector<16x16xbf16>
    %168 = vector.shape_cast %160 : vector<16x16xbf16> to vector<1x16x16xbf16>
    %169 = vector.shape_cast %161 : vector<16x16xbf16> to vector<1x16x16xbf16>
    %170 = vector.shape_cast %162 : vector<16x16xbf16> to vector<1x16x16xbf16>
    %171 = vector.shape_cast %163 : vector<16x16xbf16> to vector<1x16x16xbf16>
    %172 = vector.shape_cast %164 : vector<16x16xbf16> to vector<1x16x16xbf16>
    %173 = vector.shape_cast %165 : vector<16x16xbf16> to vector<1x16x16xbf16>
    %174 = vector.shape_cast %166 : vector<16x16xbf16> to vector<1x16x16xbf16>
    %175 = vector.shape_cast %167 : vector<16x16xbf16> to vector<1x16x16xbf16>
    %176 = tpu.concatenate %168, %169, %170, %171, %172, %173, %174, %175 in 0 : vector<1x16x16xbf16>, vector<1x16x16xbf16>, vector<1x16x16xbf16>, vector<1x16x16xbf16>, vector<1x16x16xbf16>, vector<1x16x16xbf16>, vector<1x16x16xbf16>, vector<1x16x16xbf16> -> vector<8x16x16xbf16>
    "tpu.trace_start"() <{level = 10 : i32, message = "hqd,hkd->hqk"}> : () -> ()
    %cst_28 = arith.constant dense<0.000000e+00> : vector<8x16x16xf32>
    %177 = tpu.matmul %142, %159, %cst_28 {dimension_numbers = #tpu.dot_dimension_numbers<[2], [2], [1], [1], [0, 0, 0, 1, 1, 1], [0], [0]>} : vector<8x16x16xbf16>, vector<8x16x16xbf16>, vector<8x16x16xf32> -> vector<8x16x16xf32>
    "tpu.trace_stop"() : () -> ()
    %178 = vector.shape_cast %10 : vector<16x16xf32> to vector<1x16x16xf32>
    %179 = vector.broadcast %178 : vector<1x16x16xf32> to vector<8x16x16xf32>
    %180 = arith.addf %177, %179 : vector<8x16x16xf32>
    %cst_29 = arith.constant dense<0xFF800000> : vector<8x16xf32>
    %181 = vector.multi_reduction <maximumf>, %180, %cst_29 [2] : vector<8x16x16xf32> to vector<8x16xf32>
    %182 = vector.shape_cast %181 : vector<8x16xf32> to vector<8x16x1xf32>
    %183 = vector.broadcast %182 : vector<8x16x1xf32> to vector<8x16x16xf32>
    %184 = arith.subf %180, %183 : vector<8x16x16xf32>
    %185 = math.exp %184 : vector<8x16x16xf32>
    %cst_30 = arith.constant dense<0.000000e+00> : vector<8x16xf32>
    %186 = vector.multi_reduction <add>, %185, %cst_30 [2] : vector<8x16x16xf32> to vector<8x16xf32>
    %187 = vector.shape_cast %186 : vector<8x16xf32> to vector<8x16x1xf32>
    %188 = tpu.reciprocal %187 {approx = true} : vector<8x16x1xf32> -> vector<8x16x1xf32>
    %189 = vector.broadcast %188 : vector<8x16x1xf32> to vector<8x16x16xf32>
    %190 = arith.mulf %185, %189 : vector<8x16x16xf32>
    %191 = arith.truncf %190 : vector<8x16x16xf32> to vector<8x16x16xbf16>
    "tpu.trace_start"() <{level = 10 : i32, message = "hqk,hkd->hqd"}> : () -> ()
    %cst_31 = arith.constant dense<0.000000e+00> : vector<8x16x16xf32>
    %192 = tpu.matmul %191, %176, %cst_31 {dimension_numbers = #tpu.dot_dimension_numbers<[2], [1], [1], [2], [0, 0, 0, 1, 1, 2], [0], [0]>} : vector<8x16x16xbf16>, vector<8x16x16xbf16>, vector<8x16x16xf32> -> vector<8x16x16xf32>
    "tpu.trace_stop"() : () -> ()
    %193 = vector.extract_strided_slice %192 {offsets = [0, 0, 0], sizes = [1, 16, 16], strides = [1, 1, 1]} : vector<8x16x16xf32> to vector<1x16x16xf32>
    %194 = vector.shape_cast %193 : vector<1x16x16xf32> to vector<16x16xf32>
    %195 = vector.extract_strided_slice %192 {offsets = [1, 0, 0], sizes = [1, 16, 16], strides = [1, 1, 1]} : vector<8x16x16xf32> to vector<1x16x16xf32>
    %196 = vector.shape_cast %195 : vector<1x16x16xf32> to vector<16x16xf32>
    %197 = vector.extract_strided_slice %192 {offsets = [2, 0, 0], sizes = [1, 16, 16], strides = [1, 1, 1]} : vector<8x16x16xf32> to vector<1x16x16xf32>
    %198 = vector.shape_cast %197 : vector<1x16x16xf32> to vector<16x16xf32>
    %199 = vector.extract_strided_slice %192 {offsets = [3, 0, 0], sizes = [1, 16, 16], strides = [1, 1, 1]} : vector<8x16x16xf32> to vector<1x16x16xf32>
    %200 = vector.shape_cast %199 : vector<1x16x16xf32> to vector<16x16xf32>
    %201 = vector.extract_strided_slice %192 {offsets = [4, 0, 0], sizes = [1, 16, 16], strides = [1, 1, 1]} : vector<8x16x16xf32> to vector<1x16x16xf32>
    %202 = vector.shape_cast %201 : vector<1x16x16xf32> to vector<16x16xf32>
    %203 = vector.extract_strided_slice %192 {offsets = [5, 0, 0], sizes = [1, 16, 16], strides = [1, 1, 1]} : vector<8x16x16xf32> to vector<1x16x16xf32>
    %204 = vector.shape_cast %203 : vector<1x16x16xf32> to vector<16x16xf32>
    %205 = vector.extract_strided_slice %192 {offsets = [6, 0, 0], sizes = [1, 16, 16], strides = [1, 1, 1]} : vector<8x16x16xf32> to vector<1x16x16xf32>
    %206 = vector.shape_cast %205 : vector<1x16x16xf32> to vector<16x16xf32>
    %207 = vector.extract_strided_slice %192 {offsets = [7, 0, 0], sizes = [1, 16, 16], strides = [1, 1, 1]} : vector<8x16x16xf32> to vector<1x16x16xf32>
    %208 = vector.shape_cast %207 : vector<1x16x16xf32> to vector<16x16xf32>
    %209 = tpu.concatenate %194, %196, %198, %200, %202, %204, %206, %208 in 1 : vector<16x16xf32>, vector<16x16xf32>, vector<16x16xf32>, vector<16x16xf32>, vector<16x16xf32>, vector<16x16xf32>, vector<16x16xf32>, vector<16x16xf32> -> vector<16x128xf32>
    %210 = tpu.concatenate %122, %209 in 0 : vector<16x128xf32>, vector<16x128xf32> -> vector<32x128xf32>
    %211 = arith.truncf %210 : vector<32x128xf32> to vector<32x128xbf16>
    %c0_32 = arith.constant 0 : index
    %c0_33 = arith.constant 0 : index
    %212 = vector.load %arg9[%c0_32, %c0_33] : memref<128x128xbf16, #tpu.memory_space<vmem>>, vector<128x128xbf16>
    %cst_34 = arith.constant dense<0.000000e+00> : vector<32x128xf32>
    %213 = tpu.matmul %211, %212, %cst_34 {dimension_numbers = #tpu.dot_dimension_numbers<[1], [0], [0], [1], [0, 0, 1, 1], [], []>} : vector<32x128xbf16>, vector<128x128xbf16>, vector<32x128xf32> -> vector<32x128xf32>
    %214 = vector.broadcast %18 : vector<1x128xf32> to vector<32x128xf32>
    %215 = arith.addf %213, %214 : vector<32x128xf32>
    %216 = arith.addf %215, %4 : vector<32x128xf32>
    %c0_35 = arith.constant 0 : index
    %c0_36 = arith.constant 0 : index
    %217 = vector.load %arg11[%c0_35, %c0_36] : memref<1x128xbf16, #tpu.memory_space<vmem>>, vector<1x128xbf16>
    %218 = arith.extf %217 : vector<1x128xbf16> to vector<1x128xf32>
    %c0_37 = arith.constant 0 : index
    %c0_38 = arith.constant 0 : index
    %219 = vector.load %arg12[%c0_37, %c0_38] : memref<1x128xbf16, #tpu.memory_space<vmem>>, vector<1x128xbf16>
    %220 = arith.extf %219 : vector<1x128xbf16> to vector<1x128xf32>
    %cst_39 = arith.constant dense<0.000000e+00> : vector<32xf32>
    %221 = vector.multi_reduction <add>, %216, %cst_39 [1] : vector<32x128xf32> to vector<32xf32>
    %222 = vector.shape_cast %221 : vector<32xf32> to vector<32x1xf32>
    %cst_40 = arith.constant 1.280000e+02 : f32
    %223 = vector.broadcast %cst_40 : f32 to vector<32x1xf32>
    %224 = arith.divf %222, %223 : vector<32x1xf32>
    %225 = vector.broadcast %224 : vector<32x1xf32> to vector<32x128xf32>
    %226 = arith.subf %216, %225 : vector<32x128xf32>
    %227 = arith.mulf %226, %226 : vector<32x128xf32>
    %cst_41 = arith.constant dense<0.000000e+00> : vector<32xf32>
    %228 = vector.multi_reduction <add>, %227, %cst_41 [1] : vector<32x128xf32> to vector<32xf32>
    %229 = vector.shape_cast %228 : vector<32xf32> to vector<32x1xf32>
    %cst_42 = arith.constant 1.280000e+02 : f32
    %230 = vector.broadcast %cst_42 : f32 to vector<32x1xf32>
    %231 = arith.divf %229, %230 : vector<32x1xf32>
    %232 = vector.broadcast %224 : vector<32x1xf32> to vector<32x128xf32>
    %233 = arith.subf %216, %232 : vector<32x128xf32>
    %cst_43 = arith.constant 9.99999974E-6 : f32
    %234 = vector.broadcast %cst_43 : f32 to vector<32x1xf32>
    %235 = arith.addf %231, %234 : vector<32x1xf32>
    %236 = math.rsqrt %235 : vector<32x1xf32>
    %237 = vector.broadcast %236 : vector<32x1xf32> to vector<32x128xf32>
    %238 = arith.mulf %233, %237 : vector<32x128xf32>
    %239 = vector.broadcast %218 : vector<1x128xf32> to vector<32x128xf32>
    %240 = arith.mulf %238, %239 : vector<32x128xf32>
    %241 = vector.broadcast %220 : vector<1x128xf32> to vector<32x128xf32>
    %242 = arith.addf %240, %241 : vector<32x128xf32>
    %243 = arith.truncf %242 : vector<32x128xf32> to vector<32x128xbf16>
    %c0_44 = arith.constant 0 : index
    %c0_45 = arith.constant 0 : index
    %244 = vector.load %arg16[%c0_44, %c0_45] : memref<1x128xbf16, #tpu.memory_space<vmem>>, vector<1x128xbf16>
    %245 = arith.extf %244 : vector<1x128xbf16> to vector<1x128xf32>
    %c0_46 = arith.constant 0 : index
    %c0_47 = arith.constant 0 : index
    %246 = vector.load %arg17[%c0_46, %c0_47] : memref<1x128xbf16, #tpu.memory_space<vmem>>, vector<1x128xbf16>
    %247 = arith.extf %246 : vector<1x128xbf16> to vector<1x128xf32>
    %c0_48 = arith.constant 0 : index
    %c0_49 = arith.constant 0 : index
    %248 = vector.load %arg18[%c0_48, %c0_49] : memref<1x128xbf16, #tpu.memory_space<vmem>>, vector<1x128xbf16>
    %249 = arith.extf %248 : vector<1x128xbf16> to vector<1x128xf32>
    %c0_50 = arith.constant 0 : index
    %c0_51 = arith.constant 0 : index
    %250 = vector.load %arg20[%c0_50, %c0_51] : memref<1x128xbf16, #tpu.memory_space<vmem>>, vector<1x128xbf16>
    %251 = arith.extf %250 : vector<1x128xbf16> to vector<1x128xf32>
    %c0_52 = arith.constant 0 : index
    %c0_53 = arith.constant 0 : index
    %252 = vector.load %arg13[%c0_52, %c0_53] : memref<128x128xbf16, #tpu.memory_space<vmem>>, vector<128x128xbf16>
    %cst_54 = arith.constant dense<0.000000e+00> : vector<32x128xf32>
    %253 = tpu.matmul %3, %252, %cst_54 {dimension_numbers = #tpu.dot_dimension_numbers<[1], [0], [0], [1], [0, 0, 1, 1], [], []>} : vector<32x128xbf16>, vector<128x128xbf16>, vector<32x128xf32> -> vector<32x128xf32>
    %254 = vector.broadcast %245 : vector<1x128xf32> to vector<32x128xf32>
    %255 = arith.addf %253, %254 : vector<32x128xf32>
    %c0_55 = arith.constant 0 : index
    %c0_56 = arith.constant 0 : index
    %256 = vector.load %arg14[%c0_55, %c0_56] : memref<128x128xbf16, #tpu.memory_space<vmem>>, vector<128x128xbf16>
    %cst_57 = arith.constant dense<0.000000e+00> : vector<32x128xf32>
    %257 = tpu.matmul %3, %256, %cst_57 {dimension_numbers = #tpu.dot_dimension_numbers<[1], [0], [0], [1], [0, 0, 1, 1], [], []>} : vector<32x128xbf16>, vector<128x128xbf16>, vector<32x128xf32> -> vector<32x128xf32>
    %258 = vector.broadcast %247 : vector<1x128xf32> to vector<32x128xf32>
    %259 = arith.addf %257, %258 : vector<32x128xf32>
    %c0_58 = arith.constant 0 : index
    %c0_59 = arith.constant 0 : index
    %260 = vector.load %arg15[%c0_58, %c0_59] : memref<128x128xbf16, #tpu.memory_space<vmem>>, vector<128x128xbf16>
    %cst_60 = arith.constant dense<0.000000e+00> : vector<32x128xf32>
    %261 = tpu.matmul %243, %260, %cst_60 {dimension_numbers = #tpu.dot_dimension_numbers<[1], [0], [0], [1], [0, 0, 1, 1], [], []>} : vector<32x128xbf16>, vector<128x128xbf16>, vector<32x128xf32> -> vector<32x128xf32>
    %262 = vector.broadcast %249 : vector<1x128xf32> to vector<32x128xf32>
    %263 = arith.addf %261, %262 : vector<32x128xf32>
    %cst_61 = arith.constant 2.500000e-01 : f32
    %264 = vector.broadcast %cst_61 : f32 to vector<32x128xf32>
    %265 = arith.mulf %255, %264 : vector<32x128xf32>
    %266 = arith.truncf %265 : vector<32x128xf32> to vector<32x128xbf16>
    %267 = arith.truncf %259 : vector<32x128xf32> to vector<32x128xbf16>
    %268 = arith.truncf %263 : vector<32x128xf32> to vector<32x128xbf16>
    %269 = vector.extract_strided_slice %266 {offsets = [0, 0], sizes = [16, 128], strides = [1, 1]} : vector<32x128xbf16> to vector<16x128xbf16>
    %270 = vector.extract_strided_slice %267 {offsets = [0, 0], sizes = [16, 128], strides = [1, 1]} : vector<32x128xbf16> to vector<16x128xbf16>
    %271 = vector.extract_strided_slice %268 {offsets = [0, 0], sizes = [16, 128], strides = [1, 1]} : vector<32x128xbf16> to vector<16x128xbf16>
    %272 = vector.extract_strided_slice %269 {offsets = [0, 0], sizes = [16, 16], strides = [1, 1]} : vector<16x128xbf16> to vector<16x16xbf16>
    %273 = vector.extract_strided_slice %269 {offsets = [0, 16], sizes = [16, 16], strides = [1, 1]} : vector<16x128xbf16> to vector<16x16xbf16>
    %274 = vector.extract_strided_slice %269 {offsets = [0, 32], sizes = [16, 16], strides = [1, 1]} : vector<16x128xbf16> to vector<16x16xbf16>
    %275 = vector.extract_strided_slice %269 {offsets = [0, 48], sizes = [16, 16], strides = [1, 1]} : vector<16x128xbf16> to vector<16x16xbf16>
    %276 = vector.extract_strided_slice %269 {offsets = [0, 64], sizes = [16, 16], strides = [1, 1]} : vector<16x128xbf16> to vector<16x16xbf16>
    %277 = vector.extract_strided_slice %269 {offsets = [0, 80], sizes = [16, 16], strides = [1, 1]} : vector<16x128xbf16> to vector<16x16xbf16>
    %278 = vector.extract_strided_slice %269 {offsets = [0, 96], sizes = [16, 16], strides = [1, 1]} : vector<16x128xbf16> to vector<16x16xbf16>
    %279 = vector.extract_strided_slice %269 {offsets = [0, 112], sizes = [16, 16], strides = [1, 1]} : vector<16x128xbf16> to vector<16x16xbf16>
    %280 = vector.shape_cast %272 : vector<16x16xbf16> to vector<1x16x16xbf16>
    %281 = vector.shape_cast %273 : vector<16x16xbf16> to vector<1x16x16xbf16>
    %282 = vector.shape_cast %274 : vector<16x16xbf16> to vector<1x16x16xbf16>
    %283 = vector.shape_cast %275 : vector<16x16xbf16> to vector<1x16x16xbf16>
    %284 = vector.shape_cast %276 : vector<16x16xbf16> to vector<1x16x16xbf16>
    %285 = vector.shape_cast %277 : vector<16x16xbf16> to vector<1x16x16xbf16>
    %286 = vector.shape_cast %278 : vector<16x16xbf16> to vector<1x16x16xbf16>
    %287 = vector.shape_cast %279 : vector<16x16xbf16> to vector<1x16x16xbf16>
    %288 = tpu.concatenate %280, %281, %282, %283, %284, %285, %286, %287 in 0 : vector<1x16x16xbf16>, vector<1x16x16xbf16>, vector<1x16x16xbf16>, vector<1x16x16xbf16>, vector<1x16x16xbf16>, vector<1x16x16xbf16>, vector<1x16x16xbf16>, vector<1x16x16xbf16> -> vector<8x16x16xbf16>
    %289 = vector.extract_strided_slice %270 {offsets = [0, 0], sizes = [16, 16], strides = [1, 1]} : vector<16x128xbf16> to vector<16x16xbf16>
    %290 = vector.extract_strided_slice %270 {offsets = [0, 16], sizes = [16, 16], strides = [1, 1]} : vector<16x128xbf16> to vector<16x16xbf16>
    %291 = vector.extract_strided_slice %270 {offsets = [0, 32], sizes = [16, 16], strides = [1, 1]} : vector<16x128xbf16> to vector<16x16xbf16>
    %292 = vector.extract_strided_slice %270 {offsets = [0, 48], sizes = [16, 16], strides = [1, 1]} : vector<16x128xbf16> to vector<16x16xbf16>
    %293 = vector.extract_strided_slice %270 {offsets = [0, 64], sizes = [16, 16], strides = [1, 1]} : vector<16x128xbf16> to vector<16x16xbf16>
    %294 = vector.extract_strided_slice %270 {offsets = [0, 80], sizes = [16, 16], strides = [1, 1]} : vector<16x128xbf16> to vector<16x16xbf16>
    %295 = vector.extract_strided_slice %270 {offsets = [0, 96], sizes = [16, 16], strides = [1, 1]} : vector<16x128xbf16> to vector<16x16xbf16>
    %296 = vector.extract_strided_slice %270 {offsets = [0, 112], sizes = [16, 16], strides = [1, 1]} : vector<16x128xbf16> to vector<16x16xbf16>
    %297 = vector.shape_cast %289 : vector<16x16xbf16> to vector<1x16x16xbf16>
    %298 = vector.shape_cast %290 : vector<16x16xbf16> to vector<1x16x16xbf16>
    %299 = vector.shape_cast %291 : vector<16x16xbf16> to vector<1x16x16xbf16>
    %300 = vector.shape_cast %292 : vector<16x16xbf16> to vector<1x16x16xbf16>
    %301 = vector.shape_cast %293 : vector<16x16xbf16> to vector<1x16x16xbf16>
    %302 = vector.shape_cast %294 : vector<16x16xbf16> to vector<1x16x16xbf16>
    %303 = vector.shape_cast %295 : vector<16x16xbf16> to vector<1x16x16xbf16>
    %304 = vector.shape_cast %296 : vector<16x16xbf16> to vector<1x16x16xbf16>
    %305 = tpu.concatenate %297, %298, %299, %300, %301, %302, %303, %304 in 0 : vector<1x16x16xbf16>, vector<1x16x16xbf16>, vector<1x16x16xbf16>, vector<1x16x16xbf16>, vector<1x16x16xbf16>, vector<1x16x16xbf16>, vector<1x16x16xbf16>, vector<1x16x16xbf16> -> vector<8x16x16xbf16>
    %306 = vector.extract_strided_slice %271 {offsets = [0, 0], sizes = [16, 16], strides = [1, 1]} : vector<16x128xbf16> to vector<16x16xbf16>
    %307 = vector.extract_strided_slice %271 {offsets = [0, 16], sizes = [16, 16], strides = [1, 1]} : vector<16x128xbf16> to vector<16x16xbf16>
    %308 = vector.extract_strided_slice %271 {offsets = [0, 32], sizes = [16, 16], strides = [1, 1]} : vector<16x128xbf16> to vector<16x16xbf16>
    %309 = vector.extract_strided_slice %271 {offsets = [0, 48], sizes = [16, 16], strides = [1, 1]} : vector<16x128xbf16> to vector<16x16xbf16>
    %310 = vector.extract_strided_slice %271 {offsets = [0, 64], sizes = [16, 16], strides = [1, 1]} : vector<16x128xbf16> to vector<16x16xbf16>
    %311 = vector.extract_strided_slice %271 {offsets = [0, 80], sizes = [16, 16], strides = [1, 1]} : vector<16x128xbf16> to vector<16x16xbf16>
    %312 = vector.extract_strided_slice %271 {offsets = [0, 96], sizes = [16, 16], strides = [1, 1]} : vector<16x128xbf16> to vector<16x16xbf16>
    %313 = vector.extract_strided_slice %271 {offsets = [0, 112], sizes = [16, 16], strides = [1, 1]} : vector<16x128xbf16> to vector<16x16xbf16>
    %314 = vector.shape_cast %306 : vector<16x16xbf16> to vector<1x16x16xbf16>
    %315 = vector.shape_cast %307 : vector<16x16xbf16> to vector<1x16x16xbf16>
    %316 = vector.shape_cast %308 : vector<16x16xbf16> to vector<1x16x16xbf16>
    %317 = vector.shape_cast %309 : vector<16x16xbf16> to vector<1x16x16xbf16>
    %318 = vector.shape_cast %310 : vector<16x16xbf16> to vector<1x16x16xbf16>
    %319 = vector.shape_cast %311 : vector<16x16xbf16> to vector<1x16x16xbf16>
    %320 = vector.shape_cast %312 : vector<16x16xbf16> to vector<1x16x16xbf16>
    %321 = vector.shape_cast %313 : vector<16x16xbf16> to vector<1x16x16xbf16>
    %322 = tpu.concatenate %314, %315, %316, %317, %318, %319, %320, %321 in 0 : vector<1x16x16xbf16>, vector<1x16x16xbf16>, vector<1x16x16xbf16>, vector<1x16x16xbf16>, vector<1x16x16xbf16>, vector<1x16x16xbf16>, vector<1x16x16xbf16>, vector<1x16x16xbf16> -> vector<8x16x16xbf16>
    "tpu.trace_start"() <{level = 10 : i32, message = "hqd,hkd->hqk"}> : () -> ()
    %cst_62 = arith.constant dense<0.000000e+00> : vector<8x16x16xf32>
    %323 = tpu.matmul %288, %305, %cst_62 {dimension_numbers = #tpu.dot_dimension_numbers<[2], [2], [1], [1], [0, 0, 0, 1, 1, 1], [0], [0]>} : vector<8x16x16xbf16>, vector<8x16x16xbf16>, vector<8x16x16xf32> -> vector<8x16x16xf32>
    "tpu.trace_stop"() : () -> ()
    %cst_63 = arith.constant dense<0xFF800000> : vector<8x16xf32>
    %324 = vector.multi_reduction <maximumf>, %323, %cst_63 [2] : vector<8x16x16xf32> to vector<8x16xf32>
    %325 = vector.shape_cast %324 : vector<8x16xf32> to vector<8x16x1xf32>
    %326 = vector.broadcast %325 : vector<8x16x1xf32> to vector<8x16x16xf32>
    %327 = arith.subf %323, %326 : vector<8x16x16xf32>
    %328 = math.exp %327 : vector<8x16x16xf32>
    %cst_64 = arith.constant dense<0.000000e+00> : vector<8x16xf32>
    %329 = vector.multi_reduction <add>, %328, %cst_64 [2] : vector<8x16x16xf32> to vector<8x16xf32>
    %330 = vector.shape_cast %329 : vector<8x16xf32> to vector<8x16x1xf32>
    %331 = tpu.reciprocal %330 {approx = true} : vector<8x16x1xf32> -> vector<8x16x1xf32>
    %332 = vector.broadcast %331 : vector<8x16x1xf32> to vector<8x16x16xf32>
    %333 = arith.mulf %328, %332 : vector<8x16x16xf32>
    %334 = arith.truncf %333 : vector<8x16x16xf32> to vector<8x16x16xbf16>
    "tpu.trace_start"() <{level = 10 : i32, message = "hqk,hkd->hqd"}> : () -> ()
    %cst_65 = arith.constant dense<0.000000e+00> : vector<8x16x16xf32>
    %335 = tpu.matmul %334, %322, %cst_65 {dimension_numbers = #tpu.dot_dimension_numbers<[2], [1], [1], [2], [0, 0, 0, 1, 1, 2], [0], [0]>} : vector<8x16x16xbf16>, vector<8x16x16xbf16>, vector<8x16x16xf32> -> vector<8x16x16xf32>
    "tpu.trace_stop"() : () -> ()
    %336 = vector.extract_strided_slice %335 {offsets = [0, 0, 0], sizes = [1, 16, 16], strides = [1, 1, 1]} : vector<8x16x16xf32> to vector<1x16x16xf32>
    %337 = vector.shape_cast %336 : vector<1x16x16xf32> to vector<16x16xf32>
    %338 = vector.extract_strided_slice %335 {offsets = [1, 0, 0], sizes = [1, 16, 16], strides = [1, 1, 1]} : vector<8x16x16xf32> to vector<1x16x16xf32>
    %339 = vector.shape_cast %338 : vector<1x16x16xf32> to vector<16x16xf32>
    %340 = vector.extract_strided_slice %335 {offsets = [2, 0, 0], sizes = [1, 16, 16], strides = [1, 1, 1]} : vector<8x16x16xf32> to vector<1x16x16xf32>
    %341 = vector.shape_cast %340 : vector<1x16x16xf32> to vector<16x16xf32>
    %342 = vector.extract_strided_slice %335 {offsets = [3, 0, 0], sizes = [1, 16, 16], strides = [1, 1, 1]} : vector<8x16x16xf32> to vector<1x16x16xf32>
    %343 = vector.shape_cast %342 : vector<1x16x16xf32> to vector<16x16xf32>
    %344 = vector.extract_strided_slice %335 {offsets = [4, 0, 0], sizes = [1, 16, 16], strides = [1, 1, 1]} : vector<8x16x16xf32> to vector<1x16x16xf32>
    %345 = vector.shape_cast %344 : vector<1x16x16xf32> to vector<16x16xf32>
    %346 = vector.extract_strided_slice %335 {offsets = [5, 0, 0], sizes = [1, 16, 16], strides = [1, 1, 1]} : vector<8x16x16xf32> to vector<1x16x16xf32>
    %347 = vector.shape_cast %346 : vector<1x16x16xf32> to vector<16x16xf32>
    %348 = vector.extract_strided_slice %335 {offsets = [6, 0, 0], sizes = [1, 16, 16], strides = [1, 1, 1]} : vector<8x16x16xf32> to vector<1x16x16xf32>
    %349 = vector.shape_cast %348 : vector<1x16x16xf32> to vector<16x16xf32>
    %350 = vector.extract_strided_slice %335 {offsets = [7, 0, 0], sizes = [1, 16, 16], strides = [1, 1, 1]} : vector<8x16x16xf32> to vector<1x16x16xf32>
    %351 = vector.shape_cast %350 : vector<1x16x16xf32> to vector<16x16xf32>
    %352 = tpu.concatenate %337, %339, %341, %343, %345, %347, %349, %351 in 1 : vector<16x16xf32>, vector<16x16xf32>, vector<16x16xf32>, vector<16x16xf32>, vector<16x16xf32>, vector<16x16xf32>, vector<16x16xf32>, vector<16x16xf32> -> vector<16x128xf32>
    %353 = vector.extract_strided_slice %266 {offsets = [16, 0], sizes = [16, 128], strides = [1, 1]} : vector<32x128xbf16> to vector<16x128xbf16>
    %354 = vector.extract_strided_slice %267 {offsets = [16, 0], sizes = [16, 128], strides = [1, 1]} : vector<32x128xbf16> to vector<16x128xbf16>
    %355 = vector.extract_strided_slice %268 {offsets = [16, 0], sizes = [16, 128], strides = [1, 1]} : vector<32x128xbf16> to vector<16x128xbf16>
    %356 = vector.extract_strided_slice %353 {offsets = [0, 0], sizes = [16, 16], strides = [1, 1]} : vector<16x128xbf16> to vector<16x16xbf16>
    %357 = vector.extract_strided_slice %353 {offsets = [0, 16], sizes = [16, 16], strides = [1, 1]} : vector<16x128xbf16> to vector<16x16xbf16>
    %358 = vector.extract_strided_slice %353 {offsets = [0, 32], sizes = [16, 16], strides = [1, 1]} : vector<16x128xbf16> to vector<16x16xbf16>
    %359 = vector.extract_strided_slice %353 {offsets = [0, 48], sizes = [16, 16], strides = [1, 1]} : vector<16x128xbf16> to vector<16x16xbf16>
    %360 = vector.extract_strided_slice %353 {offsets = [0, 64], sizes = [16, 16], strides = [1, 1]} : vector<16x128xbf16> to vector<16x16xbf16>
    %361 = vector.extract_strided_slice %353 {offsets = [0, 80], sizes = [16, 16], strides = [1, 1]} : vector<16x128xbf16> to vector<16x16xbf16>
    %362 = vector.extract_strided_slice %353 {offsets = [0, 96], sizes = [16, 16], strides = [1, 1]} : vector<16x128xbf16> to vector<16x16xbf16>
    %363 = vector.extract_strided_slice %353 {offsets = [0, 112], sizes = [16, 16], strides = [1, 1]} : vector<16x128xbf16> to vector<16x16xbf16>
    %364 = vector.shape_cast %356 : vector<16x16xbf16> to vector<1x16x16xbf16>
    %365 = vector.shape_cast %357 : vector<16x16xbf16> to vector<1x16x16xbf16>
    %366 = vector.shape_cast %358 : vector<16x16xbf16> to vector<1x16x16xbf16>
    %367 = vector.shape_cast %359 : vector<16x16xbf16> to vector<1x16x16xbf16>
    %368 = vector.shape_cast %360 : vector<16x16xbf16> to vector<1x16x16xbf16>
    %369 = vector.shape_cast %361 : vector<16x16xbf16> to vector<1x16x16xbf16>
    %370 = vector.shape_cast %362 : vector<16x16xbf16> to vector<1x16x16xbf16>
    %371 = vector.shape_cast %363 : vector<16x16xbf16> to vector<1x16x16xbf16>
    %372 = tpu.concatenate %364, %365, %366, %367, %368, %369, %370, %371 in 0 : vector<1x16x16xbf16>, vector<1x16x16xbf16>, vector<1x16x16xbf16>, vector<1x16x16xbf16>, vector<1x16x16xbf16>, vector<1x16x16xbf16>, vector<1x16x16xbf16>, vector<1x16x16xbf16> -> vector<8x16x16xbf16>
    %373 = vector.extract_strided_slice %354 {offsets = [0, 0], sizes = [16, 16], strides = [1, 1]} : vector<16x128xbf16> to vector<16x16xbf16>
    %374 = vector.extract_strided_slice %354 {offsets = [0, 16], sizes = [16, 16], strides = [1, 1]} : vector<16x128xbf16> to vector<16x16xbf16>
    %375 = vector.extract_strided_slice %354 {offsets = [0, 32], sizes = [16, 16], strides = [1, 1]} : vector<16x128xbf16> to vector<16x16xbf16>
    %376 = vector.extract_strided_slice %354 {offsets = [0, 48], sizes = [16, 16], strides = [1, 1]} : vector<16x128xbf16> to vector<16x16xbf16>
    %377 = vector.extract_strided_slice %354 {offsets = [0, 64], sizes = [16, 16], strides = [1, 1]} : vector<16x128xbf16> to vector<16x16xbf16>
    %378 = vector.extract_strided_slice %354 {offsets = [0, 80], sizes = [16, 16], strides = [1, 1]} : vector<16x128xbf16> to vector<16x16xbf16>
    %379 = vector.extract_strided_slice %354 {offsets = [0, 96], sizes = [16, 16], strides = [1, 1]} : vector<16x128xbf16> to vector<16x16xbf16>
    %380 = vector.extract_strided_slice %354 {offsets = [0, 112], sizes = [16, 16], strides = [1, 1]} : vector<16x128xbf16> to vector<16x16xbf16>
    %381 = vector.shape_cast %373 : vector<16x16xbf16> to vector<1x16x16xbf16>
    %382 = vector.shape_cast %374 : vector<16x16xbf16> to vector<1x16x16xbf16>
    %383 = vector.shape_cast %375 : vector<16x16xbf16> to vector<1x16x16xbf16>
    %384 = vector.shape_cast %376 : vector<16x16xbf16> to vector<1x16x16xbf16>
    %385 = vector.shape_cast %377 : vector<16x16xbf16> to vector<1x16x16xbf16>
    %386 = vector.shape_cast %378 : vector<16x16xbf16> to vector<1x16x16xbf16>
    %387 = vector.shape_cast %379 : vector<16x16xbf16> to vector<1x16x16xbf16>
    %388 = vector.shape_cast %380 : vector<16x16xbf16> to vector<1x16x16xbf16>
    %389 = tpu.concatenate %381, %382, %383, %384, %385, %386, %387, %388 in 0 : vector<1x16x16xbf16>, vector<1x16x16xbf16>, vector<1x16x16xbf16>, vector<1x16x16xbf16>, vector<1x16x16xbf16>, vector<1x16x16xbf16>, vector<1x16x16xbf16>, vector<1x16x16xbf16> -> vector<8x16x16xbf16>
    %390 = vector.extract_strided_slice %355 {offsets = [0, 0], sizes = [16, 16], strides = [1, 1]} : vector<16x128xbf16> to vector<16x16xbf16>
    %391 = vector.extract_strided_slice %355 {offsets = [0, 16], sizes = [16, 16], strides = [1, 1]} : vector<16x128xbf16> to vector<16x16xbf16>
    %392 = vector.extract_strided_slice %355 {offsets = [0, 32], sizes = [16, 16], strides = [1, 1]} : vector<16x128xbf16> to vector<16x16xbf16>
    %393 = vector.extract_strided_slice %355 {offsets = [0, 48], sizes = [16, 16], strides = [1, 1]} : vector<16x128xbf16> to vector<16x16xbf16>
    %394 = vector.extract_strided_slice %355 {offsets = [0, 64], sizes = [16, 16], strides = [1, 1]} : vector<16x128xbf16> to vector<16x16xbf16>
    %395 = vector.extract_strided_slice %355 {offsets = [0, 80], sizes = [16, 16], strides = [1, 1]} : vector<16x128xbf16> to vector<16x16xbf16>
    %396 = vector.extract_strided_slice %355 {offsets = [0, 96], sizes = [16, 16], strides = [1, 1]} : vector<16x128xbf16> to vector<16x16xbf16>
    %397 = vector.extract_strided_slice %355 {offsets = [0, 112], sizes = [16, 16], strides = [1, 1]} : vector<16x128xbf16> to vector<16x16xbf16>
    %398 = vector.shape_cast %390 : vector<16x16xbf16> to vector<1x16x16xbf16>
    %399 = vector.shape_cast %391 : vector<16x16xbf16> to vector<1x16x16xbf16>
    %400 = vector.shape_cast %392 : vector<16x16xbf16> to vector<1x16x16xbf16>
    %401 = vector.shape_cast %393 : vector<16x16xbf16> to vector<1x16x16xbf16>
    %402 = vector.shape_cast %394 : vector<16x16xbf16> to vector<1x16x16xbf16>
    %403 = vector.shape_cast %395 : vector<16x16xbf16> to vector<1x16x16xbf16>
    %404 = vector.shape_cast %396 : vector<16x16xbf16> to vector<1x16x16xbf16>
    %405 = vector.shape_cast %397 : vector<16x16xbf16> to vector<1x16x16xbf16>
    %406 = tpu.concatenate %398, %399, %400, %401, %402, %403, %404, %405 in 0 : vector<1x16x16xbf16>, vector<1x16x16xbf16>, vector<1x16x16xbf16>, vector<1x16x16xbf16>, vector<1x16x16xbf16>, vector<1x16x16xbf16>, vector<1x16x16xbf16>, vector<1x16x16xbf16> -> vector<8x16x16xbf16>
    "tpu.trace_start"() <{level = 10 : i32, message = "hqd,hkd->hqk"}> : () -> ()
    %cst_66 = arith.constant dense<0.000000e+00> : vector<8x16x16xf32>
    %407 = tpu.matmul %372, %389, %cst_66 {dimension_numbers = #tpu.dot_dimension_numbers<[2], [2], [1], [1], [0, 0, 0, 1, 1, 1], [0], [0]>} : vector<8x16x16xbf16>, vector<8x16x16xbf16>, vector<8x16x16xf32> -> vector<8x16x16xf32>
    "tpu.trace_stop"() : () -> ()
    %cst_67 = arith.constant dense<0xFF800000> : vector<8x16xf32>
    %408 = vector.multi_reduction <maximumf>, %407, %cst_67 [2] : vector<8x16x16xf32> to vector<8x16xf32>
    %409 = vector.shape_cast %408 : vector<8x16xf32> to vector<8x16x1xf32>
    %410 = vector.broadcast %409 : vector<8x16x1xf32> to vector<8x16x16xf32>
    %411 = arith.subf %407, %410 : vector<8x16x16xf32>
    %412 = math.exp %411 : vector<8x16x16xf32>
    %cst_68 = arith.constant dense<0.000000e+00> : vector<8x16xf32>
    %413 = vector.multi_reduction <add>, %412, %cst_68 [2] : vector<8x16x16xf32> to vector<8x16xf32>
    %414 = vector.shape_cast %413 : vector<8x16xf32> to vector<8x16x1xf32>
    %415 = tpu.reciprocal %414 {approx = true} : vector<8x16x1xf32> -> vector<8x16x1xf32>
    %416 = vector.broadcast %415 : vector<8x16x1xf32> to vector<8x16x16xf32>
    %417 = arith.mulf %412, %416 : vector<8x16x16xf32>
    %418 = arith.truncf %417 : vector<8x16x16xf32> to vector<8x16x16xbf16>
    "tpu.trace_start"() <{level = 10 : i32, message = "hqk,hkd->hqd"}> : () -> ()
    %cst_69 = arith.constant dense<0.000000e+00> : vector<8x16x16xf32>
    %419 = tpu.matmul %418, %406, %cst_69 {dimension_numbers = #tpu.dot_dimension_numbers<[2], [1], [1], [2], [0, 0, 0, 1, 1, 2], [0], [0]>} : vector<8x16x16xbf16>, vector<8x16x16xbf16>, vector<8x16x16xf32> -> vector<8x16x16xf32>
    "tpu.trace_stop"() : () -> ()
    %420 = vector.extract_strided_slice %419 {offsets = [0, 0, 0], sizes = [1, 16, 16], strides = [1, 1, 1]} : vector<8x16x16xf32> to vector<1x16x16xf32>
    %421 = vector.shape_cast %420 : vector<1x16x16xf32> to vector<16x16xf32>
    %422 = vector.extract_strided_slice %419 {offsets = [1, 0, 0], sizes = [1, 16, 16], strides = [1, 1, 1]} : vector<8x16x16xf32> to vector<1x16x16xf32>
    %423 = vector.shape_cast %422 : vector<1x16x16xf32> to vector<16x16xf32>
    %424 = vector.extract_strided_slice %419 {offsets = [2, 0, 0], sizes = [1, 16, 16], strides = [1, 1, 1]} : vector<8x16x16xf32> to vector<1x16x16xf32>
    %425 = vector.shape_cast %424 : vector<1x16x16xf32> to vector<16x16xf32>
    %426 = vector.extract_strided_slice %419 {offsets = [3, 0, 0], sizes = [1, 16, 16], strides = [1, 1, 1]} : vector<8x16x16xf32> to vector<1x16x16xf32>
    %427 = vector.shape_cast %426 : vector<1x16x16xf32> to vector<16x16xf32>
    %428 = vector.extract_strided_slice %419 {offsets = [4, 0, 0], sizes = [1, 16, 16], strides = [1, 1, 1]} : vector<8x16x16xf32> to vector<1x16x16xf32>
    %429 = vector.shape_cast %428 : vector<1x16x16xf32> to vector<16x16xf32>
    %430 = vector.extract_strided_slice %419 {offsets = [5, 0, 0], sizes = [1, 16, 16], strides = [1, 1, 1]} : vector<8x16x16xf32> to vector<1x16x16xf32>
    %431 = vector.shape_cast %430 : vector<1x16x16xf32> to vector<16x16xf32>
    %432 = vector.extract_strided_slice %419 {offsets = [6, 0, 0], sizes = [1, 16, 16], strides = [1, 1, 1]} : vector<8x16x16xf32> to vector<1x16x16xf32>
    %433 = vector.shape_cast %432 : vector<1x16x16xf32> to vector<16x16xf32>
    %434 = vector.extract_strided_slice %419 {offsets = [7, 0, 0], sizes = [1, 16, 16], strides = [1, 1, 1]} : vector<8x16x16xf32> to vector<1x16x16xf32>
    %435 = vector.shape_cast %434 : vector<1x16x16xf32> to vector<16x16xf32>
    %436 = tpu.concatenate %421, %423, %425, %427, %429, %431, %433, %435 in 1 : vector<16x16xf32>, vector<16x16xf32>, vector<16x16xf32>, vector<16x16xf32>, vector<16x16xf32>, vector<16x16xf32>, vector<16x16xf32>, vector<16x16xf32> -> vector<16x128xf32>
    %437 = tpu.concatenate %352, %436 in 0 : vector<16x128xf32>, vector<16x128xf32> -> vector<32x128xf32>
    %438 = arith.truncf %437 : vector<32x128xf32> to vector<32x128xbf16>
    %c0_70 = arith.constant 0 : index
    %c0_71 = arith.constant 0 : index
    %439 = vector.load %arg19[%c0_70, %c0_71] : memref<128x128xbf16, #tpu.memory_space<vmem>>, vector<128x128xbf16>
    %cst_72 = arith.constant dense<0.000000e+00> : vector<32x128xf32>
    %440 = tpu.matmul %438, %439, %cst_72 {dimension_numbers = #tpu.dot_dimension_numbers<[1], [0], [0], [1], [0, 0, 1, 1], [], []>} : vector<32x128xbf16>, vector<128x128xbf16>, vector<32x128xf32> -> vector<32x128xf32>
    %441 = vector.broadcast %251 : vector<1x128xf32> to vector<32x128xf32>
    %442 = arith.addf %440, %441 : vector<32x128xf32>
    %443 = arith.addf %242, %442 : vector<32x128xf32>
    %c0_73 = arith.constant 0 : index
    %c0_74 = arith.constant 0 : index
    %444 = vector.load %arg21[%c0_73, %c0_74] : memref<1x128xbf16, #tpu.memory_space<vmem>>, vector<1x128xbf16>
    %445 = arith.extf %444 : vector<1x128xbf16> to vector<1x128xf32>
    %c0_75 = arith.constant 0 : index
    %c0_76 = arith.constant 0 : index
    %446 = vector.load %arg22[%c0_75, %c0_76] : memref<1x128xbf16, #tpu.memory_space<vmem>>, vector<1x128xbf16>
    %447 = arith.extf %446 : vector<1x128xbf16> to vector<1x128xf32>
    %cst_77 = arith.constant dense<0.000000e+00> : vector<32xf32>
    %448 = vector.multi_reduction <add>, %443, %cst_77 [1] : vector<32x128xf32> to vector<32xf32>
    %449 = vector.shape_cast %448 : vector<32xf32> to vector<32x1xf32>
    %cst_78 = arith.constant 1.280000e+02 : f32
    %450 = vector.broadcast %cst_78 : f32 to vector<32x1xf32>
    %451 = arith.divf %449, %450 : vector<32x1xf32>
    %452 = vector.broadcast %451 : vector<32x1xf32> to vector<32x128xf32>
    %453 = arith.subf %443, %452 : vector<32x128xf32>
    %454 = arith.mulf %453, %453 : vector<32x128xf32>
    %cst_79 = arith.constant dense<0.000000e+00> : vector<32xf32>
    %455 = vector.multi_reduction <add>, %454, %cst_79 [1] : vector<32x128xf32> to vector<32xf32>
    %456 = vector.shape_cast %455 : vector<32xf32> to vector<32x1xf32>
    %cst_80 = arith.constant 1.280000e+02 : f32
    %457 = vector.broadcast %cst_80 : f32 to vector<32x1xf32>
    %458 = arith.divf %456, %457 : vector<32x1xf32>
    %459 = vector.broadcast %451 : vector<32x1xf32> to vector<32x128xf32>
    %460 = arith.subf %443, %459 : vector<32x128xf32>
    %cst_81 = arith.constant 9.99999974E-6 : f32
    %461 = vector.broadcast %cst_81 : f32 to vector<32x1xf32>
    %462 = arith.addf %458, %461 : vector<32x1xf32>
    %463 = math.rsqrt %462 : vector<32x1xf32>
    %464 = vector.broadcast %463 : vector<32x1xf32> to vector<32x128xf32>
    %465 = arith.mulf %460, %464 : vector<32x128xf32>
    %466 = vector.broadcast %445 : vector<1x128xf32> to vector<32x128xf32>
    %467 = arith.mulf %465, %466 : vector<32x128xf32>
    %468 = vector.broadcast %447 : vector<1x128xf32> to vector<32x128xf32>
    %469 = arith.addf %467, %468 : vector<32x128xf32>
    %470 = arith.truncf %469 : vector<32x128xf32> to vector<32x128xbf16>
    %c0_82 = arith.constant 0 : index
    %c0_83 = arith.constant 0 : index
    %471 = vector.load %arg23[%c0_82, %c0_83] : memref<128x512xbf16, #tpu.memory_space<vmem>>, vector<128x512xbf16>
    %cst_84 = arith.constant dense<0.000000e+00> : vector<32x512xf32>
    %472 = tpu.matmul %470, %471, %cst_84 {dimension_numbers = #tpu.dot_dimension_numbers<[1], [0], [0], [1], [0, 0, 1, 1], [], []>} : vector<32x128xbf16>, vector<128x512xbf16>, vector<32x512xf32> -> vector<32x512xf32>
    %c0_85 = arith.constant 0 : index
    %c0_86 = arith.constant 0 : index
    %473 = vector.load %arg24[%c0_85, %c0_86] : memref<1x512xbf16, #tpu.memory_space<vmem>>, vector<1x512xbf16>
    %474 = arith.extf %473 : vector<1x512xbf16> to vector<1x512xf32>
    %475 = vector.broadcast %474 : vector<1x512xf32> to vector<32x512xf32>
    %476 = arith.addf %472, %475 : vector<32x512xf32>
    %cst_87 = arith.constant 5.000000e-01 : f32
    %477 = vector.broadcast %cst_87 : f32 to vector<32x512xf32>
    %478 = arith.mulf %477, %476 : vector<32x512xf32>
    %cst_88 = arith.constant 4.471500e-02 : f32
    %479 = vector.broadcast %cst_88 : f32 to vector<32x512xf32>
    %480 = arith.mulf %479, %476 : vector<32x512xf32>
    %481 = arith.mulf %480, %476 : vector<32x512xf32>
    %482 = arith.mulf %481, %476 : vector<32x512xf32>
    %483 = arith.addf %476, %482 : vector<32x512xf32>
    %cst_89 = arith.constant 0.797884583 : f32
    %484 = vector.broadcast %cst_89 : f32 to vector<32x512xf32>
    %485 = arith.mulf %484, %483 : vector<32x512xf32>
    %486 = math.tanh %485 : vector<32x512xf32>
    %cst_90 = arith.constant 1.000000e+00 : f32
    %487 = vector.broadcast %cst_90 : f32 to vector<32x512xf32>
    %488 = arith.addf %487, %486 : vector<32x512xf32>
    %489 = arith.mulf %478, %488 : vector<32x512xf32>
    %490 = arith.truncf %489 : vector<32x512xf32> to vector<32x512xbf16>
    %c0_91 = arith.constant 0 : index
    %c0_92 = arith.constant 0 : index
    %491 = vector.load %arg25[%c0_91, %c0_92] : memref<512x128xbf16, #tpu.memory_space<vmem>>, vector<512x128xbf16>
    %cst_93 = arith.constant dense<0.000000e+00> : vector<32x128xf32>
    %492 = tpu.matmul %490, %491, %cst_93 {dimension_numbers = #tpu.dot_dimension_numbers<[1], [0], [0], [1], [0, 0, 1, 1], [], []>} : vector<32x512xbf16>, vector<512x128xbf16>, vector<32x128xf32> -> vector<32x128xf32>
    %c0_94 = arith.constant 0 : index
    %c0_95 = arith.constant 0 : index
    %493 = vector.load %arg26[%c0_94, %c0_95] : memref<1x128xbf16, #tpu.memory_space<vmem>>, vector<1x128xbf16>
    %494 = arith.extf %493 : vector<1x128xbf16> to vector<1x128xf32>
    %495 = vector.broadcast %494 : vector<1x128xf32> to vector<32x128xf32>
    %496 = arith.addf %492, %495 : vector<32x128xf32>
    %497 = arith.addf %469, %496 : vector<32x128xf32>
    %c0_96 = arith.constant 0 : index
    %c0_97 = arith.constant 0 : index
    %498 = vector.load %arg27[%c0_96, %c0_97] : memref<1x128xbf16, #tpu.memory_space<vmem>>, vector<1x128xbf16>
    %499 = arith.extf %498 : vector<1x128xbf16> to vector<1x128xf32>
    %c0_98 = arith.constant 0 : index
    %c0_99 = arith.constant 0 : index
    %500 = vector.load %arg28[%c0_98, %c0_99] : memref<1x128xbf16, #tpu.memory_space<vmem>>, vector<1x128xbf16>
    %501 = arith.extf %500 : vector<1x128xbf16> to vector<1x128xf32>
    %cst_100 = arith.constant dense<0.000000e+00> : vector<32xf32>
    %502 = vector.multi_reduction <add>, %497, %cst_100 [1] : vector<32x128xf32> to vector<32xf32>
    %503 = vector.shape_cast %502 : vector<32xf32> to vector<32x1xf32>
    %cst_101 = arith.constant 1.280000e+02 : f32
    %504 = vector.broadcast %cst_101 : f32 to vector<32x1xf32>
    %505 = arith.divf %503, %504 : vector<32x1xf32>
    %506 = vector.broadcast %505 : vector<32x1xf32> to vector<32x128xf32>
    %507 = arith.subf %497, %506 : vector<32x128xf32>
    %508 = arith.mulf %507, %507 : vector<32x128xf32>
    %cst_102 = arith.constant dense<0.000000e+00> : vector<32xf32>
    %509 = vector.multi_reduction <add>, %508, %cst_102 [1] : vector<32x128xf32> to vector<32xf32>
    %510 = vector.shape_cast %509 : vector<32xf32> to vector<32x1xf32>
    %cst_103 = arith.constant 1.280000e+02 : f32
    %511 = vector.broadcast %cst_103 : f32 to vector<32x1xf32>
    %512 = arith.divf %510, %511 : vector<32x1xf32>
    %513 = vector.broadcast %505 : vector<32x1xf32> to vector<32x128xf32>
    %514 = arith.subf %497, %513 : vector<32x128xf32>
    %cst_104 = arith.constant 9.99999974E-6 : f32
    %515 = vector.broadcast %cst_104 : f32 to vector<32x1xf32>
    %516 = arith.addf %512, %515 : vector<32x1xf32>
    %517 = math.rsqrt %516 : vector<32x1xf32>
    %518 = vector.broadcast %517 : vector<32x1xf32> to vector<32x128xf32>
    %519 = arith.mulf %514, %518 : vector<32x128xf32>
    %520 = vector.broadcast %499 : vector<1x128xf32> to vector<32x128xf32>
    %521 = arith.mulf %519, %520 : vector<32x128xf32>
    %522 = vector.broadcast %501 : vector<1x128xf32> to vector<32x128xf32>
    %523 = arith.addf %521, %522 : vector<32x128xf32>
    %524 = vector.shape_cast %523 : vector<32x128xf32> to vector<2x16x128xf32>
    %525 = arith.truncf %524 : vector<2x16x128xf32> to vector<2x16x128xbf16>
    %c0_105 = arith.constant 0 : index
    %c0_106 = arith.constant 0 : index
    %c0_107 = arith.constant 0 : index
    %526 = vector.load %arg29[%c0_105, %c0_106, %c0_107] : memref<2x16x128xbf16, #tpu.memory_space<vmem>>, vector<2x16x128xbf16>
    tpu.vector_store %arg29[%c0_105, %c0_106, %c0_107], %525 {strides = array<i32>} : memref<2x16x128xbf16, #tpu.memory_space<vmem>>, vector<2x16x128xbf16>,
    return
  }
  func.func @transform_0(%arg0: i32) -> (i32, i32, i32) {
    %c0_i32 = arith.constant 0 : i32
    %c0_i32_0 = arith.constant 0 : i32
    %c0_i32_1 = arith.constant 0 : i32
    return %arg0, %c0_i32, %c0_i32_0 : i32, i32, i32
  }
  func.func @transform_1(%arg0: i32) -> (i32, i32, i32) {
    %c0_i32 = arith.constant 0 : i32
    %c0_i32_0 = arith.constant 0 : i32
    %c0_i32_1 = arith.constant 0 : i32
    return %arg0, %c0_i32, %c0_i32_0 : i32, i32, i32
  }
  func.func @transform_2(%arg0: i32) -> (i32, i32) {
    %c0_i32 = arith.constant 0 : i32
    %c0_i32_0 = arith.constant 0 : i32
    %c0_i32_1 = arith.constant 0 : i32
    return %c0_i32, %c0_i32_0 : i32, i32
  }
  func.func @transform_3(%arg0: i32) -> (i32, i32) {
    %c0_i32 = arith.constant 0 : i32
    %c0_i32_0 = arith.constant 0 : i32
    %c0_i32_1 = arith.constant 0 : i32
    return %c0_i32, %c0_i32_0 : i32, i32
  }
  func.func @transform_4(%arg0: i32) -> (i32, i32) {
    %c0_i32 = arith.constant 0 : i32
    %c0_i32_0 = arith.constant 0 : i32
    %c0_i32_1 = arith.constant 0 : i32
    return %c0_i32, %c0_i32_0 : i32, i32
  }
  func.func @transform_5(%arg0: i32) -> (i32, i32) {
    %c0_i32 = arith.constant 0 : i32
    %c0_i32_0 = arith.constant 0 : i32
    %c0_i32_1 = arith.constant 0 : i32
    return %c0_i32, %c0_i32_0 : i32, i32
  }
  func.func @transform_6(%arg0: i32) -> (i32, i32) {
    %c0_i32 = arith.constant 0 : i32
    %c0_i32_0 = arith.constant 0 : i32
    %c0_i32_1 = arith.constant 0 : i32
    return %c0_i32, %c0_i32_0 : i32, i32
  }
  func.func @transform_7(%arg0: i32) -> (i32, i32) {
    %c0_i32 = arith.constant 0 : i32
    %c0_i32_0 = arith.constant 0 : i32
    %c0_i32_1 = arith.constant 0 : i32
    return %c0_i32, %c0_i32_0 : i32, i32
  }
  func.func @transform_8(%arg0: i32) -> (i32, i32) {
    %c0_i32 = arith.constant 0 : i32
    %c0_i32_0 = arith.constant 0 : i32
    %c0_i32_1 = arith.constant 0 : i32
    return %c0_i32, %c0_i32_0 : i32, i32
  }
  func.func @transform_9(%arg0: i32) -> (i32, i32) {
    %c0_i32 = arith.constant 0 : i32
    %c0_i32_0 = arith.constant 0 : i32
    %c0_i32_1 = arith.constant 0 : i32
    return %c0_i32, %c0_i32_0 : i32, i32
  }
  func.func @transform_10(%arg0: i32) -> (i32, i32) {
    %c0_i32 = arith.constant 0 : i32
    %c0_i32_0 = arith.constant 0 : i32
    %c0_i32_1 = arith.constant 0 : i32
    return %c0_i32, %c0_i32_0 : i32, i32
  }
  func.func @transform_11(%arg0: i32) -> (i32, i32) {
    %c0_i32 = arith.constant 0 : i32
    %c0_i32_0 = arith.constant 0 : i32
    %c0_i32_1 = arith.constant 0 : i32
    return %c0_i32, %c0_i32_0 : i32, i32
  }
  func.func @transform_12(%arg0: i32) -> (i32, i32) {
    %c0_i32 = arith.constant 0 : i32
    %c0_i32_0 = arith.constant 0 : i32
    %c0_i32_1 = arith.constant 0 : i32
    return %c0_i32, %c0_i32_0 : i32, i32
  }
  func.func @transform_13(%arg0: i32) -> (i32, i32) {
    %c0_i32 = arith.constant 0 : i32
    %c0_i32_0 = arith.constant 0 : i32
    %c0_i32_1 = arith.constant 0 : i32
    return %c0_i32, %c0_i32_0 : i32, i32
  }
  func.func @transform_14(%arg0: i32) -> (i32, i32) {
    %c0_i32 = arith.constant 0 : i32
    %c0_i32_0 = arith.constant 0 : i32
    %c0_i32_1 = arith.constant 0 : i32
    return %c0_i32, %c0_i32_0 : i32, i32
  }
  func.func @transform_15(%arg0: i32) -> (i32, i32) {
    %c0_i32 = arith.constant 0 : i32
    %c0_i32_0 = arith.constant 0 : i32
    %c0_i32_1 = arith.constant 0 : i32
    return %c0_i32, %c0_i32_0 : i32, i32
  }
  func.func @transform_16(%arg0: i32) -> (i32, i32) {
    %c0_i32 = arith.constant 0 : i32
    %c0_i32_0 = arith.constant 0 : i32
    %c0_i32_1 = arith.constant 0 : i32
    return %c0_i32, %c0_i32_0 : i32, i32
  }
  func.func @transform_17(%arg0: i32) -> (i32, i32) {
    %c0_i32 = arith.constant 0 : i32
    %c0_i32_0 = arith.constant 0 : i32
    %c0_i32_1 = arith.constant 0 : i32
    return %c0_i32, %c0_i32_0 : i32, i32
  }
  func.func @transform_18(%arg0: i32) -> (i32, i32) {
    %c0_i32 = arith.constant 0 : i32
    %c0_i32_0 = arith.constant 0 : i32
    %c0_i32_1 = arith.constant 0 : i32
    return %c0_i32, %c0_i32_0 : i32, i32
  }
  func.func @transform_19(%arg0: i32) -> (i32, i32) {
    %c0_i32 = arith.constant 0 : i32
    %c0_i32_0 = arith.constant 0 : i32
    %c0_i32_1 = arith.constant 0 : i32
    return %c0_i32, %c0_i32_0 : i32, i32
  }
  func.func @transform_20(%arg0: i32) -> (i32, i32) {
    %c0_i32 = arith.constant 0 : i32
    %c0_i32_0 = arith.constant 0 : i32
    %c0_i32_1 = arith.constant 0 : i32
    return %c0_i32, %c0_i32_0 : i32, i32
  }
  func.func @transform_21(%arg0: i32) -> (i32, i32) {
    %c0_i32 = arith.constant 0 : i32
    %c0_i32_0 = arith.constant 0 : i32
    %c0_i32_1 = arith.constant 0 : i32
    return %c0_i32, %c0_i32_0 : i32, i32
  }
  func.func @transform_22(%arg0: i32) -> (i32, i32) {
    %c0_i32 = arith.constant 0 : i32
    %c0_i32_0 = arith.constant 0 : i32
    %c0_i32_1 = arith.constant 0 : i32
    return %c0_i32, %c0_i32_0 : i32, i32
  }
  func.func @transform_23(%arg0: i32) -> (i32, i32) {
    %c0_i32 = arith.constant 0 : i32
    %c0_i32_0 = arith.constant 0 : i32
    %c0_i32_1 = arith.constant 0 : i32
    return %c0_i32, %c0_i32_0 : i32, i32
  }
  func.func @transform_24(%arg0: i32) -> (i32, i32) {
    %c0_i32 = arith.constant 0 : i32
    %c0_i32_0 = arith.constant 0 : i32
    %c0_i32_1 = arith.constant 0 : i32
    return %c0_i32, %c0_i32_0 : i32, i32
  }
  func.func @transform_25(%arg0: i32) -> (i32, i32) {
    %c0_i32 = arith.constant 0 : i32
    %c0_i32_0 = arith.constant 0 : i32
    %c0_i32_1 = arith.constant 0 : i32
    return %c0_i32, %c0_i32_0 : i32, i32
  }
  func.func @transform_26(%arg0: i32) -> (i32, i32) {
    %c0_i32 = arith.constant 0 : i32
    %c0_i32_0 = arith.constant 0 : i32
    %c0_i32_1 = arith.constant 0 : i32
    return %c0_i32, %c0_i32_0 : i32, i32
  }
  func.func @transform_27(%arg0: i32) -> (i32, i32) {
    %c0_i32 = arith.constant 0 : i32
    %c0_i32_0 = arith.constant 0 : i32
    %c0_i32_1 = arith.constant 0 : i32
    return %c0_i32, %c0_i32_0 : i32, i32
  }
  func.func @transform_28(%arg0: i32) -> (i32, i32, i32) {
    %c0_i32 = arith.constant 0 : i32
    %c0_i32_0 = arith.constant 0 : i32
    %c0_i32_1 = arith.constant 0 : i32
    return %arg0, %c0_i32, %c0_i32_0 : i32, i32, i32
  }
}

</mosaic_0001>

<bundles_post_ra>
// kernel: tpu_custom_call.1
= control target key start
LH: loop header
LB: loop body
LE: loop exit
PB: predicated region body
PF: predicated region fallthrough
CT: control target
= control target key end

     0   :  { %s10892_s0 = inlined_call_operand.hbm [shape: bf16[2,16,128], index: 0, kind: input, shape index: {}]   ;;  %s10893_s1 = inlined_call_operand.hbm [shape: bf16[2,16,128], index: 1, kind: input, shape index: {}]   ;;  %s10894_s2 = inlined_call_operand.hbm [shape: bf16[128,128], index: 2, kind: input, shape index: {}]   ;;  %s10895_s3 = inlined_call_operand.hbm [shape: bf16[128,128], index: 3, kind: input, shape index: {}]   ;;  %s10896_s4 = inlined_call_operand.hbm [shape: bf16[128,128], index: 4, kind: input, shape index: {}]   ;;  %s10897_s5 = inlined_call_operand.hbm [shape: bf16[1,128], index: 5, kind: input, shape index: {}]   ;;  %s10898_s6 = inlined_call_operand.hbm [shape: bf16[1,128], index: 6, kind: input, shape index: {}]   ;;  %s10899_s7 = inlined_call_operand.hbm [shape: bf16[1,128], index: 7, kind: input, shape index: {}]   ;;  %s10900_s8 = inlined_call_operand.hbm [shape: bf16[128,128], index: 8, kind: input, shape index: {}]   ;;  %s10901_s9 = inlined_call_operand.hbm [shape: bf16[1,128], index: 9, kind: input, shape index: {}]   ;;  %s10902_s10 = inlined_call_operand.hbm [shape: bf16[1,128], index: 10, kind: input, shape index: {}]   ;;  %s10903_s11 = inlined_call_operand.hbm [shape: bf16[1,128], index: 11, kind: input, shape index: {}]   ;;  %s10904_s12 = inlined_call_operand.hbm [shape: bf16[128,128], index: 12, kind: input, shape index: {}]   ;;  %s10905_s13 = inlined_call_operand.hbm [shape: bf16[128,128], index: 13, kind: input, shape index: {}]   ;;  %s10906_s14 = inlined_call_operand.hbm [shape: bf16[128,128], index: 14, kind: input, shape index: {}]   ;;  %s10907_s15 = inlined_call_operand.hbm [shape: bf16[1,128], index: 15, kind: input, shape index: {}]   ;;  %s10908_s16 = inlined_call_operand.hbm [shape: bf16[1,128], index: 16, kind: input, shape index: {}]   ;;  %s10909_s17 = inlined_call_operand.hbm [shape: bf16[1,128], index: 17, kind: input, shape index: {}]   ;;  %s10910_s18 = inlined_call_operand.vmem [shape: bf16[128,128], index: 18, kind: input, shape index: {}]   ;;  %s10911_s19 = inlined_call_operand.vmem [shape: bf16[1,128], index: 19, kind: input, shape index: {}]   ;;  %s10912_s20 = inlined_call_operand.vmem [shape: bf16[1,128], index: 20, kind: input, shape index: {}]   ;;  %s10913_s21 = inlined_call_operand.vmem [shape: bf16[1,128], index: 21, kind: input, shape index: {}]   ;;  %s10914_s22 = inlined_call_operand.hbm [shape: bf16[128,512], index: 22, kind: input, shape index: {}]   ;;  %s10915_s23 = inlined_call_operand.vmem [shape: bf16[1,512], index: 23, kind: input, shape index: {}]   ;;  %s10916_s24 = inlined_call_operand.hbm [shape: bf16[512,128], index: 24, kind: input, shape index: {}]   ;;  %s10917_s25 = inlined_call_operand.vmem [shape: bf16[1,128], index: 25, kind: input, shape index: {}]   ;;  %s10918_s26 = inlined_call_operand.vmem [shape: bf16[1,128], index: 26, kind: input, shape index: {}]   ;;  %s10919_s27 = inlined_call_operand.vmem [shape: bf16[1,128], index: 27, kind: input, shape index: {}]   ;;  %s10920_s28 = inlined_call_operand.hbm [shape: bf16[2,16,128], index: 28, kind: output, shape index: {}]  }
   0x1   :  { %10935 = sst [smem:[#allocation47_spill]] %s10892_s0 }
   0x2   :  { %10936 = sst [smem:[#allocation48_spill]] %s10893_s1 }
   0x3   :  { %10937 = sst [smem:[#allocation49_spill]] %s10894_s2 }
   0x4   :  { %10938 = sst [smem:[#allocation50_spill]] %s10895_s3 }
   0x5   :  { %10939 = sst [smem:[#allocation51_spill]] %s10896_s4 }
   0x6   :  { %10940 = sst [smem:[#allocation52_spill]] %s10897_s5 }
   0x7   :  { %10941 = sst [smem:[#allocation53_spill]] %s10898_s6 }
   0x8   :  { %10942 = sst [smem:[#allocation54_spill]] %s10899_s7 }
   0x9   :  { %10943 = sst [smem:[#allocation55_spill]] %s10900_s8 }
   0xa   :  { %10944 = sst [smem:[#allocation56_spill]] %s10901_s9 }
   0xb   :  { %10945 = sst [smem:[#allocation57_spill]] %s10902_s10 }
   0xc   :  { %10946 = sst [smem:[#allocation58_spill]] %s10903_s11 }
   0xd   :  { %10947 = sst [smem:[#allocation59_spill]] %s10904_s12 }
   0xe   :  { %10948 = sst [smem:[#allocation60_spill]] %s10918_s26 }
   0xf   :  { %10949 = sst [smem:[#allocation61_spill]] %s10919_s27 }
  0x10   :  { %10950 = sst [smem:[#allocation62_spill]] %s10920_s28 }
  0x11   :  { %33 = vsyncpa [#allocation3], 0 }
  0x12   :  { %34 = vsyncpa [#allocation6], 0 }
  0x13   :  { %35 = vsyncpa [#allocation9], 0 }
  0x14   :  { %36 = vsyncpa [#allocation12], 0 }
  0x15   :  { %37 = vsyncpa [#allocation15], 0 }
  0x16   :  { %38 = vsyncpa [#allocation18], 0 }
  0x17   :  { %39 = vsyncpa [#allocation21], 0 }
  0x18   :  { %40 = vsyncpa [#allocation24], 0 }
  0x19   :  { %41 = vsyncpa [#allocation27], 0 }
  0x1a   :  { %42 = vsyncpa [#allocation30], 0 }
  0x1b   :  { %43 = vsyncpa [#allocation33], 0 }
  0x1c   :  { %44 = vsyncpa [#allocation4], 0  ;;  %s8759_s8 = smov [#allocation5]   ;;  %s8760_s9 = smov [#allocation8]  }
  0x1d   :  { %s62_s5 = sshll.u32 %s8759_s8, 4  ;;  %s86_s30 = sshll.u32 %s8760_s9, 4  ;;  %s63_s5 = int_to_ptr.vmem [resolvable:$true] %s62_s5  ;;  %s8937_s30 = int_to_ptr.vmem [resolvable:$true] %s86_s30 }
  0x1e   :  { %s10951_s10 = sld [smem:[#allocation48_spill]] }
  0x24   :  { %s8273_s0 = scalar_lea.hbm %s10951_s10, 256 }
  0x25   :  { %p8274_p0 = scmp.ne.s32.totalorder %s10951_s10, %s8273_s0  ;;  %p8277_p1 = scmp.lt.u32.totalorder %s8273_s0, %s10951_s10 }
  0x27   :  { %p8279_p2 = pnand %p8277_p1, %p8274_p0 }
  0x29   :  { %8282 = shalt.err (!%p8279_p2)
}
  0x2a   :  { %s8283_s12 = scalar_lea.vmem %s63_s5, 256  ;;  %p8288_p4 = scmp.lt.s32.totalorder %s63_s5, %s63_s5 }
  0x2b   :  { %p8284_p3 = scmp.ne.s32.totalorder %s63_s5, %s8283_s12  ;;  %p8289_p5 = scmp.lt.s32.totalorder %s8283_s12, %s8283_s12 }
  0x2d   :  { %p8290_p6 = por %p8289_p5, %p8288_p4 }
  0x2f   :  { %p8291_p7 = pnand %p8290_p6, %p8284_p3 }
  0x31   :  { %8294 = shalt.err (!%p8291_p7)
}
  0x32   :  { %s8761_s1 = smov 64   ;;  %s8762_s4 = smov 4  }
  0x33   :  { %68 = dma.hbm_to_vmem [thread:$0]  %s10951_s10, 256, %s63_s5, [#allocation6], %s8761_s1, %s8761_s1, %s8762_s4  }
  0x34   :  { %s10952_s0 = sld [smem:[#allocation50_spill]] }
  0x3a   :  { %s8295_s11 = scalar_lea.hbm %s10952_s0, 1024 }
  0x3b   :  { %p8296_p8 = scmp.ne.s32.totalorder %s10952_s0, %s8295_s11  ;;  %p8299_p9 = scmp.lt.u32.totalorder %s8295_s11, %s10952_s0 }
  0x3d   :  { %p8301_p10 = pnand %p8299_p9, %p8296_p8 }
  0x3f   :  { %8304 = shalt.err (!%p8301_p10)
}
  0x40   :  { %s8305_s28 = scalar_lea.vmem %s8937_s30, 1024  ;;  %p8310_p12 = scmp.lt.s32.totalorder %s8937_s30, %s8937_s30 }
  0x41   :  { %p8306_p11 = scmp.ne.s32.totalorder %s8937_s30, %s8305_s28  ;;  %p8311_p13 = scmp.lt.s32.totalorder %s8305_s28, %s8305_s28 }
  0x43   :  { %p8312_p0 = por %p8311_p13, %p8310_p12 }
  0x45   :  { %p8313_p1 = pnand %p8312_p0, %p8306_p11 }
  0x47   :  { %8316 = shalt.err (!%p8313_p1)
}
  0x48   :  { %92 = dma.hbm_to_vmem [thread:$0]  %s10952_s0, 1024, %s8937_s30, [#allocation9], %s8761_s1, %s8761_s1, %s8762_s4  }
  0x49   :  { %s8763_s8 = smov [#allocation11]   ;;  %s8764_s3 = smov [#allocation14]  }
  0x4a   :  { %s111_s9 = sshll.u32 %s8763_s8, 4  ;;  %s131_s6 = sshll.u32 %s8764_s3, 4  ;;  %s112_s9 = int_to_ptr.vmem [resolvable:$true] %s111_s9  ;;  %s132_s6 = int_to_ptr.vmem [resolvable:$true] %s131_s6 }
  0x4b   :  { %s10953_s28 = sld [smem:[#allocation52_spill]] }
  0x51   :  { %s8317_s2 = scalar_lea.hbm %s10953_s28, 16 }
  0x52   :  { %p8318_p2 = scmp.ne.s32.totalorder %s10953_s28, %s8317_s2  ;;  %p8321_p3 = scmp.lt.u32.totalorder %s8317_s2, %s10953_s28 }
  0x54   :  { %p8323_p4 = pnand %p8321_p3, %p8318_p2 }
  0x56   :  { %8326 = shalt.err (!%p8323_p4)
}
  0x57   :  { %s8327_s30 = scalar_lea.vmem %s112_s9, 16  ;;  %s8331_s0 = scalar_lea.vmem %s112_s9, 32 }
  0x58   :  { %p8328_p5 = scmp.ne.s32.totalorder %s112_s9, %s8327_s30  ;;  %p8332_p6 = scmp.lt.s32.totalorder %s112_s9, %s112_s9 }
  0x59   :  { %p8333_p7 = scmp.lt.s32.totalorder %s8331_s0, %s8327_s30 }
  0x5b   :  { %p8334_p8 = por %p8333_p7, %p8332_p6 }
  0x5d   :  { %p8335_p9 = pnand %p8334_p8, %p8328_p5 }
  0x5f   :  { %8338 = shalt.err (!%p8335_p9)
}
  0x60   :  { %114 = dma.hbm_to_vmem [thread:$0]  %s10953_s28, 16, %s112_s9, [#allocation12]  }
  0x61   :  { %s10954_s11 = sld [smem:[#allocation54_spill]] }
  0x67   :  { %s8339_s29 = scalar_lea.hbm %s10954_s11, 16 }
  0x68   :  { %p8340_p10 = scmp.ne.s32.totalorder %s10954_s11, %s8339_s29  ;;  %p8343_p11 = scmp.lt.u32.totalorder %s8339_s29, %s10954_s11 }
  0x6a   :  { %p8345_p12 = pnand %p8343_p11, %p8340_p10 }
  0x6c   :  { %8348 = shalt.err (!%p8345_p12)
}
  0x6d   :  { %s8349_s12 = scalar_lea.vmem %s132_s6, 16  ;;  %s8353_s30 = scalar_lea.vmem %s132_s6, 32 }
  0x6e   :  { %p8350_p13 = scmp.ne.s32.totalorder %s132_s6, %s8349_s12  ;;  %p8354_p0 = scmp.lt.s32.totalorder %s132_s6, %s132_s6 }
  0x6f   :  { %p8355_p1 = scmp.lt.s32.totalorder %s8353_s30, %s8349_s12 }
  0x71   :  { %p8356_p2 = por %p8355_p1, %p8354_p0 }
  0x73   :  { %p8357_p3 = pnand %p8356_p2, %p8350_p13 }
  0x75   :  { %8360 = shalt.err (!%p8357_p3)
}
  0x76   :  { %134 = dma.hbm_to_vmem [thread:$0]  %s10954_s11, 16, %s132_s6, [#allocation15]  }
  0x77   :  { %s8765_s0 = smov [#allocation17]   ;;  %s8766_s10 = smov [#allocation20]  }
  0x78   :  { %s153_s5 = sshll.u32 %s8765_s0, 4  ;;  %s173_s8 = sshll.u32 %s8766_s10, 4  ;;  %s154_s5 = int_to_ptr.vmem [resolvable:$true] %s153_s5  ;;  %s174_s8 = int_to_ptr.vmem [resolvable:$true] %s173_s8 }
  0x79   :  { %s10955_s26 = sld [smem:[#allocation56_spill]] }
  0x7f   :  { %s8361_s27 = scalar_lea.hbm %s10955_s26, 16 }
  0x80   :  { %p8362_p4 = scmp.ne.s32.totalorder %s10955_s26, %s8361_s27  ;;  %p8365_p5 = scmp.lt.u32.totalorder %s8361_s27, %s10955_s26 }
  0x82   :  { %p8367_p6 = pnand %p8365_p5, %p8362_p4 }
  0x84   :  { %8370 = shalt.err (!%p8367_p6)
}
  0x85   :  { %s8371_s6 = scalar_lea.vmem %s154_s5, 16  ;;  %s8375_s11 = scalar_lea.vmem %s154_s5, 32 }
  0x86   :  { %p8372_p7 = scmp.ne.s32.totalorder %s154_s5, %s8371_s6  ;;  %p8376_p8 = scmp.lt.s32.totalorder %s154_s5, %s154_s5 }
  0x87   :  { %p8377_p9 = scmp.lt.s32.totalorder %s8375_s11, %s8371_s6 }
  0x89   :  { %p8378_p10 = por %p8377_p9, %p8376_p8 }
  0x8b   :  { %p8379_p11 = pnand %p8378_p10, %p8372_p7 }
  0x8d   :  { %8382 = shalt.err (!%p8379_p11)
}
  0x8e   :  { %156 = dma.hbm_to_vmem [thread:$0]  %s10955_s26, 16, %s154_s5, [#allocation18]  }
  0x8f   :  { %s10956_s3 = sld [smem:[#allocation58_spill]] }
  0x95   :  { %s8383_s29 = scalar_lea.hbm %s10956_s3, 16 }
  0x96   :  { %p8384_p12 = scmp.ne.s32.totalorder %s10956_s3, %s8383_s29  ;;  %p8387_p13 = scmp.lt.u32.totalorder %s8383_s29, %s10956_s3 }
  0x98   :  { %p8389_p0 = pnand %p8387_p13, %p8384_p12 }
  0x9a   :  { %8392 = shalt.err (!%p8389_p0)
}
  0x9b   :  { %s8393_s30 = scalar_lea.vmem %s174_s8, 16  ;;  %s8397_s6 = scalar_lea.vmem %s174_s8, 32 }
  0x9c   :  { %p8394_p1 = scmp.ne.s32.totalorder %s174_s8, %s8393_s30  ;;  %p8398_p2 = scmp.lt.s32.totalorder %s174_s8, %s174_s8 }
  0x9d   :  { %p8399_p3 = scmp.lt.s32.totalorder %s8397_s6, %s8393_s30 }
  0x9f   :  { %p8400_p4 = por %p8399_p3, %p8398_p2 }
  0xa1   :  { %p8401_p5 = pnand %p8400_p4, %p8394_p1 }
  0xa3   :  { %8404 = shalt.err (!%p8401_p5)
}
  0xa4   :  { %176 = dma.hbm_to_vmem [thread:$0]  %s10956_s3, 16, %s174_s8, [#allocation21]  }
  0xa5   :  { %s8767_s11 = smov [#allocation23]   ;;  %s8768_s28 = smov [#allocation26]  }
  0xa6   :  { %s194_s9 = sshll.u32 %s8767_s11, 4  ;;  %s219_s0 = sshll.u32 %s8768_s28, 4  ;;  %s195_s9 = int_to_ptr.vmem [resolvable:$true] %s194_s9  ;;  %s220_s0 = int_to_ptr.vmem [resolvable:$true] %s219_s0 }
  0xa7   :  { %s8405_s2 = scalar_lea.hbm %s10905_s13, 1024 }
  0xa8   :  { %p8406_p6 = scmp.ne.s32.totalorder %s10905_s13, %s8405_s2  ;;  %p8409_p7 = scmp.lt.u32.totalorder %s8405_s2, %s10905_s13 }
  0xaa   :  { %p8411_p8 = pnand %p8409_p7, %p8406_p6 }
  0xac   :  { %8414 = shalt.err (!%p8411_p8)
}
  0xad   :  { %s8415_s8 = scalar_lea.vmem %s195_s9, 1024  ;;  %p8420_p10 = scmp.lt.s32.totalorder %s195_s9, %s195_s9 }
  0xae   :  { %p8416_p9 = scmp.ne.s32.totalorder %s195_s9, %s8415_s8  ;;  %p8421_p11 = scmp.lt.s32.totalorder %s8415_s8, %s8415_s8 }
  0xb0   :  { %p8422_p12 = por %p8421_p11, %p8420_p10 }
  0xb2   :  { %p8423_p13 = pnand %p8422_p12, %p8416_p9 }
  0xb4   :  { %8426 = shalt.err (!%p8423_p13)
}
  0xb5   :  { %200 = dma.hbm_to_vmem [thread:$0]  %s10905_s13, 1024, %s195_s9, [#allocation24], %s8761_s1, %s8761_s1, %s8762_s4  }
  0xb6   :  { %s8427_s11 = scalar_lea.hbm %s10907_s15, 16 }
  0xb7   :  { %p8428_p0 = scmp.ne.s32.totalorder %s10907_s15, %s8427_s11  ;;  %p8431_p1 = scmp.lt.u32.totalorder %s8427_s11, %s10907_s15 }
  0xb9   :  { %p8433_p2 = pnand %p8431_p1, %p8428_p0 }
  0xbb   :  { %8436 = shalt.err (!%p8433_p2)
}
  0xbc   :  { %s8437_s27 = scalar_lea.vmem %s220_s0, 16  ;;  %s8441_s7 = scalar_lea.vmem %s220_s0, 32 }
  0xbd   :  { %p8438_p3 = scmp.ne.s32.totalorder %s220_s0, %s8437_s27  ;;  %p8442_p4 = scmp.lt.s32.totalorder %s220_s0, %s220_s0 }
  0xbe   :  { %p8443_p5 = scmp.lt.s32.totalorder %s8441_s7, %s8437_s27 }
  0xc0   :  { %p8444_p6 = por %p8443_p5, %p8442_p4 }
  0xc2   :  { %p8445_p7 = pnand %p8444_p6, %p8438_p3 }
  0xc4   :  { %8448 = shalt.err (!%p8445_p7)
}
  0xc5   :  { %222 = dma.hbm_to_vmem [thread:$0]  %s10907_s15, 16, %s220_s0, [#allocation27]  }
  0xc6   :  { %s8769_s12 = smov [#allocation29]   ;;  %s8770_s8 = smov [#allocation2]  }
  0xc7   :  { %s239_s30 = sshll.u32 %s8769_s12, 4  ;;  %s50_s3 = sshll.u32 %s8770_s8, 4  ;;  %s240_s30 = int_to_ptr.vmem [resolvable:$true] %s239_s30  ;;  %s9049_s3 = int_to_ptr.vmem [resolvable:$true] %s50_s3 }
  0xc8   :  { %s8449_s26 = scalar_lea.hbm %s10909_s17, 16 }
  0xc9   :  { %p8450_p8 = scmp.ne.s32.totalorder %s10909_s17, %s8449_s26  ;;  %p8453_p9 = scmp.lt.u32.totalorder %s8449_s26, %s10909_s17 }
  0xcb   :  { %p8455_p10 = pnand %p8453_p9, %p8450_p8 }
  0xcd   :  { %8458 = shalt.err (!%p8455_p10)
}
  0xce   :  { %s8459_s15 = scalar_lea.vmem %s240_s30, 16  ;;  %s8463_s0 = scalar_lea.vmem %s240_s30, 32 }
  0xcf   :  { %p8460_p11 = scmp.ne.s32.totalorder %s240_s30, %s8459_s15  ;;  %p8464_p12 = scmp.lt.s32.totalorder %s240_s30, %s240_s30 }
  0xd0   :  { %p8465_p13 = scmp.lt.s32.totalorder %s8463_s0, %s8459_s15 }
  0xd2   :  { %p8466_p0 = por %p8465_p13, %p8464_p12 }
  0xd4   :  { %p8467_p1 = pnand %p8466_p0, %p8460_p11 }
  0xd6   :  { %8470 = shalt.err (!%p8467_p1)
}
  0xd7   :  { %242 = dma.hbm_to_vmem [thread:$0]  %s10909_s17, 16, %s240_s30, [#allocation30]  }
  0xd8   :  { %s10957_s9 = sld [smem:[#allocation47_spill]] }
  0xde   :  { %s8471_s12 = scalar_lea.hbm %s10957_s9, 256 }
  0xdf   :  { %p8472_p2 = scmp.ne.s32.totalorder %s10957_s9, %s8471_s12  ;;  %p8475_p3 = scmp.lt.u32.totalorder %s8471_s12, %s10957_s9 }
  0xe1   :  { %p8477_p4 = pnand %p8475_p3, %p8472_p2 }
  0xe3   :  { %8480 = shalt.err (!%p8477_p4)
}
  0xe4   :  { %s8481_s11 = scalar_lea.vmem %s9049_s3, 256  ;;  %p8486_p6 = scmp.lt.s32.totalorder %s9049_s3, %s9049_s3 }
  0xe5   :  { %p8482_p5 = scmp.ne.s32.totalorder %s9049_s3, %s8481_s11  ;;  %p8487_p7 = scmp.lt.s32.totalorder %s8481_s11, %s8481_s11 }
  0xe7   :  { %p8488_p8 = por %p8487_p7, %p8486_p6 }
  0xe9   :  { %p8489_p9 = pnand %p8488_p8, %p8482_p5 }
  0xeb   :  { %8492 = shalt.err (!%p8489_p9)
}
  0xec   :  { %56 = dma.hbm_to_vmem [thread:$0]  %s10957_s9, 256, %s9049_s3, [#allocation3], %s8761_s1, %s8761_s1, %s8762_s4  }
  0xed   :  { %s8771_s28 = smov [#allocation7]   ;;  %s8772_s29 = smov [#allocation10]  }
  0xee   :  { %s74_s10 = sshll.u32 %s8771_s28, 4  ;;  %s98_s15 = sshll.u32 %s8772_s29, 4  ;;  %s75_s10 = int_to_ptr.vmem [resolvable:$true] %s74_s10  ;;  %s9083_s15 = int_to_ptr.vmem [resolvable:$true] %s98_s15 }
  0xef   :  { %s10958_s27 = sld [smem:[#allocation49_spill]] }
  0xf5   :  { %s8493_s7 = scalar_lea.hbm %s10958_s27, 1024 }
  0xf6   :  { %p8494_p10 = scmp.ne.s32.totalorder %s10958_s27, %s8493_s7  ;;  %p8497_p11 = scmp.lt.u32.totalorder %s8493_s7, %s10958_s27 }
  0xf8   :  { %p8499_p12 = pnand %p8497_p11, %p8494_p10 }
  0xfa   :  { %8502 = shalt.err (!%p8499_p12)
}
  0xfb   :  { %s8503_s3 = scalar_lea.vmem %s75_s10, 1024  ;;  %p8508_p0 = scmp.lt.s32.totalorder %s75_s10, %s75_s10 }
  0xfc   :  { %p8504_p13 = scmp.ne.s32.totalorder %s75_s10, %s8503_s3  ;;  %p8509_p1 = scmp.lt.s32.totalorder %s8503_s3, %s8503_s3 }
  0xfe   :  { %p8510_p2 = por %p8509_p1, %p8508_p0 }
 0x100   :  { %p8511_p3 = pnand %p8510_p2, %p8504_p13 }
 0x102   :  { %8514 = shalt.err (!%p8511_p3)
}
 0x103   :  { %80 = dma.hbm_to_vmem [thread:$0]  %s10958_s27, 1024, %s75_s10, [#allocation6], %s8761_s1, %s8761_s1, %s8762_s4  }
 0x104   :  { %s10959_s17 = sld [smem:[#allocation51_spill]] }
 0x10a   :  { %s8515_s30 = scalar_lea.hbm %s10959_s17, 1024 }
 0x10b   :  { %p8516_p4 = scmp.ne.s32.totalorder %s10959_s17, %s8515_s30  ;;  %p8519_p5 = scmp.lt.u32.totalorder %s8515_s30, %s10959_s17 }
 0x10d   :  { %p8521_p6 = pnand %p8519_p5, %p8516_p4 }
 0x10f   :  { %8524 = shalt.err (!%p8521_p6)
}
 0x110   :  { %s8525_s7 = scalar_lea.vmem %s9083_s15, 1024  ;;  %p8530_p8 = scmp.lt.s32.totalorder %s9083_s15, %s9083_s15 }
 0x111   :  { %p8526_p7 = scmp.ne.s32.totalorder %s9083_s15, %s8525_s7  ;;  %p8531_p9 = scmp.lt.s32.totalorder %s8525_s7, %s8525_s7 }
 0x113   :  { %p8532_p10 = por %p8531_p9, %p8530_p8 }
 0x115   :  { %p8533_p11 = pnand %p8532_p10, %p8526_p7 }
 0x117   :  { %8536 = shalt.err (!%p8533_p11)
}
 0x118   :  { %104 = dma.hbm_to_vmem [thread:$0]  %s10959_s17, 1024, %s9083_s15, [#allocation9], %s8761_s1, %s8761_s1, %s8762_s4  }
 0x119   :  { %s8773_s13 = smov [#allocation13]   ;;  %s8774_s8 = smov [#allocation16]  }
 0x11a   :  { %s121_s12 = sshll.u32 %s8773_s13, 4  ;;  %s140_s6 = sshll.u32 %s8774_s8, 4  ;;  %s122_s12 = int_to_ptr.vmem [resolvable:$true] %s121_s12  ;;  %s9120_s6 = int_to_ptr.vmem [resolvable:$true] %s140_s6 }
 0x11b   :  { %s10960_s5 = sld [smem:[#allocation53_spill]] }
 0x121   :  { %s8537_s26 = scalar_lea.hbm %s10960_s5, 16 }
 0x122   :  { %p8538_p12 = scmp.ne.s32.totalorder %s10960_s5, %s8537_s26  ;;  %p8541_p13 = scmp.lt.u32.totalorder %s8537_s26, %s10960_s5 }
 0x124   :  { %p8543_p0 = pnand %p8541_p13, %p8538_p12 }
 0x126   :  { %8546 = shalt.err (!%p8543_p0)
}
 0x127   :  { %s8547_s15 = scalar_lea.vmem %s122_s12, 16  ;;  %s8551_s17 = scalar_lea.vmem %s122_s12, 32 }
 0x128   :  { %p8548_p1 = scmp.ne.s32.totalorder %s122_s12, %s8547_s15  ;;  %p8552_p2 = scmp.lt.s32.totalorder %s122_s12, %s122_s12 }
 0x129   :  { %p8553_p3 = scmp.lt.s32.totalorder %s8551_s17, %s8547_s15 }
 0x12b   :  { %p8554_p4 = por %p8553_p3, %p8552_p2 }
 0x12d   :  { %p8555_p5 = pnand %p8554_p4, %p8548_p1 }
 0x12f   :  { %8558 = shalt.err (!%p8555_p5)
}
 0x130   :  { %124 = dma.hbm_to_vmem [thread:$0]  %s10960_s5, 16, %s122_s12, [#allocation12]  }
 0x131   :  { %s10961_s27 = sld [smem:[#allocation55_spill]] }
 0x137   :  { %s8559_s13 = scalar_lea.hbm %s10961_s27, 1024 }
 0x138   :  { %p8560_p6 = scmp.ne.s32.totalorder %s10961_s27, %s8559_s13  ;;  %p8563_p7 = scmp.lt.u32.totalorder %s8559_s13, %s10961_s27 }
 0x13a   :  { %p8565_p8 = pnand %p8563_p7, %p8560_p6 }
 0x13c   :  { %8568 = shalt.err (!%p8565_p8)
}
 0x13d   :  { %s8569_s11 = scalar_lea.vmem %s9120_s6, 1024  ;;  %p8574_p10 = scmp.lt.s32.totalorder %s9120_s6, %s9120_s6 }
 0x13e   :  { %p8570_p9 = scmp.ne.s32.totalorder %s9120_s6, %s8569_s11  ;;  %p8575_p11 = scmp.lt.s32.totalorder %s8569_s11, %s8569_s11 }
 0x140   :  { %p8576_p12 = por %p8575_p11, %p8574_p10 }
 0x142   :  { %p8577_p13 = pnand %p8576_p12, %p8570_p9 }
 0x144   :  { %8580 = shalt.err (!%p8577_p13)
}
 0x145   :  { %146 = dma.hbm_to_vmem [thread:$0]  %s10961_s27, 1024, %s9120_s6, [#allocation15], %s8761_s1, %s8761_s1, %s8762_s4  }
 0x146   :  { %s8775_s30 = smov [#allocation19]   ;;  %s8776_s29 = smov [#allocation22]  }
 0x147   :  { %s163_s28 = sshll.u32 %s8775_s30, 4  ;;  %s182_s15 = sshll.u32 %s8776_s29, 4  ;;  %s164_s28 = int_to_ptr.vmem [resolvable:$true] %s163_s28  ;;  %s9154_s15 = int_to_ptr.vmem [resolvable:$true] %s182_s15 }
 0x148   :  { %s10962_s2 = sld [smem:[#allocation57_spill]] }
 0x14e   :  { %s8581_s7 = scalar_lea.hbm %s10962_s2, 16 }
 0x14f   :  { %p8582_p0 = scmp.ne.s32.totalorder %s10962_s2, %s8581_s7  ;;  %p8585_p1 = scmp.lt.u32.totalorder %s8581_s7, %s10962_s2 }
 0x151   :  { %p8587_p2 = pnand %p8585_p1, %p8582_p0 }
 0x153   :  { %8590 = shalt.err (!%p8587_p2)
}
 0x154   :  { %s8591_s6 = scalar_lea.vmem %s164_s28, 16  ;;  %s8595_s27 = scalar_lea.vmem %s164_s28, 32 }
 0x155   :  { %p8592_p3 = scmp.ne.s32.totalorder %s164_s28, %s8591_s6  ;;  %p8596_p4 = scmp.lt.s32.totalorder %s164_s28, %s164_s28 }
 0x156   :  { %p8597_p5 = scmp.lt.s32.totalorder %s8595_s27, %s8591_s6 }
 0x158   :  { %p8598_p6 = por %p8597_p5, %p8596_p4 }
 0x15a   :  { %p8599_p7 = pnand %p8598_p6, %p8592_p3 }
 0x15c   :  { %8602 = shalt.err (!%p8599_p7)
}
 0x15d   :  { %166 = dma.hbm_to_vmem [thread:$0]  %s10962_s2, 16, %s164_s28, [#allocation18]  }
 0x15e   :  { %s10963_s5 = sld [smem:[#allocation59_spill]] }
 0x164   :  { %s8603_s30 = scalar_lea.hbm %s10963_s5, 1024 }
 0x165   :  { %p8604_p8 = scmp.ne.s32.totalorder %s10963_s5, %s8603_s30  ;;  %p8607_p9 = scmp.lt.u32.totalorder %s8603_s30, %s10963_s5 }
 0x167   :  { %p8609_p10 = pnand %p8607_p9, %p8604_p8 }
 0x169   :  { %8612 = shalt.err (!%p8609_p10)
}
 0x16a   :  { %s8613_s10 = scalar_lea.vmem %s9154_s15, 1024  ;;  %p8618_p12 = scmp.lt.s32.totalorder %s9154_s15, %s9154_s15 }
 0x16b   :  { %p8614_p11 = scmp.ne.s32.totalorder %s9154_s15, %s8613_s10  ;;  %p8619_p13 = scmp.lt.s32.totalorder %s8613_s10, %s8613_s10 }
 0x16d   :  { %p8620_p0 = por %p8619_p13, %p8618_p12 }
 0x16f   :  { %p8621_p1 = pnand %p8620_p0, %p8614_p11 }
 0x171   :  { %8624 = shalt.err (!%p8621_p1)
}
 0x172   :  { %188 = dma.hbm_to_vmem [thread:$0]  %s10963_s5, 1024, %s9154_s15, [#allocation21], %s8761_s1, %s8761_s1, %s8762_s4  }
 0x173   :  { %s8777_s13 = smov [#allocation25]   ;;  %s8778_s3 = smov [#allocation28]  }
 0x174   :  { %s206_s8 = sshll.u32 %s8777_s13, 4  ;;  %s229_s6 = sshll.u32 %s8778_s3, 4  ;;  %s207_s8 = int_to_ptr.vmem [resolvable:$true] %s206_s8  ;;  %s230_s6 = int_to_ptr.vmem [resolvable:$true] %s229_s6 }
 0x175   :  { %s8625_s26 = scalar_lea.hbm %s10906_s14, 1024 }
 0x176   :  { %p8626_p2 = scmp.ne.s32.totalorder %s10906_s14, %s8625_s26  ;;  %p8629_p3 = scmp.lt.u32.totalorder %s8625_s26, %s10906_s14 }
 0x178   :  { %p8631_p4 = pnand %p8629_p3, %p8626_p2 }
 0x17a   :  { %8634 = shalt.err (!%p8631_p4)
}
 0x17b   :  { %s8635_s15 = scalar_lea.vmem %s207_s8, 1024  ;;  %p8640_p6 = scmp.lt.s32.totalorder %s207_s8, %s207_s8 }
 0x17c   :  { %p8636_p5 = scmp.ne.s32.totalorder %s207_s8, %s8635_s15  ;;  %p8641_p7 = scmp.lt.s32.totalorder %s8635_s15, %s8635_s15 }
 0x17e   :  { %p8642_p8 = por %p8641_p7, %p8640_p6 }
 0x180   :  { %p8643_p9 = pnand %p8642_p8, %p8636_p5 }
 0x182   :  { %8646 = shalt.err (!%p8643_p9)
}
 0x183   :  { %212 = dma.hbm_to_vmem [thread:$0]  %s10906_s14, 1024, %s207_s8, [#allocation24], %s8761_s1, %s8761_s1, %s8762_s4  }
 0x184   :  { %s8647_s10 = scalar_lea.hbm %s10908_s16, 16 }
 0x185   :  { %p8648_p10 = scmp.ne.s32.totalorder %s10908_s16, %s8647_s10  ;;  %p8651_p11 = scmp.lt.u32.totalorder %s8647_s10, %s10908_s16 }
 0x187   :  { %p8653_p12 = pnand %p8651_p11, %p8648_p10 }
 0x189   :  { %8656 = shalt.err (!%p8653_p12)
}
 0x18a   :  { %s8657_s27 = scalar_lea.vmem %s230_s6, 16  ;;  %s8661_s9 = scalar_lea.vmem %s230_s6, 32 }
 0x18b   :  { %p8658_p13 = scmp.ne.s32.totalorder %s230_s6, %s8657_s27  ;;  %p8662_p0 = scmp.lt.s32.totalorder %s230_s6, %s230_s6 }
 0x18c   :  { %p8663_p1 = scmp.lt.s32.totalorder %s8661_s9, %s8657_s27 }
 0x18e   :  { %p8664_p2 = por %p8663_p1, %p8662_p0 }
 0x190   :  { %p8665_p3 = pnand %p8664_p2, %p8658_p13 }
 0x192   :  { %8668 = shalt.err (!%p8665_p3)
}
 0x193   :  { %232 = dma.hbm_to_vmem [thread:$0]  %s10908_s16, 16, %s230_s6, [#allocation27]  }
 0x194   :  { %s8779_s26 = smov [#allocation31]   ;;  %s8669_s29 = scalar_lea.hbm %s10914_s22, 4096 }
 0x195   :  { %s256_s11 = sshll.u32 %s8779_s26, 4  ;;  %p8670_p4 = scmp.ne.s32.totalorder %s10914_s22, %s8669_s29  ;;  %s257_s11 = int_to_ptr.vmem [resolvable:$true] %s256_s11 }
 0x196   :  { %p8673_p5 = scmp.lt.u32.totalorder %s8669_s29, %s10914_s22 }
 0x198   :  { %p8675_p6 = pnand %p8673_p5, %p8670_p4 }
 0x19a   :  { %8678 = shalt.err (!%p8675_p6)
}
 0x19b   :  { %s8679_s7 = scalar_lea.vmem %s257_s11, 4096  ;;  %p8684_p8 = scmp.lt.s32.totalorder %s257_s11, %s257_s11 }
 0x19c   :  { %p8680_p7 = scmp.ne.s32.totalorder %s257_s11, %s8679_s7  ;;  %p8685_p9 = scmp.lt.s32.totalorder %s8679_s7, %s8679_s7 }
 0x19e   :  { %p8686_p10 = por %p8685_p9, %p8684_p8 }
 0x1a0   :  { %p8687_p11 = pnand %p8686_p10, %p8680_p7 }
 0x1a2   :  { %8690 = shalt.err (!%p8687_p11)
}
 0x1a3   :  { %s8780_s16 = smov 256   ;;  %s8781_s6 = smov 16  }
 0x1a4   :  { %262 = dma.hbm_to_vmem [thread:$0]  %s10914_s22, 4096, %s257_s11, [#allocation30], %s8780_s16, %s8780_s16, %s8781_s6  }
 0x1a5   :  { %s8782_s2 = smov [#allocation32]   ;;  %s8691_s9 = scalar_lea.hbm %s10916_s24, 4096 }
 0x1a6   :  { %s270_s13 = sshll.u32 %s8782_s2, 4  ;;  %p8692_p12 = scmp.ne.s32.totalorder %s10916_s24, %s8691_s9  ;;  %s271_s13 = int_to_ptr.vmem [resolvable:$true] %s270_s13 }
 0x1a7   :  { %p8695_p13 = scmp.lt.u32.totalorder %s8691_s9, %s10916_s24 }
 0x1a9   :  { %p8697_p0 = pnand %p8695_p13, %p8692_p12 }
 0x1ab   :  { %8700 = shalt.err (!%p8697_p0)
}
 0x1ac   :  { %s8701_s30 = scalar_lea.vmem %s271_s13, 4096  ;;  %p8706_p2 = scmp.lt.s32.totalorder %s271_s13, %s271_s13 }
 0x1ad   :  { %p8702_p1 = scmp.ne.s32.totalorder %s271_s13, %s8701_s30  ;;  %p8707_p3 = scmp.lt.s32.totalorder %s8701_s30, %s8701_s30 }
 0x1af   :  { %p8708_p4 = por %p8707_p3, %p8706_p2 }
 0x1b1   :  { %p8709_p5 = pnand %p8708_p4, %p8702_p1 }
 0x1b3   :  { %8712 = shalt.err (!%p8709_p5)
}
 0x1b4   :  { %276 = dma.hbm_to_vmem [thread:$0]  %s10916_s24, 4096, %s271_s13, [#allocation33], %s8761_s1, %s8761_s1, %s8762_s4  }
 0x1b5   :  { %8735 = dma.done.wait [#allocation3], 256  }
 0x1b6   :  { %8736 = vsyncadd [#allocation3], 4294967040 }
 0x1b7   :  { %8737 = dma.done.wait [#allocation6], 1280  }
 0x1b8   :  { %8738 = vsyncadd [#allocation6], 4294966016 }
 0x1b9   :  { %8739 = dma.done.wait [#allocation9], 2048  }
 0x1ba   :  { %8740 = vsyncadd [#allocation9], 4294965248 }
 0x1bb   :  { %8741 = dma.done.wait [#allocation12], 32  }
 0x1bc   :  { %8742 = vsyncadd [#allocation12], 4294967264 }
 0x1bd   :  { %8743 = dma.done.wait [#allocation15], 1040  }
 0x1be   :  { %8744 = vsyncadd [#allocation15], 4294966256 }
 0x1bf   :  { %8745 = dma.done.wait [#allocation18], 32  }
 0x1c0   :  { %8746 = vsyncadd [#allocation18], 4294967264 }
 0x1c1   :  { %8747 = dma.done.wait [#allocation21], 1040  }
 0x1c2   :  { %8748 = vsyncadd [#allocation21], 4294966256 }
 0x1c3   :  { %8749 = dma.done.wait [#allocation24], 2048  }
 0x1c4   :  { %8750 = vsyncadd [#allocation24], 4294965248 }
 0x1c5   :  { %8751 = dma.done.wait [#allocation27], 32  }
 0x1c6   :  { %8752 = vsyncadd [#allocation27], 4294967264 }
 0x1c7   :  { %8753 = dma.done.wait [#allocation30], 4112  }
 0x1c8   :  { %8754 = vsyncadd [#allocation30], 4294963184 }
 0x1c9   :  { %8755 = dma.done.wait [#allocation33], 4096  }
 0x1ca   :  { %8756 = vsyncadd [#allocation33], 4294963200  ;;  %v7809_v0 = vld [vmem:[#allocation8] sm:$0xff]   ;;  %v7811_v2 = vld [vmem:[#allocation8 + $0x8] sm:$0xff]   ;;  %v8783_v26 = vmov 0.0   ;;  %vm8784_vm0 = vmmov 0   ;;  %v356_v27 = vlaneseq }
 0x1cb   :  { %v7810_v1 = vld [vmem:[#allocation7] sm:$0xff]   ;;  %7112 = vmatprep.subr.bf16.mxu1 %v7809_v0  ;;  %v7812_v3 = vld [vmem:[#allocation7 + $0x8] sm:$0xff]   ;;  %v7813_v4 = vld [vmem:[#allocation8 + $0x10] sm:$0xff]   ;;  %vm798_vm1 = vcmask 130048   ;;  %s8785_s24 = smov 96   ;;  %s8786_s29 = smov 112  }
 0x1cc   :  { %7113 = vmatpush3.bf16.msra.mxu1 %v7809_v0  ;;  %7092 = vmatprep.subr.bf16.mxu0 %v7810_v1  ;;  %v7814_v5 = vld [vmem:[#allocation7 + $0x10] sm:$0xff]   ;;  %v7815_v6 = vld [vmem:[#allocation8 + $0x18] sm:$0xff]   ;;  %v7817_v8 = vld [vmem:[#allocation8 + $0x20] sm:$0xff]   ;;  %v9250_v28 = vshrl.u32 %v356_v27, 7  ;;  %s8787_s15 = smov 80   ;;  %s8788_s5 = smov 48  }
 0x1cd   :  { %7093 = vmatpush3.bf16.msra.mxu0 %v7810_v1  ;;  %7114 = vmatprep.subr.bf16.mxu1 %v7811_v2  ;;  %v7816_v7 = vld [vmem:[#allocation7 + $0x18] sm:$0xff]   ;;  %v7818_v9 = vld [vmem:[#allocation7 + $0x20] sm:$0xff]   ;;  %v7819_v10 = vld [vmem:[#allocation8 + $0x28] sm:$0xff]   ;;  %s8789_s17 = smov 32   ;;  %vm1769_vm4 = vcmask 261120   ;;  %vm1772_vm5 = vcmask 392192  }
 0x1ce   :  { %7094 = vmatprep.subr.bf16.mxu0 %v7812_v3  ;;  %v344_v11 = vld [vmem:[#allocation2] sm:$0xff]   ;;  %v7820_v12 = vld [vmem:[#allocation7 + $0x28] sm:$0xff]   ;;  %v7821_v13 = vld [vmem:[#allocation8 + $0x30] sm:$0xff]   ;;  %v9253_v32 = vsub.s32 0, %v9250_v28  ;;  %vm1775_vm6 = vcmask 523264   ;;  %vm1778_vm7 = vcmask 654336  }
 0x1cf   :  { %7128 = vmatprep.mubr.bf16.mxu1 %v344_v11  ;;  %v7822_v14 = vld [vmem:[#allocation7 + $0x30] sm:$0xff]   ;;  %7108 = vmatprep.mubr.bf16.mxu0 %v344_v11  ;;  %v7823_v15 = vld [vmem:[#allocation8 + $0x38] sm:$0xff]   ;;  %v346_v17 = vld [vmem:[#allocation2 + $0x8] sm:$0xff]   ;;  %vm1781_vm8 = vcmask 785408   ;;  %vm1784_vm9 = vcmask 916480   ;;  %s10965_s16 = sld [smem:[#allocation61_spill]] }
 0x1d0   :  { %7115 = vmatpush3.bf16.msra.mxu1 %v7811_v2  ;;  %v7824_v16 = vld [vmem:[#allocation7 + $0x38] sm:$0xff]   ;;  %v7827_v18 = vld [vmem:[#allocation10] sm:$0xff]   ;;  %v7828_v19 = vld [vmem:[#allocation10 + $0x8] sm:$0xff]   ;;  %s8791_s10 = smov [#allocation34]  }
 0x1d1   :  { %7095 = vmatpush3.bf16.msra.mxu0 %v7812_v3  ;;  %7116 = vmatprep.subr.bf16.mxu1 %v7813_v4  ;;  %v7829_v20 = vld [vmem:[#allocation10 + $0x10] sm:$0xff]   ;;  %v7830_v21 = vld [vmem:[#allocation10 + $0x18] sm:$0xff]   ;;  %v7831_v22 = vld [vmem:[#allocation10 + $0x20] sm:$0xff]   ;;  %s6591_s28 = sshll.u32 %s8791_s10, 4  ;;  %s6592_s28 = int_to_ptr.vmem [resolvable:$true] %s6591_s28 }
 0x1d2   :  { %7096 = vmatprep.subr.bf16.mxu0 %v7814_v5  ;;  %v7832_v23 = vld [vmem:[#allocation10 + $0x28] sm:$0xff]   ;;  %v7833_v24 = vld [vmem:[#allocation10 + $0x30] sm:$0xff]   ;;  %v7834_v25 = vld [vmem:[#allocation10 + $0x38] sm:$0xff]   ;;  %s8713_s2 = scalar_lea.vmem %s6592_s28, 256  ;;  %p8718_p7 = scmp.lt.s32.totalorder %s6592_s28, %s6592_s28 }
 0x1d3   :  { %v367_v29 = vld [vmem:[#allocation13] sm:$0x1]  ;;  %v365_v30 = vld [vmem:[#allocation11] sm:$0x1]  ;;  %v369_v61 = vld [vmem:[#allocation14] sm:$0x1]  ;;  %p8714_p6 = scmp.ne.s32.totalorder %s6592_s28, %s8713_s2  ;;  %p8719_p8 = scmp.lt.s32.totalorder %s8713_s2, %s8713_s2 }
 0x1d4   :  { %7117 = vmatpush3.bf16.msra.mxu1 %v7813_v4  ;;  %v368_v31 = vunpack.c.l.bf16 %v367_v29  ;;  %v366_v33 = vunpack.c.l.bf16 %v365_v30  ;;  %v370_v63 = vunpack.c.l.bf16 %v369_v61 }
 0x1d5   :  { %7097 = vmatpush3.bf16.msra.mxu0 %v7814_v5  ;;  %7118 = vmatprep.subr.bf16.mxu1 %v7815_v6  ;;  %p8720_p9 = por %p8719_p8, %p8718_p7 }
 0x1d6   :  { %7098 = vmatprep.subr.bf16.mxu0 %v7816_v7  ;;  %v521_v34 = vrot.slane %v368_v31, %v9253_v32  ;;  %v392_v35 = vrot.slane %v366_v33, %v9253_v32  ;;  %v638_v2 = vrot.slane %v370_v63, %v9253_v32 }
 0x1d7   :  { %p8721_p10 = pnand %p8720_p9, %p8714_p6 }
 0x1d8   :  { %7119 = vmatpush3.bf16.msra.mxu1 %v7815_v6 }
 0x1d9   :  { %7099 = vmatpush3.bf16.msra.mxu0 %v7816_v7  ;;  %7120 = vmatprep.subr.bf16.mxu1 %v7817_v8 }
 0x1da   :  { %7100 = vmatprep.subr.bf16.mxu0 %v7818_v9 }
 0x1dc   :  { %7121 = vmatpush3.bf16.msra.mxu1 %v7817_v8 }
 0x1dd   :  { %7101 = vmatpush3.bf16.msra.mxu0 %v7818_v9  ;;  %7122 = vmatprep.subr.bf16.mxu1 %v7819_v10 }
 0x1de   :  { %7102 = vmatprep.subr.bf16.mxu0 %v7820_v12 }
 0x1e0   :  { %7123 = vmatpush3.bf16.msra.mxu1 %v7819_v10 }
 0x1e1   :  { %7103 = vmatpush3.bf16.msra.mxu0 %v7820_v12  ;;  %7124 = vmatprep.subr.bf16.mxu1 %v7821_v13 }
 0x1e2   :  { %7104 = vmatprep.subr.bf16.mxu0 %v7822_v14 }
 0x1e4   :  { %7125 = vmatpush3.bf16.msra.mxu1 %v7821_v13 }
 0x1e5   :  { %7105 = vmatpush3.bf16.msra.mxu0 %v7822_v14  ;;  %7126 = vmatprep.subr.bf16.mxu1 %v7823_v15 }
 0x1e6   :  { %7106 = vmatprep.subr.bf16.mxu0 %v7824_v16 }
 0x1e8   :  { %7127 = vmatpush3.bf16.msra.mxu1 %v7823_v15 }
 0x1e9   :  { %7107 = vmatpush3.bf16.msra.mxu0 %v7824_v16  ;;  %7152 = vmatprep.subr.bf16.mxu1 %v8783_v26 }
 0x1ea   :  { %7132 = vmatprep.subr.bf16.mxu0 %v7827_v18 }
 0x1eb   :  { %7129 = vmatmul.mubr.bf16.vlgmr.msra.gmra.mrb[0].mxu1 %v346_v17 }
 0x1ec   :  { %7109 = vmatmul.mubr.bf16.vlgmr.msra.gmra.mrb[0].mxu0 %v346_v17  ;;  %7154 = vmatprep.mubr.msk.bf16.mxu1 %vm8784_vm0, %v8783_v26 }
 0x1ed   :  { %7133 = vmatpush3.bf16.msra.mxu0 %v7827_v18  ;;  %7148 = vmatprep.mubr.bf16.mxu0 %v344_v11 }
 0x1ee   :  { %7134 = vmatprep.subr.bf16.mxu0 %v7828_v19 }
 0x1f1   :  { %7135 = vmatpush3.bf16.msra.mxu0 %v7828_v19 }
 0x1f2   :  { %7136 = vmatprep.subr.bf16.mxu0 %v7829_v20 }
 0x1f5   :  { %7137 = vmatpush3.bf16.msra.mxu0 %v7829_v20 }
 0x1f6   :  { %7138 = vmatprep.subr.bf16.mxu0 %v7830_v21 }
 0x1f9   :  { %7139 = vmatpush3.bf16.msra.mxu0 %v7830_v21 }
 0x1fa   :  { %7140 = vmatprep.subr.bf16.mxu0 %v7831_v22 }
 0x1fd   :  { %7141 = vmatpush3.bf16.msra.mxu0 %v7831_v22 }
 0x1fe   :  { %7142 = vmatprep.subr.bf16.mxu0 %v7832_v23 }
 0x201   :  { %7143 = vmatpush3.bf16.msra.mxu0 %v7832_v23 }
 0x202   :  { %7144 = vmatprep.subr.bf16.mxu0 %v7833_v24 }
 0x205   :  { %7145 = vmatpush3.bf16.msra.mxu0 %v7833_v24 }
 0x206   :  { %7146 = vmatprep.subr.bf16.mxu0 %v7834_v25 }
 0x209   :  { %7147 = vmatpush3.bf16.msra.mxu0 %v7834_v25 }
 0x20a   :  { %7200 = vmatprep.subr.bf16.mxu0 %v8783_v26 }
 0x20c   :  { %7149 = vmatmul.mubr.bf16.vlgmr.msra.gmra.mrb[4].mxu0 %v346_v17 }
 0x20d   :  { %7202 = vmatprep.mubr.msk.bf16.mxu0 %vm8784_vm0, %v8783_v26 }
 0x2be   :  { %v7130_v36 = vpop.f32.mrb[0].mxu1 }
 0x2bf   :  { %v613_v37 = vadd.f32 %v7130_v36, %v521_v34  ;;  %v604_v38 = vpop.f32.mrb[1].mxu1  ;;  %v7110_v39 = vpop.f32.mrb[0].mxu0  ;;  %v360_v36 = vand.u32 127, %v356_v27 }
 0x2c0   :  { %v496_v40 = vadd.f32 %v7110_v39, %v392_v35  ;;  %v7131_v41 = vpop.f32.mrb[2].mxu1  ;;  %v487_v42 = vpop.f32.mrb[1].mxu0  ;;  %v605_v47 = vadd.f32 %v604_v38, %v521_v34 }
 0x2c1   :  { %v616_v43 = vadd.f32 %v7131_v41, %v521_v34  ;;  %v488_v44 = vadd.f32 %v487_v42, %v392_v35  ;;  %v607_v45 = vpop.f32.mrb[3].mxu1  ;;  %v7111_v46 = vpop.f32.mrb[2].mxu0  ;;  %vm361_vm2 = vcmp.gt.s32.totalorder %v360_v36, %v9250_v28 }
 0x2c2   :  { %v738_v48 = vmul.f32 0.25, %v496_v40  ;;  %v608_v49 = vadd.f32 %v607_v45, %v521_v34  ;;  %v499_v50 = vadd.f32 %v7111_v46, %v392_v35  ;;  %v490_v51 = vpop.f32.mrb[3].mxu0  ;;  %v9329_v38 = vsel %vm361_vm2, -1e+30, %v8783_v26 }
 0x2c3   :  { %v9257_v52 = vpack.c.bf16 %v616_v43, %v613_v37  ;;  %v736_v53 = vmul.f32 0.25, %v488_v44  ;;  %v491_v54 = vadd.f32 %v490_v51, %v392_v35  ;;  %v358_v37 = vadd.s32 8, %v9250_v28 }
 0x2c4   :  { %v742_v55 = vpack.c.bf16 %v608_v49, %v605_v47  ;;  %v739_v56 = vmul.f32 0.25, %v499_v50 }
 0x2c5   :  { %v737_v57 = vmul.f32 0.25, %v491_v54  ;;  %vm362_vm3 = vcmp.gt.s32.totalorder %v360_v36, %v358_v37 }
 0x2c6   :  { %v9259_v58 = vpack.c.bf16 %v739_v56, %v738_v48  ;;  %764 = vrot.lane.b32.xlu1 %v742_v55, %s8785_s24  ;;  %762 = vrot.lane.b32.xlu0 %v742_v55, %s8786_s29  ;;  %v803_v59 = vsel %vm798_vm1, %v742_v55, 0  ;;  %v9332_v40 = vsel %vm362_vm3, -1e+30, %v8783_v26 }
 0x2c7   :  { %v740_v60 = vpack.c.bf16 %v737_v57, %v736_v53  ;;  %7153 = vmatpush3.bf16.xpose.msra.mxu1 %v803_v59 }
 0x2c8   :  { %7158 = vmatprep.subr.bf16.mxu1 %v8783_v26 }
 0x2ca   :  { %749 = vrot.lane.b32.xlu1 %v740_v60, %s8785_s24  ;;  %747 = vrot.lane.b32.xlu0 %v740_v60, %s8786_s29 }
 0x2ce   :  { %751 = vrot.lane.b32.xlu1 %v740_v60, %s8787_s15  ;;  %766 = vrot.lane.b32.xlu0 %v742_v55, %s8787_s15 }
 0x2cf   :  { %7155 = vmatmul.mubr.msk.bf16.vlgmr.msra.gmra.mrb[4].mxu1 %vm798_vm1, %v740_v60 }
 0x2d0   :  { %7160 = vmatprep.mubr.msk.bf16.mxu1 %vm8784_vm0, %v8783_v26 }
 0x2d2   :  { %753 = vrot.lane.b32.xlu1 %v740_v60, %s8761_s1  ;;  %768 = vrot.lane.b32.xlu0 %v742_v55, %s8761_s1 }
 0x2d6   :  { %755 = vrot.lane.b32.xlu1 %v740_v60, %s8788_s5  ;;  %770 = vrot.lane.b32.xlu0 %v742_v55, %s8788_s5 }
 0x2da   :  { %757 = vrot.lane.b32.xlu1 %v740_v60, %s8789_s17  ;;  %772 = vrot.lane.b32.xlu0 %v742_v55, %s8789_s17 }
 0x2de   :  { %759 = vrot.lane.b32.xlu1 %v740_v60, %s8781_s6  ;;  %774 = vrot.lane.b32.xlu0 %v742_v55, %s8781_s6 }
 0x2df   :  { %v7150_v62 = vpop.f32.mrb[4].mxu0 }
 0x2e0   :  { %v721_v0 = vpop.f32.mrb[5].mxu0  ;;  %v730_v4 = vadd.f32 %v7150_v62, %v638_v2 }
 0x2e1   :  { %v7151_v1 = vpop.f32.mrb[6].mxu0  ;;  %v722_v5 = vadd.f32 %v721_v0, %v638_v2 }
 0x2e2   :  { %v724_v3 = vpop.f32.mrb[7].mxu0  ;;  %v733_v6 = vadd.f32 %v7151_v1, %v638_v2 }
 0x2e3   :  { %v725_v7 = vadd.f32 %v724_v3, %v638_v2 }
 0x2e4   :  { %v9281_v8 = vpack.c.bf16 %v733_v6, %v730_v4 }
 0x2e5   :  { %v9283_v9 = vpack.c.bf16 %v725_v7, %v722_v5 }
 0x2e7   :  { %7201 = vmatpush3.bf16.msra.mxu0 %v9283_v9  ;;  %777 = vrot.lane.b32.xlu1 %v9283_v9, %s8786_s29 }
 0x2e8   :  { %7212 = vmatprep.subr.bf16.mxu0 %v8783_v26 }
 0x338   :  { %v763_v10 = vpop.permute.xlu0 %762  ;;  %v765_v12 = vpop.permute.xlu1 %764 }
 0x339   :  { %v850_v11 = vsel %vm798_vm1, %v763_v10, 0  ;;  %v897_v14 = vsel %vm798_vm1, %v765_v12, 0 }
 0x33a   :  { %7159 = vmatpush3.bf16.xpose.msra.mxu1 %v850_v11 }
 0x33b   :  { %7164 = vmatprep.subr.bf16.mxu1 %v8783_v26 }
 0x33c   :  { %v748_v13 = vpop.permute.xlu0 %747  ;;  %v750_v16 = vpop.permute.xlu1 %749 }
 0x340   :  { %v767_v15 = vpop.permute.xlu0 %766  ;;  %v752_v19 = vpop.permute.xlu1 %751 }
 0x341   :  { %7161 = vmatmul.mubr.msk.bf16.vlgmr.msra.gmra.mrb[8].mxu1 %vm798_vm1, %v748_v13  ;;  %v944_v17 = vsel %vm798_vm1, %v767_v15, 0 }
 0x342   :  { %7165 = vmatpush3.bf16.xpose.msra.mxu1 %v897_v14  ;;  %7166 = vmatprep.mubr.msk.bf16.mxu1 %vm8784_vm0, %v8783_v26 }
 0x343   :  { %7170 = vmatprep.subr.bf16.mxu1 %v8783_v26 }
 0x344   :  { %v769_v18 = vpop.permute.xlu0 %768  ;;  %v754_v22 = vpop.permute.xlu1 %753 }
 0x345   :  { %v991_v20 = vsel %vm798_vm1, %v769_v18, 0 }
 0x348   :  { %v771_v21 = vpop.permute.xlu0 %770  ;;  %v756_v25 = vpop.permute.xlu1 %755 }
 0x349   :  { %7167 = vmatmul.mubr.msk.bf16.vlgmr.msra.gmra.mrb[12].mxu1 %vm798_vm1, %v750_v16  ;;  %v1038_v23 = vsel %vm798_vm1, %v771_v21, 0 }
 0x34a   :  { %7171 = vmatpush3.bf16.xpose.msra.mxu1 %v944_v17  ;;  %7172 = vmatprep.mubr.msk.bf16.mxu1 %vm8784_vm0, %v8783_v26 }
 0x34b   :  { %7176 = vmatprep.subr.bf16.mxu1 %v8783_v26 }
 0x34c   :  { %v773_v24 = vpop.permute.xlu0 %772  ;;  %v758_v30 = vpop.permute.xlu1 %757 }
 0x34d   :  { %v1085_v29 = vsel %vm798_vm1, %v773_v24, 0 }
 0x350   :  { %v775_v31 = vpop.permute.xlu0 %774  ;;  %v760_v34 = vpop.permute.xlu1 %759 }
 0x351   :  { %7173 = vmatmul.mubr.msk.bf16.vlgmr.msra.gmra.mrb[16].mxu1 %vm798_vm1, %v752_v19  ;;  %v1132_v33 = vsel %vm798_vm1, %v775_v31, 0 }
 0x352   :  { %7177 = vmatpush3.bf16.xpose.msra.mxu1 %v991_v20  ;;  %7178 = vmatprep.mubr.msk.bf16.mxu1 %vm8784_vm0, %v8783_v26 }
 0x353   :  { %7182 = vmatprep.subr.bf16.mxu1 %v8783_v26 }
 0x359   :  { %7179 = vmatmul.mubr.msk.bf16.vlgmr.msra.gmra.mrb[20].mxu1 %vm798_vm1, %v754_v22  ;;  %v778_v35 = vpop.permute.xlu1 %777 }
 0x35a   :  { %7183 = vmatpush3.bf16.xpose.msra.mxu1 %v1038_v23  ;;  %7184 = vmatprep.mubr.msk.bf16.mxu1 %vm8784_vm0, %v8783_v26 }
 0x35b   :  { %7188 = vmatprep.subr.bf16.mxu1 %v8783_v26 }
 0x361   :  { %7185 = vmatmul.mubr.msk.bf16.vlgmr.msra.gmra.mrb[24].mxu1 %vm798_vm1, %v756_v25 }
 0x362   :  { %7189 = vmatpush3.bf16.xpose.msra.mxu1 %v1085_v29  ;;  %7190 = vmatprep.mubr.msk.bf16.mxu1 %vm8784_vm0, %v8783_v26 }
 0x363   :  { %7194 = vmatprep.subr.bf16.mxu1 %v8783_v26 }
 0x369   :  { %7191 = vmatmul.mubr.msk.bf16.vlgmr.msra.gmra.mrb[28].mxu1 %vm798_vm1, %v758_v30 }
 0x36a   :  { %7195 = vmatpush3.bf16.xpose.msra.mxu1 %v1132_v33  ;;  %7196 = vmatprep.mubr.msk.bf16.mxu1 %vm8784_vm0, %v8783_v26 }
 0x36b   :  { %7206 = vmatprep.subr.bf16.mxu1 %v8783_v26 }
 0x371   :  { %7197 = vmatmul.mubr.msk.bf16.vlgmr.msra.gmra.mrb[32].mxu1 %vm798_vm1, %v760_v34 }
 0x372   :  { %7207 = vmatpush3.bf16.msra.mxu1 %v778_v35  ;;  %7208 = vmatprep.mubr.msk.bf16.mxu1 %vm8784_vm0, %v8783_v26 }
 0x373   :  { %7218 = vmatprep.subr.bf16.mxu1 %v8783_v26 }
 0x3a2   :  { %v839_v39 = vpop.f32.mrb[4].mxu1 }
 0x3a3   :  { %v840_v41 = vadd.f32 %v839_v39, %v9329_v38  ;;  %v7156_v42 = vpop.f32.mrb[5].mxu1 }
 0x3a4   :  { %v842_v43 = vpop.f32.mrb[6].mxu1 }
 0x3a5   :  { %v843_v44 = vadd.f32 %v842_v43, %v9332_v40  ;;  %v7157_v45 = vpop.f32.mrb[7].mxu1  ;;  %v1175_v27 = vsel %vm798_vm1, %v840_v41, -inf }
 0x3a6   :  { %1176 = vmax.xlane.f32.xlu0 %v1175_v27 }
 0x3a7   :  { %v1178_v46 = vsel %vm798_vm1, %v843_v44, -inf }
 0x3a8   :  { %1179 = vmax.xlane.f32.xlu1 %v1178_v46 }
 0x414   :  { %v886_v47 = vpop.f32.mrb[8].mxu1 }
 0x415   :  { %v9339_v48 = vadd.f32 %v886_v47, %v9329_v38  ;;  %v7162_v49 = vpop.f32.mrb[9].mxu1 }
 0x416   :  { %v889_v50 = vpop.f32.mrb[10].mxu1 }
 0x417   :  { %v9342_v51 = vadd.f32 %v889_v50, %v9332_v40  ;;  %v7163_v53 = vpop.f32.mrb[11].mxu1  ;;  %v1181_v54 = vsel %vm798_vm1, %v9339_v48, -inf }
 0x418   :  { %1182 = vmax.xlane.f32.xlu0 %v1181_v54 }
 0x419   :  { %v1184_v55 = vsel %vm798_vm1, %v9342_v51, -inf }
 0x41c   :  { %1185 = vmax.xlane.f32.xlu0 %v1184_v55  ;;  %v933_v56 = vpop.f32.mrb[12].mxu1 }
 0x41d   :  { %v9349_v57 = vadd.f32 %v933_v56, %v9329_v38  ;;  %v7168_v59 = vpop.f32.mrb[13].mxu1 }
 0x41e   :  { %v936_v60 = vpop.f32.mrb[14].mxu1 }
 0x41f   :  { %v9352_v61 = vadd.f32 %v936_v60, %v9332_v40  ;;  %v7169_v62 = vpop.f32.mrb[15].mxu1  ;;  %v1187_v63 = vsel %vm798_vm1, %v9349_v57, -inf }
 0x420   :  { %1188 = vmax.xlane.f32.xlu1 %v1187_v63 }
 0x421   :  { %v1190_v0 = vsel %vm798_vm1, %v9352_v61, -inf }
 0x422   :  { %1191 = vmax.xlane.f32.xlu0 %v1190_v0 }
 0x424   :  { %v980_v1 = vpop.f32.mrb[16].mxu1 }
 0x425   :  { %v9359_v2 = vadd.f32 %v980_v1, %v9329_v38  ;;  %v7174_v3 = vpop.f32.mrb[17].mxu1 }
 0x426   :  { %v983_v4 = vpop.f32.mrb[18].mxu1 }
 0x427   :  { %v9362_v5 = vadd.f32 %v983_v4, %v9332_v40  ;;  %v7175_v6 = vpop.f32.mrb[19].mxu1  ;;  %v1193_v7 = vsel %vm798_vm1, %v9359_v2, -inf }
 0x428   :  { %1194 = vmax.xlane.f32.xlu1 %v1193_v7 }
 0x429   :  { %v1196_v10 = vsel %vm798_vm1, %v9362_v5, -inf }
 0x42a   :  { %1197 = vmax.xlane.f32.xlu0 %v1196_v10 }
 0x42c   :  { %v1027_v11 = vpop.f32.mrb[20].mxu1 }
 0x42d   :  { %v9369_v12 = vadd.f32 %v1027_v11, %v9329_v38  ;;  %v7180_v13 = vpop.f32.mrb[21].mxu1 }
 0x42e   :  { %v1030_v14 = vpop.f32.mrb[22].mxu1 }
 0x42f   :  { %v9372_v15 = vadd.f32 %v1030_v14, %v9332_v40  ;;  %v7181_v16 = vpop.f32.mrb[23].mxu1  ;;  %v1199_v17 = vsel %vm798_vm1, %v9369_v12, -inf }
 0x430   :  { %1200 = vmax.xlane.f32.xlu1 %v1199_v17 }
 0x431   :  { %v1202_v18 = vsel %vm798_vm1, %v9372_v15, -inf }
 0x432   :  { %1203 = vmax.xlane.f32.xlu0 %v1202_v18 }
 0x433   :  { %v1177_v19 = vpop.xlane.xlu0 %1176 }
 0x434   :  { %v1223_v20 = vsub.f32 %v840_v41, %v1177_v19  ;;  %v1074_v21 = vpop.f32.mrb[24].mxu1 }
 0x435   :  { %v1180_v22 = vpop.xlane.xlu1 %1179  ;;  %v9379_v23 = vadd.f32 %v1074_v21, %v9329_v38  ;;  %v7186_v24 = vpop.f32.mrb[25].mxu1 }
 0x436   :  { %v1239_v25 = vmul.f32 1.442695, %v1223_v20  ;;  %v1224_v29 = vsub.f32 %v843_v44, %v1180_v22  ;;  %v1077_v30 = vpop.f32.mrb[26].mxu1 }
 0x437   :  { %v9382_v31 = vadd.f32 %v1077_v30, %v9332_v40  ;;  %v7187_v33 = vpop.f32.mrb[27].mxu1  ;;  %v1205_v34 = vsel %vm798_vm1, %v9379_v23, -inf }
 0x438   :  { %7959 = vpow2.f32 %v1239_v25  ;;  %v1241_v35 = vmul.f32 1.442695, %v1224_v29  ;;  %1206 = vmax.xlane.f32.xlu1 %v1205_v34 }
 0x439   :  { %v1208_v36 = vsel %vm798_vm1, %v9382_v31, -inf }
 0x43a   :  { %7961 = vpow2.f32 %v1241_v35  ;;  %1209 = vmax.xlane.f32.xlu0 %v1208_v36 }
 0x43c   :  { %v1121_v37 = vpop.f32.mrb[28].mxu1 }
 0x43d   :  { %v9389_v39 = vadd.f32 %v1121_v37, %v9329_v38  ;;  %v7192_v41 = vpop.f32.mrb[29].mxu1 }
 0x43e   :  { %v1124_v42 = vpop.f32.mrb[30].mxu1 }
 0x43f   :  { %v9392_v43 = vadd.f32 %v1124_v42, %v9332_v40  ;;  %v7193_v44 = vpop.f32.mrb[31].mxu1  ;;  %v1211_v45 = vsel %vm798_vm1, %v9389_v39, -inf }
 0x440   :  { %1212 = vmax.xlane.f32.xlu1 %v1211_v45 }
 0x441   :  { %v1214_v27 = vsel %vm798_vm1, %v9392_v43, -inf }
 0x442   :  { %v9398_v46 = vpop.eup %7959  ;;  %1215 = vmax.xlane.f32.xlu0 %v1214_v27 }
 0x443   :  { %v1271_v47 = vsel %vm798_vm1, %v9398_v46, 0.0 }
 0x444   :  { %v9402_v49 = vpop.eup %7961  ;;  %1272 = vadd.xlane.f32.xlu1 %v1271_v47  ;;  %v1168_v50 = vpop.f32.mrb[32].mxu1 }
 0x445   :  { %v9405_v53 = vadd.f32 %v1168_v50, %v9329_v38  ;;  %v7198_v54 = vpop.f32.mrb[33].mxu1  ;;  %v1274_v55 = vsel %vm798_vm1, %v9402_v49, 0.0 }
 0x446   :  { %1275 = vadd.xlane.f32.xlu0 %v1274_v55  ;;  %v1171_v56 = vpop.f32.mrb[34].mxu1 }
 0x447   :  { %v9410_v59 = vadd.f32 %v1171_v56, %v9332_v40  ;;  %v7199_v60 = vpop.f32.mrb[35].mxu1  ;;  %v1217_v62 = vsel %vm798_vm1, %v9405_v53, -inf }
 0x448   :  { %1218 = vmax.xlane.f32.xlu1 %v1217_v62 }
 0x449   :  { %v1220_v63 = vsel %vm798_vm1, %v9410_v59, -inf }
 0x44a   :  { %1221 = vmax.xlane.f32.xlu0 %v1220_v63 }
 0x459   :  { %783 = vrot.lane.b32.xlu1 %v9283_v9, %s8787_s15 }
 0x45d   :  { %786 = vrot.lane.b32.xlu1 %v9283_v9, %s8761_s1 }
 0x460   :  { %780 = vrot.lane.b32.xlu0 %v9283_v9, %s8785_s24 }
 0x461   :  { %792 = vrot.lane.b32.xlu1 %v9283_v9, %s8789_s17 }
 0x464   :  { %789 = vrot.lane.b32.xlu0 %v9283_v9, %s8788_s5 }
 0x4a5   :  { %v1183_v0 = vpop.xlane.xlu0 %1182 }
 0x4a6   :  { %v1225_v1 = vsub.f32 %v9339_v48, %v1183_v0 }
 0x4a8   :  { %v1243_v3 = vmul.f32 1.442695, %v1225_v1 }
 0x4a9   :  { %v1186_v4 = vpop.xlane.xlu0 %1185 }
 0x4aa   :  { %7963 = vpow2.f32 %v1243_v3  ;;  %v1226_v6 = vsub.f32 %v9342_v51, %v1186_v4 }
 0x4ac   :  { %v1245_v7 = vmul.f32 1.442695, %v1226_v6 }
 0x4ad   :  { %v1189_v10 = vpop.xlane.xlu1 %1188 }
 0x4ae   :  { %7965 = vpow2.f32 %v1245_v7  ;;  %v1227_v11 = vsub.f32 %v9349_v57, %v1189_v10 }
 0x4af   :  { %v1192_v13 = vpop.xlane.xlu0 %1191 }
 0x4b0   :  { %v1247_v14 = vmul.f32 1.442695, %v1227_v11  ;;  %v1228_v16 = vsub.f32 %v9352_v61, %v1192_v13 }
 0x4b2   :  { %7967 = vpow2.f32 %v1247_v14  ;;  %v1249_v17 = vmul.f32 1.442695, %v1228_v16 }
 0x4b4   :  { %v9430_v18 = vpop.eup %7963  ;;  %7969 = vpow2.f32 %v1249_v17 }
 0x4b5   :  { %v1195_v48 = vpop.xlane.xlu1 %1194  ;;  %v1277_v19 = vsel %vm798_vm1, %v9430_v18, 0.0 }
 0x4b6   :  { %v1229_v51 = vsub.f32 %v9359_v2, %v1195_v48  ;;  %1278 = vadd.xlane.f32.xlu1 %v1277_v19 }
 0x4b7   :  { %v1198_v20 = vpop.xlane.xlu0 %1197 }
 0x4b8   :  { %v9435_v21 = vpop.eup %7965  ;;  %v1251_v57 = vmul.f32 1.442695, %v1229_v51  ;;  %v1230_v22 = vsub.f32 %v9362_v5, %v1198_v20 }
 0x4b9   :  { %v1280_v61 = vsel %vm798_vm1, %v9435_v21, 0.0 }
 0x4ba   :  { %7971 = vpow2.f32 %v1251_v57  ;;  %v1253_v24 = vmul.f32 1.442695, %v1230_v22  ;;  %1281 = vadd.xlane.f32.xlu0 %v1280_v61 }
 0x4bc   :  { %v9440_v25 = vpop.eup %7967  ;;  %7973 = vpow2.f32 %v1253_v24 }
 0x4bd   :  { %v1201_v29 = vpop.xlane.xlu1 %1200  ;;  %v1283_v2 = vsel %vm798_vm1, %v9440_v25, 0.0 }
 0x4be   :  { %v9444_v30 = vpop.eup %7969  ;;  %v1231_v33 = vsub.f32 %v9369_v12, %v1201_v29  ;;  %1284 = vadd.xlane.f32.xlu1 %v1283_v2 }
 0x4bf   :  { %v1204_v34 = vpop.xlane.xlu0 %1203  ;;  %v1286_v5 = vsel %vm798_vm1, %v9444_v30, 0.0 }
 0x4c0   :  { %v1255_v35 = vmul.f32 1.442695, %v1231_v33  ;;  %v1232_v36 = vsub.f32 %v9372_v15, %v1204_v34  ;;  %1287 = vadd.xlane.f32.xlu0 %v1286_v5 }
 0x4c2   :  { %7975 = vpow2.f32 %v1255_v35  ;;  %v1257_v37 = vmul.f32 1.442695, %v1232_v36 }
 0x4c4   :  { %v9450_v41 = vpop.eup %7971  ;;  %7977 = vpow2.f32 %v1257_v37 }
 0x4c5   :  { %v1207_v42 = vpop.xlane.xlu1 %1206  ;;  %v1289_v44 = vsel %vm798_vm1, %v9450_v41, 0.0 }
 0x4c6   :  { %v9454_v45 = vpop.eup %7973  ;;  %v1233_v12 = vsub.f32 %v9379_v23, %v1207_v42  ;;  %1290 = vadd.xlane.f32.xlu1 %v1289_v44 }
 0x4c7   :  { %v1210_v27 = vpop.xlane.xlu0 %1209  ;;  %v1292_v47 = vsel %vm798_vm1, %v9454_v45, 0.0 }
 0x4c8   :  { %v1259_v15 = vmul.f32 1.442695, %v1233_v12  ;;  %v1234_v50 = vsub.f32 %v9382_v31, %v1210_v27  ;;  %1293 = vadd.xlane.f32.xlu0 %v1292_v47 }
 0x4ca   :  { %7979 = vpow2.f32 %v1259_v15  ;;  %v1261_v54 = vmul.f32 1.442695, %v1234_v50 }
 0x4cc   :  { %v9460_v55 = vpop.eup %7975  ;;  %7981 = vpow2.f32 %v1261_v54 }
 0x4cd   :  { %v1213_v56 = vpop.xlane.xlu1 %1212  ;;  %v1295_v60 = vsel %vm798_vm1, %v9460_v55, 0.0 }
 0x4ce   :  { %v9464_v62 = vpop.eup %7977  ;;  %v1235_v23 = vsub.f32 %v9389_v39, %v1213_v56  ;;  %1296 = vadd.xlane.f32.xlu1 %v1295_v60 }
 0x4cf   :  { %v1216_v63 = vpop.xlane.xlu0 %1215  ;;  %v1298_v0 = vsel %vm798_vm1, %v9464_v62, 0.0 }
 0x4d0   :  { %v1263_v31 = vmul.f32 1.442695, %v1235_v23  ;;  %v1236_v1 = vsub.f32 %v9392_v43, %v1216_v63  ;;  %1299 = vadd.xlane.f32.xlu0 %v1298_v0 }
 0x4d1   :  { %v1273_v3 = vpop.xlane.xlu1 %1272 }
 0x4d2   :  { %7983 = vpow2.f32 %v1263_v31  ;;  %v1265_v4 = vmul.f32 1.442695, %v1236_v1 }
 0x4d3   :  { %7985 = vrcp.f32 %v1273_v3  ;;  %v1276_v6 = vpop.xlane.xlu0 %1275 }
 0x4d4   :  { %v9470_v7 = vpop.eup %7979  ;;  %7987 = vpow2.f32 %v1265_v4 }
 0x4d5   :  { %7989 = vrcp.f32 %v1276_v6  ;;  %v1219_v10 = vpop.xlane.xlu1 %1218  ;;  %v1301_v39 = vsel %vm798_vm1, %v9470_v7, 0.0 }
 0x4d6   :  { %v9474_v11 = vpop.eup %7981  ;;  %v1237_v13 = vsub.f32 %v9405_v53, %v1219_v10  ;;  %1302 = vadd.xlane.f32.xlu1 %v1301_v39 }
 0x4d7   :  { %v1222_v43 = vpop.xlane.xlu0 %1221  ;;  %v1304_v14 = vsel %vm798_vm1, %v9474_v11, 0.0 }
 0x4d8   :  { %v1267_v16 = vmul.f32 1.442695, %v1237_v13  ;;  %v1238_v17 = vsub.f32 %v9410_v59, %v1222_v43  ;;  %1305 = vadd.xlane.f32.xlu0 %v1304_v14 }
 0x4da   :  { %7991 = vpow2.f32 %v1267_v16  ;;  %v1269_v48 = vmul.f32 1.442695, %v1238_v17 }
 0x4db   :  { %v781_v2 = vpop.permute.xlu0 %780 }
 0x4dc   :  { %v9480_v19 = vpop.eup %7983  ;;  %7993 = vpow2.f32 %v1269_v48 }
 0x4dd   :  { %v7986_v51 = vpop.eup %7985  ;;  %v1307_v20 = vsel %vm798_vm1, %v9480_v19, 0.0 }
 0x4de   :  { %v9484_v57 = vpop.eup %7987  ;;  %1308 = vadd.xlane.f32.xlu1 %v1307_v20  ;;  %v1335_v61 = vmul.f32 %v7986_v51, %v9398_v46 }
 0x4df   :  { %v7990_v53 = vpop.eup %7989  ;;  %v1310_v22 = vsel %vm798_vm1, %v9484_v57, 0.0  ;;  %v790_v35 = vpop.permute.xlu0 %789 }
 0x4e0   :  { %v1336_v59 = vmul.f32 %v7990_v53, %v9402_v49  ;;  %1311 = vadd.xlane.f32.xlu0 %v1310_v22 }
 0x4e2   :  { %v1351_v24 = vpack.c.bf16 %v1336_v59, %v1335_v61 }
 0x4e4   :  { %v9490_v29 = vpop.eup %7991  ;;  %7203 = vmatmul.mubr.msk.bf16.vlgmr.msra.gmra.mrb[8].mxu0 %vm798_vm1, %v1351_v24 }
 0x4e5   :  { %7213 = vmatpush3.bf16.msra.mxu0 %v781_v2  ;;  %v1313_v33 = vsel %vm798_vm1, %v9490_v29, 0.0  ;;  %7214 = vmatprep.mubr.msk.bf16.mxu0 %vm8784_vm0, %v8783_v26 }
 0x4e6   :  { %v9497_v34 = vpop.eup %7993  ;;  %1314 = vadd.xlane.f32.xlu1 %v1313_v33  ;;  %7224 = vmatprep.subr.bf16.mxu0 %v8783_v26  ;;  %v1843_v33 = vsel %vm798_vm1, %v9257_v52, 0 }
 0x4e7   :  { %v1316_v46 = vsel %vm798_vm1, %v9497_v34, 0.0 }
 0x4e8   :  { %1317 = vadd.xlane.f32.xlu0 %v1316_v46 }
 0x4f7   :  { %1803 = vrot.lane.b32.xlu1 %v9257_v52, %s8786_s29 }
 0x4fb   :  { %1788 = vrot.lane.b32.xlu1 %v9259_v58, %s8786_s29 }
 0x4fe   :  { %795 = vrot.lane.b32.xlu0 %v9283_v9, %s8781_s6  ;;  %v784_v9 = vpop.permute.xlu1 %783 }
 0x4ff   :  { %1790 = vrot.lane.b32.xlu1 %v9259_v58, %s8785_s24 }
 0x502   :  { %1805 = vrot.lane.b32.xlu0 %v9257_v52, %s8785_s24  ;;  %v787_v49 = vpop.permute.xlu1 %786 }
 0x503   :  { %1792 = vrot.lane.b32.xlu1 %v9259_v58, %s8787_s15 }
 0x506   :  { %1807 = vrot.lane.b32.xlu0 %v9257_v52, %s8787_s15  ;;  %v793_v5 = vpop.permute.xlu1 %792 }
 0x507   :  { %1794 = vrot.lane.b32.xlu1 %v9259_v58, %s8761_s1 }
 0x50a   :  { %1809 = vrot.lane.b32.xlu0 %v9257_v52, %s8761_s1 }
 0x50b   :  { %1796 = vrot.lane.b32.xlu1 %v9259_v58, %s8788_s5 }
 0x50e   :  { %1811 = vrot.lane.b32.xlu0 %v9257_v52, %s8788_s5 }
 0x50f   :  { %1798 = vrot.lane.b32.xlu1 %v9259_v58, %s8789_s17 }
 0x512   :  { %1813 = vrot.lane.b32.xlu0 %v9257_v52, %s8789_s17 }
 0x516   :  { %1815 = vrot.lane.b32.xlu0 %v9257_v52, %s8781_s6 }
 0x51a   :  { %1800 = vrot.lane.b32.xlu0 %v9259_v58, %s8781_s6 }
 0x543   :  { %v1279_v36 = vpop.xlane.xlu1 %1278 }
 0x544   :  { %7995 = vrcp.f32 %v1279_v36 }
 0x547   :  { %v1282_v37 = vpop.xlane.xlu0 %1281 }
 0x548   :  { %7997 = vrcp.f32 %v1282_v37 }
 0x54b   :  { %v1285_v42 = vpop.xlane.xlu1 %1284 }
 0x54c   :  { %7999 = vrcp.f32 %v1285_v42 }
 0x54d   :  { %v1288_v44 = vpop.xlane.xlu0 %1287 }
 0x54e   :  { %8001 = vrcp.f32 %v1288_v44  ;;  %v7996_v12 = vpop.eup %7995 }
 0x54f   :  { %v1337_v47 = vmul.f32 %v7996_v12, %v9430_v18 }
 0x552   :  { %v7998_v27 = vpop.eup %7997 }
 0x553   :  { %v1338_v15 = vmul.f32 %v7998_v27, %v9435_v21  ;;  %v1291_v50 = vpop.xlane.xlu1 %1290 }
 0x554   :  { %8003 = vrcp.f32 %v1291_v50 }
 0x555   :  { %v1294_v54 = vpop.xlane.xlu0 %1293  ;;  %v1352_v56 = vpack.c.bf16 %v1338_v15, %v1337_v47 }
 0x556   :  { %v8000_v60 = vpop.eup %7999  ;;  %8005 = vrcp.f32 %v1294_v54 }
 0x557   :  { %7209 = vmatmul.mubr.msk.bf16.vlgmr.msra.gmra.mrb[36].mxu1 %vm798_vm1, %v1352_v56  ;;  %v1339_v63 = vmul.f32 %v8000_v60, %v9440_v25 }
 0x558   :  { %v8002_v23 = vpop.eup %8001  ;;  %7219 = vmatpush3.bf16.msra.mxu1 %v784_v9  ;;  %7220 = vmatprep.mubr.msk.bf16.mxu1 %vm8784_vm0, %v8783_v26 }
 0x559   :  { %v1340_v0 = vmul.f32 %v8002_v23, %v9444_v30  ;;  %7230 = vmatprep.subr.bf16.mxu1 %v8783_v26 }
 0x55b   :  { %v1297_v18 = vpop.xlane.xlu1 %1296  ;;  %v1353_v21 = vpack.c.bf16 %v1340_v0, %v1339_v63 }
 0x55c   :  { %8007 = vrcp.f32 %v1297_v18 }
 0x55d   :  { %7215 = vmatmul.mubr.msk.bf16.vlgmr.msra.gmra.mrb[12].mxu0 %vm798_vm1, %v1353_v21  ;;  %v1300_v31 = vpop.xlane.xlu0 %1299 }
 0x55e   :  { %v8004_v1 = vpop.eup %8003  ;;  %7225 = vmatpush3.bf16.msra.mxu0 %v787_v49  ;;  %8009 = vrcp.f32 %v1300_v31  ;;  %7226 = vmatprep.mubr.msk.bf16.mxu0 %vm8784_vm0, %v8783_v26 }
 0x55f   :  { %7236 = vmatprep.subr.bf16.mxu0 %v8783_v26  ;;  %v1341_v25 = vmul.f32 %v8004_v1, %v9450_v41 }
 0x560   :  { %v8006_v3 = vpop.eup %8005 }
 0x561   :  { %v1342_v30 = vmul.f32 %v8006_v3, %v9454_v45 }
 0x563   :  { %v1303_v4 = vpop.xlane.xlu1 %1302  ;;  %v1354_v6 = vpack.c.bf16 %v1342_v30, %v1341_v25 }
 0x564   :  { %8011 = vrcp.f32 %v1303_v4 }
 0x565   :  { %7221 = vmatmul.mubr.msk.bf16.vlgmr.msra.gmra.mrb[40].mxu1 %vm798_vm1, %v1354_v6  ;;  %v1306_v10 = vpop.xlane.xlu0 %1305 }
 0x566   :  { %v8008_v39 = vpop.eup %8007  ;;  %7231 = vmatpush3.bf16.msra.mxu1 %v790_v35  ;;  %8013 = vrcp.f32 %v1306_v10  ;;  %7232 = vmatprep.mubr.msk.bf16.mxu1 %vm8784_vm0, %v8783_v26 }
 0x567   :  { %7242 = vmatprep.subr.bf16.mxu1 %v8783_v26  ;;  %v1343_v43 = vmul.f32 %v8008_v39, %v9460_v55 }
 0x568   :  { %v8010_v13 = vpop.eup %8009 }
 0x569   :  { %v1344_v41 = vmul.f32 %v8010_v13, %v9464_v62 }
 0x56b   :  { %v1309_v45 = vpop.xlane.xlu1 %1308  ;;  %v1355_v14 = vpack.c.bf16 %v1344_v41, %v1343_v43 }
 0x56c   :  { %8015 = vrcp.f32 %v1309_v45 }
 0x56d   :  { %7227 = vmatmul.mubr.msk.bf16.vlgmr.msra.gmra.mrb[16].mxu0 %vm798_vm1, %v1355_v14  ;;  %v1312_v16 = vpop.xlane.xlu0 %1311 }
 0x56e   :  { %v8012_v17 = vpop.eup %8011  ;;  %7237 = vmatpush3.bf16.msra.mxu0 %v793_v5  ;;  %8017 = vrcp.f32 %v1312_v16  ;;  %7238 = vmatprep.mubr.msk.bf16.mxu0 %vm8784_vm0, %v8783_v26 }
 0x56f   :  { %7248 = vmatprep.subr.bf16.mxu0 %v8783_v26  ;;  %v1345_v51 = vmul.f32 %v8012_v17, %v9470_v7 }
 0x570   :  { %v8014_v48 = vpop.eup %8013 }
 0x571   :  { %v1346_v55 = vmul.f32 %v8014_v48, %v9474_v11 }
 0x573   :  { %v1315_v62 = vpop.xlane.xlu1 %1314  ;;  %v1356_v20 = vpack.c.bf16 %v1346_v55, %v1345_v51 }
 0x574   :  { %8019 = vrcp.f32 %v1315_v62 }
 0x575   :  { %7233 = vmatmul.mubr.msk.bf16.vlgmr.msra.gmra.mrb[44].mxu1 %vm798_vm1, %v1356_v20  ;;  %v1318_v53 = vpop.xlane.xlu0 %1317 }
 0x576   :  { %v8016_v22 = vpop.eup %8015  ;;  %8021 = vrcp.f32 %v1318_v53  ;;  %7244 = vmatprep.mubr.msk.bf16.mxu1 %vm8784_vm0, %v8783_v26 }
 0x577   :  { %v1804_v59 = vpop.permute.xlu1 %1803  ;;  %v1347_v24 = vmul.f32 %v8016_v22, %v9480_v19 }
 0x578   :  { %v8018_v61 = vpop.eup %8017  ;;  %v1890_v42 = vsel %vm798_vm1, %v1804_v59, 0 }
 0x579   :  { %v1348_v2 = vmul.f32 %v8018_v61, %v9484_v57  ;;  %v796_v7 = vpop.permute.xlu0 %795 }
 0x57a   :  { %7243 = vmatpush3.bf16.msra.mxu1 %v796_v7 }
 0x57b   :  { %v1357_v11 = vpack.c.bf16 %v1348_v2, %v1347_v24  ;;  %7254 = vmatprep.subr.bf16.mxu1 %v8783_v26  ;;  %v1789_v49 = vpop.permute.xlu1 %1788 }
 0x57d   :  { %7239 = vmatmul.mubr.msk.bf16.vlgmr.msra.gmra.mrb[20].mxu0 %vm798_vm1, %v1357_v11  ;;  %v1806_v46 = vpop.permute.xlu0 %1805 }
 0x57e   :  { %v8020_v9 = vpop.eup %8019  ;;  %7249 = vmatpush3.bf16.xpose.msra.mxu0 %v1843_v33  ;;  %7250 = vmatprep.mubr.msk.bf16.mxu0 %vm8784_vm0, %v8783_v26  ;;  %v1937_v52 = vsel %vm798_vm1, %v1806_v46, 0 }
 0x57f   :  { %7260 = vmatprep.subr.bf16.mxu0 %v8783_v26  ;;  %v1349_v57 = vmul.f32 %v8020_v9, %v9490_v29  ;;  %v1791_v37 = vpop.permute.xlu1 %1790 }
 0x580   :  { %v8022_v19 = vpop.eup %8021 }
 0x581   :  { %v1350_v5 = vmul.f32 %v8022_v19, %v9497_v34  ;;  %v1808_v35 = vpop.permute.xlu0 %1807 }
 0x582   :  { %v1984_v12 = vsel %vm798_vm1, %v1808_v35, 0 }
 0x583   :  { %v1358_v36 = vpack.c.bf16 %v1350_v5, %v1349_v57  ;;  %v1793_v29 = vpop.permute.xlu1 %1792 }
 0x585   :  { %7245 = vmatmul.mubr.msk.bf16.vlgmr.msra.gmra.mrb[48].mxu1 %vm798_vm1, %v1358_v36  ;;  %7251 = vmatmul.mubr.msk.bf16.vlgmr.msra.gmra.mrb[24].mxu0 %vm798_vm1, %v9259_v58  ;;  %v1810_v44 = vpop.permute.xlu0 %1809 }
 0x586   :  { %7255 = vmatpush3.bf16.xpose.msra.mxu1 %v1890_v42  ;;  %7261 = vmatpush3.bf16.xpose.msra.mxu0 %v1937_v52  ;;  %v2031_v27 = vsel %vm798_vm1, %v1810_v44, 0 }
 0x587   :  { %7256 = vmatprep.mubr.msk.bf16.mxu1 %vm8784_vm0, %v8783_v26  ;;  %7262 = vmatprep.mubr.msk.bf16.mxu0 %vm8784_vm0, %v8783_v26  ;;  %v1795_v58 = vpop.permute.xlu1 %1794 }
 0x588   :  { %7266 = vmatprep.subr.bf16.mxu1 %v8783_v26  ;;  %7272 = vmatprep.subr.bf16.mxu0 %v8783_v26 }
 0x589   :  { %v1812_v34 = vpop.permute.xlu0 %1811 }
 0x58a   :  { %v2078_v15 = vsel %vm798_vm1, %v1812_v34, 0 }
 0x58b   :  { %v1797_v54 = vpop.permute.xlu1 %1796 }
 0x58d   :  { %7257 = vmatmul.mubr.msk.bf16.vlgmr.msra.gmra.mrb[52].mxu1 %vm798_vm1, %v1789_v49  ;;  %7263 = vmatmul.mubr.msk.bf16.vlgmr.msra.gmra.mrb[28].mxu0 %vm798_vm1, %v1791_v37  ;;  %v1814_v47 = vpop.permute.xlu0 %1813 }
 0x58e   :  { %7267 = vmatpush3.bf16.xpose.msra.mxu1 %v1984_v12  ;;  %7273 = vmatpush3.bf16.xpose.msra.mxu0 %v2031_v27  ;;  %v2125_v50 = vsel %vm798_vm1, %v1814_v47, 0 }
 0x58f   :  { %7268 = vmatprep.mubr.msk.bf16.mxu1 %vm8784_vm0, %v8783_v26  ;;  %7274 = vmatprep.mubr.msk.bf16.mxu0 %vm8784_vm0, %v8783_v26  ;;  %v1799_v60 = vpop.permute.xlu1 %1798 }
 0x590   :  { %7278 = vmatprep.subr.bf16.mxu1 %v8783_v26  ;;  %7284 = vmatprep.subr.bf16.mxu0 %v8783_v26 }
 0x591   :  { %v1816_v56 = vpop.permute.xlu0 %1815 }
 0x592   :  { %v2172_v23 = vsel %vm798_vm1, %v1816_v56, 0 }
 0x595   :  { %7269 = vmatmul.mubr.msk.bf16.vlgmr.msra.gmra.mrb[56].mxu1 %vm798_vm1, %v1793_v29  ;;  %7275 = vmatmul.mubr.msk.bf16.vlgmr.msra.gmra.mrb[32].mxu0 %vm798_vm1, %v1795_v58  ;;  %v1801_v63 = vpop.permute.xlu0 %1800 }
 0x596   :  { %7279 = vmatpush3.bf16.xpose.msra.mxu1 %v2078_v15  ;;  %7285 = vmatpush3.bf16.xpose.msra.mxu0 %v2125_v50 }
 0x597   :  { %7280 = vmatprep.mubr.msk.bf16.mxu1 %vm8784_vm0, %v8783_v26  ;;  %7286 = vmatprep.mubr.msk.bf16.mxu0 %vm8784_vm0, %v8783_v26 }
 0x598   :  { %7290 = vmatprep.subr.bf16.mxu1 %v8783_v26  ;;  %7296 = vmatprep.subr.bf16.mxu0 %v8783_v26 }
 0x59d   :  { %7281 = vmatmul.mubr.msk.bf16.vlgmr.msra.gmra.mrb[60].mxu1 %vm798_vm1, %v1797_v54  ;;  %7287 = vmatmul.mubr.msk.bf16.vlgmr.msra.gmra.mrb[36].mxu0 %vm798_vm1, %v1799_v60 }
 0x59e   :  { %7291 = vmatpush3.bf16.xpose.msra.mxu1 %v2172_v23  ;;  %7297 = vmatpush3.bf16.msra.mxu0 %v9281_v8 }
 0x59f   :  { %7292 = vmatprep.mubr.msk.bf16.mxu1 %vm8784_vm0, %v8783_v26  ;;  %7302 = vmatprep.subr.bf16.mxu1 %v8783_v26 }
 0x5a0   :  { %7298 = vmatprep.mubr.msk.bf16.mxu0 %vm8784_vm0, %v8783_v26  ;;  %7308 = vmatprep.subr.bf16.mxu0 %v8783_v26 }
 0x5a5   :  { %7293 = vmatmul.mubr.msk.bf16.vlgmr.msra.gmra.mrb[64].mxu1 %vm798_vm1, %v1801_v63 }
 0x5a6   :  { %7304 = vmatprep.mubr.msk.bf16.mxu1 %vm8784_vm0, %v8783_v26 }
 0x5b7   :  { %v9616_v0 = vpop.f32.mrb[8].mxu0 }
 0x5b8   :  { %v7204_v18 = vpop.f32.mrb[9].mxu0 }
 0x5b9   :  { %v9618_v21 = vpop.f32.mrb[10].mxu0 }
 0x5ba   :  { %v7205_v31 = vpop.f32.mrb[11].mxu0 }
 0x62a   :  { %v9620_v1 = vpop.f32.mrb[36].mxu1 }
 0x62b   :  { %v7210_v3 = vpop.f32.mrb[37].mxu1 }
 0x62c   :  { %v9622_v25 = vpop.f32.mrb[38].mxu1 }
 0x62d   :  { %v7669_v30 = vpack.i.bf16 %v9622_v25, %v9620_v1  ;;  %v7211_v4 = vpop.f32.mrb[39].mxu1 }
 0x630   :  { %v9626_v6 = vpop.f32.mrb[12].mxu0 }
 0x631   :  { %v7216_v10 = vpop.f32.mrb[13].mxu0 }
 0x632   :  { %v9628_v39 = vpop.f32.mrb[14].mxu0 }
 0x633   :  { %v7674_v13 = vpack.i.bf16 %v9628_v39, %v9626_v6  ;;  %v7217_v43 = vpop.f32.mrb[15].mxu0 }
 0x638   :  { %v9632_v41 = vpop.f32.mrb[40].mxu1 }
 0x639   :  { %v7222_v45 = vpop.f32.mrb[41].mxu1 }
 0x63a   :  { %v9634_v14 = vpop.f32.mrb[42].mxu1 }
 0x63b   :  { %v7679_v16 = vpack.i.bf16 %v9634_v14, %v9632_v41  ;;  %v7223_v17 = vpop.f32.mrb[43].mxu1 }
 0x640   :  { %v9638_v48 = vpop.f32.mrb[16].mxu0 }
 0x641   :  { %v7228_v51 = vpop.f32.mrb[17].mxu0 }
 0x642   :  { %v9640_v55 = vpop.f32.mrb[18].mxu0 }
 0x643   :  { %v7684_v62 = vpack.i.bf16 %v9640_v55, %v9638_v48  ;;  %v7229_v20 = vpop.f32.mrb[19].mxu0 }
 0x648   :  { %v9644_v53 = vpop.f32.mrb[44].mxu1 }
 0x649   :  { %v7234_v22 = vpop.f32.mrb[45].mxu1 }
 0x64a   :  { %v9646_v61 = vpop.f32.mrb[46].mxu1 }
 0x64b   :  { %v7689_v59 = vpack.i.bf16 %v9646_v61, %v9644_v53  ;;  %v7235_v24 = vpop.f32.mrb[47].mxu1 }
 0x650   :  { %v9650_v2 = vpop.f32.mrb[20].mxu0 }
 0x651   :  { %v7240_v7 = vpop.f32.mrb[21].mxu0 }
 0x652   :  { %v9652_v11 = vpop.f32.mrb[22].mxu0 }
 0x653   :  { %v7694_v33 = vpack.i.bf16 %v9652_v11, %v9650_v2  ;;  %v7241_v46 = vpop.f32.mrb[23].mxu0 }
 0x658   :  { %v9656_v9 = vpop.f32.mrb[48].mxu1  ;;  %v1879_v49 = vpop.f32.mrb[24].mxu0 }
 0x659   :  { %v9659_v19 = vadd.f32 %v1879_v49, %v9329_v38  ;;  %v7246_v57 = vpop.f32.mrb[49].mxu1  ;;  %v7252_v5 = vpop.f32.mrb[25].mxu0 }
 0x65a   :  { %v9661_v35 = vpop.f32.mrb[50].mxu1  ;;  %v1882_v36 = vpop.f32.mrb[26].mxu0 }
 0x65b   :  { %v7699_v37 = vpack.i.bf16 %v9661_v35, %v9656_v9  ;;  %v9666_v42 = vadd.f32 %v1882_v36, %v9332_v40  ;;  %v7247_v52 = vpop.f32.mrb[51].mxu1  ;;  %v7253_v44 = vpop.f32.mrb[27].mxu0  ;;  %v2215_v29 = vsel %vm798_vm1, %v9659_v19, -inf }
 0x65c   :  { %2216 = vmax.xlane.f32.xlu1 %v2215_v29 }
 0x65d   :  { %v2218_v34 = vsel %vm798_vm1, %v9666_v42, -inf }
 0x65e   :  { %2219 = vmax.xlane.f32.xlu0 %v2218_v34 }
 0x660   :  { %v1926_v12 = vpop.f32.mrb[52].mxu1  ;;  %v1973_v27 = vpop.f32.mrb[28].mxu0 }
 0x661   :  { %v9673_v58 = vadd.f32 %v1926_v12, %v9329_v38  ;;  %v7258_v47 = vpop.f32.mrb[53].mxu1  ;;  %v7264_v15 = vpop.f32.mrb[29].mxu0  ;;  %v9676_v56 = vadd.f32 %v1973_v27, %v9329_v38 }
 0x662   :  { %v1929_v50 = vpop.f32.mrb[54].mxu1  ;;  %v1976_v54 = vpop.f32.mrb[30].mxu0 }
 0x663   :  { %v9679_v60 = vadd.f32 %v1929_v50, %v9332_v40  ;;  %v7259_v23 = vpop.f32.mrb[55].mxu1  ;;  %v7265_v63 = vpop.f32.mrb[31].mxu0  ;;  %v2221_v18 = vsel %vm798_vm1, %v9673_v58, -inf  ;;  %v9684_v31 = vadd.f32 %v1976_v54, %v9332_v40  ;;  %v2227_v4 = vsel %vm798_vm1, %v9676_v56, -inf }
 0x664   :  { %2222 = vmax.xlane.f32.xlu0 %v2221_v18 }
 0x665   :  { %v2224_v3 = vsel %vm798_vm1, %v9679_v60, -inf  ;;  %v2230_v20 = vsel %vm798_vm1, %v9684_v31, -inf }
 0x666   :  { %2225 = vmax.xlane.f32.xlu1 %v2224_v3 }
 0x668   :  { %v2067_v10 = vpop.f32.mrb[32].mxu0  ;;  %2228 = vmax.xlane.f32.xlu0 %v2227_v4  ;;  %v2020_v43 = vpop.f32.mrb[56].mxu1 }
 0x669   :  { %v9691_v45 = vadd.f32 %v2020_v43, %v9329_v38  ;;  %v7270_v17 = vpop.f32.mrb[57].mxu1  ;;  %v7276_v51 = vpop.f32.mrb[33].mxu0  ;;  %v9696_v7 = vadd.f32 %v2067_v10, %v9329_v38 }
 0x66a   :  { %v2070_v22 = vpop.f32.mrb[34].mxu0  ;;  %2231 = vmax.xlane.f32.xlu1 %v2230_v20  ;;  %v2023_v24 = vpop.f32.mrb[58].mxu1 }
 0x66b   :  { %v9699_v46 = vadd.f32 %v2023_v24, %v9332_v40  ;;  %v7271_v49 = vpop.f32.mrb[59].mxu1  ;;  %v7277_v57 = vpop.f32.mrb[35].mxu0  ;;  %v2233_v5 = vsel %vm798_vm1, %v9691_v45, -inf  ;;  %v9704_v36 = vadd.f32 %v2070_v22, %v9332_v40  ;;  %v2239_v44 = vsel %vm798_vm1, %v9696_v7, -inf }
 0x66c   :  { %2234 = vmax.xlane.f32.xlu0 %v2233_v5 }
 0x66d   :  { %v2236_v52 = vsel %vm798_vm1, %v9699_v46, -inf  ;;  %v2242_v15 = vsel %vm798_vm1, %v9704_v36, -inf }
 0x66e   :  { %2237 = vmax.xlane.f32.xlu1 %v2236_v52 }
 0x670   :  { %v2161_v29 = vpop.f32.mrb[36].mxu0  ;;  %2240 = vmax.xlane.f32.xlu0 %v2239_v44  ;;  %v2114_v34 = vpop.f32.mrb[60].mxu1 }
 0x671   :  { %v9711_v12 = vadd.f32 %v2114_v34, %v9329_v38  ;;  %v7282_v27 = vpop.f32.mrb[61].mxu1  ;;  %v7288_v47 = vpop.f32.mrb[37].mxu0  ;;  %v9716_v23 = vadd.f32 %v2161_v29, %v9329_v38 }
 0x672   :  { %v2164_v50 = vpop.f32.mrb[38].mxu0  ;;  %2243 = vmax.xlane.f32.xlu1 %v2242_v15  ;;  %v2117_v54 = vpop.f32.mrb[62].mxu1 }
 0x673   :  { %v9719_v63 = vadd.f32 %v2117_v54, %v9332_v40  ;;  %v7283_v18 = vpop.f32.mrb[63].mxu1  ;;  %v7289_v3 = vpop.f32.mrb[39].mxu0  ;;  %v2245_v4 = vsel %vm798_vm1, %v9711_v12, -inf  ;;  %v9724_v10 = vadd.f32 %v2164_v50, %v9332_v40  ;;  %v2251_v17 = vsel %vm798_vm1, %v9716_v23, -inf }
 0x674   :  { %2246 = vmax.xlane.f32.xlu0 %v2245_v4 }
 0x675   :  { %v2248_v43 = vsel %vm798_vm1, %v9719_v63, -inf  ;;  %v2254_v24 = vsel %vm798_vm1, %v9724_v10, -inf }
 0x676   :  { %2249 = vmax.xlane.f32.xlu1 %v2248_v43 }
 0x678   :  { %2252 = vmax.xlane.f32.xlu0 %v2251_v17  ;;  %v2208_v51 = vpop.f32.mrb[64].mxu1 }
 0x679   :  { %v9731_v20 = vadd.f32 %v2208_v51, %v9329_v38  ;;  %v7294_v22 = vpop.f32.mrb[65].mxu1 }
 0x67a   :  { %2255 = vmax.xlane.f32.xlu1 %v2254_v24  ;;  %v2211_v49 = vpop.f32.mrb[66].mxu1 }
 0x67b   :  { %v7295_v57 = vpop.f32.mrb[67].mxu1  ;;  %v2257_v5 = vsel %vm798_vm1, %v9731_v20, -inf  ;;  %v9746_v38 = vadd.f32 %v2211_v49, %v9332_v40 }
 0x67c   :  { %2258 = vmax.xlane.f32.xlu0 %v2257_v5 }
 0x67d   :  { %v2260_v52 = vsel %vm798_vm1, %v9746_v38, -inf }
 0x68b   :  { %1821 = vrot.lane.b32.xlu1 %v9281_v8, %s8785_s24 }
 0x68f   :  { %1824 = vrot.lane.b32.xlu1 %v9281_v8, %s8787_s15 }
 0x692   :  { %1818 = vrot.lane.b32.xlu0 %v9281_v8, %s8786_s29 }
 0x696   :  { %1827 = vrot.lane.b32.xlu0 %v9281_v8, %s8761_s1 }
 0x6b3   :  { %2261 = vmax.xlane.f32.xlu1 %v2260_v52 }
 0x6c4   :  { %1830 = vrot.lane.b32.xlu1 %v9281_v8, %s8788_s5 }
 0x6e9   :  { %v2217_v44 = vpop.xlane.xlu1 %2216 }
 0x6ea   :  { %v2263_v29 = vsub.f32 %v9659_v19, %v2217_v44 }
 0x6eb   :  { %v2220_v34 = vpop.xlane.xlu0 %2219 }
 0x6ec   :  { %v2279_v27 = vmul.f32 1.442695, %v2263_v29  ;;  %v2264_v47 = vsub.f32 %v9666_v42, %v2220_v34 }
 0x6ee   :  { %8023 = vpow2.f32 %v2279_v27  ;;  %v2281_v15 = vmul.f32 1.442695, %v2264_v47 }
 0x6f0   :  { %8025 = vpow2.f32 %v2281_v15 }
 0x6f1   :  { %v2223_v50 = vpop.xlane.xlu0 %2222 }
 0x6f2   :  { %v2265_v40 = vsub.f32 %v9673_v58, %v2223_v50 }
 0x6f3   :  { %v2226_v54 = vpop.xlane.xlu1 %2225 }
 0x6f4   :  { %v2283_v18 = vmul.f32 1.442695, %v2265_v40  ;;  %v2266_v3 = vsub.f32 %v9679_v60, %v2226_v54 }
 0x6f5   :  { %v2229_v4 = vpop.xlane.xlu0 %2228 }
 0x6f6   :  { %8027 = vpow2.f32 %v2283_v18  ;;  %v2285_v43 = vmul.f32 1.442695, %v2266_v3  ;;  %v2267_v17 = vsub.f32 %v9676_v56, %v2229_v4 }
 0x6f7   :  { %v2232_v19 = vpop.xlane.xlu1 %2231 }
 0x6f8   :  { %v9757_v51 = vpop.eup %8023  ;;  %8029 = vpow2.f32 %v2285_v43  ;;  %v2287_v42 = vmul.f32 1.442695, %v2267_v17  ;;  %v2268_v22 = vsub.f32 %v9684_v31, %v2232_v19 }
 0x6f9   :  { %v2235_v24 = vpop.xlane.xlu0 %2234  ;;  %v2311_v58 = vsel %vm798_vm1, %v9757_v51, 0.0 }
 0x6fa   :  { %v9762_v49 = vpop.eup %8025  ;;  %8031 = vpow2.f32 %v2287_v42  ;;  %v2289_v60 = vmul.f32 1.442695, %v2268_v22  ;;  %v2269_v57 = vsub.f32 %v9691_v45, %v2235_v24  ;;  %2312 = vadd.xlane.f32.xlu0 %v2311_v58 }
 0x6fb   :  { %v2238_v5 = vpop.xlane.xlu1 %2237  ;;  %v2314_v56 = vsel %vm798_vm1, %v9762_v49, 0.0 }
 0x6fc   :  { %8033 = vpow2.f32 %v2289_v60  ;;  %v2291_v52 = vmul.f32 1.442695, %v2269_v57  ;;  %v2270_v44 = vsub.f32 %v9699_v46, %v2238_v5  ;;  %2315 = vadd.xlane.f32.xlu1 %v2314_v56 }
 0x6fd   :  { %v2241_v31 = vpop.xlane.xlu0 %2240 }
 0x6fe   :  { %8035 = vpow2.f32 %v2291_v52  ;;  %v2293_v29 = vmul.f32 1.442695, %v2270_v44  ;;  %v2271_v34 = vsub.f32 %v9696_v7, %v2241_v31 }
 0x6ff   :  { %v2244_v27 = vpop.xlane.xlu1 %2243 }
 0x700   :  { %v9769_v47 = vpop.eup %8027  ;;  %8037 = vpow2.f32 %v2293_v29  ;;  %v2295_v45 = vmul.f32 1.442695, %v2271_v34  ;;  %v2272_v15 = vsub.f32 %v9704_v36, %v2244_v27 }
 0x701   :  { %v2247_v50 = vpop.xlane.xlu0 %2246  ;;  %v2317_v40 = vsel %vm798_vm1, %v9769_v47, 0.0 }
 0x702   :  { %v9774_v54 = vpop.eup %8029  ;;  %8039 = vpow2.f32 %v2295_v45  ;;  %v2297_v46 = vmul.f32 1.442695, %v2272_v15  ;;  %v2273_v18 = vsub.f32 %v9711_v12, %v2247_v50  ;;  %2318 = vadd.xlane.f32.xlu0 %v2317_v40 }
 0x703   :  { %v2250_v3 = vpop.xlane.xlu1 %2249  ;;  %v2320_v7 = vsel %vm798_vm1, %v9774_v54, 0.0 }
 0x704   :  { %v9779_v4 = vpop.eup %8031  ;;  %8041 = vpow2.f32 %v2297_v46  ;;  %v2299_v43 = vmul.f32 1.442695, %v2273_v18  ;;  %v2274_v36 = vsub.f32 %v9719_v63, %v2250_v3  ;;  %2321 = vadd.xlane.f32.xlu1 %v2320_v7 }
 0x705   :  { %v2253_v17 = vpop.xlane.xlu0 %2252  ;;  %v2323_v19 = vsel %vm798_vm1, %v9779_v4, 0.0 }
 0x706   :  { %v9784_v42 = vpop.eup %8033  ;;  %8043 = vpow2.f32 %v2299_v43  ;;  %v2301_v12 = vmul.f32 1.442695, %v2274_v36  ;;  %v2275_v22 = vsub.f32 %v9716_v23, %v2253_v17  ;;  %2324 = vadd.xlane.f32.xlu0 %v2323_v19 }
 0x707   :  { %v2256_v24 = vpop.xlane.xlu1 %2255  ;;  %v2326_v58 = vsel %vm798_vm1, %v9784_v42, 0.0 }
 0x708   :  { %v9789_v60 = vpop.eup %8035  ;;  %8045 = vpow2.f32 %v2301_v12  ;;  %v2303_v63 = vmul.f32 1.442695, %v2275_v22  ;;  %v2276_v57 = vsub.f32 %v9724_v10, %v2256_v24  ;;  %2327 = vadd.xlane.f32.xlu1 %v2326_v58 }
 0x709   :  { %v2259_v5 = vpop.xlane.xlu0 %2258  ;;  %v2329_v56 = vsel %vm798_vm1, %v9789_v60, 0.0 }
 0x70a   :  { %v9794_v52 = vpop.eup %8037  ;;  %8047 = vpow2.f32 %v2303_v63  ;;  %v2305_v23 = vmul.f32 1.442695, %v2276_v57  ;;  %v2277_v44 = vsub.f32 %v9731_v20, %v2259_v5  ;;  %2330 = vadd.xlane.f32.xlu0 %v2329_v56 }
 0x70b   :  { %v2332_v31 = vsel %vm798_vm1, %v9794_v52, 0.0  ;;  %v1822_v19 = vpop.permute.xlu1 %1821 }
 0x70c   :  { %v9799_v29 = vpop.eup %8039  ;;  %8049 = vpow2.f32 %v2305_v23  ;;  %v2307_v34 = vmul.f32 1.442695, %v2277_v44  ;;  %2333 = vadd.xlane.f32.xlu1 %v2332_v31 }
 0x70d   :  { %v1819_v10 = vpop.permute.xlu0 %1818  ;;  %v2335_v27 = vsel %vm798_vm1, %v9799_v29, 0.0 }
 0x70e   :  { %v9803_v45 = vpop.eup %8041  ;;  %8051 = vpow2.f32 %v2307_v34  ;;  %2336 = vadd.xlane.f32.xlu0 %v2335_v27  ;;  %7303 = vmatpush3.bf16.msra.mxu1 %v1819_v10 }
 0x70f   :  { %v2338_v20 = vsel %vm798_vm1, %v9803_v45, 0.0  ;;  %7314 = vmatprep.subr.bf16.mxu1 %v8783_v26  ;;  %v1825_v12 = vpop.permute.xlu1 %1824 }
 0x710   :  { %v9808_v15 = vpop.eup %8043  ;;  %2339 = vadd.xlane.f32.xlu1 %v2338_v20 }
 0x711   :  { %v2341_v50 = vsel %vm798_vm1, %v9808_v15, 0.0 }
 0x712   :  { %v9812_v40 = vpop.eup %8045  ;;  %2342 = vadd.xlane.f32.xlu0 %v2341_v50 }
 0x713   :  { %v2344_v46 = vsel %vm798_vm1, %v9812_v40, 0.0 }
 0x714   :  { %v9816_v18 = vpop.eup %8047  ;;  %2345 = vadd.xlane.f32.xlu1 %v2344_v46 }
 0x715   :  { %v2347_v3 = vsel %vm798_vm1, %v9816_v18, 0.0 }
 0x716   :  { %v9820_v7 = vpop.eup %8049  ;;  %2348 = vadd.xlane.f32.xlu0 %v2347_v3 }
 0x717   :  { %v2350_v43 = vsel %vm798_vm1, %v9820_v7, 0.0 }
 0x718   :  { %v9824_v36 = vpop.eup %8051  ;;  %2351 = vadd.xlane.f32.xlu1 %v2350_v43 }
 0x719   :  { %v2353_v17 = vsel %vm798_vm1, %v9824_v36, 0.0 }
 0x71a   :  { %2354 = vadd.xlane.f32.xlu0 %v2353_v17 }
 0x730   :  { %1833 = vrot.lane.b32.xlu0 %v9281_v8, %s8789_s17 }
 0x734   :  { %7670 = vrot.lane.b32.xlu0 %v7669_v30, %s8781_s6 }
 0x740   :  { %v2262_v22 = vpop.xlane.xlu1 %2261 }
 0x741   :  { %v2278_v24 = vsub.f32 %v9746_v38, %v2262_v22 }
 0x743   :  { %v2309_v58 = vmul.f32 1.442695, %v2278_v24 }
 0x744   :  { %v9865_v1 = vpop.permute.xlu1 %1830 }
 0x745   :  { %8053 = vpow2.f32 %v2309_v58 }
 0x74f   :  { %v9835_v63 = vpop.eup %8053 }
 0x750   :  { %v2356_v57 = vsel %vm798_vm1, %v9835_v63, 0.0 }
 0x751   :  { %2357 = vadd.xlane.f32.xlu1 %v2356_v57 }
 0x762   :  { %1836 = vrot.lane.b32.xlu1 %v9281_v8, %s8781_s6  ;;  %v1828_v8 = vpop.permute.xlu0 %1827 }
 0x766   :  { %7675 = vrot.lane.b32.xlu1 %v7674_v13, %s8789_s17 }
 0x76a   :  { %7680 = vrot.lane.b32.xlu1 %v7679_v16, %s8788_s5 }
 0x76e   :  { %7685 = vrot.lane.b32.xlu1 %v7684_v62, %s8761_s1 }
 0x772   :  { %7690 = vrot.lane.b32.xlu1 %v7689_v59, %s8787_s15 }
 0x776   :  { %7695 = vrot.lane.b32.xlu1 %v7694_v33, %s8785_s24 }
 0x77a   :  { %7700 = vrot.lane.b32.xlu1 %v7699_v37, %s8786_s29 }
 0x787   :  { %v2313_v25 = vpop.xlane.xlu0 %2312 }
 0x788   :  { %8055 = vrcp.f32 %v2313_v25 }
 0x789   :  { %v2316_v30 = vpop.xlane.xlu1 %2315 }
 0x78a   :  { %8057 = vrcp.f32 %v2316_v30 }
 0x78f   :  { %v2319_v6 = vpop.xlane.xlu0 %2318 }
 0x790   :  { %8059 = vrcp.f32 %v2319_v6 }
 0x791   :  { %v2322_v39 = vpop.xlane.xlu1 %2321 }
 0x792   :  { %v8056_v13 = vpop.eup %8055  ;;  %8061 = vrcp.f32 %v2322_v39 }
 0x793   :  { %v2325_v41 = vpop.xlane.xlu0 %2324  ;;  %v2375_v16 = vmul.f32 %v8056_v13, %v9757_v51 }
 0x794   :  { %v8058_v14 = vpop.eup %8057  ;;  %8063 = vrcp.f32 %v2325_v41 }
 0x795   :  { %v2376_v48 = vmul.f32 %v8058_v14, %v9762_v49  ;;  %v2328_v55 = vpop.xlane.xlu1 %2327 }
 0x796   :  { %8065 = vrcp.f32 %v2328_v55 }
 0x797   :  { %v2331_v62 = vpop.xlane.xlu0 %2330  ;;  %v2391_v53 = vpack.c.bf16 %v2376_v48, %v2375_v16 }
 0x798   :  { %8067 = vrcp.f32 %v2331_v62 }
 0x799   :  { %7299 = vmatmul.mubr.msk.bf16.vlgmr.msra.gmra.mrb[40].mxu0 %vm798_vm1, %v2391_v53  ;;  %v2334_v61 = vpop.xlane.xlu1 %2333 }
 0x79a   :  { %v8060_v59 = vpop.eup %8059  ;;  %7309 = vmatpush3.bf16.msra.mxu0 %v1822_v19  ;;  %8069 = vrcp.f32 %v2334_v61  ;;  %7310 = vmatprep.mubr.msk.bf16.mxu0 %vm8784_vm0, %v8783_v26 }
 0x79b   :  { %v2337_v2 = vpop.xlane.xlu0 %2336  ;;  %7320 = vmatprep.subr.bf16.mxu0 %v8783_v26  ;;  %v2377_v33 = vmul.f32 %v8060_v59, %v9769_v47 }
 0x79c   :  { %v8062_v11 = vpop.eup %8061  ;;  %8071 = vrcp.f32 %v2337_v2 }
 0x79d   :  { %v2378_v9 = vmul.f32 %v8062_v11, %v9774_v54  ;;  %v2340_v35 = vpop.xlane.xlu1 %2339 }
 0x79e   :  { %v8064_v37 = vpop.eup %8063  ;;  %8073 = vrcp.f32 %v2340_v35 }
 0x79f   :  { %v2343_v38 = vpop.xlane.xlu0 %2342  ;;  %v2392_v51 = vpack.c.bf16 %v2378_v9, %v2377_v33  ;;  %v2379_v5 = vmul.f32 %v8064_v37, %v9779_v4 }
 0x7a0   :  { %v8066_v49 = vpop.eup %8065  ;;  %8075 = vrcp.f32 %v2343_v38 }
 0x7a1   :  { %v2380_v56 = vmul.f32 %v8066_v49, %v9784_v42  ;;  %7305 = vmatmul.mubr.msk.bf16.vlgmr.msra.gmra.mrb[68].mxu1 %vm798_vm1, %v2392_v51  ;;  %v2346_v23 = vpop.xlane.xlu1 %2345 }
 0x7a2   :  { %v8068_v44 = vpop.eup %8067  ;;  %7315 = vmatpush3.bf16.msra.mxu1 %v1825_v12  ;;  %8077 = vrcp.f32 %v2346_v23  ;;  %7316 = vmatprep.mubr.msk.bf16.mxu1 %vm8784_vm0, %v8783_v26 }
 0x7a3   :  { %v2349_v47 = vpop.xlane.xlu0 %2348  ;;  %v2393_v54 = vpack.c.bf16 %v2380_v56, %v2379_v5  ;;  %7326 = vmatprep.subr.bf16.mxu1 %v8783_v26  ;;  %v2381_v34 = vmul.f32 %v8068_v44, %v9789_v60 }
 0x7a4   :  { %v8070_v31 = vpop.eup %8069  ;;  %8079 = vrcp.f32 %v2349_v47 }
 0x7a5   :  { %v2382_v4 = vmul.f32 %v8070_v31, %v9794_v52  ;;  %7311 = vmatmul.mubr.msk.bf16.vlgmr.msra.gmra.mrb[44].mxu0 %vm798_vm1, %v2393_v54  ;;  %v2352_v42 = vpop.xlane.xlu1 %2351 }
 0x7a6   :  { %v8072_v10 = vpop.eup %8071  ;;  %7321 = vmatpush3.bf16.msra.mxu0 %v1828_v8  ;;  %8081 = vrcp.f32 %v2352_v42  ;;  %7322 = vmatprep.mubr.msk.bf16.mxu0 %vm8784_vm0, %v8783_v26 }
 0x7a7   :  { %v2355_v27 = vpop.xlane.xlu0 %2354  ;;  %v2394_v20 = vpack.c.bf16 %v2382_v4, %v2381_v34  ;;  %7332 = vmatprep.subr.bf16.mxu0 %v8783_v26  ;;  %v2383_v46 = vmul.f32 %v8072_v10, %v9799_v29 }
 0x7a8   :  { %v8074_v50 = vpop.eup %8073  ;;  %8083 = vrcp.f32 %v2355_v27 }
 0x7a9   :  { %v2384_v60 = vmul.f32 %v8074_v50, %v9803_v45  ;;  %7317 = vmatmul.mubr.msk.bf16.vlgmr.msra.gmra.mrb[72].mxu1 %vm798_vm1, %v2394_v20 }
 0x7aa   :  { %v8076_v52 = vpop.eup %8075  ;;  %7327 = vmatpush3.bf16.msra.mxu1 %v9865_v1  ;;  %7328 = vmatprep.mubr.msk.bf16.mxu1 %vm8784_vm0, %v8783_v26 }
 0x7ab   :  { %v1834_v3 = vpop.permute.xlu0 %1833  ;;  %v2395_v43 = vpack.c.bf16 %v2384_v60, %v2383_v46  ;;  %7338 = vmatprep.subr.bf16.mxu1 %v8783_v26  ;;  %v2385_v19 = vmul.f32 %v8076_v52, %v9808_v15 }
 0x7ac   :  { %v8078_v17 = vpop.eup %8077 }
 0x7ad   :  { %v2386_v12 = vmul.f32 %v8078_v17, %v9812_v40  ;;  %7323 = vmatmul.mubr.msk.bf16.vlgmr.msra.gmra.mrb[48].mxu0 %vm798_vm1, %v2395_v43 }
 0x7ae   :  { %v8080_v29 = vpop.eup %8079  ;;  %7333 = vmatpush3.bf16.msra.mxu0 %v1834_v3  ;;  %7334 = vmatprep.mubr.msk.bf16.mxu0 %vm8784_vm0, %v8783_v26 }
 0x7af   :  { %v2396_v45 = vpack.c.bf16 %v2386_v12, %v2385_v19  ;;  %v2387_v24 = vmul.f32 %v8080_v29, %v9816_v18  ;;  %v7671_v13 = vpop.permute.xlu0 %7670 }
 0x7b0   :  { %v8082_v22 = vpop.eup %8081  ;;  %v7673_v14 = vunpack.i.h.bf16 %v7671_v13  ;;  %v7672_v16 = vunpack.i.l.bf16 %v7671_v13 }
 0x7b1   :  { %v2388_v58 = vmul.f32 %v8082_v22, %v9820_v7  ;;  %7329 = vmatmul.mubr.msk.bf16.vlgmr.msra.gmra.mrb[76].mxu1 %vm798_vm1, %v2396_v45 }
 0x7b2   :  { %7340 = vmatprep.mubr.msk.bf16.mxu1 %vm8784_vm0, %v8783_v26  ;;  %v8084_v1 = vpop.eup %8083  ;;  %v1768_v59 = vsel %vm798_vm1, %v9618_v21, %v7673_v14  ;;  %v1767_v2 = vsel %vm798_vm1, %v9616_v0, %v7672_v16 }
 0x7b3   :  { %v2397_v15 = vpack.c.bf16 %v2388_v58, %v2387_v24  ;;  %v2389_v18 = vmul.f32 %v8084_v1, %v9824_v36 }
 0x7b5   :  { %7335 = vmatmul.mubr.msk.bf16.vlgmr.msra.gmra.mrb[52].mxu0 %vm798_vm1, %v2397_v15 }
 0x7de   :  { %v2358_v40 = vpop.xlane.xlu1 %2357 }
 0x7df   :  { %8085 = vrcp.f32 %v2358_v40 }
 0x7e2   :  { %v1837_v57 = vpop.permute.xlu1 %1836 }
 0x7e3   :  { %7339 = vmatpush3.bf16.msra.mxu1 %v1837_v57 }
 0x7e6   :  { %v7676_v8 = vpop.permute.xlu1 %7675 }
 0x7e7   :  { %v7678_v48 = vunpack.i.h.bf16 %v7676_v8  ;;  %v7677_v55 = vunpack.i.l.bf16 %v7676_v8 }
 0x7e9   :  { %v8086_v25 = vpop.eup %8085  ;;  %v1771_v9 = vsel %vm1769_vm4, %v1768_v59, %v7678_v48  ;;  %v1770_v35 = vsel %vm1769_vm4, %v1767_v2, %v7677_v55  ;;  %v7840_v59 = vld [vmem:[#allocation16 + $0x28] sm:$0xff]   ;;  %v7841_v2 = vld [vmem:[#allocation16 + $0x30] sm:$0xff]  }
 0x7ea   :  { %v2390_v7 = vmul.f32 %v8086_v25, %v9835_v63  ;;  %v7681_v30 = vpop.permute.xlu1 %7680  ;;  %v7835_v25 = vld [vmem:[#allocation16] sm:$0xff]  }
 0x7eb   :  { %v7683_v62 = vunpack.i.h.bf16 %v7681_v30  ;;  %v7682_v53 = vunpack.i.l.bf16 %v7681_v30  ;;  %7344 = vmatprep.subr.bf16.mxu0 %v7835_v25 }
 0x7ec   :  { %v2398_v6 = vpack.c.bf16 %v2390_v7, %v2389_v18  ;;  %v7836_v18 = vld [vmem:[#allocation16 + $0x8] sm:$0xff]   ;;  %7345 = vmatpush3.bf16.msra.mxu0 %v7835_v25 }
 0x7ed   :  { %v1773_v51 = vsel %vm1772_vm5, %v1770_v35, %v7682_v53  ;;  %v1774_v49 = vsel %vm1772_vm5, %v1771_v9, %v7683_v62  ;;  %7346 = vmatprep.subr.bf16.mxu0 %v7836_v18  ;;  %v7838_v53 = vld [vmem:[#allocation16 + $0x18] sm:$0xff]  }
 0x7ee   :  { %7341 = vmatmul.mubr.msk.bf16.vlgmr.msra.gmra.mrb[80].mxu1 %vm798_vm1, %v2398_v6  ;;  %v7686_v39 = vpop.permute.xlu1 %7685 }
 0x7ef   :  { %v7688_v61 = vunpack.i.h.bf16 %v7686_v39  ;;  %v7687_v36 = vunpack.i.l.bf16 %v7686_v39 }
 0x7f0   :  { %7347 = vmatpush3.bf16.msra.mxu0 %v7836_v18 }
 0x7f1   :  { %v1776_v5 = vsel %vm1775_vm6, %v1773_v51, %v7687_v36  ;;  %v1777_v21 = vsel %vm1775_vm6, %v1774_v49, %v7688_v61 }
 0x7f2   :  { %v7691_v41 = vpop.permute.xlu1 %7690 }
 0x7f3   :  { %v7693_v11 = vunpack.i.h.bf16 %v7691_v41  ;;  %v7692_v33 = vunpack.i.l.bf16 %v7691_v41  ;;  %v7837_v41 = vld [vmem:[#allocation16 + $0x10] sm:$0xff]  }
 0x7f4   :  { %7348 = vmatprep.subr.bf16.mxu0 %v7837_v41 }
 0x7f5   :  { %v1779_v0 = vsel %vm1778_vm7, %v1776_v5, %v7692_v33  ;;  %v1780_v23 = vsel %vm1778_vm7, %v1777_v21, %v7693_v11  ;;  %7349 = vmatpush3.bf16.msra.mxu0 %v7837_v41  ;;  %v7842_v11 = vld [vmem:[#allocation16 + $0x38] sm:$0xff]   ;;  %v9934_v33 = vld [vmem:[#allocation23] sm:$0xff]   ;;  %v7847_v5 = vld [vmem:[#allocation22 + $0x8] sm:$0xff]  }
 0x7f6   :  { %v7696_v63 = vpop.permute.xlu1 %7695  ;;  %7350 = vmatprep.subr.bf16.mxu0 %v7838_v53  ;;  %v7849_v21 = vld [vmem:[#allocation22 + $0x10] sm:$0xff]  }
 0x7f7   :  { %v7698_v37 = vunpack.i.h.bf16 %v7696_v63  ;;  %v7697_v38 = vunpack.i.l.bf16 %v7696_v63  ;;  %v7839_v63 = vld [vmem:[#allocation16 + $0x20] sm:$0xff]  }
 0x7f9   :  { %v1782_v54 = vsel %vm1781_vm8, %v1779_v0, %v7697_v38  ;;  %v1783_v31 = vsel %vm1781_vm8, %v1780_v23, %v7698_v37  ;;  %7351 = vmatpush3.bf16.msra.mxu0 %v7838_v53  ;;  %v7845_v38 = vld [vmem:[#allocation22] sm:$0xff]   ;;  %v7855_v23 = vld [vmem:[#allocation22 + $0x28] sm:$0xff]   ;;  %v7848_v53 = vld [vmem:[#allocation23 + $0x18] sm:$0xff]  }
 0x7fa   :  { %v7701_v56 = vpop.permute.xlu1 %7700  ;;  %7352 = vmatprep.subr.bf16.mxu0 %v7839_v63  ;;  %7364 = vmatprep.subr.bf16.mxu1 %v7845_v38  ;;  %v7853_v0 = vld [vmem:[#allocation22 + $0x20] sm:$0xff]  }
 0x7fb   :  { %v7703_v44 = vunpack.i.h.bf16 %v7701_v56  ;;  %v7702_v47 = vunpack.i.l.bf16 %v7701_v56  ;;  %7365 = vmatpush3.bf16.msra.mxu1 %v7845_v38  ;;  %v7851_v56 = vld [vmem:[#allocation22 + $0x18] sm:$0xff]  }
 0x7fc   :  { %7366 = vmatprep.subr.bf16.mxu1 %v7847_v5 }
 0x7fd   :  { %v1785_v34 = vsel %vm1784_vm9, %v1782_v54, %v7702_v47  ;;  %v1786_v4 = vsel %vm1784_vm9, %v1783_v31, %v7703_v44  ;;  %7353 = vmatpush3.bf16.msra.mxu0 %v7839_v63  ;;  %v7857_v44 = vld [vmem:[#allocation22 + $0x30] sm:$0xff]   ;;  %v7858_v47 = vld [vmem:[#allocation5] sm:$0xff]   ;;  %v7860_v54 = vld [vmem:[#allocation22 + $0x38] sm:$0xff]  }
 0x7fe   :  { %v2821_v42 = vpack.c.bf16 %v1786_v4, %v1785_v34  ;;  %7354 = vmatprep.subr.bf16.mxu0 %v7840_v59  ;;  %7380 = vmatprep.mubr.bf16.mxu1 %v7858_v47  ;;  %v7859_v31 = vld [vmem:[#allocation5 + $0x8] sm:$0xff]  }
 0x7ff   :  { %7367 = vmatpush3.bf16.msra.mxu1 %v7847_v5  ;;  %v7854_v63 = vld [vmem:[#allocation23 + $0x30] sm:$0xff]  }
 0x800   :  { %7360 = vmatprep.mubr.bf16.mxu0 %v2821_v42  ;;  %7368 = vmatprep.subr.bf16.mxu1 %v7849_v21 }
 0x801   :  { %7355 = vmatpush3.bf16.msra.mxu0 %v7840_v59  ;;  %v7856_v59 = vld [vmem:[#allocation23 + $0x38] sm:$0xff]  }
 0x802   :  { %7356 = vmatprep.subr.bf16.mxu0 %v7841_v2 }
 0x803   :  { %7369 = vmatpush3.bf16.msra.mxu1 %v7849_v21 }
 0x804   :  { %7370 = vmatprep.subr.bf16.mxu1 %v7851_v56 }
 0x805   :  { %7357 = vmatpush3.bf16.msra.mxu0 %v7841_v2  ;;  %v3011_v2 = vld [vmem:[#allocation26] sm:$0x1] }
 0x806   :  { %7358 = vmatprep.subr.bf16.mxu0 %v7842_v11 }
 0x807   :  { %7371 = vmatpush3.bf16.msra.mxu1 %v7851_v56 }
 0x808   :  { %7372 = vmatprep.subr.bf16.mxu1 %v7853_v0 }
 0x809   :  { %7359 = vmatpush3.bf16.msra.mxu0 %v7842_v11  ;;  %v3012_v11 = vunpack.c.l.bf16 %v3011_v2 }
 0x80a   :  { %7384 = vmatprep.subr.bf16.mxu0 %v9934_v33 }
 0x80b   :  { %7373 = vmatpush3.bf16.msra.mxu1 %v7853_v0 }
 0x80c   :  { %7374 = vmatprep.subr.bf16.mxu1 %v7855_v23 }
 0x80f   :  { %7375 = vmatpush3.bf16.msra.mxu1 %v7855_v23 }
 0x810   :  { %7376 = vmatprep.subr.bf16.mxu1 %v7857_v44 }
 0x813   :  { %7377 = vmatpush3.bf16.msra.mxu1 %v7857_v44 }
 0x814   :  { %7378 = vmatprep.subr.bf16.mxu1 %v7860_v54 }
 0x817   :  { %7379 = vmatpush3.bf16.msra.mxu1 %v7860_v54 }
 0x81a   :  { %7381 = vmatmul.mubr.bf16.vlgmr.msra.gmra.mrb[84].mxu1 %v7859_v31 }
 0x86c   :  { %v9924_v10 = vpop.f32.mrb[40].mxu0 }
 0x86d   :  { %v7300_v27 = vpop.f32.mrb[41].mxu0 }
 0x86e   :  { %v9926_v20 = vpop.f32.mrb[42].mxu0 }
 0x86f   :  { %v7301_v50 = vpop.f32.mrb[43].mxu0 }
 0x874   :  { %v2480_v46 = vpop.f32.mrb[68].mxu1 }
 0x875   :  { %v7306_v60 = vpop.f32.mrb[69].mxu1 }
 0x876   :  { %v2483_v52 = vpop.f32.mrb[70].mxu1 }
 0x877   :  { %v7704_v3 = vpack.i.bf16 %v2483_v52, %v2480_v46  ;;  %v7307_v43 = vpop.f32.mrb[71].mxu1 }
 0x878   :  { %v2524_v17 = vpop.f32.mrb[44].mxu0 }
 0x879   :  { %v7312_v19 = vpop.f32.mrb[45].mxu0  ;;  %7705 = vrot.lane.b32.xlu0 %v7704_v3, %s8781_s6 }
 0x87a   :  { %v2527_v12 = vpop.f32.mrb[46].mxu0 }
 0x87b   :  { %v7709_v29 = vpack.i.bf16 %v2527_v12, %v2524_v17  ;;  %v7313_v45 = vpop.f32.mrb[47].mxu0 }
 0x87c   :  { %v2568_v22 = vpop.f32.mrb[72].mxu1 }
 0x87d   :  { %7710 = vrot.lane.b32.xlu0 %v7709_v29, %s8789_s17  ;;  %v7318_v24 = vpop.f32.mrb[73].mxu1 }
 0x87e   :  { %v2571_v58 = vpop.f32.mrb[74].mxu1 }
 0x87f   :  { %v7714_v15 = vpack.i.bf16 %v2571_v58, %v2568_v22  ;;  %v7319_v40 = vpop.f32.mrb[75].mxu1 }
 0x880   :  { %v2612_v57 = vpop.f32.mrb[48].mxu0 }
 0x881   :  { %v7324_v8 = vpop.f32.mrb[49].mxu0  ;;  %7715 = vrot.lane.b32.xlu0 %v7714_v15, %s8788_s5 }
 0x882   :  { %v2615_v1 = vpop.f32.mrb[50].mxu0 }
 0x883   :  { %v7719_v7 = vpack.i.bf16 %v2615_v1, %v2612_v57  ;;  %v7325_v30 = vpop.f32.mrb[51].mxu0 }
 0x884   :  { %v2656_v6 = vpop.f32.mrb[76].mxu1 }
 0x885   :  { %7720 = vrot.lane.b32.xlu0 %v7719_v7, %s8761_s1  ;;  %v7330_v39 = vpop.f32.mrb[77].mxu1 }
 0x886   :  { %v2659_v13 = vpop.f32.mrb[78].mxu1 }
 0x887   :  { %v7724_v14 = vpack.i.bf16 %v2659_v13, %v2656_v6  ;;  %v7331_v16 = vpop.f32.mrb[79].mxu1 }
 0x888   :  { %v2700_v48 = vpop.f32.mrb[52].mxu0 }
 0x889   :  { %v7336_v55 = vpop.f32.mrb[53].mxu0  ;;  %7725 = vrot.lane.b32.xlu0 %v7724_v14, %s8787_s15 }
 0x88a   :  { %v2703_v62 = vpop.f32.mrb[54].mxu0  ;;  %v7844_v55 = vld [vmem:[#allocation23 + $0x8] sm:$0xff]  }
 0x88b   :  { %v7729_v61 = vpack.i.bf16 %v2703_v62, %v2700_v48  ;;  %v7337_v36 = vpop.f32.mrb[55].mxu0  ;;  %v7846_v62 = vld [vmem:[#allocation23 + $0x10] sm:$0xff]  }
 0x88c   :  { %v7852_v36 = vld [vmem:[#allocation23 + $0x28] sm:$0xff]  }
 0x88d   :  { %7730 = vrot.lane.b32.xlu0 %v7729_v61, %s8785_s24  ;;  %v7850_v61 = vld [vmem:[#allocation23 + $0x20] sm:$0xff]  }
 0x8c1   :  { %v2744_v9 = vpop.f32.mrb[80].mxu1 }
 0x8c2   :  { %v7342_v35 = vpop.f32.mrb[81].mxu1 }
 0x8c3   :  { %v2747_v37 = vpop.f32.mrb[82].mxu1  ;;  %v3038_v35 = vrot.slane %v3012_v11, %v9253_v32 }
 0x8c4   :  { %v7734_v51 = vpack.i.bf16 %v2747_v37, %v2744_v9  ;;  %v7343_v49 = vpop.f32.mrb[83].mxu1 }
 0x8c6   :  { %7735 = vrot.lane.b32.xlu1 %v7734_v51, %s8786_s29 }
 0x8eb   :  { %v7706_v34 = vpop.permute.xlu0 %7705 }
 0x8ec   :  { %v7708_v46 = vunpack.i.h.bf16 %v7706_v34  ;;  %v7707_v60 = vunpack.i.l.bf16 %v7706_v34 }
 0x8ee   :  { %v2808_v45 = vsel %vm798_vm1, %v9926_v20, %v7708_v46  ;;  %v2807_v22 = vsel %vm798_vm1, %v9924_v10, %v7707_v60 }
 0x8ef   :  { %v7711_v4 = vpop.permute.xlu0 %7710 }
 0x8f0   :  { %v7713_v52 = vunpack.i.h.bf16 %v7711_v4  ;;  %v7712_v3 = vunpack.i.l.bf16 %v7711_v4 }
 0x8f2   :  { %v2809_v15 = vsel %vm1769_vm4, %v2807_v22, %v7712_v3  ;;  %v2810_v40 = vsel %vm1769_vm4, %v2808_v45, %v7713_v52 }
 0x8f3   :  { %v7716_v42 = vpop.permute.xlu0 %7715 }
 0x8f4   :  { %v7718_v43 = vunpack.i.h.bf16 %v7716_v42  ;;  %v7717_v17 = vunpack.i.l.bf16 %v7716_v42 }
 0x8f6   :  { %v2812_v1 = vsel %vm1772_vm5, %v2810_v40, %v7718_v43  ;;  %v2811_v25 = vsel %vm1772_vm5, %v2809_v15, %v7717_v17  ;;  %v8272_v17 = vld [vmem:[#allocation2 + $0x8] sm:$0xff]  }
 0x8f7   :  { %v7721_v27 = vpop.permute.xlu0 %7720 }
 0x8f8   :  { %v7723_v12 = vunpack.i.h.bf16 %v7721_v27  ;;  %v7722_v29 = vunpack.i.l.bf16 %v7721_v27  ;;  %v8271_v27 = vld [vmem:[#allocation2] sm:$0xff]  }
 0x8f9   :  { %v353_v3 = vunpack.c.h.bf16 %v8271_v27 }
 0x8fa   :  { %v2813_v18 = vsel %vm1775_vm6, %v2811_v25, %v7722_v29  ;;  %v2814_v7 = vsel %vm1775_vm6, %v2812_v1, %v7723_v12 }
 0x8fb   :  { %v7726_v50 = vpop.permute.xlu0 %7725 }
 0x8fc   :  { %v7728_v24 = vunpack.i.h.bf16 %v7726_v50  ;;  %v7727_v58 = vunpack.i.l.bf16 %v7726_v50  ;;  %v352_v50 = vunpack.c.l.bf16 %v8271_v27 }
 0x8fe   :  { %v2816_v30 = vsel %vm1778_vm7, %v2814_v7, %v7728_v24  ;;  %v2815_v10 = vsel %vm1778_vm7, %v2813_v18, %v7727_v58  ;;  %v355_v58 = vunpack.c.h.bf16 %v8272_v17 }
 0x8ff   :  { %v7731_v19 = vpop.permute.xlu0 %7730 }
 0x900   :  { %v7733_v57 = vunpack.i.h.bf16 %v7731_v19  ;;  %v7732_v8 = vunpack.i.l.bf16 %v7731_v19  ;;  %v354_v19 = vunpack.c.l.bf16 %v8272_v17 }
 0x902   :  { %v2817_v13 = vsel %vm1781_vm8, %v2815_v10, %v7732_v8  ;;  %v2818_v41 = vsel %vm1781_vm8, %v2816_v30, %v7733_v57  ;;  %v3013_v57 = vld [vmem:[#allocation28] sm:$0x1] }
 0x903   :  { %v3014_v8 = vunpack.c.l.bf16 %v3013_v57 }
 0x905   :  { %v3167_v1 = vrot.slane %v3014_v8, %v9253_v32 }
 0x938   :  { %v7736_v20 = vpop.permute.xlu1 %7735 }
 0x939   :  { %v7738_v6 = vunpack.i.h.bf16 %v7736_v20  ;;  %v7737_v39 = vunpack.i.l.bf16 %v7736_v20 }
 0x93b   :  { %v2820_v14 = vsel %vm1784_vm9, %v2818_v41, %v7738_v6  ;;  %v2819_v16 = vsel %vm1784_vm9, %v2817_v13, %v7737_v39 }
 0x93c   :  { %v2822_v48 = vpack.c.bf16 %v2820_v14, %v2819_v16  ;;  %v7861_v16 = vld [vmem:[#allocation25] sm:$0xff]  }
 0x93d   :  { %7404 = vmatprep.subr.bf16.mxu1 %v7861_v16 }
 0x93e   :  { %7361 = vmatmul.mubr.bf16.vlgmr.msra.gmra.mrb[56].mxu0 %v2822_v48  ;;  %v7862_v48 = vld [vmem:[#allocation25 + $0x8] sm:$0xff]   ;;  %7405 = vmatpush3.bf16.msra.mxu1 %v7861_v16 }
 0x93f   :  { %7385 = vmatpush3.bf16.msra.mxu0 %v9934_v33  ;;  %7400 = vmatprep.mubr.bf16.mxu0 %v7858_v47  ;;  %v7382_v33 = vpop.f32.mrb[84].mxu1 }
 0x940   :  { %7386 = vmatprep.subr.bf16.mxu0 %v7844_v55  ;;  %v3133_v9 = vpop.f32.mrb[85].mxu1  ;;  %v3142_v51 = vadd.f32 %v7382_v33, %v3038_v35  ;;  %7406 = vmatprep.subr.bf16.mxu1 %v7862_v48 }
 0x941   :  { %v7383_v37 = vpop.f32.mrb[86].mxu1  ;;  %v3134_v49 = vadd.f32 %v3133_v9, %v3038_v35 }
 0x942   :  { %v3136_v38 = vpop.f32.mrb[87].mxu1  ;;  %v3145_v5 = vadd.f32 %v7383_v37, %v3038_v35  ;;  %v3384_v56 = vmul.f32 0.25, %v3142_v51  ;;  %7407 = vmatpush3.bf16.msra.mxu1 %v7862_v48 }
 0x943   :  { %7387 = vmatpush3.bf16.msra.mxu0 %v7844_v55  ;;  %v3137_v21 = vadd.f32 %v3136_v38, %v3038_v35  ;;  %v3382_v0 = vmul.f32 0.25, %v3134_v49 }
 0x944   :  { %7388 = vmatprep.subr.bf16.mxu0 %v7846_v62  ;;  %v3385_v23 = vmul.f32 0.25, %v3145_v5  ;;  %v7863_v5 = vld [vmem:[#allocation25 + $0x10] sm:$0xff]  }
 0x945   :  { %v3383_v44 = vmul.f32 0.25, %v3137_v21  ;;  %7408 = vmatprep.subr.bf16.mxu1 %v7863_v5  ;;  %v7864_v21 = vld [vmem:[#allocation25 + $0x18] sm:$0xff]  }
 0x946   :  { %v9959_v47 = vpack.c.bf16 %v3385_v23, %v3384_v56  ;;  %7409 = vmatpush3.bf16.msra.mxu1 %v7863_v5  ;;  %v7865_v56 = vld [vmem:[#allocation25 + $0x20] sm:$0xff]   ;;  %v7867_v23 = vld [vmem:[#allocation25 + $0x30] sm:$0xff]  }
 0x947   :  { %7389 = vmatpush3.bf16.msra.mxu0 %v7846_v62  ;;  %v9961_v54 = vpack.c.bf16 %v3383_v44, %v3382_v0  ;;  %7410 = vmatprep.subr.bf16.mxu1 %v7864_v21  ;;  %v7866_v0 = vld [vmem:[#allocation25 + $0x28] sm:$0xff]   ;;  %v7868_v44 = vld [vmem:[#allocation25 + $0x38] sm:$0xff]  }
 0x948   :  { %7390 = vmatprep.subr.bf16.mxu0 %v7848_v53 }
 0x94a   :  { %7411 = vmatpush3.bf16.msra.mxu1 %v7864_v21 }
 0x94b   :  { %7391 = vmatpush3.bf16.msra.mxu0 %v7848_v53  ;;  %7412 = vmatprep.subr.bf16.mxu1 %v7865_v56 }
 0x94c   :  { %7392 = vmatprep.subr.bf16.mxu0 %v7850_v61 }
 0x94e   :  { %7413 = vmatpush3.bf16.msra.mxu1 %v7865_v56 }
 0x94f   :  { %7393 = vmatpush3.bf16.msra.mxu0 %v7850_v61  ;;  %7414 = vmatprep.subr.bf16.mxu1 %v7866_v0 }
 0x950   :  { %7394 = vmatprep.subr.bf16.mxu0 %v7852_v36 }
 0x952   :  { %7415 = vmatpush3.bf16.msra.mxu1 %v7866_v0 }
 0x953   :  { %7395 = vmatpush3.bf16.msra.mxu0 %v7852_v36  ;;  %7416 = vmatprep.subr.bf16.mxu1 %v7867_v23 }
 0x954   :  { %7396 = vmatprep.subr.bf16.mxu0 %v7854_v63 }
 0x956   :  { %7417 = vmatpush3.bf16.msra.mxu1 %v7867_v23 }
 0x957   :  { %7397 = vmatpush3.bf16.msra.mxu0 %v7854_v63  ;;  %7418 = vmatprep.subr.bf16.mxu1 %v7868_v44 }
 0x958   :  { %7398 = vmatprep.subr.bf16.mxu0 %v7856_v59 }
 0x95a   :  { %7419 = vmatpush3.bf16.msra.mxu1 %v7868_v44 }
 0x95b   :  { %7399 = vmatpush3.bf16.msra.mxu0 %v7856_v59  ;;  %7430 = vmatprep.subr.bf16.mxu1 %v8783_v26 }
 0x95c   :  { %7424 = vmatprep.subr.bf16.mxu0 %v8783_v26 }
 0x95e   :  { %7401 = vmatmul.mubr.bf16.vlgmr.msra.gmra.mrb[60].mxu0 %v7859_v31  ;;  %v371_v31 = vld [vmem:[#allocation17] sm:$0x1] }
 0x95f   :  { %7426 = vmatprep.mubr.msk.bf16.mxu0 %vm8784_vm0, %v8783_v26  ;;  %v372_v34 = vunpack.c.l.bf16 %v371_v31 }
 0x961   :  { %v2842_v4 = vrot.slane %v372_v34, %v9253_v32 }
 0xa11   :  { %v7362_v42 = vpop.f32.mrb[56].mxu0 }
 0xa12   :  { %v2925_v46 = vpop.f32.mrb[57].mxu0  ;;  %v2934_v12 = vadd.f32 %v7362_v42, %v2842_v4 }
 0xa13   :  { %v2926_v60 = vadd.f32 %v2925_v46, %v2842_v4  ;;  %v7363_v52 = vpop.f32.mrb[58].mxu0 }
 0xa14   :  { %v2928_v43 = vpop.f32.mrb[59].mxu0  ;;  %v2942_v24 = vadd.f32 %v2934_v12, %v354_v19  ;;  %v2937_v15 = vadd.f32 %v7363_v52, %v2842_v4 }
 0xa15   :  { %v2940_v29 = vadd.f32 %v2926_v60, %v352_v50  ;;  %v2929_v45 = vadd.f32 %v2928_v43, %v2842_v4 }
 0xa16   :  { %v2943_v40 = vadd.f32 %v2937_v15, %v355_v58 }
 0xa17   :  { %v2941_v22 = vadd.f32 %v2929_v45, %v353_v3  ;;  %2948 = vadd.xlane.f32.xlu0 %v2940_v29 }
 0xa19   :  { %2950 = vadd.xlane.f32.xlu1 %v2941_v22 }
 0xa1b   :  { %2952 = vadd.xlane.f32.xlu0 %v2942_v24 }
 0xa1f   :  { %2954 = vadd.xlane.f32.xlu0 %v2943_v40 }
 0xa31   :  { %v7402_v25 = vpop.f32.mrb[60].mxu0 }
 0xa32   :  { %v3259_v18 = vadd.f32 %v7402_v25, %v3167_v1  ;;  %v3250_v7 = vpop.f32.mrb[61].mxu0 }
 0xa33   :  { %v3251_v20 = vadd.f32 %v3250_v7, %v3167_v1  ;;  %v7403_v30 = vpop.f32.mrb[62].mxu0 }
 0xa34   :  { %v3262_v10 = vadd.f32 %v7403_v30, %v3167_v1  ;;  %v3253_v6 = vpop.f32.mrb[63].mxu0 }
 0xa35   :  { %v3254_v39 = vadd.f32 %v3253_v6, %v3167_v1 }
 0xa36   :  { %v9965_v13 = vpack.c.bf16 %v3262_v10, %v3259_v18 }
 0xa37   :  { %v3388_v41 = vpack.c.bf16 %v3254_v39, %v3251_v20 }
 0xa39   :  { %v3448_v14 = vsel %vm798_vm1, %v3388_v41, 0 }
 0xa3a   :  { %7425 = vmatpush3.bf16.xpose.msra.mxu0 %v3448_v14 }
 0xa3b   :  { %7436 = vmatprep.subr.bf16.mxu0 %v8783_v26 }
 0xa41   :  { %7427 = vmatmul.mubr.msk.bf16.vlgmr.msra.gmra.mrb[64].mxu0 %vm798_vm1, %v9961_v54 }
 0xa42   :  { %7438 = vmatprep.mubr.msk.bf16.mxu0 %vm8784_vm0, %v8783_v26 }
 0xaa4   :  { %v2949_v55 = vpop.xlane.xlu0 %2948 }
 0xaa5   :  { %v2957_v62 = vmul.f32 0.0078125, %v2949_v55 }
 0xaa6   :  { %v2951_v53 = vpop.xlane.xlu1 %2950 }
 0xaa7   :  { %v9973_v61 = vsub.f32 %v2940_v29, %v2957_v62  ;;  %v2958_v36 = vmul.f32 0.0078125, %v2951_v53  ;;  %v2944_v29 = vld [vmem:[#allocation19] sm:$0x1] }
 0xaa8   :  { %v2953_v63 = vpop.xlane.xlu0 %2952  ;;  %v2945_v58 = vunpack.c.l.bf16 %v2944_v29 }
 0xaa9   :  { %v9975_v59 = vsub.f32 %v2941_v22, %v2958_v36  ;;  %v2959_v2 = vmul.f32 0.0078125, %v2953_v63  ;;  %v2965_v11 = vmul.f32 %v9973_v61, %v9973_v61 }
 0xaaa   :  { %v2996_v18 = vrot.slane %v2945_v58, %v9253_v32 }
 0xaab   :  { %v9979_v33 = vsub.f32 %v2942_v24, %v2959_v2  ;;  %2969 = vadd.xlane.f32.xlu1 %v2965_v11  ;;  %v2966_v9 = vmul.f32 %v9975_v59, %v9975_v59 }
 0xaac   :  { %v2955_v35 = vpop.xlane.xlu0 %2954 }
 0xaad   :  { %v2960_v37 = vmul.f32 0.0078125, %v2955_v35  ;;  %2971 = vadd.xlane.f32.xlu0 %v2966_v9  ;;  %v2967_v38 = vmul.f32 %v9979_v33, %v9979_v33 }
 0xaaf   :  { %v9985_v51 = vsub.f32 %v2943_v40, %v2960_v37  ;;  %2973 = vadd.xlane.f32.xlu1 %v2967_v38  ;;  %v2946_v40 = vld [vmem:[#allocation20] sm:$0x1] }
 0xab0   :  { %v2947_v25 = vunpack.c.l.bf16 %v2946_v40 }
 0xab1   :  { %v2968_v49 = vmul.f32 %v9985_v51, %v9985_v51 }
 0xab2   :  { %v3004_v14 = vrot.slane %v2947_v25, %v9253_v32 }
 0xab3   :  { %2975 = vadd.xlane.f32.xlu0 %v2968_v49 }
 0xac0   :  { %3408 = vrot.lane.b32.xlu1 %v3388_v41, %s8786_s29 }
 0xac4   :  { %3393 = vrot.lane.b32.xlu1 %v9961_v54, %s8786_s29 }
 0xac8   :  { %3412 = vrot.lane.b32.xlu1 %v3388_v41, %s8787_s15 }
 0xac9   :  { %3410 = vrot.lane.b32.xlu0 %v3388_v41, %s8785_s24 }
 0xacc   :  { %3414 = vrot.lane.b32.xlu1 %v3388_v41, %s8761_s1 }
 0xacd   :  { %3395 = vrot.lane.b32.xlu0 %v9961_v54, %s8785_s24 }
 0xad0   :  { %3416 = vrot.lane.b32.xlu1 %v3388_v41, %s8788_s5 }
 0xad1   :  { %3397 = vrot.lane.b32.xlu0 %v9961_v54, %s8787_s15 }
 0xad4   :  { %3418 = vrot.lane.b32.xlu1 %v3388_v41, %s8789_s17 }
 0xad5   :  { %3399 = vrot.lane.b32.xlu0 %v9961_v54, %s8761_s1 }
 0xad8   :  { %3420 = vrot.lane.b32.xlu1 %v3388_v41, %s8781_s6 }
 0xad9   :  { %3401 = vrot.lane.b32.xlu0 %v9961_v54, %s8788_s5 }
 0xadc   :  { %3405 = vrot.lane.b32.xlu1 %v9961_v54, %s8781_s6 }
 0xadd   :  { %3403 = vrot.lane.b32.xlu0 %v9961_v54, %s8789_s17 }
 0xb14   :  { %v10011_v31 = vpop.f32.mrb[64].mxu0 }
 0xb15   :  { %v7428_v34 = vpop.f32.mrb[65].mxu0  ;;  %v3820_v4 = vsel %vm798_vm1, %v10011_v31, -inf }
 0xb16   :  { %v10015_v42 = vpop.f32.mrb[66].mxu0  ;;  %3821 = vmax.xlane.f32.xlu0 %v3820_v4 }
 0xb17   :  { %v3823_v27 = vsel %vm798_vm1, %v10015_v42, -inf  ;;  %v7429_v50 = vpop.f32.mrb[67].mxu0 }
 0xb18   :  { %3824 = vmax.xlane.f32.xlu1 %v3823_v27 }
 0xb38   :  { %v2970_v46 = vpop.xlane.xlu1 %2969 }
 0xb39   :  { %v2977_v60 = vmul.f32 0.0078125, %v2970_v46 }
 0xb3a   :  { %v2972_v52 = vpop.xlane.xlu0 %2971 }
 0xb3b   :  { %v2981_v3 = vadd.f32 1e-05, %v2977_v60  ;;  %v2978_v43 = vmul.f32 0.0078125, %v2972_v52 }
 0xb3c   :  { %v2974_v54 = vpop.xlane.xlu1 %2973 }
 0xb3d   :  { %8087 = vrsqrt.f32 %v2981_v3  ;;  %v2982_v17 = vadd.f32 1e-05, %v2978_v43  ;;  %v2979_v19 = vmul.f32 0.0078125, %v2974_v54 }
 0xb3f   :  { %8089 = vrsqrt.f32 %v2982_v17  ;;  %v2983_v12 = vadd.f32 1e-05, %v2979_v19  ;;  %v3015_v17 = vld [vmem:[#allocation29] sm:$0x1] }
 0xb40   :  { %v3409_v45 = vpop.permute.xlu1 %3408  ;;  %v2976_v22 = vpop.xlane.xlu0 %2975 }
 0xb41   :  { %8091 = vrsqrt.f32 %v2983_v12  ;;  %v2980_v24 = vmul.f32 0.0078125, %v2976_v22 }
 0xb43   :  { %v2984_v15 = vadd.f32 1e-05, %v2980_v24  ;;  %v3016_v24 = vunpack.c.l.bf16 %v3015_v17 }
 0xb44   :  { %v3394_v57 = vpop.permute.xlu1 %3393  ;;  %v3411_v8 = vpop.permute.xlu0 %3410 }
 0xb45   :  { %8093 = vrsqrt.f32 %v2984_v15  ;;  %v3542_v1 = vsel %vm798_vm1, %v3411_v8, 0  ;;  %v3284_v15 = vrot.slane %v3016_v24, %v9253_v32 }
 0xb46   :  { %7437 = vmatpush3.bf16.xpose.msra.mxu0 %v3542_v1 }
 0xb47   :  { %v8088_v7 = vpop.eup %8087  ;;  %7448 = vmatprep.subr.bf16.mxu0 %v8783_v26 }
 0xb48   :  { %v3413_v20 = vpop.permute.xlu1 %3412  ;;  %v3396_v30 = vpop.permute.xlu0 %3395  ;;  %v2989_v10 = vmul.f32 %v8088_v7, %v9973_v61 }
 0xb49   :  { %v8090_v6 = vpop.eup %8089  ;;  %v3589_v44 = vsel %vm798_vm1, %v3413_v20, 0 }
 0xb4a   :  { %v2990_v39 = vmul.f32 %v8090_v6, %v9975_v59  ;;  %v2997_v41 = vmul.f32 %v2996_v18, %v2989_v10 }
 0xb4b   :  { %v8092_v16 = vpop.eup %8091 }
 0xb4c   :  { %v3415_v48 = vpop.permute.xlu1 %3414  ;;  %v3398_v55 = vpop.permute.xlu0 %3397  ;;  %v2998_v62 = vmul.f32 %v2996_v18, %v2990_v39  ;;  %v2991_v53 = vmul.f32 %v8092_v16, %v9979_v33  ;;  %v10028_v63 = vadd.f32 %v3004_v14, %v2997_v41 }
 0xb4d   :  { %v3636_v36 = vsel %vm798_vm1, %v3415_v48, 0  ;;  %7439 = vmatmul.mubr.msk.bf16.vlgmr.msra.gmra.mrb[68].mxu0 %vm798_vm1, %v3396_v30 }
 0xb4e   :  { %7449 = vmatpush3.bf16.xpose.msra.mxu0 %v3636_v36  ;;  %v10030_v61 = vadd.f32 %v3004_v14, %v2998_v62  ;;  %7450 = vmatprep.mubr.msk.bf16.mxu0 %vm8784_vm0, %v8783_v26  ;;  %v2999_v35 = vmul.f32 %v2996_v18, %v2991_v53 }
 0xb4f   :  { %v8094_v59 = vpop.eup %8093  ;;  %7460 = vmatprep.subr.bf16.mxu0 %v8783_v26 }
 0xb50   :  { %v3417_v2 = vpop.permute.xlu1 %3416  ;;  %v3400_v11 = vpop.permute.xlu0 %3399  ;;  %v3009_v33 = vpack.c.bf16 %v10030_v61, %v10028_v63  ;;  %v2992_v9 = vmul.f32 %v8094_v59, %v9985_v51  ;;  %v10038_v49 = vadd.f32 %v3004_v14, %v2999_v35  ;;  %v3495_v51 = vsel %vm798_vm1, %v3409_v45, 0 }
 0xb51   :  { %v3683_v34 = vsel %vm798_vm1, %v3417_v2, 0 }
 0xb52   :  { %7420 = vmatprep.mubr.bf16.mxu1 %v3009_v33  ;;  %v3000_v37 = vmul.f32 %v2996_v18, %v2992_v9 }
 0xb54   :  { %v3419_v38 = vpop.permute.xlu1 %3418  ;;  %v10040_v5 = vadd.f32 %v3004_v14, %v3000_v37  ;;  %v3402_v56 = vpop.permute.xlu0 %3401 }
 0xb55   :  { %v3730_v21 = vsel %vm798_vm1, %v3419_v38, 0  ;;  %7451 = vmatmul.mubr.msk.bf16.vlgmr.msra.gmra.mrb[72].mxu0 %vm798_vm1, %v3400_v11 }
 0xb56   :  { %7461 = vmatpush3.bf16.xpose.msra.mxu0 %v3730_v21  ;;  %v3010_v0 = vpack.c.bf16 %v10040_v5, %v10038_v49  ;;  %7462 = vmatprep.mubr.msk.bf16.mxu0 %vm8784_vm0, %v8783_v26 }
 0xb57   :  { %7472 = vmatprep.subr.bf16.mxu0 %v8783_v26 }
 0xb58   :  { %7421 = vmatmul.mubr.bf16.vlgmr.msra.gmra.mrb[88].mxu1 %v3010_v0  ;;  %v3404_v23 = vpop.permute.xlu0 %3403  ;;  %v3421_v4 = vpop.permute.xlu1 %3420 }
 0xb59   :  { %7431 = vmatpush3.bf16.xpose.msra.mxu1 %v3495_v51  ;;  %7432 = vmatprep.mubr.msk.bf16.mxu1 %vm8784_vm0, %v8783_v26  ;;  %v3777_v27 = vsel %vm798_vm1, %v3421_v4, 0 }
 0xb5a   :  { %7442 = vmatprep.subr.bf16.mxu1 %v8783_v26 }
 0xb5c   :  { %v3406_v50 = vpop.permute.xlu1 %3405 }
 0xb5d   :  { %7463 = vmatmul.mubr.msk.bf16.vlgmr.msra.gmra.mrb[76].mxu0 %vm798_vm1, %v3404_v23 }
 0xb5e   :  { %7474 = vmatprep.mubr.msk.bf16.mxu0 %vm8784_vm0, %v8783_v26 }
 0xb60   :  { %7433 = vmatmul.mubr.msk.bf16.vlgmr.msra.gmra.mrb[92].mxu1 %vm798_vm1, %v3394_v57 }
 0xb61   :  { %7443 = vmatpush3.bf16.xpose.msra.mxu1 %v3589_v44  ;;  %7444 = vmatprep.mubr.msk.bf16.mxu1 %vm8784_vm0, %v8783_v26 }
 0xb62   :  { %7454 = vmatprep.subr.bf16.mxu1 %v8783_v26 }
 0xb68   :  { %7445 = vmatmul.mubr.msk.bf16.vlgmr.msra.gmra.mrb[96].mxu1 %vm798_vm1, %v3398_v55 }
 0xb69   :  { %7455 = vmatpush3.bf16.xpose.msra.mxu1 %v3683_v34  ;;  %7456 = vmatprep.mubr.msk.bf16.mxu1 %vm8784_vm0, %v8783_v26 }
 0xb6a   :  { %7466 = vmatprep.subr.bf16.mxu1 %v8783_v26 }
 0xb70   :  { %7457 = vmatmul.mubr.msk.bf16.vlgmr.msra.gmra.mrb[100].mxu1 %vm798_vm1, %v3402_v56 }
 0xb71   :  { %7467 = vmatpush3.bf16.xpose.msra.mxu1 %v3777_v27  ;;  %7468 = vmatprep.mubr.msk.bf16.mxu1 %vm8784_vm0, %v8783_v26 }
 0xb72   :  { %7478 = vmatprep.subr.bf16.mxu1 %v8783_v26 }
 0xb78   :  { %7469 = vmatmul.mubr.msk.bf16.vlgmr.msra.gmra.mrb[104].mxu1 %vm798_vm1, %v3406_v50 }
 0xb79   :  { %7480 = vmatprep.mubr.msk.bf16.mxu1 %vm8784_vm0, %v8783_v26 }
 0xba3   :  { %v3822_v46 = vpop.xlane.xlu0 %3821 }
 0xba4   :  { %v3868_v52 = vsub.f32 %v10011_v31, %v3822_v46 }
 0xba5   :  { %v3825_v60 = vpop.xlane.xlu1 %3824 }
 0xba6   :  { %v3869_v19 = vsub.f32 %v10015_v42, %v3825_v60  ;;  %v3884_v22 = vmul.f32 1.442695, %v3868_v52 }
 0xba8   :  { %v3886_v31 = vmul.f32 1.442695, %v3869_v19  ;;  %8095 = vpow2.f32 %v3884_v22 }
 0xbaa   :  { %8097 = vpow2.f32 %v3886_v31 }
 0xbb2   :  { %v10098_v62 = vpop.eup %8095 }
 0xbb3   :  { %v3916_v35 = vsel %vm798_vm1, %v10098_v62, 0.0 }
 0xbb4   :  { %v10104_v11 = vpop.eup %8097 }
 0xbb5   :  { %v3919_v38 = vsel %vm798_vm1, %v10104_v11, 0.0 }
 0xc20   :  { %v10075_v3 = vpop.f32.mrb[68].mxu0 }
 0xc21   :  { %v7440_v43 = vpop.f32.mrb[69].mxu0  ;;  %v3832_v54 = vsel %vm798_vm1, %v10075_v3, -inf }
 0xc22   :  { %3833 = vmax.xlane.f32.xlu1 %v3832_v54  ;;  %v10080_v12 = vpop.f32.mrb[70].mxu0 }
 0xc23   :  { %v7441_v29 = vpop.f32.mrb[71].mxu0  ;;  %v3835_v45 = vsel %vm798_vm1, %v10080_v12, -inf }
 0xc24   :  { %3836 = vmax.xlane.f32.xlu0 %v3835_v45 }
 0xc28   :  { %v10084_v58 = vpop.f32.mrb[72].mxu0 }
 0xc29   :  { %v7452_v40 = vpop.f32.mrb[73].mxu0  ;;  %v3844_v42 = vsel %vm798_vm1, %v10084_v58, -inf }
 0xc2a   :  { %3845 = vmax.xlane.f32.xlu1 %v3844_v42  ;;  %v3675_v57 = vpop.f32.mrb[74].mxu0 }
 0xc2b   :  { %v7422_v8 = vpop.f32.mrb[88].mxu1  ;;  %v7453_v1 = vpop.f32.mrb[75].mxu0  ;;  %v3847_v25 = vsel %vm798_vm1, %v3675_v57, -inf }
 0xc2c   :  { %v3376_v18 = vadd.f32 %v7422_v8, %v3284_v15  ;;  %v3367_v7 = vpop.f32.mrb[89].mxu1  ;;  %3848 = vmax.xlane.f32.xlu0 %v3847_v25 }
 0xc2d   :  { %v7423_v20 = vpop.f32.mrb[90].mxu1  ;;  %v3368_v6 = vadd.f32 %v3367_v7, %v3284_v15 }
 0xc2e   :  { %v3379_v30 = vadd.f32 %v7423_v20, %v3284_v15  ;;  %v3370_v10 = vpop.f32.mrb[91].mxu1 }
 0xc2f   :  { %v3371_v39 = vadd.f32 %v3370_v10, %v3284_v15 }
 0xc30   :  { %v10090_v41 = vpack.c.bf16 %v3379_v30, %v3376_v18  ;;  %v10092_v14 = vpop.f32.mrb[76].mxu0 }
 0xc31   :  { %v10094_v16 = vpack.c.bf16 %v3371_v39, %v3368_v6  ;;  %v7464_v48 = vpop.f32.mrb[77].mxu0  ;;  %v3856_v55 = vsel %vm798_vm1, %v10092_v14, -inf }
 0xc32   :  { %3857 = vmax.xlane.f32.xlu1 %v3856_v55  ;;  %v3769_v53 = vpop.f32.mrb[78].mxu0 }
 0xc33   :  { %v10100_v36 = vpop.f32.mrb[92].mxu1  ;;  %v7465_v59 = vpop.f32.mrb[79].mxu0  ;;  %7473 = vmatpush3.bf16.msra.mxu0 %v10094_v16  ;;  %v3859_v2 = vsel %vm798_vm1, %v3769_v53, -inf }
 0xc34   :  { %v7434_v33 = vpop.f32.mrb[93].mxu1  ;;  %3860 = vmax.xlane.f32.xlu0 %v3859_v2  ;;  %7484 = vmatprep.subr.bf16.mxu0 %v8783_v26  ;;  %v3826_v20 = vsel %vm798_vm1, %v10100_v36, -inf }
 0xc35   :  { %v10107_v9 = vpop.f32.mrb[94].mxu1 }
 0xc36   :  { %v7435_v37 = vpop.f32.mrb[95].mxu1  ;;  %3917 = vadd.xlane.f32.xlu1 %v3916_v35  ;;  %v3829_v48 = vsel %vm798_vm1, %v10107_v9, -inf }
 0xc38   :  { %3920 = vadd.xlane.f32.xlu0 %v3919_v38 }
 0xc3b   :  { %v10113_v21 = vpop.f32.mrb[96].mxu1 }
 0xc3c   :  { %v7446_v56 = vpop.f32.mrb[97].mxu1 }
 0xc3d   :  { %v10115_v0 = vpop.f32.mrb[98].mxu1 }
 0xc3e   :  { %v7447_v51 = vpop.f32.mrb[99].mxu1  ;;  %v3841_v38 = vsel %vm798_vm1, %v10115_v0, -inf }
 0xc43   :  { %v10117_v23 = vpop.f32.mrb[100].mxu1 }
 0xc44   :  { %v7458_v44 = vpop.f32.mrb[101].mxu1 }
 0xc45   :  { %v10119_v34 = vpop.f32.mrb[102].mxu1 }
 0xc46   :  { %v7459_v4 = vpop.f32.mrb[103].mxu1  ;;  %v3853_v56 = vsel %vm798_vm1, %v10119_v34, -inf }
 0xc4b   :  { %v10121_v27 = vpop.f32.mrb[104].mxu1 }
 0xc4c   :  { %v7470_v50 = vpop.f32.mrb[105].mxu1 }
 0xc4d   :  { %v10123_v46 = vpop.f32.mrb[106].mxu1  ;;  %v3838_v50 = vsel %vm798_vm1, %v10113_v21, -inf }
 0xc4e   :  { %v7471_v60 = vpop.f32.mrb[107].mxu1 }
 0xc4f   :  { %v3850_v60 = vsel %vm798_vm1, %v10117_v23, -inf }
 0xcaf   :  { %v3834_v52 = vpop.xlane.xlu1 %3833 }
 0xcb0   :  { %v3872_v43 = vsub.f32 %v10075_v3, %v3834_v52 }
 0xcb1   :  { %v3837_v54 = vpop.xlane.xlu0 %3836 }
 0xcb2   :  { %v3892_v17 = vmul.f32 1.442695, %v3872_v43  ;;  %v3873_v19 = vsub.f32 %v10080_v12, %v3837_v54 }
 0xcb4   :  { %8099 = vpow2.f32 %v3892_v17  ;;  %v3894_v29 = vmul.f32 1.442695, %v3873_v19 }
 0xcb6   :  { %8101 = vpow2.f32 %v3894_v29 }
 0xcb7   :  { %v3846_v45 = vpop.xlane.xlu1 %3845 }
 0xcb8   :  { %v3876_v22 = vsub.f32 %v10084_v58, %v3846_v45 }
 0xcb9   :  { %v3849_v24 = vpop.xlane.xlu0 %3848 }
 0xcba   :  { %v3900_v31 = vmul.f32 1.442695, %v3876_v22  ;;  %v3877_v15 = vsub.f32 %v3675_v57, %v3849_v24 }
 0xcbc   :  { %8103 = vpow2.f32 %v3900_v31  ;;  %v3902_v40 = vmul.f32 1.442695, %v3877_v15 }
 0xcbe   :  { %v10128_v42 = vpop.eup %8099  ;;  %8105 = vpow2.f32 %v3902_v40 }
 0xcbf   :  { %v3858_v8 = vpop.xlane.xlu1 %3857  ;;  %v3928_v3 = vsel %vm798_vm1, %v10128_v42, 0.0 }
 0xcc0   :  { %v10132_v1 = vpop.eup %8101  ;;  %3929 = vadd.xlane.f32.xlu1 %v3928_v3 }
 0xcc1   :  { %v3861_v12 = vpop.xlane.xlu0 %3860  ;;  %v3931_v25 = vsel %vm798_vm1, %v10132_v1, 0.0 }
 0xcc2   :  { %v3881_v58 = vsub.f32 %v3769_v53, %v3861_v12  ;;  %3932 = vadd.xlane.f32.xlu0 %v3931_v25 }
 0xcc3   :  { %v3918_v18 = vpop.xlane.xlu1 %3917 }
 0xcc4   :  { %v3910_v57 = vmul.f32 1.442695, %v3881_v58  ;;  %8107 = vrcp.f32 %v3918_v18 }
 0xcc5   :  { %v3921_v7 = vpop.xlane.xlu0 %3920 }
 0xcc6   :  { %v10138_v30 = vpop.eup %8103  ;;  %8109 = vpow2.f32 %v3910_v57  ;;  %3827 = vmax.xlane.f32.xlu0 %v3826_v20 }
 0xcc7   :  { %8111 = vrcp.f32 %v3921_v7  ;;  %v3940_v10 = vsel %vm798_vm1, %v10138_v30, 0.0 }
 0xcc8   :  { %v10142_v6 = vpop.eup %8105  ;;  %3941 = vadd.xlane.f32.xlu1 %v3940_v10 }
 0xcc9   :  { %v3943_v39 = vsel %vm798_vm1, %v10142_v6, 0.0 }
 0xcca   :  { %3944 = vadd.xlane.f32.xlu0 %v3943_v39 }
 0xcce   :  { %3830 = vmax.xlane.f32.xlu0 %v3829_v48  ;;  %v8108_v55 = vpop.eup %8107 }
 0xccf   :  { %v3980_v33 = vmul.f32 %v8108_v55, %v10098_v62  ;;  %v3865_v62 = vsel %vm798_vm1, %v10123_v46, -inf }
 0xcd0   :  { %v10148_v53 = vpop.eup %8109 }
 0xcd1   :  { %v8112_v59 = vpop.eup %8111  ;;  %v3955_v2 = vsel %vm798_vm1, %v10148_v53, 0.0 }
 0xcd2   :  { %v3981_v35 = vmul.f32 %v8112_v59, %v10104_v11  ;;  %3956 = vadd.xlane.f32.xlu0 %v3955_v2  ;;  %v3880_v11 = vsub.f32 %v10092_v14, %v3858_v8  ;;  %v3862_v14 = vsel %vm798_vm1, %v10121_v27, -inf }
 0xcd4   :  { %v3996_v37 = vpack.c.bf16 %v3981_v35, %v3980_v33  ;;  %v3908_v51 = vmul.f32 1.442695, %v3880_v11 }
 0xcd6   :  { %7475 = vmatmul.mubr.msk.bf16.vlgmr.msra.gmra.mrb[80].mxu0 %vm798_vm1, %v3996_v37  ;;  %3842 = vmax.xlane.f32.xlu0 %v3841_v38  ;;  %8113 = vpow2.f32 %v3908_v51 }
 0xcd7   :  { %7486 = vmatprep.mubr.msk.bf16.mxu0 %vm8784_vm0, %v8783_v26 }
 0xcd9   :  { %3423 = vrot.lane.b32.xlu1 %v10094_v16, %s8786_s29 }
 0xcda   :  { %3854 = vmax.xlane.f32.xlu0 %v3853_v56 }
 0xcde   :  { %3866 = vmax.xlane.f32.xlu0 %v3865_v62 }
 0xce0   :  { %v10168_v44 = vpop.eup %8113 }
 0xce1   :  { %v3952_v4 = vsel %vm798_vm1, %v10168_v44, 0.0 }
 0xcf4   :  { %3426 = vrot.lane.b32.xlu0 %v10094_v16, %s8785_s24 }
 0xcfd   :  { %3953 = vadd.xlane.f32.xlu1 %v3952_v4 }
 0xd01   :  { %3839 = vmax.xlane.f32.xlu1 %v3838_v50 }
 0xd05   :  { %3851 = vmax.xlane.f32.xlu1 %v3850_v60 }
 0xd09   :  { %3863 = vmax.xlane.f32.xlu1 %v3862_v14 }
 0xd1a   :  { %3429 = vrot.lane.b32.xlu1 %v10094_v16, %s8787_s15 }
 0xd1e   :  { %3432 = vrot.lane.b32.xlu1 %v10094_v16, %s8761_s1 }
 0xd4d   :  { %v3930_v43 = vpop.xlane.xlu1 %3929 }
 0xd4f   :  { %v3933_v52 = vpop.xlane.xlu0 %3932 }
 0xd53   :  { %v3828_v54 = vpop.xlane.xlu0 %3827 }
 0xd54   :  { %v3870_v17 = vsub.f32 %v10100_v36, %v3828_v54 }
 0xd55   :  { %v3942_v19 = vpop.xlane.xlu1 %3941 }
 0xd56   :  { %v3888_v29 = vmul.f32 1.442695, %v3870_v17 }
 0xd57   :  { %v3945_v45 = vpop.xlane.xlu0 %3944 }
 0xd58   :  { %8115 = vpow2.f32 %v3888_v29 }
 0xd59   :  { %v3424_v22 = vpop.permute.xlu1 %3423  ;;  %8117 = vrcp.f32 %v3933_v52 }
 0xd5a   :  { %7479 = vmatpush3.bf16.msra.mxu1 %v3424_v22 }
 0xd5b   :  { %v3831_v24 = vpop.xlane.xlu0 %3830  ;;  %7490 = vmatprep.subr.bf16.mxu1 %v8783_v26 }
 0xd5c   :  { %v3871_v31 = vsub.f32 %v10107_v9, %v3831_v24 }
 0xd5e   :  { %v3890_v15 = vmul.f32 1.442695, %v3871_v31 }
 0xd5f   :  { %v10185_v40 = vpop.xlane.xlu0 %3956 }
 0xd60   :  { %8119 = vpow2.f32 %v3890_v15 }
 0xd61   :  { %8121 = vrcp.f32 %v3930_v43 }
 0xd62   :  { %v10187_v8 = vpop.eup %8115  ;;  %8123 = vrcp.f32 %v3945_v45 }
 0xd63   :  { %v3843_v36 = vpop.xlane.xlu0 %3842  ;;  %v3922_v3 = vsel %vm798_vm1, %v10187_v8, 0.0  ;;  %v8118_v25 = vpop.eup %8117  ;;  %8125 = vrcp.f32 %v3942_v19 }
 0xd64   :  { %3923 = vadd.xlane.f32.xlu1 %v3922_v3  ;;  %v3985_v7 = vmul.f32 %v8118_v25, %v10132_v1  ;;  %v3875_v48 = vsub.f32 %v10115_v0, %v3843_v36 }
 0xd66   :  { %v3898_v1 = vmul.f32 1.442695, %v3875_v48 }
 0xd67   :  { %v3855_v12 = vpop.xlane.xlu0 %3854 }
 0xd68   :  { %8127 = vpow2.f32 %v3898_v1 }
 0xd6a   :  { %v10191_v58 = vpop.eup %8119 }
 0xd6b   :  { %v3867_v18 = vpop.xlane.xlu0 %3866  ;;  %v3925_v9 = vsel %vm798_vm1, %v10191_v58, 0.0  ;;  %v8122_v57 = vpop.eup %8121 }
 0xd6c   :  { %3926 = vadd.xlane.f32.xlu0 %v3925_v9  ;;  %v3984_v20 = vmul.f32 %v8122_v57, %v10128_v42  ;;  %v3879_v42 = vsub.f32 %v10119_v34, %v3855_v12  ;;  %v3883_v38 = vsub.f32 %v10123_v46, %v3867_v18  ;;  %v8124_v62 = vpop.eup %8123 }
 0xd6d   :  { %v8126_v51 = vpop.eup %8125 }
 0xd6e   :  { %v3998_v39 = vpack.c.bf16 %v3985_v7, %v3984_v20  ;;  %v3906_v37 = vmul.f32 1.442695, %v3879_v42  ;;  %v3914_v0 = vmul.f32 1.442695, %v3883_v38  ;;  %v3988_v50 = vmul.f32 %v8126_v51, %v10138_v30 }
 0xd6f   :  { %v3427_v10 = vpop.permute.xlu0 %3426 }
 0xd70   :  { %7485 = vmatpush3.bf16.msra.mxu0 %v3427_v10 }
 0xd71   :  { %7496 = vmatprep.subr.bf16.mxu0 %v8783_v26 }
 0xd72   :  { %v10211_v4 = vpop.eup %8127 }
 0xd73   :  { %7487 = vmatmul.mubr.msk.bf16.vlgmr.msra.gmra.mrb[84].mxu0 %vm798_vm1, %v3998_v39  ;;  %v3937_v14 = vsel %vm798_vm1, %v10211_v4, 0.0 }
 0xd74   :  { %7498 = vmatprep.mubr.msk.bf16.mxu0 %vm8784_vm0, %v8783_v26 }
 0xd82   :  { %3435 = vrot.lane.b32.xlu0 %v10094_v16, %s8788_s5 }
 0xd8a   :  { %v10204_v55 = vpop.xlane.xlu1 %3953 }
 0xd8e   :  { %v3840_v59 = vpop.xlane.xlu1 %3839 }
 0xd8f   :  { %v3874_v2 = vsub.f32 %v10113_v21, %v3840_v59  ;;  %v3989_v21 = vmul.f32 %v8124_v62, %v10142_v6 }
 0xd91   :  { %v3896_v33 = vmul.f32 1.442695, %v3874_v2  ;;  %v4000_v52 = vpack.c.bf16 %v3989_v21, %v3988_v50 }
 0xd92   :  { %v3852_v35 = vpop.xlane.xlu1 %3851 }
 0xd93   :  { %8129 = vpow2.f32 %v3896_v33  ;;  %v3878_v22 = vsub.f32 %v10117_v23, %v3852_v35 }
 0xd94   :  { %8131 = vpow2.f32 %v3906_v37 }
 0xd95   :  { %8133 = vpow2.f32 %v3914_v0  ;;  %v3904_v24 = vmul.f32 1.442695, %v3878_v22 }
 0xd96   :  { %v3864_v56 = vpop.xlane.xlu1 %3863 }
 0xd97   :  { %v3882_v31 = vsub.f32 %v10121_v27, %v3864_v56  ;;  %8135 = vpow2.f32 %v3904_v24 }
 0xd99   :  { %v3912_v15 = vmul.f32 1.442695, %v3882_v31 }
 0xd9a   :  { %v10209_v11 = vpop.permute.xlu1 %3429 }
 0xd9b   :  { %8137 = vpow2.f32 %v3912_v15 }
 0xd9d   :  { %v10214_v34 = vpop.eup %8129 }
 0xd9e   :  { %v3433_v60 = vpop.permute.xlu1 %3432  ;;  %v3934_v46 = vsel %vm798_vm1, %v10214_v34, 0.0  ;;  %v10222_v43 = vpop.eup %8131 }
 0xd9f   :  { %3935 = vadd.xlane.f32.xlu1 %v3934_v46  ;;  %7497 = vmatpush3.bf16.msra.mxu0 %v3433_v60  ;;  %v3949_v30 = vsel %vm798_vm1, %v10222_v43, 0.0  ;;  %v10229_v6 = vpop.eup %8133 }
 0xda0   :  { %7508 = vmatprep.subr.bf16.mxu0 %v8783_v26  ;;  %v3961_v54 = vsel %vm798_vm1, %v10229_v6, 0.0 }
 0xda1   :  { %3938 = vadd.xlane.f32.xlu0 %v3937_v14  ;;  %v10251_v23 = vpop.eup %8135 }
 0xda2   :  { %7499 = vmatmul.mubr.msk.bf16.vlgmr.msra.gmra.mrb[88].mxu0 %vm798_vm1, %v4000_v52 }
 0xda3   :  { %7510 = vmatprep.mubr.msk.bf16.mxu0 %vm8784_vm0, %v8783_v26 }
 0xda5   :  { %3950 = vadd.xlane.f32.xlu0 %v3949_v30  ;;  %v10257_v27 = vpop.eup %8137 }
 0xda6   :  { %v3958_v36 = vsel %vm798_vm1, %v10257_v27, 0.0 }
 0xda9   :  { %v10233_v17 = vpop.f32.mrb[80].mxu0  ;;  %3962 = vadd.xlane.f32.xlu0 %v3961_v54 }
 0xdaa   :  { %v7476_v19 = vpop.f32.mrb[81].mxu0 }
 0xdab   :  { %v10235_v29 = vpop.f32.mrb[82].mxu0 }
 0xdac   :  { %v7477_v45 = vpop.f32.mrb[83].mxu0 }
 0xdb0   :  { %3438 = vrot.lane.b32.xlu1 %v10094_v16, %s8789_s17 }
 0xdbf   :  { %3441 = vrot.lane.b32.xlu0 %v10094_v16, %s8781_s6  ;;  %v3946_v16 = vsel %vm798_vm1, %v10251_v23, 0.0 }
 0xdc3   :  { %4444 = vrot.lane.b32.xlu0 %v9965_v13, %s8785_s24 }
 0xdc7   :  { %4446 = vrot.lane.b32.xlu0 %v9965_v13, %s8787_s15 }
 0xdcb   :  { %4448 = vrot.lane.b32.xlu0 %v9965_v13, %s8761_s1 }
 0xdcf   :  { %4450 = vrot.lane.b32.xlu0 %v9965_v13, %s8788_s5 }
 0xdd3   :  { %4452 = vrot.lane.b32.xlu0 %v9965_v13, %s8789_s17 }
 0xdd4   :  { %3947 = vadd.xlane.f32.xlu1 %v3946_v16 }
 0xdd7   :  { %4454 = vrot.lane.b32.xlu0 %v9965_v13, %s8781_s6 }
 0xdd8   :  { %3959 = vadd.xlane.f32.xlu1 %v3958_v36 }
 0xddb   :  { %4439 = vrot.lane.b32.xlu0 %v9959_v47, %s8781_s6 }
 0xde9   :  { %4442 = vrot.lane.b32.xlu1 %v9965_v13, %s8786_s29 }
 0xded   :  { %4427 = vrot.lane.b32.xlu1 %v9959_v47, %s8786_s29 }
 0xdf1   :  { %4429 = vrot.lane.b32.xlu1 %v9959_v47, %s8785_s24  ;;  %v3924_v3 = vpop.xlane.xlu1 %3923 }
 0xdf2   :  { %8139 = vrcp.f32 %v3924_v3 }
 0xdf5   :  { %4431 = vrot.lane.b32.xlu1 %v9959_v47, %s8787_s15 }
 0xdf9   :  { %4433 = vrot.lane.b32.xlu1 %v9959_v47, %s8761_s1  ;;  %v3927_v12 = vpop.xlane.xlu0 %3926 }
 0xdfa   :  { %8141 = vrcp.f32 %v3927_v12 }
 0xdfb   :  { %8143 = vrcp.f32 %v10204_v55 }
 0xdfc   :  { %v8140_v25 = vpop.eup %8139  ;;  %8145 = vrcp.f32 %v10185_v40 }
 0xdfd   :  { %4435 = vrot.lane.b32.xlu1 %v9959_v47, %s8788_s5  ;;  %v3982_v9 = vmul.f32 %v8140_v25, %v10187_v8  ;;  %v3436_v20 = vpop.permute.xlu0 %3435 }
 0xe01   :  { %4437 = vrot.lane.b32.xlu1 %v9959_v47, %s8789_s17 }
 0xe04   :  { %v8142_v18 = vpop.eup %8141 }
 0xe05   :  { %v3983_v57 = vmul.f32 %v8142_v18, %v10191_v58  ;;  %v8144_v10 = vpop.eup %8143 }
 0xe06   :  { %v8146_v8 = vpop.eup %8145  ;;  %v3992_v58 = vmul.f32 %v8144_v10, %v10168_v44  ;;  %v4482_v44 = vsel %vm798_vm1, %v9965_v13, 0 }
 0xe07   :  { %v3997_v7 = vpack.c.bf16 %v3983_v57, %v3982_v9  ;;  %v3993_v1 = vmul.f32 %v8146_v8, %v10148_v53 }
 0xe09   :  { %7481 = vmatmul.mubr.msk.bf16.vlgmr.msra.gmra.mrb[108].mxu1 %vm798_vm1, %v3997_v7  ;;  %v4002_v2 = vpack.c.bf16 %v3993_v1, %v3992_v58 }
 0xe0a   :  { %7491 = vmatpush3.bf16.msra.mxu1 %v10209_v11  ;;  %7492 = vmatprep.mubr.msk.bf16.mxu1 %vm8784_vm0, %v8783_v26 }
 0xe0b   :  { %7502 = vmatprep.subr.bf16.mxu1 %v8783_v26 }
 0xe2c   :  { %v3936_v39 = vpop.xlane.xlu1 %3935 }
 0xe2d   :  { %8147 = vrcp.f32 %v3936_v39 }
 0xe2e   :  { %v3939_v48 = vpop.xlane.xlu0 %3938 }
 0xe2f   :  { %8149 = vrcp.f32 %v3939_v48 }
 0xe30   :  { %v3439_v59 = vpop.permute.xlu1 %3438 }
 0xe31   :  { %7509 = vmatpush3.bf16.msra.mxu0 %v3439_v59 }
 0xe32   :  { %v3951_v42 = vpop.xlane.xlu0 %3950  ;;  %7520 = vmatprep.subr.bf16.mxu0 %v8783_v26 }
 0xe33   :  { %8151 = vrcp.f32 %v3951_v42 }
 0xe34   :  { %7511 = vmatmul.mubr.msk.bf16.vlgmr.msra.gmra.mrb[92].mxu0 %vm798_vm1, %v4002_v2 }
 0xe35   :  { %7522 = vmatprep.mubr.msk.bf16.mxu0 %vm8784_vm0, %v8783_v26 }
 0xe36   :  { %v3963_v40 = vpop.xlane.xlu0 %3962 }
 0xe37   :  { %v8148_v55 = vpop.eup %8147 }
 0xe38   :  { %v3986_v35 = vmul.f32 %v8148_v55, %v10214_v34 }
 0xe39   :  { %v8150_v33 = vpop.eup %8149 }
 0xe3a   :  { %v3987_v53 = vmul.f32 %v8150_v33, %v10211_v4  ;;  %7521 = vmatpush3.bf16.xpose.msra.mxu0 %v4482_v44  ;;  %v3442_v37 = vpop.permute.xlu0 %3441 }
 0xe3b   :  { %7532 = vmatprep.subr.bf16.mxu0 %v8783_v26 }
 0xe3c   :  { %v3999_v38 = vpack.c.bf16 %v3987_v53, %v3986_v35 }
 0xe3d   :  { %v8152_v60 = vpop.eup %8151 }
 0xe3e   :  { %7493 = vmatmul.mubr.msk.bf16.vlgmr.msra.gmra.mrb[112].mxu1 %vm798_vm1, %v3999_v38  ;;  %v4445_v56 = vpop.permute.xlu0 %4444  ;;  %v3991_v52 = vmul.f32 %v8152_v60, %v10222_v43 }
 0xe3f   :  { %7503 = vmatpush3.bf16.msra.mxu1 %v3436_v20  ;;  %7504 = vmatprep.mubr.msk.bf16.mxu1 %vm8784_vm0, %v8783_v26  ;;  %v4576_v13 = vsel %vm798_vm1, %v4445_v56, 0 }
 0xe40   :  { %7514 = vmatprep.subr.bf16.mxu1 %v8783_v26 }
 0xe41   :  { %7523 = vmatmul.mubr.msk.bf16.vlgmr.msra.gmra.mrb[96].mxu0 %vm798_vm1, %v9959_v47 }
 0xe42   :  { %7533 = vmatpush3.bf16.xpose.msra.mxu0 %v4576_v13  ;;  %7534 = vmatprep.mubr.msk.bf16.mxu0 %vm8784_vm0, %v8783_v26  ;;  %v4447_v34 = vpop.permute.xlu0 %4446 }
 0xe43   :  { %7544 = vmatprep.subr.bf16.mxu0 %v8783_v26  ;;  %v4623_v39 = vsel %vm798_vm1, %v4447_v34, 0 }
 0xe46   :  { %v10309_v0 = vpop.f32.mrb[84].mxu0  ;;  %v4449_v46 = vpop.permute.xlu0 %4448 }
 0xe47   :  { %v7488_v62 = vpop.f32.mrb[85].mxu0  ;;  %v4670_v15 = vsel %vm798_vm1, %v4449_v46, 0 }
 0xe48   :  { %v10311_v11 = vpop.f32.mrb[86].mxu0 }
 0xe49   :  { %v7744_v51 = vpack.i.bf16 %v10311_v11, %v10309_v0  ;;  %v7489_v4 = vpop.f32.mrb[87].mxu0 }
 0xe4a   :  { %v4451_v22 = vpop.permute.xlu0 %4450 }
 0xe4b   :  { %v4717_v8 = vsel %vm798_vm1, %v4451_v22, 0 }
 0xe4e   :  { %v4453_v12 = vpop.permute.xlu0 %4452 }
 0xe4f   :  { %v4764_v7 = vsel %vm798_vm1, %v4453_v12, 0 }
 0xe52   :  { %v4455_v58 = vpop.permute.xlu0 %4454 }
 0xe53   :  { %v4811_v48 = vsel %vm798_vm1, %v4455_v58, 0 }
 0xe56   :  { %v4440_v1 = vpop.permute.xlu0 %4439 }
 0xe61   :  { %v3948_v21 = vpop.xlane.xlu1 %3947 }
 0xe62   :  { %8153 = vrcp.f32 %v3948_v21 }
 0xe65   :  { %v3960_v47 = vpop.xlane.xlu1 %3959 }
 0xe66   :  { %8155 = vrcp.f32 %v3960_v47 }
 0xe67   :  { %8157 = vrcp.f32 %v3963_v40 }
 0xe69   :  { %v4443_v50 = vpop.permute.xlu1 %4442 }
 0xe6c   :  { %v8154_v14 = vpop.eup %8153 }
 0xe6d   :  { %v3990_v30 = vmul.f32 %v8154_v14, %v10251_v23  ;;  %v4428_v54 = vpop.permute.xlu1 %4427 }
 0xe6f   :  { %v4001_v19 = vpack.c.bf16 %v3991_v52, %v3990_v30 }
 0xe70   :  { %v8156_v45 = vpop.eup %8155 }
 0xe71   :  { %v4430_v24 = vpop.permute.xlu1 %4429  ;;  %7505 = vmatmul.mubr.msk.bf16.vlgmr.msra.gmra.mrb[116].mxu1 %vm798_vm1, %v4001_v19  ;;  %v8158_v31 = vpop.eup %8157  ;;  %v3994_v16 = vmul.f32 %v8156_v45, %v10257_v27 }
 0xe72   :  { %7515 = vmatpush3.bf16.msra.mxu1 %v3442_v37  ;;  %7535 = vmatmul.mubr.msk.bf16.vlgmr.msra.gmra.mrb[100].mxu0 %vm798_vm1, %v4430_v24  ;;  %v3995_v43 = vmul.f32 %v8158_v31, %v10229_v6  ;;  %v4529_v6 = vsel %vm798_vm1, %v4443_v50, 0 }
 0xe73   :  { %7545 = vmatpush3.bf16.xpose.msra.mxu0 %v4670_v15  ;;  %7516 = vmatprep.mubr.msk.bf16.mxu1 %vm8784_vm0, %v8783_v26 }
 0xe74   :  { %7526 = vmatprep.subr.bf16.mxu1 %v8783_v26  ;;  %7546 = vmatprep.mubr.msk.bf16.mxu0 %vm8784_vm0, %v8783_v26  ;;  %v4003_v27 = vpack.c.bf16 %v3995_v43, %v3994_v16 }
 0xe75   :  { %v4432_v23 = vpop.permute.xlu1 %4431  ;;  %v10327_v36 = vpop.f32.mrb[88].mxu0  ;;  %7556 = vmatprep.subr.bf16.mxu0 %v8783_v26 }
 0xe76   :  { %v7500_v3 = vpop.f32.mrb[89].mxu0 }
 0xe77   :  { %v10330_v25 = vpop.f32.mrb[90].mxu0 }
 0xe78   :  { %v7754_v18 = vpack.i.bf16 %v10330_v25, %v10327_v36  ;;  %v7501_v9 = vpop.f32.mrb[91].mxu0 }
 0xe79   :  { %v4434_v57 = vpop.permute.xlu1 %4433  ;;  %7517 = vmatmul.mubr.msk.bf16.vlgmr.msra.gmra.mrb[120].mxu1 %vm798_vm1, %v4003_v27 }
 0xe7a   :  { %7547 = vmatmul.mubr.msk.bf16.vlgmr.msra.gmra.mrb[104].mxu0 %vm798_vm1, %v4434_v57  ;;  %7528 = vmatprep.mubr.msk.bf16.mxu1 %vm8784_vm0, %v8783_v26 }
 0xe7b   :  { %7527 = vmatpush3.bf16.xpose.msra.mxu1 %v4529_v6  ;;  %7557 = vmatpush3.bf16.xpose.msra.mxu0 %v4764_v7 }
 0xe7c   :  { %7538 = vmatprep.subr.bf16.mxu1 %v8783_v26  ;;  %7558 = vmatprep.mubr.msk.bf16.mxu0 %vm8784_vm0, %v8783_v26 }
 0xe7d   :  { %v4436_v20 = vpop.permute.xlu1 %4435  ;;  %7568 = vmatprep.subr.bf16.mxu0 %v8783_v26 }
 0xe81   :  { %v4438_v10 = vpop.permute.xlu1 %4437 }
 0xe82   :  { %7529 = vmatmul.mubr.msk.bf16.vlgmr.msra.gmra.mrb[124].mxu1 %vm798_vm1, %v4428_v54  ;;  %7559 = vmatmul.mubr.msk.bf16.vlgmr.msra.gmra.mrb[108].mxu0 %vm798_vm1, %v4438_v10 }
 0xe83   :  { %7539 = vmatpush3.bf16.xpose.msra.mxu1 %v4623_v39  ;;  %7569 = vmatpush3.bf16.msra.mxu0 %v10090_v41 }
 0xe84   :  { %7540 = vmatprep.mubr.msk.bf16.mxu1 %vm8784_vm0, %v8783_v26  ;;  %7550 = vmatprep.subr.bf16.mxu1 %v8783_v26 }
 0xe85   :  { %7570 = vmatprep.mubr.msk.bf16.mxu0 %vm8784_vm0, %v8783_v26  ;;  %7580 = vmatprep.subr.bf16.mxu0 %v8783_v26 }
 0xe8a   :  { %7541 = vmatmul.mubr.msk.bf16.vlgmr.msra.gmra.mrb[128].mxu1 %vm798_vm1, %v4432_v23 }
 0xe8b   :  { %7551 = vmatpush3.bf16.xpose.msra.mxu1 %v4717_v8  ;;  %7552 = vmatprep.mubr.msk.bf16.mxu1 %vm8784_vm0, %v8783_v26 }
 0xe8c   :  { %7562 = vmatprep.subr.bf16.mxu1 %v8783_v26 }
 0xe92   :  { %7553 = vmatmul.mubr.msk.bf16.vlgmr.msra.gmra.mrb[132].mxu1 %vm798_vm1, %v4436_v20 }
 0xe93   :  { %7563 = vmatpush3.bf16.xpose.msra.mxu1 %v4811_v48  ;;  %7564 = vmatprep.mubr.msk.bf16.mxu1 %vm8784_vm0, %v8783_v26 }
 0xe94   :  { %7574 = vmatprep.subr.bf16.mxu1 %v8783_v26 }
 0xe9a   :  { %7565 = vmatmul.mubr.msk.bf16.vlgmr.msra.gmra.mrb[136].mxu1 %vm798_vm1, %v4440_v1 }
 0xe9b   :  { %7576 = vmatprep.mubr.msk.bf16.mxu1 %vm8784_vm0, %v8783_v26 }
 0xedc   :  { %v10367_v59 = vpop.f32.mrb[108].mxu1 }
 0xedd   :  { %v7482_v42 = vpop.f32.mrb[109].mxu1 }
 0xede   :  { %v10369_v2 = vpop.f32.mrb[110].mxu1 }
 0xedf   :  { %v7739_v40 = vpack.i.bf16 %v10369_v2, %v10367_v59  ;;  %v7483_v55 = vpop.f32.mrb[111].mxu1 }
 0xf07   :  { %v10373_v33 = vpop.f32.mrb[92].mxu0 }
 0xf08   :  { %v7512_v44 = vpop.f32.mrb[93].mxu0 }
 0xf09   :  { %v10375_v35 = vpop.f32.mrb[94].mxu0 }
 0xf0a   :  { %v7764_v53 = vpack.i.bf16 %v10375_v35, %v10373_v33  ;;  %v7513_v37 = vpop.f32.mrb[95].mxu0 }
 0xf11   :  { %v10379_v38 = vpop.f32.mrb[112].mxu1 }
 0xf12   :  { %v7494_v56 = vpop.f32.mrb[113].mxu1 }
 0xf13   :  { %v10381_v13 = vpop.f32.mrb[114].mxu1 }
 0xf14   :  { %v7749_v62 = vpack.i.bf16 %v10381_v13, %v10379_v38  ;;  %v7495_v4 = vpop.f32.mrb[115].mxu1  ;;  %v4518_v21 = vpop.f32.mrb[96].mxu0 }
 0xf15   :  { %v7524_v34 = vpop.f32.mrb[97].mxu0  ;;  %v4854_v47 = vsel %vm798_vm1, %v4518_v21, -inf }
 0xf16   :  { %4855 = vmax.xlane.f32.xlu1 %v4854_v47  ;;  %v4521_v50 = vpop.f32.mrb[98].mxu0 }
 0xf17   :  { %v7525_v60 = vpop.f32.mrb[99].mxu0  ;;  %v4857_v46 = vsel %vm798_vm1, %v4521_v50, -inf }
 0xf18   :  { %4858 = vmax.xlane.f32.xlu0 %v4857_v46 }
 0xf44   :  { %v10387_v14 = vpop.f32.mrb[116].mxu1 }
 0xf45   :  { %v7506_v52 = vpop.f32.mrb[117].mxu1  ;;  %v10389_v30 = vpop.f32.mrb[100].mxu0 }
 0xf46   :  { %v10391_v54 = vpop.f32.mrb[118].mxu1  ;;  %v7536_v19 = vpop.f32.mrb[101].mxu0  ;;  %v4866_v45 = vsel %vm798_vm1, %v10389_v30, -inf }
 0xf47   :  { %v7759_v22 = vpack.i.bf16 %v10391_v54, %v10387_v14  ;;  %v7507_v24 = vpop.f32.mrb[119].mxu1  ;;  %4867 = vmax.xlane.f32.xlu0 %v4866_v45  ;;  %v4615_v31 = vpop.f32.mrb[102].mxu0 }
 0xf48   :  { %v7537_v15 = vpop.f32.mrb[103].mxu0  ;;  %v4869_v16 = vsel %vm798_vm1, %v4615_v31, -inf }
 0xf49   :  { %4870 = vmax.xlane.f32.xlu1 %v4869_v16 }
 0xf4c   :  { %v10398_v43 = vpop.f32.mrb[120].mxu1 }
 0xf4d   :  { %v7518_v23 = vpop.f32.mrb[121].mxu1  ;;  %v4706_v3 = vpop.f32.mrb[104].mxu0 }
 0xf4e   :  { %v10400_v12 = vpop.f32.mrb[122].mxu1  ;;  %v7548_v27 = vpop.f32.mrb[105].mxu0  ;;  %v4878_v9 = vsel %vm798_vm1, %v4706_v3, -inf }
 0xf4f   :  { %v7769_v57 = vpack.i.bf16 %v10400_v12, %v10398_v43  ;;  %v7519_v7 = vpop.f32.mrb[123].mxu1  ;;  %4879 = vmax.xlane.f32.xlu0 %v4878_v9  ;;  %v4709_v6 = vpop.f32.mrb[106].mxu0 }
 0xf50   :  { %v7549_v20 = vpop.f32.mrb[107].mxu0  ;;  %v4881_v10 = vsel %vm798_vm1, %v4709_v6, -inf }
 0xf51   :  { %4882 = vmax.xlane.f32.xlu1 %v4881_v10 }
 0xf55   :  { %v10406_v39 = vpop.f32.mrb[124].mxu1  ;;  %v4800_v8 = vpop.f32.mrb[108].mxu0 }
 0xf56   :  { %v7530_v58 = vpop.f32.mrb[125].mxu1  ;;  %v7560_v48 = vpop.f32.mrb[109].mxu0  ;;  %v4890_v1 = vsel %vm798_vm1, %v4800_v8, -inf }
 0xf57   :  { %v10409_v42 = vpop.f32.mrb[126].mxu1  ;;  %4891 = vmax.xlane.f32.xlu0 %v4890_v1  ;;  %v4803_v55 = vpop.f32.mrb[110].mxu0 }
 0xf58   :  { %v7531_v44 = vpop.f32.mrb[127].mxu1  ;;  %v7561_v37 = vpop.f32.mrb[111].mxu0  ;;  %v4893_v56 = vsel %vm798_vm1, %v4803_v55, -inf }
 0xf59   :  { %4894 = vmax.xlane.f32.xlu1 %v4893_v56 }
 0xf5d   :  { %v10412_v4 = vpop.f32.mrb[128].mxu1 }
 0xf5e   :  { %v7542_v34 = vpop.f32.mrb[129].mxu1 }
 0xf5f   :  { %v10414_v47 = vpop.f32.mrb[130].mxu1 }
 0xf60   :  { %v7543_v60 = vpop.f32.mrb[131].mxu1 }
 0xf65   :  { %v10416_v46 = vpop.f32.mrb[132].mxu1 }
 0xf66   :  { %v7554_v52 = vpop.f32.mrb[133].mxu1 }
 0xf67   :  { %v10418_v19 = vpop.f32.mrb[134].mxu1 }
 0xf68   :  { %v7555_v45 = vpop.f32.mrb[135].mxu1 }
 0xf6d   :  { %v10420_v24 = vpop.f32.mrb[136].mxu1 }
 0xf6e   :  { %v7566_v15 = vpop.f32.mrb[137].mxu1 }
 0xf6f   :  { %v10422_v16 = vpop.f32.mrb[138].mxu1 }
 0xf70   :  { %v7567_v23 = vpop.f32.mrb[139].mxu1 }
 0xfa3   :  { %v4856_v27 = vpop.xlane.xlu1 %4855 }
 0xfa4   :  { %v4902_v9 = vsub.f32 %v4518_v21, %v4856_v27 }
 0xfa5   :  { %v4859_v7 = vpop.xlane.xlu0 %4858 }
 0xfa6   :  { %v4918_v20 = vmul.f32 1.442695, %v4902_v9  ;;  %v4903_v10 = vsub.f32 %v4521_v50, %v4859_v7 }
 0xfa8   :  { %8159 = vpow2.f32 %v4918_v20  ;;  %v4920_v58 = vmul.f32 1.442695, %v4903_v10 }
 0xfaa   :  { %8161 = vpow2.f32 %v4920_v58 }
 0xfb2   :  { %v10424_v48 = vpop.eup %8159 }
 0xfb3   :  { %v4950_v1 = vsel %vm798_vm1, %v10424_v48, 0.0 }
 0xfb4   :  { %v10428_v44 = vpop.eup %8161  ;;  %4951 = vadd.xlane.f32.xlu0 %v4950_v1 }
 0xfb5   :  { %v4953_v37 = vsel %vm798_vm1, %v10428_v44, 0.0 }
 0xfb6   :  { %4954 = vadd.xlane.f32.xlu1 %v4953_v37 }
 0xfd4   :  { %v4868_v56 = vpop.xlane.xlu0 %4867 }
 0xfd5   :  { %v4906_v21 = vsub.f32 %v10389_v30, %v4868_v56 }
 0xfd6   :  { %v4871_v34 = vpop.xlane.xlu1 %4870 }
 0xfd7   :  { %v4926_v50 = vmul.f32 1.442695, %v4906_v21  ;;  %v4907_v60 = vsub.f32 %v4615_v31, %v4871_v34 }
 0xfd9   :  { %8163 = vpow2.f32 %v4926_v50  ;;  %v4928_v52 = vmul.f32 1.442695, %v4907_v60  ;;  %v4860_v60 = vsel %vm798_vm1, %v10406_v39, -inf }
 0xfdb   :  { %8165 = vpow2.f32 %v4928_v52 }
 0xfdc   :  { %v4880_v45 = vpop.xlane.xlu0 %4879 }
 0xfdd   :  { %v4910_v15 = vsub.f32 %v4706_v3, %v4880_v45 }
 0xfde   :  { %v4883_v23 = vpop.xlane.xlu1 %4882 }
 0xfdf   :  { %v4934_v27 = vmul.f32 1.442695, %v4910_v15  ;;  %v4911_v9 = vsub.f32 %v4709_v6, %v4883_v23 }
 0xfe1   :  { %8167 = vpow2.f32 %v4934_v27  ;;  %v4936_v7 = vmul.f32 1.442695, %v4911_v9  ;;  %v4872_v27 = vsel %vm798_vm1, %v10412_v4, -inf  ;;  %v4875_v9 = vsel %vm798_vm1, %v10414_v47, -inf }
 0xfe3   :  { %v10433_v20 = vpop.eup %8163  ;;  %8169 = vpow2.f32 %v4936_v7  ;;  %v4884_v7 = vsel %vm798_vm1, %v10416_v46, -inf }
 0xfe4   :  { %v4892_v10 = vpop.xlane.xlu0 %4891  ;;  %v4962_v30 = vsel %vm798_vm1, %v10433_v20, 0.0 }
 0xfe5   :  { %v10437_v58 = vpop.eup %8165  ;;  %v4914_v31 = vsub.f32 %v4800_v8, %v4892_v10  ;;  %4963 = vadd.xlane.f32.xlu0 %v4962_v30  ;;  %v4887_v10 = vsel %vm798_vm1, %v10418_v19, -inf  ;;  %v4896_v30 = vsel %vm798_vm1, %v10420_v24, -inf }
 0xfe6   :  { %v4895_v1 = vpop.xlane.xlu1 %4894  ;;  %v4965_v3 = vsel %vm798_vm1, %v10437_v58, 0.0 }
 0xfe7   :  { %v4942_v37 = vmul.f32 1.442695, %v4914_v31  ;;  %v4915_v56 = vsub.f32 %v4803_v55, %v4895_v1  ;;  %4966 = vadd.xlane.f32.xlu1 %v4965_v3  ;;  %v4863_v55 = vsel %vm798_vm1, %v10409_v42, -inf  ;;  %v4899_v31 = vsel %vm798_vm1, %v10422_v16, -inf }
 0xfe9   :  { %8171 = vpow2.f32 %v4942_v37  ;;  %v4944_v6 = vmul.f32 1.442695, %v4915_v56 }
 0xfeb   :  { %v10441_v21 = vpop.eup %8167  ;;  %8173 = vpow2.f32 %v4944_v6 }
 0xfec   :  { %v4974_v34 = vsel %vm798_vm1, %v10441_v21, 0.0 }
 0xfed   :  { %v10445_v50 = vpop.eup %8169  ;;  %4975 = vadd.xlane.f32.xlu0 %v4974_v34 }
 0xfee   :  { %v4977_v8 = vsel %vm798_vm1, %v10445_v50, 0.0 }
 0xfef   :  { %4978 = vadd.xlane.f32.xlu1 %v4977_v8 }
 0xff1   :  { %4861 = vmax.xlane.f32.xlu0 %v4860_v60 }
 0xff3   :  { %v10453_v52 = vpop.eup %8171  ;;  %4864 = vmax.xlane.f32.xlu1 %v4863_v55 }
 0xff4   :  { %v4986_v45 = vsel %vm798_vm1, %v10453_v52, 0.0 }
 0xff5   :  { %v10457_v15 = vpop.eup %8173  ;;  %4987 = vadd.xlane.f32.xlu0 %v4986_v45 }
 0xff6   :  { %v4989_v23 = vsel %vm798_vm1, %v10457_v15, 0.0 }
 0xff7   :  { %4990 = vadd.xlane.f32.xlu1 %v4989_v23 }
 0xff9   :  { %4873 = vmax.xlane.f32.xlu0 %v4872_v27 }
 0xffb   :  { %4876 = vmax.xlane.f32.xlu1 %v4875_v9 }
 0xffd   :  { %4885 = vmax.xlane.f32.xlu0 %v4884_v7 }
 0xfff   :  { %4888 = vmax.xlane.f32.xlu1 %v4887_v10 }
0x1001   :  { %4897 = vmax.xlane.f32.xlu0 %v4896_v30 }
0x1010   :  { %4460 = vrot.lane.b32.xlu1 %v10090_v41, %s8785_s24 }
0x1017   :  { %4457 = vrot.lane.b32.xlu0 %v10090_v41, %s8786_s29 }
0x1034   :  { %4900 = vmax.xlane.f32.xlu1 %v4899_v31 }
0x1041   :  { %v4952_v1 = vpop.xlane.xlu0 %4951 }
0x1042   :  { %8175 = vrcp.f32 %v4952_v1 }
0x1043   :  { %v4955_v3 = vpop.xlane.xlu1 %4954 }
0x1044   :  { %8177 = vrcp.f32 %v4955_v3 }
0x1045   :  { %4463 = vrot.lane.b32.xlu1 %v10090_v41, %s8787_s15 }
0x104c   :  { %v8176_v37 = vpop.eup %8175 }
0x104d   :  { %v5014_v6 = vmul.f32 %v8176_v37, %v10424_v48 }
0x104e   :  { %v8178_v56 = vpop.eup %8177 }
0x104f   :  { %v5015_v34 = vmul.f32 %v8178_v56, %v10428_v44 }
0x1051   :  { %v5030_v8 = vpack.c.bf16 %v5015_v34, %v5014_v6 }
0x1053   :  { %7571 = vmatmul.mubr.msk.bf16.vlgmr.msra.gmra.mrb[112].mxu0 %vm798_vm1, %v5030_v8 }
0x1054   :  { %7582 = vmatprep.mubr.msk.bf16.mxu0 %vm8784_vm0, %v8783_v26 }
0x1072   :  { %v4964_v60 = vpop.xlane.xlu0 %4963 }
0x1074   :  { %v4967_v55 = vpop.xlane.xlu1 %4966 }
0x107a   :  { %v4976_v45 = vpop.xlane.xlu0 %4975 }
0x107b   :  { %8179 = vrcp.f32 %v4976_v45 }
0x107c   :  { %v4979_v23 = vpop.xlane.xlu1 %4978 }
0x107d   :  { %8181 = vrcp.f32 %v4979_v23 }
0x107e   :  { %v4862_v27 = vpop.xlane.xlu0 %4861  ;;  %8183 = vrcp.f32 %v4967_v55 }
0x107f   :  { %v4904_v9 = vsub.f32 %v10406_v39, %v4862_v27  ;;  %8185 = vrcp.f32 %v4964_v60 }
0x1080   :  { %v4865_v7 = vpop.xlane.xlu1 %4864 }
0x1081   :  { %v4922_v48 = vmul.f32 1.442695, %v4904_v9  ;;  %v4905_v44 = vsub.f32 %v10409_v42, %v4865_v7 }
0x1082   :  { %v4988_v10 = vpop.xlane.xlu0 %4987 }
0x1083   :  { %8187 = vpow2.f32 %v4922_v48  ;;  %v4924_v30 = vmul.f32 1.442695, %v4905_v44 }
0x1084   :  { %8189 = vrcp.f32 %v4988_v10  ;;  %v4991_v31 = vpop.xlane.xlu1 %4990 }
0x1085   :  { %v8180_v1 = vpop.eup %8179  ;;  %8191 = vpow2.f32 %v4924_v30 }
0x1086   :  { %8193 = vrcp.f32 %v4991_v31  ;;  %v4874_v3 = vpop.xlane.xlu0 %4873  ;;  %v10488_v39 = vmul.f32 %v8180_v1, %v10441_v21 }
0x1087   :  { %v8182_v37 = vpop.eup %8181  ;;  %v4908_v56 = vsub.f32 %v10412_v4, %v4874_v3 }
0x1088   :  { %v10491_v6 = vmul.f32 %v8182_v37, %v10445_v50  ;;  %v4877_v42 = vpop.xlane.xlu1 %4876  ;;  %v8184_v55 = vpop.eup %8183 }
0x1089   :  { %v4930_v34 = vmul.f32 1.442695, %v4908_v56  ;;  %v8186_v45 = vpop.eup %8185  ;;  %v5019_v4 = vmul.f32 %v8184_v55, %v10437_v58 }
0x108a   :  { %v4886_v8 = vpop.xlane.xlu0 %4885  ;;  %v5034_v60 = vpack.c.bf16 %v10491_v6, %v10488_v39  ;;  %v5018_v44 = vmul.f32 %v8186_v45, %v10433_v20 }
0x108b   :  { %8195 = vpow2.f32 %v4930_v34  ;;  %v4912_v55 = vsub.f32 %v10416_v46, %v4886_v8 }
0x108c   :  { %v4889_v23 = vpop.xlane.xlu1 %4888  ;;  %v5032_v3 = vpack.c.bf16 %v5019_v4, %v5018_v44 }
0x108d   :  { %v10495_v27 = vpop.eup %8187  ;;  %v4913_v34 = vsub.f32 %v10418_v19, %v4889_v23 }
0x108e   :  { %v8190_v9 = vpop.eup %8189  ;;  %v4898_v21 = vpop.xlane.xlu0 %4897  ;;  %v4956_v50 = vsel %vm798_vm1, %v10495_v27, 0.0 }
0x108f   :  { %v10500_v7 = vpop.eup %8191  ;;  %4957 = vadd.xlane.f32.xlu0 %v4956_v50  ;;  %v10506_v31 = vmul.f32 %v8190_v9, %v10453_v52  ;;  %v4940_v45 = vmul.f32 1.442695, %v4913_v34  ;;  %v4938_v9 = vmul.f32 1.442695, %v4912_v55  ;;  %v4916_v4 = vsub.f32 %v10420_v24, %v4898_v21 }
0x1090   :  { %v8194_v48 = vpop.eup %8193  ;;  %v4461_v10 = vpop.permute.xlu1 %4460  ;;  %v4959_v30 = vsel %vm798_vm1, %v10500_v7, 0.0 }
0x1091   :  { %v10509_v1 = vmul.f32 %v8194_v48, %v10457_v15  ;;  %4960 = vadd.xlane.f32.xlu1 %v4959_v30  ;;  %7581 = vmatpush3.bf16.msra.mxu0 %v4461_v10  ;;  %v4909_v15 = vsub.f32 %v10414_v47, %v4877_v42  ;;  %v4946_v50 = vmul.f32 1.442695, %v4916_v4 }
0x1092   :  { %v4458_v58 = vpop.permute.xlu0 %4457  ;;  %7592 = vmatprep.subr.bf16.mxu0 %v8783_v26 }
0x1093   :  { %7575 = vmatpush3.bf16.msra.mxu1 %v4458_v58  ;;  %v5036_v20 = vpack.c.bf16 %v10509_v1, %v10506_v31  ;;  %v4932_v56 = vmul.f32 1.442695, %v4909_v15 }
0x1094   :  { %7583 = vmatmul.mubr.msk.bf16.vlgmr.msra.gmra.mrb[116].mxu0 %vm798_vm1, %v5032_v3  ;;  %7586 = vmatprep.subr.bf16.mxu1 %v8783_v26 }
0x1095   :  { %v10516_v37 = vpop.eup %8195  ;;  %7594 = vmatprep.mubr.msk.bf16.mxu0 %vm8784_vm0, %v8783_v26  ;;  %8197 = vpow2.f32 %v4932_v56 }
0x1096   :  { %v4968_v52 = vsel %vm798_vm1, %v10516_v37, 0.0  ;;  %8199 = vpow2.f32 %v4940_v45 }
0x1097   :  { %4969 = vadd.xlane.f32.xlu0 %v4968_v52  ;;  %8201 = vpow2.f32 %v4938_v9 }
0x1098   :  { %8203 = vpow2.f32 %v4946_v50 }
0x109f   :  { %v10530_v44 = vpop.eup %8197 }
0x10a0   :  { %v4971_v19 = vsel %vm798_vm1, %v10530_v44, 0.0  ;;  %v10535_v42 = vpop.eup %8199 }
0x10a1   :  { %v10537_v46 = vpop.eup %8201  ;;  %v4983_v24 = vsel %vm798_vm1, %v10535_v42, 0.0 }
0x10a2   :  { %4469 = vrot.lane.b32.xlu1 %v10090_v41, %s8788_s5  ;;  %v4980_v8 = vsel %vm798_vm1, %v10537_v46, 0.0  ;;  %v10543_v23 = vpop.eup %8203 }
0x10ad   :  { %4466 = vrot.lane.b32.xlu0 %v10090_v41, %s8761_s1 }
0x10c1   :  { %v4901_v48 = vpop.xlane.xlu1 %4900 }
0x10c2   :  { %v4917_v10 = vsub.f32 %v10422_v16, %v4901_v48  ;;  %v4992_v16 = vsel %vm798_vm1, %v10543_v23, 0.0 }
0x10c4   :  { %v4948_v47 = vmul.f32 1.442695, %v4917_v10 }
0x10c6   :  { %8205 = vpow2.f32 %v4948_v47  ;;  %4972 = vadd.xlane.f32.xlu1 %v4971_v19 }
0x10ca   :  { %4984 = vadd.xlane.f32.xlu1 %v4983_v24 }
0x10cc   :  { %4981 = vadd.xlane.f32.xlu0 %v4980_v8 }
0x10d0   :  { %v10547_v21 = vpop.eup %8205  ;;  %4993 = vadd.xlane.f32.xlu0 %v4992_v16 }
0x10d1   :  { %v4995_v30 = vsel %vm798_vm1, %v10547_v21, 0.0 }
0x10d2   :  { %4996 = vadd.xlane.f32.xlu1 %v4995_v30 }
0x10e3   :  { %4475 = vrot.lane.b32.xlu1 %v10090_v41, %s8781_s6 }
0x10e6   :  { %4472 = vrot.lane.b32.xlu0 %v10090_v41, %s8789_s17  ;;  %v4464_v41 = vpop.permute.xlu1 %4463 }
0x10e7   :  { %7745 = vrot.lane.b32.xlu1 %v7744_v51, %s8789_s17 }
0x10ea   :  { %7740 = vrot.lane.b32.xlu0 %v7739_v40, %s8781_s6 }
0x10eb   :  { %7750 = vrot.lane.b32.xlu1 %v7749_v62, %s8788_s5 }
0x10ef   :  { %7755 = vrot.lane.b32.xlu1 %v7754_v18, %s8761_s1 }
0x10f3   :  { %7760 = vrot.lane.b32.xlu1 %v7759_v22, %s8787_s15 }
0x10f7   :  { %7765 = vrot.lane.b32.xlu1 %v7764_v53, %s8785_s24 }
0x10fb   :  { %7770 = vrot.lane.b32.xlu1 %v7769_v57, %s8786_s29 }
0x111c   :  { %v4958_v0 = vpop.xlane.xlu0 %4957 }
0x111d   :  { %8207 = vrcp.f32 %v4958_v0 }
0x111e   :  { %v4961_v11 = vpop.xlane.xlu1 %4960 }
0x111f   :  { %8209 = vrcp.f32 %v4961_v11 }
0x1122   :  { %v4470_v13 = vpop.permute.xlu1 %4469 }
0x1124   :  { %v4970_v51 = vpop.xlane.xlu0 %4969 }
0x1125   :  { %8211 = vrcp.f32 %v4970_v51 }
0x1126   :  { %v10583_v36 = vpop.f32.mrb[112].mxu0 }
0x1127   :  { %v8208_v25 = vpop.eup %8207  ;;  %v7572_v18 = vpop.f32.mrb[113].mxu0 }
0x1128   :  { %v10585_v59 = vpop.f32.mrb[114].mxu0  ;;  %v4467_v2 = vpop.permute.xlu0 %4466  ;;  %v5016_v35 = vmul.f32 %v8208_v25, %v10495_v27 }
0x1129   :  { %v8210_v40 = vpop.eup %8209  ;;  %v7573_v33 = vpop.f32.mrb[115].mxu0  ;;  %7593 = vmatpush3.bf16.msra.mxu0 %v4467_v2 }
0x112a   :  { %v5017_v53 = vmul.f32 %v8210_v40, %v10500_v7  ;;  %7604 = vmatprep.subr.bf16.mxu0 %v8783_v26 }
0x112c   :  { %7595 = vmatmul.mubr.msk.bf16.vlgmr.msra.gmra.mrb[120].mxu0 %vm798_vm1, %v5034_v60  ;;  %v5031_v38 = vpack.c.bf16 %v5017_v53, %v5016_v35 }
0x112d   :  { %7606 = vmatprep.mubr.msk.bf16.mxu0 %vm8784_vm0, %v8783_v26 }
0x112e   :  { %7577 = vmatmul.mubr.msk.bf16.vlgmr.msra.gmra.mrb[140].mxu1 %vm798_vm1, %v5031_v38 }
0x112f   :  { %7587 = vmatpush3.bf16.msra.mxu1 %v4464_v41  ;;  %7588 = vmatprep.mubr.msk.bf16.mxu1 %vm8784_vm0, %v8783_v26  ;;  %v8212_v22 = vpop.eup %8211 }
0x1130   :  { %7598 = vmatprep.subr.bf16.mxu1 %v8783_v26  ;;  %v5020_v57 = vmul.f32 %v8212_v22, %v10516_v37 }
0x1153   :  { %v4973_v62 = vpop.xlane.xlu1 %4972 }
0x1154   :  { %8213 = vrcp.f32 %v4973_v62 }
0x1157   :  { %v4985_v14 = vpop.xlane.xlu1 %4984 }
0x1158   :  { %8215 = vrcp.f32 %v4985_v14 }
0x1159   :  { %v4982_v54 = vpop.xlane.xlu0 %4981 }
0x115a   :  { %8217 = vrcp.f32 %v4982_v54 }
0x115d   :  { %v4994_v43 = vpop.xlane.xlu0 %4993 }
0x115e   :  { %v8214_v12 = vpop.eup %8213 }
0x115f   :  { %v5021_v39 = vmul.f32 %v8214_v12, %v10530_v44  ;;  %v4997_v6 = vpop.xlane.xlu1 %4996 }
0x1160   :  { %8219 = vrcp.f32 %v4997_v6  ;;  %v7870_v6 = vld [vmem:[%s10910_s18 + $0x8] sm:$0xff]  }
0x1161   :  { %v4473_v60 = vpop.permute.xlu0 %4472  ;;  %v5033_v27 = vpack.c.bf16 %v5021_v39, %v5020_v57  ;;  %8221 = vrcp.f32 %v4994_v43  ;;  %v7869_v39 = vld [vmem:[%s10910_s18] sm:$0xff]  }
0x1162   :  { %7605 = vmatpush3.bf16.msra.mxu0 %v4473_v60  ;;  %v8216_v7 = vpop.eup %8215 }
0x1163   :  { %v4476_v58 = vpop.permute.xlu1 %4475  ;;  %7589 = vmatmul.mubr.msk.bf16.vlgmr.msra.gmra.mrb[144].mxu1 %vm798_vm1, %v5033_v27  ;;  %v5025_v37 = vmul.f32 %v8216_v7, %v10535_v42  ;;  %7616 = vmatprep.subr.bf16.mxu0 %v7869_v39 }
0x1164   :  { %v8218_v3 = vpop.eup %8217  ;;  %7599 = vmatpush3.bf16.msra.mxu1 %v4470_v13  ;;  %7600 = vmatprep.mubr.msk.bf16.mxu1 %vm8784_vm0, %v8783_v26 }
0x1165   :  { %v5024_v52 = vmul.f32 %v8218_v3, %v10537_v46  ;;  %7607 = vmatmul.mubr.msk.bf16.vlgmr.msra.gmra.mrb[124].mxu0 %vm798_vm1, %v5036_v20  ;;  %7610 = vmatprep.subr.bf16.mxu1 %v8783_v26  ;;  %v7741_v20 = vpop.permute.xlu0 %7740  ;;  %v7871_v3 = vld [vmem:[%s10910_s18 + $0x10] sm:$0xff]  }
0x1166   :  { %v7743_v19 = vunpack.i.h.bf16 %v7741_v20  ;;  %v7742_v42 = vunpack.i.l.bf16 %v7741_v20  ;;  %7617 = vmatpush3.bf16.msra.mxu0 %v7869_v39 }
0x1167   :  { %v7746_v15 = vpop.permute.xlu1 %7745  ;;  %v5163_v56 = vpop.f32.mrb[116].mxu0  ;;  %v5035_v45 = vpack.c.bf16 %v5025_v37, %v5024_v52  ;;  %7618 = vmatprep.subr.bf16.mxu0 %v7870_v6 }
0x1168   :  { %v7584_v34 = vpop.f32.mrb[117].mxu0  ;;  %v7748_v24 = vunpack.i.h.bf16 %v7746_v15  ;;  %v7747_v8 = vunpack.i.l.bf16 %v7746_v15  ;;  %v4413_v16 = vsel %vm798_vm1, %v10235_v29, %v7743_v19 }
0x1169   :  { %v5166_v55 = vpop.f32.mrb[118].mxu0 }
0x116a   :  { %v8220_v9 = vpop.eup %8219  ;;  %v7774_v4 = vpack.i.bf16 %v5166_v55, %v5163_v56  ;;  %v7585_v50 = vpop.f32.mrb[119].mxu0  ;;  %v4415_v18 = vsel %vm1769_vm4, %v4413_v16, %v7748_v24  ;;  %7619 = vmatpush3.bf16.msra.mxu0 %v7870_v6  ;;  %v7876_v16 = vld [vmem:[%s10910_s18 + $0x38] sm:$0xff]  }
0x116b   :  { %v7751_v48 = vpop.permute.xlu1 %7750  ;;  %7601 = vmatmul.mubr.msk.bf16.vlgmr.msra.gmra.mrb[148].mxu1 %vm798_vm1, %v5035_v45  ;;  %v8222_v44 = vpop.eup %8221  ;;  %v5029_v31 = vmul.f32 %v8220_v9, %v10547_v21  ;;  %v4412_v21 = vsel %vm798_vm1, %v10233_v17, %v7742_v42  ;;  %7620 = vmatprep.subr.bf16.mxu0 %v7871_v3  ;;  %v7872_v45 = vld [vmem:[%s10910_s18 + $0x18] sm:$0xff]   ;;  %v7873_v9 = vld [vmem:[%s10910_s18 + $0x20] sm:$0xff]  }
0x116c   :  { %7611 = vmatpush3.bf16.msra.mxu1 %v4476_v58  ;;  %7775 = vrot.lane.b32.xlu0 %v7774_v4, %s8789_s17  ;;  %v5028_v1 = vmul.f32 %v8222_v44, %v10543_v23  ;;  %v7753_v30 = vunpack.i.h.bf16 %v7751_v48  ;;  %v4414_v25 = vsel %vm1769_vm4, %v4412_v21, %v7747_v8  ;;  %s10964_s17 = sld [smem:[#allocation60_spill]] }
0x116d   :  { %7612 = vmatprep.mubr.msk.bf16.mxu1 %vm8784_vm0, %v8783_v26  ;;  %v7752_v26 = vunpack.i.l.bf16 %v7751_v48  ;;  %v7874_v48 = vld [vmem:[%s10910_s18 + $0x28] sm:$0xff]  }
0x116e   :  { %v5037_v47 = vpack.c.bf16 %v5029_v31, %v5028_v1  ;;  %v4417_v29 = vsel %vm1772_vm5, %v4415_v18, %v7753_v30  ;;  %7621 = vmatpush3.bf16.msra.mxu0 %v7871_v3 }
0x116f   :  { %v7756_v10 = vpop.permute.xlu1 %7755  ;;  %v4416_v33 = vsel %vm1772_vm5, %v4414_v25, %v7752_v26  ;;  %7622 = vmatprep.subr.bf16.mxu0 %v7872_v45 }
0x1170   :  { %v7758_v41 = vunpack.i.h.bf16 %v7756_v10  ;;  %v7757_v23 = vunpack.i.l.bf16 %v7756_v10 }
0x1172   :  { %v4418_v35 = vsel %vm1775_vm6, %v4416_v33, %v7757_v23  ;;  %v4419_v17 = vsel %vm1775_vm6, %v4417_v29, %v7758_v41  ;;  %7623 = vmatpush3.bf16.msra.mxu0 %v7872_v45 }
0x1173   :  { %v7761_v46 = vpop.permute.xlu1 %7760  ;;  %7613 = vmatmul.mubr.msk.bf16.vlgmr.msra.gmra.mrb[152].mxu1 %vm798_vm1, %v5037_v47  ;;  %7624 = vmatprep.subr.bf16.mxu0 %v7873_v9 }
0x1174   :  { %v7763_v11 = vunpack.i.h.bf16 %v7761_v46  ;;  %v7762_v51 = vunpack.i.l.bf16 %v7761_v46  ;;  %v7875_v46 = vld [vmem:[%s10910_s18 + $0x30] sm:$0xff]  }
0x1176   :  { %v4420_v38 = vsel %vm1778_vm7, %v4418_v35, %v7762_v51  ;;  %v4421_v13 = vsel %vm1778_vm7, %v4419_v17, %v7763_v11  ;;  %7625 = vmatpush3.bf16.msra.mxu0 %v7873_v9 }
0x1177   :  { %v7766_v0 = vpop.permute.xlu1 %7765  ;;  %7626 = vmatprep.subr.bf16.mxu0 %v7874_v48 }
0x1178   :  { %v7768_v2 = vunpack.i.h.bf16 %v7766_v0  ;;  %v7767_v40 = vunpack.i.l.bf16 %v7766_v0 }
0x117a   :  { %v4422_v54 = vsel %vm1781_vm8, %v4420_v38, %v7767_v40  ;;  %v4423_v22 = vsel %vm1781_vm8, %v4421_v13, %v7768_v2  ;;  %7627 = vmatpush3.bf16.msra.mxu0 %v7874_v48 }
0x117b   :  { %v7771_v53 = vpop.permute.xlu1 %7770  ;;  %7628 = vmatprep.subr.bf16.mxu0 %v7875_v46 }
0x117c   :  { %v7773_v62 = vunpack.i.h.bf16 %v7771_v53  ;;  %v7772_v14 = vunpack.i.l.bf16 %v7771_v53 }
0x117e   :  { %v4424_v43 = vsel %vm1784_vm9, %v4422_v54, %v7772_v14  ;;  %v4425_v12 = vsel %vm1784_vm9, %v4423_v22, %v7773_v62  ;;  %7629 = vmatpush3.bf16.msra.mxu0 %v7875_v46 }
0x117f   :  { %v5460_v57 = vpack.c.bf16 %v4425_v12, %v4424_v43  ;;  %7630 = vmatprep.subr.bf16.mxu0 %v7876_v16 }
0x1181   :  { %7632 = vmatprep.mubr.bf16.mxu0 %v5460_v57 }
0x1182   :  { %7631 = vmatpush3.bf16.msra.mxu0 %v7876_v16 }
0x11de   :  { %v7776_v25 = vpop.permute.xlu0 %7775 }
0x11df   :  { %v7778_v62 = vunpack.i.h.bf16 %v7776_v25  ;;  %v7777_v14 = vunpack.i.l.bf16 %v7776_v25 }
0x11ff   :  { %v5251_v60 = vpop.f32.mrb[120].mxu0 }
0x1200   :  { %v7596_v27 = vpop.f32.mrb[121].mxu0 }
0x1201   :  { %v5119_v7 = vpop.f32.mrb[140].mxu1  ;;  %v5254_v58 = vpop.f32.mrb[122].mxu0 }
0x1202   :  { %v7779_v52 = vpack.i.bf16 %v5254_v58, %v5251_v60  ;;  %v7578_v37 = vpop.f32.mrb[141].mxu1  ;;  %v7597_v15 = vpop.f32.mrb[123].mxu0 }
0x1203   :  { %v5122_v56 = vpop.f32.mrb[142].mxu1 }
0x1204   :  { %v7784_v34 = vpack.i.bf16 %v5122_v56, %v5119_v7  ;;  %v7579_v55 = vpop.f32.mrb[143].mxu1  ;;  %7780 = vrot.lane.b32.xlu0 %v7779_v52, %s8761_s1 }
0x1208   :  { %7785 = vrot.lane.b32.xlu0 %v7784_v34, %s8781_s6 }
0x1236   :  { %v5207_v4 = vpop.f32.mrb[144].mxu1 }
0x1237   :  { %v7590_v50 = vpop.f32.mrb[145].mxu1 }
0x1238   :  { %v5210_v44 = vpop.f32.mrb[146].mxu1  ;;  %v5339_v31 = vpop.f32.mrb[124].mxu0  ;;  %v3017_v50 = vld [vmem:[%s10911_s19] sm:$0x1] }
0x1239   :  { %v7789_v1 = vpack.i.bf16 %v5210_v44, %v5207_v4  ;;  %v7591_v20 = vpop.f32.mrb[147].mxu1  ;;  %v7608_v10 = vpop.f32.mrb[125].mxu0  ;;  %v3018_v48 = vunpack.c.l.bf16 %v3017_v50  ;;  %v7922_v50 = vld [vmem:[#allocation31 + $0xe8] ss:$16 sps:$4 sm:$0xff]  }
0x123a   :  { %v5342_v47 = vpop.f32.mrb[126].mxu0 }
0x123b   :  { %v7799_v19 = vpack.i.bf16 %v5342_v47, %v5339_v31  ;;  %7790 = vrot.lane.b32.xlu0 %v7789_v1, %s8788_s5  ;;  %v7609_v42 = vpop.f32.mrb[127].mxu0  ;;  %v5481_v44 = vrot.slane %v3018_v48, %v9253_v32  ;;  %v8790_v48 = vmov 0  }
0x123c   :  { %5912 = vmatprep.mubr.bf16.mxu1 %v8790_v48 }
0x123e   :  { %v5295_v24 = vpop.f32.mrb[148].mxu1 }
0x123f   :  { %v7602_v8 = vpop.f32.mrb[149].mxu1 }
0x1240   :  { %v5298_v21 = vpop.f32.mrb[150].mxu1 }
0x1241   :  { %v7794_v30 = vpack.i.bf16 %v5298_v21, %v5295_v24  ;;  %v7603_v26 = vpop.f32.mrb[151].mxu1 }
0x1242   :  { %v7879_v26 = vld [vmem:[#allocation31 + $0x4] ss:$16 sps:$4 sm:$0xff]  }
0x1243   :  { %7795 = vrot.lane.b32.xlu0 %v7794_v30, %s8787_s15  ;;  %v7877_v30 = vld [vmem:[#allocation31] ss:$16 sps:$4 sm:$0xff]   ;;  %5880 = vmatprep.subr.bf16.mxu1 %v7879_v26  ;;  %v5585_v26 = vld [vmem:[%s10913_s21] sm:$0x1] }
0x1244   :  { %5881 = vmatpush1.bf16.msra.mxu1 %v7877_v30 }
0x1246   :  { %v5383_v41 = vpop.f32.mrb[152].mxu1 }
0x1247   :  { %v7614_v23 = vpop.f32.mrb[153].mxu1  ;;  %7800 = vrot.lane.b32.xlu0 %v7799_v19, %s8785_s24 }
0x1248   :  { %v5386_v0 = vpop.f32.mrb[154].mxu1  ;;  %v7882_v23 = vld [vmem:[#allocation31 + $0xc] ss:$16 sps:$4 sm:$0xff]  }
0x1249   :  { %v7804_v11 = vpack.i.bf16 %v5386_v0, %v5383_v41  ;;  %v7615_v51 = vpop.f32.mrb[155].mxu1  ;;  %v7880_v41 = vld [vmem:[#allocation31 + $0x8] ss:$16 sps:$4 sm:$0xff]   ;;  %v7885_v0 = vld [vmem:[#allocation31 + $0x24] ss:$16 sps:$4 sm:$0xff]   ;;  %5933 = vmatprep.subr.bf16.mxu0 %v7882_v23 }
0x124a   :  { %5882 = vmatprep.subr.bf16.mxu1 %v7885_v0 }
0x124b   :  { %7805 = vrot.lane.b32.xlu1 %v7804_v11, %s8786_s29  ;;  %v7888_v11 = vld [vmem:[#allocation31 + $0x2c] ss:$16 sps:$4 sm:$0xff]  }
0x1276   :  { %v7781_v18 = vpop.permute.xlu0 %7780 }
0x1277   :  { %v7783_v60 = vunpack.i.h.bf16 %v7781_v18 }
0x127a   :  { %v7786_v2 = vpop.permute.xlu0 %7785 }
0x127b   :  { %v7788_v33 = vunpack.i.h.bf16 %v7786_v2  ;;  %v7787_v29 = vunpack.i.l.bf16 %v7786_v2 }
0x127d   :  { %v5447_v17 = vsel %vm798_vm1, %v10585_v59, %v7788_v33  ;;  %v5446_v53 = vsel %vm798_vm1, %v10583_v36, %v7787_v29  ;;  %v7782_v59 = vunpack.i.l.bf16 %v7781_v18 }
0x127e   :  { %v5448_v54 = vsel %vm1769_vm4, %v5446_v53, %v7777_v14  ;;  %v5449_v22 = vsel %vm1769_vm4, %v5447_v17, %v7778_v62 }
0x12ad   :  { %v7791_v40 = vpop.permute.xlu0 %7790 }
0x12ae   :  { %v7793_v38 = vunpack.i.h.bf16 %v7791_v40  ;;  %v7792_v13 = vunpack.i.l.bf16 %v7791_v40 }
0x12b0   :  { %v5450_v12 = vsel %vm1772_vm5, %v5448_v54, %v7792_v13  ;;  %v5451_v57 = vsel %vm1772_vm5, %v5449_v22, %v7793_v38  ;;  %v7891_v54 = vld [vmem:[#allocation31 + $0x44] ss:$16 sps:$4 sm:$0xff]   ;;  %v7894_v22 = vld [vmem:[#allocation31 + $0x4c] ss:$16 sps:$4 sm:$0xff]  }
0x12b1   :  { %v5452_v36 = vsel %vm1775_vm6, %v5450_v12, %v7782_v59  ;;  %v5453_v58 = vsel %vm1775_vm6, %v5451_v57, %v7783_v60  ;;  %v7892_v12 = vld [vmem:[#allocation31 + $0x48] ss:$16 sps:$4 sm:$0xff]   ;;  %v7897_v57 = vld [vmem:[#allocation31 + $0x64] ss:$16 sps:$4 sm:$0xff]  }
0x12b2   :  { %v7898_v60 = vld [vmem:[#allocation31 + $0x68] ss:$16 sps:$4 sm:$0xff]   ;;  %v7903_v59 = vld [vmem:[#allocation31 + $0x84] ss:$16 sps:$4 sm:$0xff]  }
0x12b5   :  { %v7796_v35 = vpop.permute.xlu0 %7795 }
0x12b6   :  { %v7798_v39 = vunpack.i.h.bf16 %v7796_v35  ;;  %v7797_v6 = vunpack.i.l.bf16 %v7796_v35 }
0x12b8   :  { %v5454_v52 = vsel %vm1778_vm7, %v5452_v36, %v7797_v6  ;;  %v5455_v37 = vsel %vm1778_vm7, %v5453_v58, %v7798_v39  ;;  %v7900_v39 = vld [vmem:[#allocation31 + $0x6c] ss:$16 sps:$4 sm:$0xff]   ;;  %v7895_v6 = vld [vmem:[#allocation31 + $0x60] ss:$16 sps:$4 sm:$0xff]   ;;  %v7904_v36 = vld [vmem:[#allocation31 + $0x88] ss:$16 sps:$4 sm:$0xff]  }
0x12b9   :  { %v7801_v43 = vpop.permute.xlu0 %7800  ;;  %v7909_v58 = vld [vmem:[#allocation31 + $0xa4] ss:$16 sps:$4 sm:$0xff]  }
0x12ba   :  { %v7803_v27 = vunpack.i.h.bf16 %v7801_v43  ;;  %v7802_v7 = vunpack.i.l.bf16 %v7801_v43  ;;  %v7889_v43 = vld [vmem:[#allocation31 + $0x40] ss:$16 sps:$4 sm:$0xff]  }
0x12bc   :  { %v5456_v34 = vsel %vm1781_vm8, %v5454_v52, %v7802_v7  ;;  %v5457_v55 = vsel %vm1781_vm8, %v5455_v37, %v7803_v27  ;;  %v7906_v27 = vld [vmem:[#allocation31 + $0x8c] ss:$16 sps:$4 sm:$0xff]   ;;  %v7901_v7 = vld [vmem:[#allocation31 + $0x80] ss:$16 sps:$4 sm:$0xff]   ;;  %v7910_v37 = vld [vmem:[#allocation31 + $0xa8] ss:$16 sps:$4 sm:$0xff]  }
0x12bd   :  { %v7806_v3 = vpop.permute.xlu1 %7805  ;;  %v7907_v52 = vld [vmem:[#allocation31 + $0xa0] ss:$16 sps:$4 sm:$0xff]  }
0x12be   :  { %v7808_v15 = vunpack.i.h.bf16 %v7806_v3  ;;  %v7807_v56 = vunpack.i.l.bf16 %v7806_v3  ;;  %v7912_v3 = vld [vmem:[#allocation31 + $0xac] ss:$16 sps:$4 sm:$0xff]  }
0x12c0   :  { %v5458_v45 = vsel %vm1784_vm9, %v5456_v34, %v7807_v56  ;;  %v5459_v9 = vsel %vm1784_vm9, %v5457_v55, %v7808_v15  ;;  %v7913_v15 = vld [vmem:[#allocation31 + $0xc0] ss:$16 sps:$4 sm:$0xff]   ;;  %v7915_v56 = vld [vmem:[#allocation31 + $0xc4] ss:$16 sps:$4 sm:$0xff]   ;;  %v7916_v34 = vld [vmem:[#allocation31 + $0xc8] ss:$16 sps:$4 sm:$0xff]  }
0x12c1   :  { %v5461_v4 = vpack.c.bf16 %v5459_v9, %v5458_v45  ;;  %v7918_v55 = vld [vmem:[#allocation31 + $0xcc] ss:$16 sps:$4 sm:$0xff]   ;;  %v7921_v45 = vld [vmem:[#allocation31 + $0xe4] ss:$16 sps:$4 sm:$0xff]  }
0x12c2   :  { %v7924_v9 = vld [vmem:[#allocation31 + $0xec] ss:$16 sps:$4 sm:$0xff]  }
0x12c3   :  { %7633 = vmatmul.mubr.bf16.vlgmr.msra.gmra.mrb[128].mxu0 %v5461_v4  ;;  %v7919_v4 = vld [vmem:[#allocation31 + $0xe0] ss:$16 sps:$4 sm:$0xff]  }
0x12c4   :  { %5934 = vmatpush1.bf16.msra.mxu0 %v7880_v41  ;;  %5965 = vmatprep.mubr.bf16.mxu0 %v8790_v48  ;;  %v5586_v41 = vunpack.c.l.bf16 %v5585_v26 }
0x12c5   :  { %5935 = vmatprep.subr.bf16.mxu0 %v7888_v11 }
0x1396   :  { %v7634_v31 = vpop.f32.mrb[128].mxu0 }
0x1397   :  { %v5564_v1 = vpop.f32.mrb[129].mxu0  ;;  %v5573_v19 = vadd.f32 %v7634_v31, %v5481_v44 }
0x1398   :  { %v5565_v20 = vadd.f32 %v5564_v1, %v5481_v44  ;;  %v7635_v10 = vpop.f32.mrb[130].mxu0 }
0x1399   :  { %v5567_v47 = vpop.f32.mrb[131].mxu0  ;;  %v5581_v8 = vadd.f32 %v5573_v19, %v10038_v49  ;;  %v5576_v16 = vadd.f32 %v7635_v10, %v5481_v44 }
0x139a   :  { %v5579_v42 = vadd.f32 %v5565_v20, %v10028_v63  ;;  %v5568_v46 = vadd.f32 %v5567_v47, %v5481_v44  ;;  %v7883_v63 = vld [vmem:[#allocation31 + $0x20] ss:$16 sps:$4 sm:$0xff]  }
0x139b   :  { %v5582_v21 = vadd.f32 %v5576_v16, %v10040_v5  ;;  %5883 = vmatpush1.bf16.msra.mxu1 %v7883_v63 }
0x139c   :  { %v5580_v24 = vadd.f32 %v5568_v46, %v10030_v61  ;;  %5587 = vadd.xlane.f32.xlu0 %v5579_v42  ;;  %v7886_v61 = vld [vmem:[#allocation31 + $0x28] ss:$16 sps:$4 sm:$0xff]   ;;  %5884 = vmatprep.subr.bf16.mxu1 %v7891_v54 }
0x139d   :  { %5936 = vmatpush1.bf16.msra.mxu0 %v7886_v61 }
0x139e   :  { %5589 = vadd.xlane.f32.xlu1 %v5580_v24  ;;  %5937 = vmatprep.subr.bf16.mxu0 %v7894_v22  ;;  %v7926_v22 = vld [vmem:[#allocation32 + $0xc0] sm:$0xff]  }
0x139f   :  { %5885 = vmatpush1.bf16.msra.mxu1 %v7889_v43  ;;  %v7928_v43 = vld [vmem:[#allocation32 + $0x80] sm:$0xff]  }
0x13a0   :  { %5591 = vadd.xlane.f32.xlu0 %v5581_v8  ;;  %5886 = vmatprep.subr.bf16.mxu1 %v7897_v57  ;;  %v7930_v57 = vld [vmem:[#allocation32 + $0xc8] sm:$0xff]  }
0x13a1   :  { %5938 = vmatpush1.bf16.msra.mxu0 %v7892_v12  ;;  %v7929_v12 = vld [vmem:[#allocation32 + $0x48] sm:$0xff]  }
0x13a2   :  { %5939 = vmatprep.subr.bf16.mxu0 %v7900_v39  ;;  %v7931_v39 = vld [vmem:[#allocation32 + $0x8] sm:$0xff]  }
0x13a3   :  { %5887 = vmatpush1.bf16.msra.mxu1 %v7895_v6  ;;  %v7932_v6 = vld [vmem:[#allocation32 + $0x88] sm:$0xff]  }
0x13a4   :  { %5593 = vadd.xlane.f32.xlu0 %v5582_v21  ;;  %5888 = vmatprep.subr.bf16.mxu1 %v7903_v59  ;;  %v7934_v59 = vld [vmem:[#allocation32 + $0xd0] sm:$0xff]  }
0x13a5   :  { %5940 = vmatpush1.bf16.msra.mxu0 %v7898_v60  ;;  %v7933_v60 = vld [vmem:[#allocation32 + $0x50] sm:$0xff]  }
0x13a6   :  { %5941 = vmatprep.subr.bf16.mxu0 %v7906_v27  ;;  %v7935_v27 = vld [vmem:[#allocation32 + $0x10] sm:$0xff]  }
0x13a7   :  { %5889 = vmatpush1.bf16.msra.mxu1 %v7901_v7  ;;  %v7936_v7 = vld [vmem:[#allocation32 + $0x90] sm:$0xff]  }
0x13a8   :  { %5890 = vmatprep.subr.bf16.mxu1 %v7909_v58  ;;  %v7938_v58 = vld [vmem:[#allocation32 + $0xd8] sm:$0xff]  }
0x13a9   :  { %5942 = vmatpush1.bf16.msra.mxu0 %v7904_v36  ;;  %v7937_v36 = vld [vmem:[#allocation32 + $0x58] sm:$0xff]  }
0x13aa   :  { %5943 = vmatprep.subr.bf16.mxu0 %v7912_v3  ;;  %v7939_v3 = vld [vmem:[#allocation32 + $0x18] sm:$0xff]  }
0x13ab   :  { %5891 = vmatpush1.bf16.msra.mxu1 %v7907_v52  ;;  %v7940_v52 = vld [vmem:[#allocation32 + $0x98] sm:$0xff]  }
0x13ac   :  { %5892 = vmatprep.subr.bf16.mxu1 %v7915_v56  ;;  %v7943_v56 = vld [vmem:[#allocation32 + $0x20] sm:$0xff]  }
0x13ad   :  { %5944 = vmatpush1.bf16.msra.mxu0 %v7910_v37  ;;  %v7941_v37 = vld [vmem:[#allocation32 + $0x60] sm:$0xff]  }
0x13ae   :  { %5945 = vmatprep.subr.bf16.mxu0 %v7918_v55  ;;  %v7945_v55 = vld [vmem:[#allocation32 + $0x68] sm:$0xff]  }
0x13af   :  { %5893 = vmatpush1.bf16.msra.mxu1 %v7913_v15  ;;  %v7942_v15 = vld [vmem:[#allocation32 + $0xe0] sm:$0xff]  }
0x13b0   :  { %5894 = vmatprep.subr.bf16.mxu1 %v7921_v45  ;;  %v7946_v45 = vld [vmem:[#allocation32 + $0xe8] sm:$0xff]  }
0x13b1   :  { %5946 = vmatpush1.bf16.msra.mxu0 %v7916_v34  ;;  %v7944_v34 = vld [vmem:[#allocation32 + $0xa0] sm:$0xff]  }
0x13b2   :  { %5947 = vmatprep.subr.bf16.mxu0 %v7924_v9  ;;  %v7947_v9 = vld [vmem:[#allocation32 + $0x28] sm:$0xff]  }
0x13b3   :  { %5895 = vmatpush1.bf16.msra.mxu1 %v7919_v4  ;;  %v7948_v4 = vld [vmem:[#allocation32 + $0xa8] sm:$0xff]  }
0x13b5   :  { %5948 = vmatpush1.bf16.msra.mxu0 %v7922_v50  ;;  %v7949_v50 = vld [vmem:[#allocation32 + $0x70] sm:$0xff]  }
0x13b6   :  { %7064 = vmatprep.subr.bf16.mxu0 %v7926_v22 }
0x1429   :  { %v5588_v49 = vpop.xlane.xlu0 %5587 }
0x142a   :  { %v5595_v51 = vmul.f32 0.0078125, %v5588_v49 }
0x142b   :  { %v5590_v5 = vpop.xlane.xlu1 %5589 }
0x142c   :  { %v10689_v25 = vsub.f32 %v5579_v42, %v5595_v51  ;;  %v5596_v18 = vmul.f32 0.0078125, %v5590_v5  ;;  %v5642_v51 = vrot.slane %v5586_v41, %v9253_v32 }
0x142d   :  { %v5592_v2 = vpop.xlane.xlu0 %5591 }
0x142e   :  { %v10691_v40 = vsub.f32 %v5580_v24, %v5596_v18  ;;  %v5597_v33 = vmul.f32 0.0078125, %v5592_v2  ;;  %v5603_v29 = vmul.f32 %v10689_v25, %v10689_v25  ;;  %v5583_v24 = vld [vmem:[%s10912_s20] sm:$0x1] }
0x1430   :  { %v10695_v35 = vsub.f32 %v5581_v8, %v5597_v33  ;;  %5607 = vadd.xlane.f32.xlu1 %v5603_v29  ;;  %v5604_v17 = vmul.f32 %v10691_v40, %v10691_v40 }
0x1431   :  { %v5594_v53 = vpop.xlane.xlu0 %5593 }
0x1432   :  { %v5598_v38 = vmul.f32 0.0078125, %v5594_v53  ;;  %5609 = vadd.xlane.f32.xlu0 %v5604_v17  ;;  %v5605_v13 = vmul.f32 %v10695_v35, %v10695_v35 }
0x1434   :  { %v10701_v62 = vsub.f32 %v5582_v21, %v5598_v38  ;;  %5611 = vadd.xlane.f32.xlu1 %v5605_v13  ;;  %v5584_v21 = vunpack.c.l.bf16 %v5583_v24  ;;  %v5690_v24 = vsub.s32 2, %v9250_v28 }
0x1436   :  { %v5606_v14 = vmul.f32 %v10701_v62, %v10701_v62  ;;  %v5634_v23 = vrot.slane %v5584_v21, %v9253_v32  ;;  %v5698_v21 = vsub.s32 6, %v9250_v28 }
0x1438   :  { %5613 = vadd.xlane.f32.xlu0 %v5606_v14 }
0x14bd   :  { %v5608_v44 = vpop.xlane.xlu1 %5607 }
0x14be   :  { %v5615_v31 = vmul.f32 0.0078125, %v5608_v44  ;;  %v7951_v44 = vld [vmem:[#allocation32 + $0x30] sm:$0xff]  }
0x14bf   :  { %v5610_v1 = vpop.xlane.xlu0 %5609 }
0x14c0   :  { %v5619_v20 = vadd.f32 1e-05, %v5615_v31  ;;  %v5616_v10 = vmul.f32 0.0078125, %v5610_v1  ;;  %v7952_v31 = vld [vmem:[#allocation32 + $0xb0] sm:$0xff]   ;;  %v7953_v1 = vld [vmem:[#allocation32 + $0x78] sm:$0xff]  }
0x14c1   :  { %v5612_v47 = vpop.xlane.xlu1 %5611 }
0x14c2   :  { %8223 = vrsqrt.f32 %v5619_v20  ;;  %v5620_v19 = vadd.f32 1e-05, %v5616_v10  ;;  %v5617_v42 = vmul.f32 0.0078125, %v5612_v47  ;;  %v7954_v20 = vld [vmem:[#allocation32 + $0xf8] sm:$0xff]  }
0x14c3   :  { %v7955_v10 = vld [vmem:[#allocation32 + $0x38] sm:$0xff]  }
0x14c4   :  { %8225 = vrsqrt.f32 %v5620_v19  ;;  %v5621_v46 = vadd.f32 1e-05, %v5617_v42  ;;  %v7956_v47 = vld [vmem:[#allocation32 + $0xb8] sm:$0xff]   ;;  %v5681_v19 = vld [vmem:[%s10915_s23] sm:$0xf] }
0x14c5   :  { %v5614_v8 = vpop.xlane.xlu0 %5613  ;;  %v5682_v42 = vunpack.c.l.bf16 %v5681_v19 }
0x14c6   :  { %8227 = vrsqrt.f32 %v5621_v46  ;;  %v5618_v16 = vmul.f32 0.0078125, %v5614_v8  ;;  %v5694_v46 = vsub.s32 4, %v9250_v28 }
0x14c7   :  { %v5687_v8 = vrot.slane %v5682_v42, %v9253_v32 }
0x14c8   :  { %v5622_v30 = vadd.f32 1e-05, %v5618_v16  ;;  %v5695_v16 = vrot.slane %v5682_v42, %v5694_v46 }
0x14c9   :  { %v10737_v26 = vrot.slane %v5687_v8, %v9253_v32 }
0x14ca   :  { %8229 = vrsqrt.f32 %v5622_v30  ;;  %v5691_v30 = vrot.slane %v5682_v42, %v5690_v24  ;;  %v10740_v41 = vrot.slane %v5695_v16, %v9253_v32 }
0x14cc   :  { %v8224_v0 = vpop.eup %8223 }
0x14cd   :  { %v5627_v11 = vmul.f32 %v8224_v0, %v10689_v25 }
0x14ce   :  { %v8226_v63 = vpop.eup %8225 }
0x14cf   :  { %v5628_v61 = vmul.f32 %v8226_v63, %v10691_v40  ;;  %v5635_v49 = vmul.f32 %v5634_v23, %v5627_v11  ;;  %v10743_v63 = vrot.slane %v5691_v30, %v9253_v32 }
0x14d0   :  { %v8228_v5 = vpop.eup %8227 }
0x14d1   :  { %v5636_v18 = vmul.f32 %v5634_v23, %v5628_v61  ;;  %v10715_v2 = vadd.f32 %v5642_v51, %v5635_v49  ;;  %v5629_v29 = vmul.f32 %v8228_v5, %v10695_v35  ;;  %v7925_v35 = vld [vmem:[#allocation32 + $0x40] sm:$0xff]  }
0x14d2   :  { %7036 = vmatprep.subr.bf16.mxu1 %v7925_v35 }
0x14d3   :  { %v10717_v33 = vadd.f32 %v5642_v51, %v5636_v18  ;;  %v5637_v40 = vmul.f32 %v5634_v23, %v5629_v29 }
0x14d4   :  { %v8230_v17 = vpop.eup %8229 }
0x14d5   :  { %v5647_v53 = vpack.c.bf16 %v10717_v33, %v10715_v2  ;;  %v5630_v25 = vmul.f32 %v8230_v17, %v10701_v62  ;;  %v10725_v14 = vadd.f32 %v5642_v51, %v5637_v40  ;;  %v7927_v62 = vld [vmem:[#allocation32] sm:$0xff]  }
0x14d7   :  { %5913 = vmatmul.mubr.bf16.vlgmr.msra.gmra.mrb[156].mxu1 %v5647_v53  ;;  %5966 = vmatmul.mubr.bf16.vlgmr.msra.gmra.mrb[132].mxu0 %v5647_v53  ;;  %v5638_v38 = vmul.f32 %v5634_v23, %v5630_v25  ;;  %v5699_v23 = vrot.slane %v5682_v42, %v5698_v21 }
0x14d8   :  { %5922 = vmatprep.mubr.bf16.mxu1 %v8790_v48  ;;  %5975 = vmatprep.mubr.bf16.mxu0 %v8790_v48  ;;  %v7950_v48 = vld [vmem:[#allocation32 + $0xf0] sm:$0xff]  }
0x14d9   :  { %v10723_v13 = vadd.f32 %v5642_v51, %v5638_v38  ;;  %7037 = vmatpush3.bf16.msra.mxu1 %v7927_v62  ;;  %7065 = vmatpush3.bf16.msra.mxu0 %v7928_v43  ;;  %v10748_v28 = vrot.slane %v5699_v23, %v9253_v32 }
0x14da   :  { %7038 = vmatprep.subr.bf16.mxu1 %v7929_v12  ;;  %7066 = vmatprep.subr.bf16.mxu0 %v7930_v57 }
0x14db   :  { %v5648_v54 = vpack.c.bf16 %v10723_v13, %v10725_v14 }
0x14dd   :  { %7039 = vmatpush3.bf16.msra.mxu1 %v7931_v39  ;;  %7067 = vmatpush3.bf16.msra.mxu0 %v7932_v6 }
0x14de   :  { %7040 = vmatprep.subr.bf16.mxu1 %v7933_v60  ;;  %7068 = vmatprep.subr.bf16.mxu0 %v7934_v59 }
0x14df   :  { %5923 = vmatmul.mubr.bf16.gmra.mrb[160].mxu1 %v5648_v54  ;;  %5976 = vmatmul.mubr.bf16.gmra.mrb[136].mxu0 %v5648_v54 }
0x14e1   :  { %7041 = vmatpush3.bf16.msra.mxu1 %v7935_v27  ;;  %7069 = vmatpush3.bf16.msra.mxu0 %v7936_v7 }
0x14e2   :  { %7042 = vmatprep.subr.bf16.mxu1 %v7937_v36  ;;  %7070 = vmatprep.subr.bf16.mxu0 %v7938_v58 }
0x14e5   :  { %7043 = vmatpush3.bf16.msra.mxu1 %v7939_v3  ;;  %7071 = vmatpush3.bf16.msra.mxu0 %v7940_v52 }
0x14e6   :  { %7044 = vmatprep.subr.bf16.mxu1 %v7941_v37  ;;  %7072 = vmatprep.subr.bf16.mxu0 %v7942_v15 }
0x14e9   :  { %7045 = vmatpush3.bf16.msra.mxu1 %v7943_v56  ;;  %7073 = vmatpush3.bf16.msra.mxu0 %v7944_v34 }
0x14ea   :  { %7046 = vmatprep.subr.bf16.mxu1 %v7945_v55  ;;  %7074 = vmatprep.subr.bf16.mxu0 %v7946_v45 }
0x14ed   :  { %7047 = vmatpush3.bf16.msra.mxu1 %v7947_v9  ;;  %7075 = vmatpush3.bf16.msra.mxu0 %v7948_v4 }
0x14ee   :  { %7048 = vmatprep.subr.bf16.mxu1 %v7949_v50  ;;  %7076 = vmatprep.subr.bf16.mxu0 %v7950_v48 }
0x14f1   :  { %7049 = vmatpush3.bf16.msra.mxu1 %v7951_v44  ;;  %7077 = vmatpush3.bf16.msra.mxu0 %v7952_v31 }
0x14f2   :  { %7050 = vmatprep.subr.bf16.mxu1 %v7953_v1  ;;  %7078 = vmatprep.subr.bf16.mxu0 %v7954_v20 }
0x14f5   :  { %7051 = vmatpush3.bf16.msra.mxu1 %v7955_v10  ;;  %7079 = vmatpush3.bf16.msra.mxu0 %v7956_v47 }
0x15aa   :  { %v5914_v0 = vpop.f32.mrb[156].mxu1  ;;  %v5967_v11 = vpop.f32.mrb[132].mxu0 }
0x15ab   :  { %v5915_v61 = vadd.f32 %v5914_v0, %v10737_v26  ;;  %v5968_v49 = vadd.f32 %v5967_v11, %v10740_v41  ;;  %v5916_v51 = vpop.f32.mrb[157].mxu1  ;;  %v5969_v5 = vpop.f32.mrb[133].mxu0 }
0x15ac   :  { %v5918_v18 = vpop.f32.mrb[158].mxu1  ;;  %v5971_v29 = vpop.f32.mrb[134].mxu0  ;;  %v10751_v25 = vadd.f32 %v5916_v51, %v10743_v63  ;;  %v10761_v12 = vadd.f32 %v5969_v5, %v10748_v28 }
0x15ad   :  { %v6002_v17 = vmul.f32 0.044715, %v5915_v61  ;;  %v6004_v53 = vmul.f32 0.044715, %v5968_v49  ;;  %v5919_v40 = vadd.f32 %v5918_v18, %v10737_v26  ;;  %v10755_v38 = vadd.f32 %v5971_v29, %v10740_v41  ;;  %v5920_v54 = vpop.f32.mrb[159].mxu1  ;;  %v5973_v35 = vpop.f32.mrb[135].mxu0 }
0x15ae   :  { %v10758_v43 = vadd.f32 %v5920_v54, %v10743_v63  ;;  %v10764_v39 = vadd.f32 %v5973_v35, %v10748_v28  ;;  %v10766_v6 = vmul.f32 0.5, %v5915_v61  ;;  %v6003_v7 = vmul.f32 0.044715, %v10751_v25 }
0x15af   :  { %v6018_v22 = vmul.f32 %v6002_v17, %v5915_v61  ;;  %v6020_v62 = vmul.f32 %v6004_v53, %v5968_v49  ;;  %v6006_v57 = vmul.f32 0.044715, %v5919_v40  ;;  %v6008_v27 = vmul.f32 0.044715, %v10755_v38 }
0x15b0   :  { %v6007_v58 = vmul.f32 0.044715, %v10758_v43  ;;  %v10771_v15 = vmul.f32 0.5, %v5968_v49  ;;  %v6005_v9 = vmul.f32 0.044715, %v10761_v12  ;;  %v6019_v42 = vmul.f32 %v6003_v7, %v10751_v25 }
0x15b1   :  { %v6034_v60 = vmul.f32 %v6018_v22, %v5915_v61  ;;  %v6036_v59 = vmul.f32 %v6020_v62, %v5968_v49  ;;  %v6022_v36 = vmul.f32 %v6006_v57, %v5919_v40  ;;  %v6024_v34 = vmul.f32 %v6008_v27, %v10755_v38 }
0x15b2   :  { %v5924_v3 = vpop.f32.mrb[160].mxu1  ;;  %v5977_v52 = vpop.f32.mrb[136].mxu0  ;;  %v6009_v50 = vmul.f32 0.044715, %v10764_v39  ;;  %v6023_v24 = vmul.f32 %v6007_v58, %v10758_v43  ;;  %v6021_v23 = vmul.f32 %v6005_v9, %v10761_v12  ;;  %v6035_v18 = vmul.f32 %v6019_v42, %v10751_v25 }
0x15b3   :  { %v6050_v37 = vadd.f32 %v6034_v60, %v5915_v61  ;;  %v6052_v56 = vadd.f32 %v6036_v59, %v5968_v49  ;;  %v5926_v55 = vpop.f32.mrb[161].mxu1  ;;  %v5979_v45 = vpop.f32.mrb[137].mxu0  ;;  %v6038_v4 = vmul.f32 %v6022_v36, %v5919_v40  ;;  %v10777_v48 = vadd.f32 %v5924_v3, %v10737_v26 }
0x15b4   :  { %v5928_v44 = vpop.f32.mrb[162].mxu1  ;;  %v5981_v31 = vpop.f32.mrb[138].mxu0  ;;  %v6040_v10 = vmul.f32 %v6024_v34, %v10755_v38  ;;  %v10783_v8 = vadd.f32 %v5977_v52, %v10740_v41  ;;  %v10788_v30 = vadd.f32 %v5926_v55, %v10743_v63  ;;  %v6025_v11 = vmul.f32 %v6009_v50, %v10764_v39 }
0x15b5   :  { %v6066_v1 = vmul.f32 0.7978846, %v6050_v37  ;;  %v6068_v20 = vmul.f32 0.7978846, %v6052_v56  ;;  %v5930_v47 = vpop.f32.mrb[163].mxu1  ;;  %v5983_v19 = vpop.f32.mrb[139].mxu0  ;;  %v6054_v46 = vadd.f32 %v6038_v4, %v5919_v40  ;;  %v10794_v51 = vadd.f32 %v5979_v45, %v10748_v28 }
0x15b6   :  { %v6056_v16 = vadd.f32 %v6040_v10, %v10755_v38  ;;  %v6010_v21 = vmul.f32 0.044715, %v10777_v48  ;;  %v6011_v49 = vmul.f32 0.044715, %v10788_v30  ;;  %v10797_v5 = vadd.f32 %v5928_v44, %v10737_v26 }
0x15b7   :  { %8231 = vtanh.f32 %v6066_v1  ;;  %v6070_v0 = vmul.f32 0.7978846, %v6054_v46  ;;  %v6039_v29 = vmul.f32 %v6023_v24, %v10758_v43  ;;  %v10802_v17 = vadd.f32 %v5981_v31, %v10740_v41 }
0x15b8   :  { %8233 = vtanh.f32 %v6068_v20  ;;  %v6072_v61 = vmul.f32 0.7978846, %v6056_v16  ;;  %v6026_v53 = vmul.f32 %v6010_v21, %v10777_v48  ;;  %v6012_v54 = vmul.f32 0.044715, %v10783_v8 }
0x15b9   :  { %8235 = vtanh.f32 %v6070_v0  ;;  %v6013_v35 = vmul.f32 0.044715, %v10794_v51  ;;  %v5990_v22 = vmul.f32 0.5, %v5919_v40  ;;  %v6027_v62 = vmul.f32 %v6011_v49, %v10788_v30 }
0x15ba   :  { %8237 = vtanh.f32 %v6072_v61  ;;  %v10809_v26 = vadd.f32 %v5930_v47, %v10743_v63  ;;  %v10812_v57 = vadd.f32 %v5983_v19, %v10748_v28  ;;  %v6037_v60 = vmul.f32 %v6021_v23, %v10761_v12 }
0x15bb   :  { %v6041_v41 = vmul.f32 %v6025_v11, %v10764_v39  ;;  %v6014_v59 = vmul.f32 0.044715, %v10797_v5  ;;  %v6016_v27 = vmul.f32 0.044715, %v10802_v17  ;;  %v6029_v7 = vmul.f32 %v6013_v35, %v10794_v51 }
0x15bc   :  { %v6015_v40 = vmul.f32 0.044715, %v10809_v26  ;;  %v6017_v36 = vmul.f32 0.044715, %v10812_v57  ;;  %v6051_v63 = vadd.f32 %v6035_v18, %v10751_v25  ;;  %v5992_v58 = vmul.f32 0.5, %v10755_v38 }
0x15bd   :  { %v6042_v28 = vmul.f32 %v6026_v53, %v10777_v48  ;;  %v6028_v3 = vmul.f32 %v6012_v54, %v10783_v8  ;;  %v6055_v52 = vadd.f32 %v6039_v29, %v10758_v43  ;;  %v6043_v37 = vmul.f32 %v6027_v62, %v10788_v30 }
0x15be   :  { %v6031_v56 = vmul.f32 %v6015_v40, %v10809_v26  ;;  %v6033_v34 = vmul.f32 %v6017_v36, %v10812_v57  ;;  %v6067_v55 = vmul.f32 0.7978846, %v6051_v63  ;;  %v6030_v9 = vmul.f32 %v6014_v59, %v10797_v5 }
0x15bf   :  { %v6071_v4 = vmul.f32 0.7978846, %v6055_v52  ;;  %v6053_v50 = vadd.f32 %v6037_v60, %v10761_v12  ;;  %v6057_v38 = vadd.f32 %v6041_v41, %v10764_v39  ;;  %v6045_v31 = vmul.f32 %v6029_v7, %v10794_v51 }
0x15c0   :  { %v6032_v1 = vmul.f32 %v6016_v27, %v10802_v17  ;;  %v6047_v20 = vmul.f32 %v6031_v56, %v10809_v26  ;;  %8239 = vtanh.f32 %v6067_v55  ;;  %v6044_v46 = vmul.f32 %v6028_v3, %v10783_v8 }
0x15c1   :  { %v8232_v45 = vpop.eup %8231  ;;  %8241 = vtanh.f32 %v6071_v4  ;;  %v6069_v10 = vmul.f32 0.7978846, %v6053_v50  ;;  %v6073_v47 = vmul.f32 0.7978846, %v6057_v38  ;;  %v6049_v24 = vmul.f32 %v6033_v34, %v10812_v57 }
0x15c2   :  { %v8234_v44 = vpop.eup %8233  ;;  %v6098_v19 = vadd.f32 1.0, %v8232_v45  ;;  %v6059_v21 = vadd.f32 %v6043_v37, %v10788_v30  ;;  %v6046_v0 = vmul.f32 %v6030_v9, %v10797_v5  ;;  %v6063_v61 = vadd.f32 %v6047_v20, %v10809_v26 }
0x15c3   :  { %v8236_v42 = vpop.eup %8235  ;;  %v6100_v16 = vadd.f32 1.0, %v8234_v44  ;;  %8243 = vtanh.f32 %v6069_v10  ;;  %v6048_v49 = vmul.f32 %v6032_v1, %v10802_v17  ;;  %v6061_v62 = vadd.f32 %v6045_v31, %v10794_v51 }
0x15c4   :  { %v8238_v23 = vpop.eup %8237  ;;  %v6102_v11 = vadd.f32 1.0, %v8236_v42  ;;  %8245 = vtanh.f32 %v6073_v47  ;;  %v6075_v29 = vmul.f32 0.7978846, %v6059_v21  ;;  %v6114_v53 = vmul.f32 %v6098_v19, %v10766_v6 }
0x15c5   :  { %v6104_v18 = vadd.f32 1.0, %v8238_v23  ;;  %v6079_v35 = vmul.f32 0.7978846, %v6063_v61  ;;  %v6116_v60 = vmul.f32 %v6100_v16, %v10771_v15  ;;  %v6065_v59 = vadd.f32 %v6049_v24, %v10812_v57 }
0x15c6   :  { %v6118_v54 = vmul.f32 %v6102_v11, %v5990_v22  ;;  %8247 = vtanh.f32 %v6075_v29  ;;  %v6077_v7 = vmul.f32 0.7978846, %v6061_v62  ;;  %v6058_v63 = vadd.f32 %v6042_v28, %v10777_v48 }
0x15c7   :  { %v6120_v41 = vmul.f32 %v6104_v18, %v5992_v58  ;;  %8249 = vtanh.f32 %v6079_v35  ;;  %v6081_v36 = vmul.f32 0.7978846, %v6065_v59  ;;  %v6062_v3 = vadd.f32 %v6046_v0, %v10797_v5 }
0x15c8   :  { %v6130_v27 = vpack.c.bf16 %v6118_v54, %v6114_v53  ;;  %8251 = vtanh.f32 %v6077_v7  ;;  %v6060_v6 = vadd.f32 %v6044_v46, %v10783_v8  ;;  %v6074_v52 = vmul.f32 0.7978846, %v6058_v63 }
0x15c9   :  { %v6132_v40 = vpack.c.bf16 %v6120_v41, %v6116_v60  ;;  %8253 = vtanh.f32 %v6081_v36  ;;  %v6078_v15 = vmul.f32 0.7978846, %v6062_v3  ;;  %v6064_v58 = vadd.f32 %v6048_v49, %v10802_v17 }
0x15ca   :  { %v8240_v22 = vpop.eup %8239  ;;  %v5987_v56 = vmul.f32 0.5, %v10751_v25  ;;  %v6076_v55 = vmul.f32 0.7978846, %v6060_v6  ;;  %v5991_v45 = vmul.f32 0.5, %v10758_v43  ;;  %8255 = vtanh.f32 %v6074_v52 }
0x15cb   :  { %v8242_v37 = vpop.eup %8241  ;;  %v6099_v34 = vadd.f32 1.0, %v8240_v22  ;;  %v6080_v28 = vmul.f32 0.7978846, %v6064_v58  ;;  %8257 = vtanh.f32 %v6078_v15  ;;  %v5989_v1 = vmul.f32 0.5, %v10761_v12 }
0x15cc   :  { %v6103_v9 = vadd.f32 1.0, %v8242_v37  ;;  %8259 = vtanh.f32 %v6076_v55  ;;  %v5993_v20 = vmul.f32 0.5, %v10764_v39  ;;  %v5995_v24 = vmul.f32 0.5, %v10788_v30 }
0x15cd   :  { %v8244_v4 = vpop.eup %8243  ;;  %v6115_v38 = vmul.f32 %v6099_v34, %v5987_v56  ;;  %8261 = vtanh.f32 %v6080_v28  ;;  %v5999_v16 = vmul.f32 0.5, %v10809_v26  ;;  %v5997_v49 = vmul.f32 0.5, %v10794_v51 }
0x15ce   :  { %v8246_v50 = vpop.eup %8245  ;;  %v6119_v44 = vmul.f32 %v6103_v9, %v5991_v45  ;;  %v6101_v31 = vadd.f32 1.0, %v8244_v4  ;;  %v6001_v18 = vmul.f32 0.5, %v10812_v57  ;;  %v5994_v41 = vmul.f32 0.5, %v10777_v48  ;;  %v6202_v48 = vld [vmem:[%s10917_s25] sm:$0x1] }
0x15cf   :  { %v6105_v10 = vadd.f32 1.0, %v8246_v50  ;;  %v5998_v59 = vmul.f32 0.5, %v10797_v5  ;;  %v5996_v51 = vmul.f32 0.5, %v10783_v8  ;;  %v6203_v5 = vunpack.c.l.bf16 %v6202_v48 }
0x15d0   :  { %v8248_v25 = vpop.eup %8247  ;;  %v6131_v47 = vpack.c.bf16 %v6119_v44, %v6115_v38  ;;  %v6117_v43 = vmul.f32 %v6101_v31, %v5989_v1 }
0x15d1   :  { %v8250_v19 = vpop.eup %8249  ;;  %v6121_v42 = vmul.f32 %v6105_v10, %v5993_v20  ;;  %v6107_v46 = vadd.f32 1.0, %v8248_v25  ;;  %v6207_v8 = vrot.slane %v6203_v5, %v9253_v32 }
0x15d2   :  { %6432 = vmatprep.mubr.bf16.mxu1 %v6131_v47  ;;  %v6111_v21 = vadd.f32 1.0, %v8250_v19  ;;  %v8252_v23 = vpop.eup %8251 }
0x15d3   :  { %v6133_v0 = vpack.c.bf16 %v6121_v42, %v6117_v43  ;;  %6433 = vmatmul.mubr.bf16.vlgmr.msra.gmra.mrb[164].mxu1 %v6130_v27  ;;  %v8254_v12 = vpop.eup %8253  ;;  %v6123_v11 = vmul.f32 %v6107_v46, %v5995_v24  ;;  %v6109_v61 = vadd.f32 1.0, %v8252_v23 }
0x15d4   :  { %v6127_v39 = vmul.f32 %v6111_v21, %v5999_v16  ;;  %v6113_v29 = vadd.f32 1.0, %v8254_v12  ;;  %v8256_v53 = vpop.eup %8255 }
0x15d5   :  { %6481 = vmatprep.mubr.bf16.mxu0 %v6133_v0  ;;  %v8258_v30 = vpop.eup %8257  ;;  %v6125_v35 = vmul.f32 %v6109_v61, %v5997_v49  ;;  %v6106_v62 = vadd.f32 1.0, %v8256_v53 }
0x15d6   :  { %6482 = vmatmul.mubr.bf16.vlgmr.msra.gmra.mrb[140].mxu0 %v6132_v40  ;;  %v6135_v54 = vpack.c.bf16 %v6127_v39, %v6123_v11  ;;  %v6129_v26 = vmul.f32 %v6113_v29, %v6001_v18  ;;  %v8260_v60 = vpop.eup %8259  ;;  %v6110_v27 = vadd.f32 1.0, %v8258_v30  ;;  %v6000_v40 = vmul.f32 0.5, %v10802_v17 }
0x15d7   :  { %v8262_v7 = vpop.eup %8261  ;;  %v6108_v57 = vadd.f32 1.0, %v8260_v60  ;;  %v6122_v63 = vmul.f32 %v6106_v62, %v5994_v41 }
0x15d8   :  { %6440 = vmatprep.mubr.bf16.mxu1 %v6135_v54  ;;  %v6137_v36 = vpack.c.bf16 %v6129_v26, %v6125_v35  ;;  %v6126_v3 = vmul.f32 %v6110_v27, %v5998_v59  ;;  %v6112_v6 = vadd.f32 1.0, %v8262_v7 }
0x15d9   :  { %v6124_v52 = vmul.f32 %v6108_v57, %v5996_v51 }
0x15da   :  { %6489 = vmatprep.mubr.bf16.mxu0 %v6137_v36  ;;  %v6134_v22 = vpack.c.bf16 %v6126_v3, %v6122_v63  ;;  %v6128_v15 = vmul.f32 %v6112_v6, %v6000_v40 }
0x15dc   :  { %6441 = vmatmul.mubr.bf16.gmra.mrb[168].mxu1 %v6134_v22  ;;  %v6136_v58 = vpack.c.bf16 %v6128_v15, %v6124_v52  ;;  %v6502_v15 = vld [vmem:[%s10964_s17] sm:$0x1] }
0x15dd   :  { %v6503_v48 = vunpack.c.l.bf16 %v6502_v15 }
0x15de   :  { %6490 = vmatmul.mubr.bf16.gmra.mrb[144].mxu0 %v6136_v58 }
0x16a6   :  { %v7052_v37 = vpop.f32.mrb[164].mxu1 }
0x16a7   :  { %v7053_v56 = vpop.f32.mrb[165].mxu1 }
0x16a8   :  { %v7054_v34 = vadd.f32 %v7053_v56, %v7052_v37  ;;  %v7055_v55 = vpop.f32.mrb[166].mxu1  ;;  %v6504_v37 = vld [vmem:[%s10965_s16] sm:$0x1] }
0x16a9   :  { %v7080_v17 = vpop.f32.mrb[140].mxu0  ;;  %v7056_v45 = vpop.f32.mrb[167].mxu1 }
0x16aa   :  { %v6435_v9 = vadd.f32 %v7054_v34, %v6207_v8  ;;  %v7081_v28 = vpop.f32.mrb[141].mxu0  ;;  %v7057_v4 = vadd.f32 %v7056_v45, %v7055_v55  ;;  %v6505_v55 = vunpack.c.l.bf16 %v6504_v37 }
0x16ab   :  { %v7082_v50 = vadd.f32 %v7081_v28, %v7080_v17  ;;  %v7083_v38 = vpop.f32.mrb[142].mxu0  ;;  %v6553_v17 = vrot.slane %v6503_v48, %v9253_v32 }
0x16ac   :  { %v6438_v44 = vadd.f32 %v7057_v4, %v6207_v8  ;;  %v7084_v31 = vpop.f32.mrb[143].mxu0 }
0x16ad   :  { %v6484_v1 = vadd.f32 %v7082_v50, %v6435_v9  ;;  %v7085_v20 = vadd.f32 %v7084_v31, %v7083_v38 }
0x16af   :  { %v6487_v10 = vadd.f32 %v7085_v20, %v6438_v44  ;;  %v6498_v25 = vadd.f32 %v6484_v1, %v10715_v2  ;;  %v7058_v47 = vpop.f32.mrb[168].mxu1  ;;  %v6561_v44 = vrot.slane %v6505_v55, %v9253_v32 }
0x16b0   :  { %v7059_v43 = vpop.f32.mrb[169].mxu1 }
0x16b1   :  { %6506 = vadd.xlane.f32.xlu1 %v6498_v25  ;;  %v6499_v19 = vadd.f32 %v6487_v10, %v10717_v33  ;;  %v7086_v42 = vpop.f32.mrb[144].mxu0  ;;  %v7060_v46 = vadd.f32 %v7059_v43, %v7058_v47  ;;  %v7061_v24 = vpop.f32.mrb[170].mxu1 }
0x16b2   :  { %v7087_v16 = vpop.f32.mrb[145].mxu0  ;;  %v7062_v21 = vpop.f32.mrb[171].mxu1 }
0x16b3   :  { %6508 = vadd.xlane.f32.xlu0 %v6499_v19  ;;  %v6443_v23 = vadd.f32 %v7060_v46, %v6207_v8  ;;  %v7088_v0 = vadd.f32 %v7087_v16, %v7086_v42  ;;  %v7089_v12 = vpop.f32.mrb[146].mxu0  ;;  %v7063_v11 = vadd.f32 %v7062_v21, %v7061_v24 }
0x16b4   :  { %v7090_v39 = vpop.f32.mrb[147].mxu0 }
0x16b5   :  { %v6492_v61 = vadd.f32 %v7088_v0, %v6443_v23  ;;  %v6446_v49 = vadd.f32 %v7063_v11, %v6207_v8  ;;  %v7091_v18 = vadd.f32 %v7090_v39, %v7089_v12 }
0x16b7   :  { %v6495_v2 = vadd.f32 %v7091_v18, %v6446_v49  ;;  %v6500_v29 = vadd.f32 %v6492_v61, %v10725_v14 }
0x16b9   :  { %6510 = vadd.xlane.f32.xlu1 %v6500_v29  ;;  %v6501_v33 = vadd.f32 %v6495_v2, %v10723_v13 }
0x16bb   :  { %6512 = vadd.xlane.f32.xlu0 %v6501_v33 }
0x173e   :  { %v6507_v53 = vpop.xlane.xlu1 %6506 }
0x173f   :  { %v6514_v54 = vmul.f32 0.0078125, %v6507_v53 }
0x1740   :  { %v6509_v30 = vpop.xlane.xlu0 %6508 }
0x1741   :  { %v6518_v35 = vsub.f32 %v6498_v25, %v6514_v54  ;;  %v6515_v26 = vmul.f32 0.0078125, %v6509_v30 }
0x1743   :  { %v6519_v62 = vsub.f32 %v6499_v19, %v6515_v26  ;;  %v6522_v60 = vmul.f32 %v6518_v35, %v6518_v35 }
0x1745   :  { %6526 = vadd.xlane.f32.xlu1 %v6522_v60  ;;  %v6523_v41 = vmul.f32 %v6519_v62, %v6519_v62 }
0x1746   :  { %v6511_v59 = vpop.xlane.xlu1 %6510 }
0x1747   :  { %6528 = vadd.xlane.f32.xlu0 %v6523_v41  ;;  %v6516_v27 = vmul.f32 0.0078125, %v6511_v59 }
0x1748   :  { %v6513_v7 = vpop.xlane.xlu0 %6512 }
0x1749   :  { %v6520_v36 = vsub.f32 %v6500_v29, %v6516_v27  ;;  %v6517_v51 = vmul.f32 0.0078125, %v6513_v7 }
0x174b   :  { %v6521_v14 = vsub.f32 %v6501_v33, %v6517_v51  ;;  %v6524_v57 = vmul.f32 %v6520_v36, %v6520_v36 }
0x174d   :  { %6530 = vadd.xlane.f32.xlu1 %v6524_v57  ;;  %v6525_v13 = vmul.f32 %v6521_v14, %v6521_v14 }
0x174f   :  { %6532 = vadd.xlane.f32.xlu0 %v6525_v13 }
0x17d2   :  { %v6527_v63 = vpop.xlane.xlu1 %6526 }
0x17d3   :  { %v6534_v3 = vmul.f32 0.0078125, %v6527_v63 }
0x17d4   :  { %v6529_v40 = vpop.xlane.xlu0 %6528 }
0x17d5   :  { %v6538_v6 = vadd.f32 1e-05, %v6534_v3  ;;  %v6535_v22 = vmul.f32 0.0078125, %v6529_v40 }
0x17d7   :  { %8263 = vrsqrt.f32 %v6538_v6  ;;  %v6539_v52 = vadd.f32 1e-05, %v6535_v22 }
0x17d9   :  { %8265 = vrsqrt.f32 %v6539_v52 }
0x17da   :  { %v6531_v58 = vpop.xlane.xlu1 %6530 }
0x17db   :  { %v6536_v5 = vmul.f32 0.0078125, %v6531_v58 }
0x17dc   :  { %v6533_v8 = vpop.xlane.xlu0 %6532 }
0x17dd   :  { %v6540_v56 = vadd.f32 1e-05, %v6536_v5  ;;  %v6537_v34 = vmul.f32 0.0078125, %v6533_v8 }
0x17df   :  { %8267 = vrsqrt.f32 %v6540_v56  ;;  %v6541_v9 = vadd.f32 1e-05, %v6537_v34 }
0x17e1   :  { %v8264_v45 = vpop.eup %8263  ;;  %8269 = vrsqrt.f32 %v6541_v9 }
0x17e2   :  { %v6546_v28 = vmul.f32 %v8264_v45, %v6518_v35 }
0x17e3   :  { %v8266_v4 = vpop.eup %8265 }
0x17e4   :  { %v6547_v50 = vmul.f32 %v8266_v4, %v6519_v62  ;;  %v6554_v38 = vmul.f32 %v6553_v17, %v6546_v28 }
0x17e6   :  { %v6555_v31 = vmul.f32 %v6553_v17, %v6547_v50  ;;  %v6562_v1 = vadd.f32 %v6561_v44, %v6554_v38 }
0x17e8   :  { %v6563_v20 = vadd.f32 %v6561_v44, %v6555_v31 }
0x17e9   :  { %v8268_v25 = vpop.eup %8267 }
0x17ea   :  { %v6820_v10 = vpack.c.bf16 %v6563_v20, %v6562_v1  ;;  %v6548_v47 = vmul.f32 %v8268_v25, %v6520_v36 }
0x17eb   :  { %v8270_v19 = vpop.eup %8269 }
0x17ec   :  { %6821 = vst [vmem:[#allocation34] sm:$0xff] %v6820_v10   ;;  %v6549_v43 = vmul.f32 %v8270_v19, %v6521_v14  ;;  %v6556_v42 = vmul.f32 %v6553_v17, %v6548_v47 }
0x17ee   :  { %v6557_v46 = vmul.f32 %v6553_v17, %v6549_v43  ;;  %v6564_v24 = vadd.f32 %v6561_v44, %v6556_v42 }
0x17f0   :  { %v6565_v16 = vadd.f32 %v6561_v44, %v6557_v46 }
0x17f2   :  { %v6825_v21 = vpack.c.bf16 %v6565_v16, %v6564_v24 }
0x17f4   :  { %6827 = vst [vmem:[#allocation34 + $0x8] sm:$0xff] %v6825_v21  }
0x17f5   :  { %8724 = shalt.err (!%p8721_p10)
}
0x17f6   :  { %s10966_s27 = sld [smem:[#allocation62_spill]] }
0x17fc   :  { %s8725_s9 = scalar_lea.hbm %s10966_s27, 256 }
0x17fd   :  { %p8726_p11 = scmp.ne.s32.totalorder %s10966_s27, %s8725_s9  ;;  %p8729_p12 = scmp.lt.u32.totalorder %s8725_s9, %s10966_s27 }
0x17ff   :  { %p8731_p13 = pnand %p8729_p12, %p8726_p11 }
0x1801   :  { %8734 = shalt.err (!%p8731_p13)
}
0x1802   :  { %6597 = dma.vmem_to_hbm [thread:$0]  %s6592_s28, 256, %s10966_s27, [#allocation4], %s8761_s1, %s8761_s1, %s8762_s4  }
0x1803   :  { %8757 = dma.done.wait [#allocation4], 256  }
0x1804   :  { %8758 = vsyncadd [#allocation4], 4294967040 }
0x1805   :  { %6601 = vsyncpa [#allocation3], 1 }
0x1806   :  { %6602 = vsyncpa [#allocation6], 1 }
0x1807   :  { %6603 = vsyncpa [#allocation9], 1 }
0x1808   :  { %6604 = vsyncpa [#allocation12], 1 }
0x1809   :  { %6605 = vsyncpa [#allocation15], 1 }
0x180a   :  { %6606 = vsyncpa [#allocation18], 1 }
0x180b   :  { %6607 = vsyncpa [#allocation21], 1 }
0x180c   :  { %6608 = vsyncpa [#allocation24], 1 }
0x180d   :  { %6609 = vsyncpa [#allocation27], 1 }
0x180e   :  { %6610 = vsyncpa [#allocation30], 1 }
0x180f   :  { %6611 = vsyncpa [#allocation33], 1 }
0x1810   :  { %6612 = vsyncpa [#allocation4], 1 }

</bundles_post_ra>
